<compile_context>
chip_gen: v7x
topology: tpu7x:2x2x1
jax: 0.10.0
libtpu: 0.0.40
codegen_flags: <defaults>
</compile_context>

<pallas_src>
import math
import jax
import jax.numpy as jnp
from jax import lax
from jax.experimental import pallas as pl
from jax.experimental.pallas import tpu as pltpu

# Small but structurally faithful hyper-parameters (module defaults are
# input_dim=128, model_dim=256, heads=8, layers=6, max_length=1000).
INPUT_DIM = 32
MODEL_DIM = 64
NUM_HEADS = 4
NUM_LAYERS = 2
MAX_LENGTH = 64
HEAD_DIM = MODEL_DIM // NUM_HEADS
FF_DIM = 4 * MODEL_DIM


def _layer_norm(x, w, b, eps=1e-5):
    mu = jnp.mean(x, axis=-1, keepdims=True)
    var = jnp.mean((x - mu) ** 2, axis=-1, keepdims=True)
    return (x - mu) * lax.rsqrt(var + eps) * w + b


def make_kernel(bt, seq_len):
    """Kernel closure over the batch fold (bt) and sequence length."""
    D = MODEL_DIM
    H = NUM_HEADS
    dh = HEAD_DIM
    S = seq_len
    M = bt * S
    f32, bf16 = jnp.float32, jnp.bfloat16

    def kernel(x_ref, embb_ref, wemb_ref, wqkv_ref, bqkv_ref, wo_ref, bo_ref,
               cross_ref, ln1w_ref, ln1b_ref, ln2w_ref, ln2b_ref,
               ln3w_ref, ln3b_ref, w1_ref, b1_ref, w2_ref, b2_ref,
               wout_ref, bout_ref, o_ref):
        # In-kernel causal mask (S, S): 0 where key <= query, -1e30 otherwise.
        # Added on the f32 score accumulator only (never in bf16).
        row = lax.broadcasted_iota(jnp.int32, (S, S), 0)
        col = lax.broadcasted_iota(jnp.int32, (S, S), 1)
        mask_bias = jnp.where(col <= row, 0.0, -1e30).astype(f32)      # (S, S)

        # Input embedding (bf16 MXU feed, f32 accumulate) + fused (pos + bias)
        x = x_ref[...].astype(bf16)                                     # (M, Din)
        h = jnp.dot(x, wemb_ref[...], preferred_element_type=f32)      # (M, D)
        h = (h.reshape(bt, S, D) + embb_ref[...][None]).reshape(M, D)

        for l in range(NUM_LAYERS):
            # ----- causal multi-head self-attention (post-norm residual) ----
            # single fused QKV matmul over the folded rows; q columns are
            # pre-scaled by 1/sqrt(dh) in the wrapper.
            qkv = jnp.dot(h.astype(bf16), wqkv_ref[l],
                          preferred_element_type=f32) + bqkv_ref[l]     # (M, 3D)
            qkv3 = qkv.reshape(bt, S, 3 * D)

            sa = None
            for hd in range(H):
                qh = qkv3[:, :, hd * dh:(hd + 1) * dh].astype(bf16)
                kh = qkv3[:, :, D + hd * dh:D + (hd + 1) * dh].astype(bf16)
                vh = qkv3[:, :, 2 * D + hd * dh:2 * D + (hd + 1) * dh].astype(bf16)
                # bt-batched S x S scores: no wasted cross-batch FLOPs.
                s = jnp.einsum('bqd,bkd->bqk', qh, kh,
                               preferred_element_type=f32) + mask_bias[None]
                m = jnp.max(s, axis=-1, keepdims=True)
                e = jnp.exp(s - m)
                p = e * pl.reciprocal(jnp.sum(e, axis=-1, keepdims=True),
                                      approx=True)
                ctx = jnp.einsum('bqk,bkd->bqd', p.astype(bf16), vh,
                                 preferred_element_type=f32)            # (bt,S,dh)
                # concat folded into the out-proj: per-head slice of wo.
                part = jnp.einsum('bqd,do->bqo', ctx.astype(bf16),
                                  wo_ref[l, hd],
                                  preferred_element_type=f32)           # (bt,S,D)
                sa = part if sa is None else sa + part
            sa = sa.reshape(M, D) + bo_ref[l]
            h = _layer_norm(h + sa, ln1w_ref[l], ln1b_ref[l])

            # ----- cross-attention with all-zero memory -----
            # K/V are constants (their in_proj biases), softmax is uniform, so
            # the attention output reduces exactly to out_proj(b_v) + b_o per
            # layer (precomputed in the wrapper; valid for eval + zero memory).
            h = _layer_norm(h + cross_ref[l], ln2w_ref[l], ln2b_ref[l])

            # ----- feed-forward (ReLU) -----
            ff = jnp.dot(h.astype(bf16), w1_ref[l],
                         preferred_element_type=f32) + b1_ref[l]
            ff = jnp.maximum(ff, 0.0).astype(bf16)
            ff = jnp.dot(ff, w2_ref[l], preferred_element_type=f32) + b2_ref[l]
            h = _layer_norm(h + ff, ln3w_ref[l], ln3b_ref[l])

        # lane-dense padded output projection + sigmoid
        out = jnp.dot(h.astype(bf16), wout_ref[...],
                      preferred_element_type=f32) + bout_ref[...]
        o_ref[...] = jax.nn.sigmoid(out)

    return kernel


def _prep_params(params, seq_len, out_pad):
    """Wrapper-side param massaging: (in, out)-layout bf16 weights, q-scale
    folded in, (S, D) pos+embedding-bias constant, per-head out_proj slabs,
    zero-memory cross-attn collapsed to a per-layer constant, lane-dense
    padded output projection."""
    (pe, wemb, bemb, wqkv, bqkv, wo, bo,
     cross_bv, cross_wo, cross_bo,
     ln1w, ln1b, ln2w, ln2b, ln3w, ln3b,
     w1, b1, w2, b2, wout, bout) = params
    D = MODEL_DIM
    H = NUM_HEADS
    dh = HEAD_DIM
    f32, bf16 = jnp.float32, jnp.bfloat16
    scale = 1.0 / math.sqrt(dh)

    # fused positional encoding + embedding bias (broadcast over batch in-kernel)
    embb = (pe[:seq_len] + bemb).astype(f32)                            # (S, D)

    # pre-transposed (in, out) weights in bf16; q output columns pre-scaled
    qcol = jnp.concatenate([jnp.full((D,), scale, f32),
                            jnp.ones((2 * D,), f32)])
    wqkv_t = (jnp.swapaxes(wqkv, 1, 2) * qcol).astype(bf16)             # (L, D, 3D)
    bqkv_s = (bqkv * qcol).astype(f32)                                  # (L, 3D)
    wemb_t = wemb.T.astype(bf16)                                        # (Din, D)
    # out_proj split per head so the head concat folds into the projection
    wo_h = jnp.swapaxes(wo, 1, 2).reshape(NUM_LAYERS, H, dh, D).astype(bf16)
    w1_t = jnp.swapaxes(w1, 1, 2).astype(bf16)                          # (L, D, FF)
    w2_t = jnp.swapaxes(w2, 1, 2).astype(bf16)                          # (L, FF, D)

    # lane-dense padded output projection (zeros beyond input_dim)
    din = wout.shape[0]
    wout_p = jnp.zeros((D, out_pad), bf16).at[:, :din].set(wout.T.astype(bf16))
    bout_p = jnp.zeros((1, out_pad), f32).at[:, :din].set(bout.astype(f32))

    # cross-attention with zero memory == out_proj(b_v) + b_o per layer
    cross = (jnp.einsum('ld,lod->lo', cross_bv, cross_wo)
             + cross_bo).astype(f32)                                    # (L, D)

    return (embb, wemb_t, wqkv_t, bqkv_s, wo_h, bo.astype(f32), cross,
            ln1w, ln1b, ln2w, ln2b, ln3w, ln3b,
            w1_t, b1.astype(f32), w2_t, b2.astype(f32), wout_p, bout_p)


def decoder_forward(x, params, target_rows=256):
    B, S, Din = x.shape

    # Batch fold: largest bt dividing B with bt*S <~ target_rows, but capped at
    # B//2 so the ("parallel",) grid has >= 2 steps for v7x's two TensorCores.
    cap = B // 2 if B >= 2 else 1
    bt = max(1, min(cap, max(1, target_rows // S), B))
    while bt > 1 and B % bt:
        bt -= 1
    if bt < B and (bt * S) % 8 != 0:
        bt = B                      # full fold: block == full array dims (always legal)
    M = bt * S
    grid = (B // bt,)

    # pad output features to a lane-dense multiple of 128 (Din=128 at prod)
    out_pad = Din if Din % 128 == 0 else ((Din + 127) // 128) * 128

    weights = _prep_params(params, S, out_pad)

    # bf16 input feed when the sublane tile allows it (halves input DMA; v5e win)
    x_dtype = jnp.bfloat16 if (bt == B or M % 16 == 0) else jnp.float32
    x2 = x.reshape(B * S, Din).astype(x_dtype)

    kernel = make_kernel(bt, S)

    def build(single_buffer_weights):
        def full(a):
            nd = a.ndim
            if single_buffer_weights:
                # constant-index blocks never change across the grid: one buffer
                return pl.BlockSpec(a.shape, lambda i, _nd=nd: (0,) * _nd,
                                    pipeline_mode=pl.Buffered(1))
            return pl.BlockSpec(a.shape, lambda i, _nd=nd: (0,) * _nd)

        in_specs = [pl.BlockSpec((M, Din), lambda i: (i, 0))] + \
                   [full(a) for a in weights]
        out_spec = pl.BlockSpec((M, out_pad), lambda i: (i, 0))

        # generation-aware VMEM budget: resident weights (+double buffer if
        # requested) + f32 activation working set, capped by physical VMEM.
        weight_bytes = sum(int(a.size) * a.dtype.itemsize for a in weights)
        act_bytes = (M * (3 * MODEL_DIM + FF_DIM + 6 * MODEL_DIM) * 4
                     + 2 * bt * NUM_HEADS * S * S * 4)
        try:
            info = pltpu.get_tpu_info()
            cap_bytes = int(getattr(info, "vmem_capacity_bytes", 64 << 20))
        except Exception:
            cap_bytes = 64 << 20
        budget = ((1 if single_buffer_weights else 2) * weight_bytes
                  + 4 * act_bytes + (8 << 20))
        vmem_limit = max(32 << 20, budget)
        vmem_limit = min(vmem_limit, 100 << 20, max(cap_bytes - (8 << 20), 32 << 20))

        return pl.pallas_call(
            kernel,
            out_shape=jax.ShapeDtypeStruct((B * S, out_pad), jnp.float32),
            grid=grid,
            in_specs=in_specs,
            out_specs=out_spec,
            compiler_params=pltpu.CompilerParams(
                dimension_semantics=("parallel",),
                vmem_limit_bytes=int(vmem_limit)),
        )

    try:
        out = build(True)(x2, *weights)
    except Exception:
        # fallback if this Pallas build rejects pipeline_mode=pl.Buffered(1)
        out = build(False)(x2, *weights)

    return out[:, :Din].reshape(B, S, Din)


def init_params(key):
    keys = iter(jax.random.split(key, 24))

    def nrm(shape, s=0.05):
        return (s * jax.random.normal(next(keys), shape)).astype(jnp.float32)

    # sinusoidal positional encoding, identical to the torch reference
    position = jnp.arange(MAX_LENGTH, dtype=jnp.float32)[:, None]
    div_term = jnp.exp(jnp.arange(0, MODEL_DIM, 2, dtype=jnp.float32)
                       * (-math.log(10000.0) / MODEL_DIM))
    pe = jnp.zeros((MAX_LENGTH, MODEL_DIM), jnp.float32)
    pe = pe.at[:, 0::2].set(jnp.sin(position * div_term))
    pe = pe.at[:, 1::2].set(jnp.cos(position * div_term))

    L, D = NUM_LAYERS, MODEL_DIM
    wemb = nrm((D, INPUT_DIM))
    bemb = nrm((1, D))

    wqkv = nrm((L, 3 * D, D))          # self-attn in_proj_weight (out, in)
    bqkv = nrm((L, 3 * D))             # self-attn in_proj_bias
    wo = nrm((L, D, D))                # self-attn out_proj.weight (out, in)
    bo = nrm((L, D))                   # self-attn out_proj.bias

    # cross-attention params; only b_v and out_proj matter with zero memory
    cross_bv = nrm((L, D))
    cross_wo = nrm((L, D, D))
    cross_bo = nrm((L, D))

    ln1w = jnp.ones((L, D), jnp.float32)
    ln1b = jnp.zeros((L, D), jnp.float32)
    ln2w = jnp.ones((L, D), jnp.float32)
    ln2b = jnp.zeros((L, D), jnp.float32)
    ln3w = jnp.ones((L, D), jnp.float32)
    ln3b = jnp.zeros((L, D), jnp.float32)

    w1 = nrm((L, FF_DIM, D))
    b1 = nrm((L, FF_DIM))
    w2 = nrm((L, D, FF_DIM))
    b2 = nrm((L, D))

    wout = nrm((INPUT_DIM, D))
    bout = nrm((1, INPUT_DIM))

    return (pe, wemb, bemb, wqkv, bqkv, wo, bo,
            cross_bv, cross_wo, cross_bo,
            ln1w, ln1b, ln2w, ln2b, ln3w, ln3b,
            w1, b1, w2, b2, wout, bout)


if __name__ == "__main__":
    key = jax.random.PRNGKey(0)
    pkey, xkey = jax.random.split(key)
    params = init_params(pkey)

    B, S = 2, 16   # S multiple of 16 -> bf16 input feed, bt=1 -> grid of 2
    x = jax.random.normal(xkey, (B, S, INPUT_DIM), dtype=jnp.float32)

    out = decoder_forward(x, params)
    out = jax.block_until_ready(out)
    assert out.shape == (B, S, INPUT_DIM)
    assert bool(jnp.all(jnp.isfinite(out)))
    assert bool(jnp.all((out >= 0.0) & (out <= 1.0)))   # sigmoid output range
    print("KERNEL_OK")
</pallas_src>

<mosaic_0001>
module attributes {stable_mosaic.version = 11 : i64} {
  func.func @kernel(%arg0: i32, %arg1: memref<16x32xbf16, #tpu.memory_space<vmem>>, %arg2: memref<16x64xf32, #tpu.memory_space<vmem>>, %arg3: memref<32x64xbf16, #tpu.memory_space<vmem>>, %arg4: memref<2x64x192xbf16, #tpu.memory_space<vmem>>, %arg5: memref<2x192xf32, #tpu.memory_space<vmem>>, %arg6: memref<2x4x16x64xbf16, #tpu.memory_space<vmem>>, %arg7: memref<2x64xf32, #tpu.memory_space<vmem>>, %arg8: memref<2x64xf32, #tpu.memory_space<vmem>>, %arg9: memref<2x64xf32, #tpu.memory_space<vmem>>, %arg10: memref<2x64xf32, #tpu.memory_space<vmem>>, %arg11: memref<2x64xf32, #tpu.memory_space<vmem>>, %arg12: memref<2x64xf32, #tpu.memory_space<vmem>>, %arg13: memref<2x64xf32, #tpu.memory_space<vmem>>, %arg14: memref<2x64xf32, #tpu.memory_space<vmem>>, %arg15: memref<2x64x256xbf16, #tpu.memory_space<vmem>>, %arg16: memref<2x256xf32, #tpu.memory_space<vmem>>, %arg17: memref<2x256x64xbf16, #tpu.memory_space<vmem>>, %arg18: memref<2x64xf32, #tpu.memory_space<vmem>>, %arg19: memref<64x128xbf16, #tpu.memory_space<vmem>>, %arg20: memref<1x128xf32, #tpu.memory_space<vmem>>, %arg21: memref<16x128xf32, #tpu.memory_space<vmem>>) attributes {dimension_semantics = [#tpu.dimension_semantics<parallel>], iteration_bounds = array<i64: 2>, scalar_prefetch = 0 : i64, scratch_operands = 0 : i64, tpu.core_type = #tpu.core_type<tc>, window_params = [{transform_indices = @transform_0, window_bounds = array<i64: 16, 32>}, {pipeline_mode = #tpu.pipeline_mode<synchronous>, transform_indices = @transform_1, window_bounds = array<i64: 16, 64>}, {pipeline_mode = #tpu.pipeline_mode<synchronous>, transform_indices = @transform_2, window_bounds = array<i64: 32, 64>}, {pipeline_mode = #tpu.pipeline_mode<synchronous>, transform_indices = @transform_3, window_bounds = array<i64: 2, 64, 192>}, {pipeline_mode = #tpu.pipeline_mode<synchronous>, transform_indices = @transform_4, window_bounds = array<i64: 2, 192>}, {pipeline_mode = #tpu.pipeline_mode<synchronous>, transform_indices = @transform_5, window_bounds = array<i64: 2, 4, 16, 64>}, {pipeline_mode = #tpu.pipeline_mode<synchronous>, transform_indices = @transform_6, window_bounds = array<i64: 2, 64>}, {pipeline_mode = #tpu.pipeline_mode<synchronous>, transform_indices = @transform_7, window_bounds = array<i64: 2, 64>}, {pipeline_mode = #tpu.pipeline_mode<synchronous>, transform_indices = @transform_8, window_bounds = array<i64: 2, 64>}, {pipeline_mode = #tpu.pipeline_mode<synchronous>, transform_indices = @transform_9, window_bounds = array<i64: 2, 64>}, {pipeline_mode = #tpu.pipeline_mode<synchronous>, transform_indices = @transform_10, window_bounds = array<i64: 2, 64>}, {pipeline_mode = #tpu.pipeline_mode<synchronous>, transform_indices = @transform_11, window_bounds = array<i64: 2, 64>}, {pipeline_mode = #tpu.pipeline_mode<synchronous>, transform_indices = @transform_12, window_bounds = array<i64: 2, 64>}, {pipeline_mode = #tpu.pipeline_mode<synchronous>, transform_indices = @transform_13, window_bounds = array<i64: 2, 64>}, {pipeline_mode = #tpu.pipeline_mode<synchronous>, transform_indices = @transform_14, window_bounds = array<i64: 2, 64, 256>}, {pipeline_mode = #tpu.pipeline_mode<synchronous>, transform_indices = @transform_15, window_bounds = array<i64: 2, 256>}, {pipeline_mode = #tpu.pipeline_mode<synchronous>, transform_indices = @transform_16, window_bounds = array<i64: 2, 256, 64>}, {pipeline_mode = #tpu.pipeline_mode<synchronous>, transform_indices = @transform_17, window_bounds = array<i64: 2, 64>}, {pipeline_mode = #tpu.pipeline_mode<synchronous>, transform_indices = @transform_18, window_bounds = array<i64: 64, 128>}, {pipeline_mode = #tpu.pipeline_mode<synchronous>, transform_indices = @transform_19, window_bounds = array<i64: 1, 128>}, {transform_indices = @transform_20, window_bounds = array<i64: 16, 128>}]} {
    %0 = tpu.iota {dimensions = array<i32: 0>} : vector<16x16xi32>
    %1 = tpu.iota {dimensions = array<i32: 1>} : vector<16x16xi32>
    %2 = arith.cmpi sle, %1, %0 : vector<16x16xi32>
    %cst = arith.constant 0.000000e+00 : f32
    %cst_0 = arith.constant -1.000000e+30 : f32
    %3 = vector.broadcast %cst : f32 to vector<16x16xf32>
    %4 = vector.broadcast %cst_0 : f32 to vector<16x16xf32>
    %5 = arith.select %2, %3, %4 : vector<16x16xi1>, vector<16x16xf32>
    %c0 = arith.constant 0 : index
    %c0_1 = arith.constant 0 : index
    %6 = vector.load %arg1[%c0, %c0_1] : memref<16x32xbf16, #tpu.memory_space<vmem>>, vector<16x32xbf16>
    %c0_2 = arith.constant 0 : index
    %c0_3 = arith.constant 0 : index
    %7 = vector.load %arg3[%c0_2, %c0_3] : memref<32x64xbf16, #tpu.memory_space<vmem>>, vector<32x64xbf16>
    %cst_4 = arith.constant dense<0.000000e+00> : vector<16x64xf32>
    %8 = tpu.matmul %6, %7, %cst_4 {dimension_numbers = #tpu.dot_dimension_numbers<[1], [0], [0], [1], [0, 0, 1, 1], [], []>} : vector<16x32xbf16>, vector<32x64xbf16>, vector<16x64xf32> -> vector<16x64xf32>
    %9 = vector.shape_cast %8 : vector<16x64xf32> to vector<1x16x64xf32>
    %c0_5 = arith.constant 0 : index
    %c0_6 = arith.constant 0 : index
    %10 = vector.load %arg2[%c0_5, %c0_6] : memref<16x64xf32, #tpu.memory_space<vmem>>, vector<16x64xf32>
    %11 = vector.shape_cast %10 : vector<16x64xf32> to vector<1x16x64xf32>
    %12 = arith.addf %9, %11 : vector<1x16x64xf32>
    %13 = vector.shape_cast %12 : vector<1x16x64xf32> to vector<16x64xf32>
    %14 = arith.truncf %13 : vector<16x64xf32> to vector<16x64xbf16>
    %c0_7 = arith.constant 0 : index
    %c0_8 = arith.constant 0 : index
    %c0_9 = arith.constant 0 : index
    %15 = vector.load %arg4[%c0_7, %c0_8, %c0_9] : memref<2x64x192xbf16, #tpu.memory_space<vmem>>, vector<1x64x192xbf16>
    %16 = vector.shape_cast %15 : vector<1x64x192xbf16> to vector<64x192xbf16>
    %cst_10 = arith.constant dense<0.000000e+00> : vector<16x192xf32>
    %17 = tpu.matmul %14, %16, %cst_10 {dimension_numbers = #tpu.dot_dimension_numbers<[1], [0], [0], [1], [0, 0, 1, 1], [], []>} : vector<16x64xbf16>, vector<64x192xbf16>, vector<16x192xf32> -> vector<16x192xf32>
    %c0_11 = arith.constant 0 : index
    %c0_12 = arith.constant 0 : index
    %18 = vector.load %arg5[%c0_11, %c0_12] : memref<2x192xf32, #tpu.memory_space<vmem>>, vector<1x192xf32>
    %19 = vector.shape_cast %18 : vector<1x192xf32> to vector<192xf32>
    %20 = vector.shape_cast %19 : vector<192xf32> to vector<1x192xf32>
    %21 = vector.broadcast %20 : vector<1x192xf32> to vector<16x192xf32>
    %22 = arith.addf %17, %21 : vector<16x192xf32>
    %23 = vector.shape_cast %22 : vector<16x192xf32> to vector<1x16x192xf32>
    %24 = vector.extract_strided_slice %23 {offsets = [0, 0, 0], sizes = [1, 16, 16], strides = [1, 1, 1]} : vector<1x16x192xf32> to vector<1x16x16xf32>
    %25 = arith.truncf %24 : vector<1x16x16xf32> to vector<1x16x16xbf16>
    %26 = vector.extract_strided_slice %23 {offsets = [0, 0, 64], sizes = [1, 16, 16], strides = [1, 1, 1]} : vector<1x16x192xf32> to vector<1x16x16xf32>
    %27 = arith.truncf %26 : vector<1x16x16xf32> to vector<1x16x16xbf16>
    %28 = vector.extract_strided_slice %23 {offsets = [0, 0, 128], sizes = [1, 16, 16], strides = [1, 1, 1]} : vector<1x16x192xf32> to vector<1x16x16xf32>
    %29 = arith.truncf %28 : vector<1x16x16xf32> to vector<1x16x16xbf16>
    "tpu.trace_start"() <{level = 10 : i32, message = "bqd,bkd->bqk"}> : () -> ()
    %cst_13 = arith.constant dense<0.000000e+00> : vector<1x16x16xf32>
    %30 = tpu.matmul %25, %27, %cst_13 {dimension_numbers = #tpu.dot_dimension_numbers<[2], [2], [1], [1], [0, 0, 0, 1, 1, 1], [0], [0]>} : vector<1x16x16xbf16>, vector<1x16x16xbf16>, vector<1x16x16xf32> -> vector<1x16x16xf32>
    "tpu.trace_stop"() : () -> ()
    %31 = vector.shape_cast %5 : vector<16x16xf32> to vector<1x16x16xf32>
    %32 = arith.addf %30, %31 : vector<1x16x16xf32>
    %cst_14 = arith.constant dense<0xFF800000> : vector<1x16xf32>
    %33 = vector.multi_reduction <maximumf>, %32, %cst_14 [2] : vector<1x16x16xf32> to vector<1x16xf32>
    %34 = vector.shape_cast %33 : vector<1x16xf32> to vector<1x16x1xf32>
    %35 = vector.broadcast %34 : vector<1x16x1xf32> to vector<1x16x16xf32>
    %36 = arith.subf %32, %35 : vector<1x16x16xf32>
    %37 = math.exp %36 : vector<1x16x16xf32>
    %cst_15 = arith.constant dense<0.000000e+00> : vector<1x16xf32>
    %38 = vector.multi_reduction <add>, %37, %cst_15 [2] : vector<1x16x16xf32> to vector<1x16xf32>
    %39 = vector.shape_cast %38 : vector<1x16xf32> to vector<1x16x1xf32>
    %40 = tpu.reciprocal %39 {approx = true} : vector<1x16x1xf32> -> vector<1x16x1xf32>
    %41 = vector.broadcast %40 : vector<1x16x1xf32> to vector<1x16x16xf32>
    %42 = arith.mulf %37, %41 : vector<1x16x16xf32>
    %43 = arith.truncf %42 : vector<1x16x16xf32> to vector<1x16x16xbf16>
    "tpu.trace_start"() <{level = 10 : i32, message = "bqk,bkd->bqd"}> : () -> ()
    %cst_16 = arith.constant dense<0.000000e+00> : vector<1x16x16xf32>
    %44 = tpu.matmul %43, %29, %cst_16 {dimension_numbers = #tpu.dot_dimension_numbers<[2], [1], [1], [2], [0, 0, 0, 1, 1, 2], [0], [0]>} : vector<1x16x16xbf16>, vector<1x16x16xbf16>, vector<1x16x16xf32> -> vector<1x16x16xf32>
    "tpu.trace_stop"() : () -> ()
    %45 = arith.truncf %44 : vector<1x16x16xf32> to vector<1x16x16xbf16>
    %c0_17 = arith.constant 0 : index
    %c0_18 = arith.constant 0 : index
    %c0_19 = arith.constant 0 : index
    %c0_20 = arith.constant 0 : index
    %46 = vector.load %arg6[%c0_17, %c0_18, %c0_19, %c0_20] : memref<2x4x16x64xbf16, #tpu.memory_space<vmem>>, vector<1x1x16x64xbf16>
    %47 = vector.shape_cast %46 : vector<1x1x16x64xbf16> to vector<16x64xbf16>
    "tpu.trace_start"() <{level = 10 : i32, message = "bqd,do->bqo"}> : () -> ()
    %cst_21 = arith.constant dense<0.000000e+00> : vector<1x16x64xf32>
    %48 = tpu.matmul %45, %47, %cst_21 {dimension_numbers = #tpu.dot_dimension_numbers<[2], [0], [0, 1], [1], [0, 0, 0, 1, 1, 1], [], []>} : vector<1x16x16xbf16>, vector<16x64xbf16>, vector<1x16x64xf32> -> vector<1x16x64xf32>
    "tpu.trace_stop"() : () -> ()
    %49 = vector.extract_strided_slice %23 {offsets = [0, 0, 16], sizes = [1, 16, 16], strides = [1, 1, 1]} : vector<1x16x192xf32> to vector<1x16x16xf32>
    %50 = arith.truncf %49 : vector<1x16x16xf32> to vector<1x16x16xbf16>
    %51 = vector.extract_strided_slice %23 {offsets = [0, 0, 80], sizes = [1, 16, 16], strides = [1, 1, 1]} : vector<1x16x192xf32> to vector<1x16x16xf32>
    %52 = arith.truncf %51 : vector<1x16x16xf32> to vector<1x16x16xbf16>
    %53 = vector.extract_strided_slice %23 {offsets = [0, 0, 144], sizes = [1, 16, 16], strides = [1, 1, 1]} : vector<1x16x192xf32> to vector<1x16x16xf32>
    %54 = arith.truncf %53 : vector<1x16x16xf32> to vector<1x16x16xbf16>
    "tpu.trace_start"() <{level = 10 : i32, message = "bqd,bkd->bqk"}> : () -> ()
    %cst_22 = arith.constant dense<0.000000e+00> : vector<1x16x16xf32>
    %55 = tpu.matmul %50, %52, %cst_22 {dimension_numbers = #tpu.dot_dimension_numbers<[2], [2], [1], [1], [0, 0, 0, 1, 1, 1], [0], [0]>} : vector<1x16x16xbf16>, vector<1x16x16xbf16>, vector<1x16x16xf32> -> vector<1x16x16xf32>
    "tpu.trace_stop"() : () -> ()
    %56 = vector.shape_cast %5 : vector<16x16xf32> to vector<1x16x16xf32>
    %57 = arith.addf %55, %56 : vector<1x16x16xf32>
    %cst_23 = arith.constant dense<0xFF800000> : vector<1x16xf32>
    %58 = vector.multi_reduction <maximumf>, %57, %cst_23 [2] : vector<1x16x16xf32> to vector<1x16xf32>
    %59 = vector.shape_cast %58 : vector<1x16xf32> to vector<1x16x1xf32>
    %60 = vector.broadcast %59 : vector<1x16x1xf32> to vector<1x16x16xf32>
    %61 = arith.subf %57, %60 : vector<1x16x16xf32>
    %62 = math.exp %61 : vector<1x16x16xf32>
    %cst_24 = arith.constant dense<0.000000e+00> : vector<1x16xf32>
    %63 = vector.multi_reduction <add>, %62, %cst_24 [2] : vector<1x16x16xf32> to vector<1x16xf32>
    %64 = vector.shape_cast %63 : vector<1x16xf32> to vector<1x16x1xf32>
    %65 = tpu.reciprocal %64 {approx = true} : vector<1x16x1xf32> -> vector<1x16x1xf32>
    %66 = vector.broadcast %65 : vector<1x16x1xf32> to vector<1x16x16xf32>
    %67 = arith.mulf %62, %66 : vector<1x16x16xf32>
    %68 = arith.truncf %67 : vector<1x16x16xf32> to vector<1x16x16xbf16>
    "tpu.trace_start"() <{level = 10 : i32, message = "bqk,bkd->bqd"}> : () -> ()
    %cst_25 = arith.constant dense<0.000000e+00> : vector<1x16x16xf32>
    %69 = tpu.matmul %68, %54, %cst_25 {dimension_numbers = #tpu.dot_dimension_numbers<[2], [1], [1], [2], [0, 0, 0, 1, 1, 2], [0], [0]>} : vector<1x16x16xbf16>, vector<1x16x16xbf16>, vector<1x16x16xf32> -> vector<1x16x16xf32>
    "tpu.trace_stop"() : () -> ()
    %70 = arith.truncf %69 : vector<1x16x16xf32> to vector<1x16x16xbf16>
    %c0_26 = arith.constant 0 : index
    %c1 = arith.constant 1 : index
    %c0_27 = arith.constant 0 : index
    %c0_28 = arith.constant 0 : index
    %71 = vector.load %arg6[%c0_26, %c1, %c0_27, %c0_28] : memref<2x4x16x64xbf16, #tpu.memory_space<vmem>>, vector<1x1x16x64xbf16>
    %72 = vector.shape_cast %71 : vector<1x1x16x64xbf16> to vector<16x64xbf16>
    "tpu.trace_start"() <{level = 10 : i32, message = "bqd,do->bqo"}> : () -> ()
    %cst_29 = arith.constant dense<0.000000e+00> : vector<1x16x64xf32>
    %73 = tpu.matmul %70, %72, %cst_29 {dimension_numbers = #tpu.dot_dimension_numbers<[2], [0], [0, 1], [1], [0, 0, 0, 1, 1, 1], [], []>} : vector<1x16x16xbf16>, vector<16x64xbf16>, vector<1x16x64xf32> -> vector<1x16x64xf32>
    "tpu.trace_stop"() : () -> ()
    %74 = arith.addf %48, %73 : vector<1x16x64xf32>
    %75 = vector.extract_strided_slice %23 {offsets = [0, 0, 32], sizes = [1, 16, 16], strides = [1, 1, 1]} : vector<1x16x192xf32> to vector<1x16x16xf32>
    %76 = arith.truncf %75 : vector<1x16x16xf32> to vector<1x16x16xbf16>
    %77 = vector.extract_strided_slice %23 {offsets = [0, 0, 96], sizes = [1, 16, 16], strides = [1, 1, 1]} : vector<1x16x192xf32> to vector<1x16x16xf32>
    %78 = arith.truncf %77 : vector<1x16x16xf32> to vector<1x16x16xbf16>
    %79 = vector.extract_strided_slice %23 {offsets = [0, 0, 160], sizes = [1, 16, 16], strides = [1, 1, 1]} : vector<1x16x192xf32> to vector<1x16x16xf32>
    %80 = arith.truncf %79 : vector<1x16x16xf32> to vector<1x16x16xbf16>
    "tpu.trace_start"() <{level = 10 : i32, message = "bqd,bkd->bqk"}> : () -> ()
    %cst_30 = arith.constant dense<0.000000e+00> : vector<1x16x16xf32>
    %81 = tpu.matmul %76, %78, %cst_30 {dimension_numbers = #tpu.dot_dimension_numbers<[2], [2], [1], [1], [0, 0, 0, 1, 1, 1], [0], [0]>} : vector<1x16x16xbf16>, vector<1x16x16xbf16>, vector<1x16x16xf32> -> vector<1x16x16xf32>
    "tpu.trace_stop"() : () -> ()
    %82 = vector.shape_cast %5 : vector<16x16xf32> to vector<1x16x16xf32>
    %83 = arith.addf %81, %82 : vector<1x16x16xf32>
    %cst_31 = arith.constant dense<0xFF800000> : vector<1x16xf32>
    %84 = vector.multi_reduction <maximumf>, %83, %cst_31 [2] : vector<1x16x16xf32> to vector<1x16xf32>
    %85 = vector.shape_cast %84 : vector<1x16xf32> to vector<1x16x1xf32>
    %86 = vector.broadcast %85 : vector<1x16x1xf32> to vector<1x16x16xf32>
    %87 = arith.subf %83, %86 : vector<1x16x16xf32>
    %88 = math.exp %87 : vector<1x16x16xf32>
    %cst_32 = arith.constant dense<0.000000e+00> : vector<1x16xf32>
    %89 = vector.multi_reduction <add>, %88, %cst_32 [2] : vector<1x16x16xf32> to vector<1x16xf32>
    %90 = vector.shape_cast %89 : vector<1x16xf32> to vector<1x16x1xf32>
    %91 = tpu.reciprocal %90 {approx = true} : vector<1x16x1xf32> -> vector<1x16x1xf32>
    %92 = vector.broadcast %91 : vector<1x16x1xf32> to vector<1x16x16xf32>
    %93 = arith.mulf %88, %92 : vector<1x16x16xf32>
    %94 = arith.truncf %93 : vector<1x16x16xf32> to vector<1x16x16xbf16>
    "tpu.trace_start"() <{level = 10 : i32, message = "bqk,bkd->bqd"}> : () -> ()
    %cst_33 = arith.constant dense<0.000000e+00> : vector<1x16x16xf32>
    %95 = tpu.matmul %94, %80, %cst_33 {dimension_numbers = #tpu.dot_dimension_numbers<[2], [1], [1], [2], [0, 0, 0, 1, 1, 2], [0], [0]>} : vector<1x16x16xbf16>, vector<1x16x16xbf16>, vector<1x16x16xf32> -> vector<1x16x16xf32>
    "tpu.trace_stop"() : () -> ()
    %96 = arith.truncf %95 : vector<1x16x16xf32> to vector<1x16x16xbf16>
    %c0_34 = arith.constant 0 : index
    %c2 = arith.constant 2 : index
    %c0_35 = arith.constant 0 : index
    %c0_36 = arith.constant 0 : index
    %97 = vector.load %arg6[%c0_34, %c2, %c0_35, %c0_36] : memref<2x4x16x64xbf16, #tpu.memory_space<vmem>>, vector<1x1x16x64xbf16>
    %98 = vector.shape_cast %97 : vector<1x1x16x64xbf16> to vector<16x64xbf16>
    "tpu.trace_start"() <{level = 10 : i32, message = "bqd,do->bqo"}> : () -> ()
    %cst_37 = arith.constant dense<0.000000e+00> : vector<1x16x64xf32>
    %99 = tpu.matmul %96, %98, %cst_37 {dimension_numbers = #tpu.dot_dimension_numbers<[2], [0], [0, 1], [1], [0, 0, 0, 1, 1, 1], [], []>} : vector<1x16x16xbf16>, vector<16x64xbf16>, vector<1x16x64xf32> -> vector<1x16x64xf32>
    "tpu.trace_stop"() : () -> ()
    %100 = arith.addf %74, %99 : vector<1x16x64xf32>
    %101 = vector.extract_strided_slice %23 {offsets = [0, 0, 48], sizes = [1, 16, 16], strides = [1, 1, 1]} : vector<1x16x192xf32> to vector<1x16x16xf32>
    %102 = arith.truncf %101 : vector<1x16x16xf32> to vector<1x16x16xbf16>
    %103 = vector.extract_strided_slice %23 {offsets = [0, 0, 112], sizes = [1, 16, 16], strides = [1, 1, 1]} : vector<1x16x192xf32> to vector<1x16x16xf32>
    %104 = arith.truncf %103 : vector<1x16x16xf32> to vector<1x16x16xbf16>
    %105 = vector.extract_strided_slice %23 {offsets = [0, 0, 176], sizes = [1, 16, 16], strides = [1, 1, 1]} : vector<1x16x192xf32> to vector<1x16x16xf32>
    %106 = arith.truncf %105 : vector<1x16x16xf32> to vector<1x16x16xbf16>
    "tpu.trace_start"() <{level = 10 : i32, message = "bqd,bkd->bqk"}> : () -> ()
    %cst_38 = arith.constant dense<0.000000e+00> : vector<1x16x16xf32>
    %107 = tpu.matmul %102, %104, %cst_38 {dimension_numbers = #tpu.dot_dimension_numbers<[2], [2], [1], [1], [0, 0, 0, 1, 1, 1], [0], [0]>} : vector<1x16x16xbf16>, vector<1x16x16xbf16>, vector<1x16x16xf32> -> vector<1x16x16xf32>
    "tpu.trace_stop"() : () -> ()
    %108 = vector.shape_cast %5 : vector<16x16xf32> to vector<1x16x16xf32>
    %109 = arith.addf %107, %108 : vector<1x16x16xf32>
    %cst_39 = arith.constant dense<0xFF800000> : vector<1x16xf32>
    %110 = vector.multi_reduction <maximumf>, %109, %cst_39 [2] : vector<1x16x16xf32> to vector<1x16xf32>
    %111 = vector.shape_cast %110 : vector<1x16xf32> to vector<1x16x1xf32>
    %112 = vector.broadcast %111 : vector<1x16x1xf32> to vector<1x16x16xf32>
    %113 = arith.subf %109, %112 : vector<1x16x16xf32>
    %114 = math.exp %113 : vector<1x16x16xf32>
    %cst_40 = arith.constant dense<0.000000e+00> : vector<1x16xf32>
    %115 = vector.multi_reduction <add>, %114, %cst_40 [2] : vector<1x16x16xf32> to vector<1x16xf32>
    %116 = vector.shape_cast %115 : vector<1x16xf32> to vector<1x16x1xf32>
    %117 = tpu.reciprocal %116 {approx = true} : vector<1x16x1xf32> -> vector<1x16x1xf32>
    %118 = vector.broadcast %117 : vector<1x16x1xf32> to vector<1x16x16xf32>
    %119 = arith.mulf %114, %118 : vector<1x16x16xf32>
    %120 = arith.truncf %119 : vector<1x16x16xf32> to vector<1x16x16xbf16>
    "tpu.trace_start"() <{level = 10 : i32, message = "bqk,bkd->bqd"}> : () -> ()
    %cst_41 = arith.constant dense<0.000000e+00> : vector<1x16x16xf32>
    %121 = tpu.matmul %120, %106, %cst_41 {dimension_numbers = #tpu.dot_dimension_numbers<[2], [1], [1], [2], [0, 0, 0, 1, 1, 2], [0], [0]>} : vector<1x16x16xbf16>, vector<1x16x16xbf16>, vector<1x16x16xf32> -> vector<1x16x16xf32>
    "tpu.trace_stop"() : () -> ()
    %122 = arith.truncf %121 : vector<1x16x16xf32> to vector<1x16x16xbf16>
    %c0_42 = arith.constant 0 : index
    %c3 = arith.constant 3 : index
    %c0_43 = arith.constant 0 : index
    %c0_44 = arith.constant 0 : index
    %123 = vector.load %arg6[%c0_42, %c3, %c0_43, %c0_44] : memref<2x4x16x64xbf16, #tpu.memory_space<vmem>>, vector<1x1x16x64xbf16>
    %124 = vector.shape_cast %123 : vector<1x1x16x64xbf16> to vector<16x64xbf16>
    "tpu.trace_start"() <{level = 10 : i32, message = "bqd,do->bqo"}> : () -> ()
    %cst_45 = arith.constant dense<0.000000e+00> : vector<1x16x64xf32>
    %125 = tpu.matmul %122, %124, %cst_45 {dimension_numbers = #tpu.dot_dimension_numbers<[2], [0], [0, 1], [1], [0, 0, 0, 1, 1, 1], [], []>} : vector<1x16x16xbf16>, vector<16x64xbf16>, vector<1x16x64xf32> -> vector<1x16x64xf32>
    "tpu.trace_stop"() : () -> ()
    %126 = arith.addf %100, %125 : vector<1x16x64xf32>
    %127 = vector.shape_cast %126 : vector<1x16x64xf32> to vector<16x64xf32>
    %c0_46 = arith.constant 0 : index
    %c0_47 = arith.constant 0 : index
    %128 = vector.load %arg7[%c0_46, %c0_47] : memref<2x64xf32, #tpu.memory_space<vmem>>, vector<1x64xf32>
    %129 = vector.shape_cast %128 : vector<1x64xf32> to vector<64xf32>
    %130 = vector.shape_cast %129 : vector<64xf32> to vector<1x64xf32>
    %131 = vector.broadcast %130 : vector<1x64xf32> to vector<16x64xf32>
    %132 = arith.addf %127, %131 : vector<16x64xf32>
    %133 = arith.addf %13, %132 : vector<16x64xf32>
    %c0_48 = arith.constant 0 : index
    %c0_49 = arith.constant 0 : index
    %134 = vector.load %arg9[%c0_48, %c0_49] : memref<2x64xf32, #tpu.memory_space<vmem>>, vector<1x64xf32>
    %135 = vector.shape_cast %134 : vector<1x64xf32> to vector<64xf32>
    %c0_50 = arith.constant 0 : index
    %c0_51 = arith.constant 0 : index
    %136 = vector.load %arg10[%c0_50, %c0_51] : memref<2x64xf32, #tpu.memory_space<vmem>>, vector<1x64xf32>
    %137 = vector.shape_cast %136 : vector<1x64xf32> to vector<64xf32>
    %cst_52 = arith.constant dense<0.000000e+00> : vector<16xf32>
    %138 = vector.multi_reduction <add>, %133, %cst_52 [1] : vector<16x64xf32> to vector<16xf32>
    %139 = vector.shape_cast %138 : vector<16xf32> to vector<16x1xf32>
    %cst_53 = arith.constant 6.400000e+01 : f32
    %140 = vector.broadcast %cst_53 : f32 to vector<16x1xf32>
    %141 = arith.divf %139, %140 : vector<16x1xf32>
    %142 = vector.broadcast %141 : vector<16x1xf32> to vector<16x64xf32>
    %143 = arith.subf %133, %142 : vector<16x64xf32>
    %144 = arith.mulf %143, %143 : vector<16x64xf32>
    %cst_54 = arith.constant dense<0.000000e+00> : vector<16xf32>
    %145 = vector.multi_reduction <add>, %144, %cst_54 [1] : vector<16x64xf32> to vector<16xf32>
    %146 = vector.shape_cast %145 : vector<16xf32> to vector<16x1xf32>
    %cst_55 = arith.constant 6.400000e+01 : f32
    %147 = vector.broadcast %cst_55 : f32 to vector<16x1xf32>
    %148 = arith.divf %146, %147 : vector<16x1xf32>
    %149 = vector.broadcast %141 : vector<16x1xf32> to vector<16x64xf32>
    %150 = arith.subf %133, %149 : vector<16x64xf32>
    %cst_56 = arith.constant 9.99999974E-6 : f32
    %151 = vector.broadcast %cst_56 : f32 to vector<16x1xf32>
    %152 = arith.addf %148, %151 : vector<16x1xf32>
    %153 = math.rsqrt %152 : vector<16x1xf32>
    %154 = vector.broadcast %153 : vector<16x1xf32> to vector<16x64xf32>
    %155 = arith.mulf %150, %154 : vector<16x64xf32>
    %156 = vector.shape_cast %135 : vector<64xf32> to vector<1x64xf32>
    %157 = vector.broadcast %156 : vector<1x64xf32> to vector<16x64xf32>
    %158 = arith.mulf %155, %157 : vector<16x64xf32>
    %159 = vector.shape_cast %137 : vector<64xf32> to vector<1x64xf32>
    %160 = vector.broadcast %159 : vector<1x64xf32> to vector<16x64xf32>
    %161 = arith.addf %158, %160 : vector<16x64xf32>
    %c0_57 = arith.constant 0 : index
    %c0_58 = arith.constant 0 : index
    %162 = vector.load %arg8[%c0_57, %c0_58] : memref<2x64xf32, #tpu.memory_space<vmem>>, vector<1x64xf32>
    %163 = vector.shape_cast %162 : vector<1x64xf32> to vector<64xf32>
    %164 = vector.shape_cast %163 : vector<64xf32> to vector<1x64xf32>
    %165 = vector.broadcast %164 : vector<1x64xf32> to vector<16x64xf32>
    %166 = arith.addf %161, %165 : vector<16x64xf32>
    %c0_59 = arith.constant 0 : index
    %c0_60 = arith.constant 0 : index
    %167 = vector.load %arg11[%c0_59, %c0_60] : memref<2x64xf32, #tpu.memory_space<vmem>>, vector<1x64xf32>
    %168 = vector.shape_cast %167 : vector<1x64xf32> to vector<64xf32>
    %c0_61 = arith.constant 0 : index
    %c0_62 = arith.constant 0 : index
    %169 = vector.load %arg12[%c0_61, %c0_62] : memref<2x64xf32, #tpu.memory_space<vmem>>, vector<1x64xf32>
    %170 = vector.shape_cast %169 : vector<1x64xf32> to vector<64xf32>
    %cst_63 = arith.constant dense<0.000000e+00> : vector<16xf32>
    %171 = vector.multi_reduction <add>, %166, %cst_63 [1] : vector<16x64xf32> to vector<16xf32>
    %172 = vector.shape_cast %171 : vector<16xf32> to vector<16x1xf32>
    %cst_64 = arith.constant 6.400000e+01 : f32
    %173 = vector.broadcast %cst_64 : f32 to vector<16x1xf32>
    %174 = arith.divf %172, %173 : vector<16x1xf32>
    %175 = vector.broadcast %174 : vector<16x1xf32> to vector<16x64xf32>
    %176 = arith.subf %166, %175 : vector<16x64xf32>
    %177 = arith.mulf %176, %176 : vector<16x64xf32>
    %cst_65 = arith.constant dense<0.000000e+00> : vector<16xf32>
    %178 = vector.multi_reduction <add>, %177, %cst_65 [1] : vector<16x64xf32> to vector<16xf32>
    %179 = vector.shape_cast %178 : vector<16xf32> to vector<16x1xf32>
    %cst_66 = arith.constant 6.400000e+01 : f32
    %180 = vector.broadcast %cst_66 : f32 to vector<16x1xf32>
    %181 = arith.divf %179, %180 : vector<16x1xf32>
    %182 = vector.broadcast %174 : vector<16x1xf32> to vector<16x64xf32>
    %183 = arith.subf %166, %182 : vector<16x64xf32>
    %cst_67 = arith.constant 9.99999974E-6 : f32
    %184 = vector.broadcast %cst_67 : f32 to vector<16x1xf32>
    %185 = arith.addf %181, %184 : vector<16x1xf32>
    %186 = math.rsqrt %185 : vector<16x1xf32>
    %187 = vector.broadcast %186 : vector<16x1xf32> to vector<16x64xf32>
    %188 = arith.mulf %183, %187 : vector<16x64xf32>
    %189 = vector.shape_cast %168 : vector<64xf32> to vector<1x64xf32>
    %190 = vector.broadcast %189 : vector<1x64xf32> to vector<16x64xf32>
    %191 = arith.mulf %188, %190 : vector<16x64xf32>
    %192 = vector.shape_cast %170 : vector<64xf32> to vector<1x64xf32>
    %193 = vector.broadcast %192 : vector<1x64xf32> to vector<16x64xf32>
    %194 = arith.addf %191, %193 : vector<16x64xf32>
    %195 = arith.truncf %194 : vector<16x64xf32> to vector<16x64xbf16>
    %c0_68 = arith.constant 0 : index
    %c0_69 = arith.constant 0 : index
    %c0_70 = arith.constant 0 : index
    %196 = vector.load %arg15[%c0_68, %c0_69, %c0_70] : memref<2x64x256xbf16, #tpu.memory_space<vmem>>, vector<1x64x256xbf16>
    %197 = vector.shape_cast %196 : vector<1x64x256xbf16> to vector<64x256xbf16>
    %cst_71 = arith.constant dense<0.000000e+00> : vector<16x256xf32>
    %198 = tpu.matmul %195, %197, %cst_71 {dimension_numbers = #tpu.dot_dimension_numbers<[1], [0], [0], [1], [0, 0, 1, 1], [], []>} : vector<16x64xbf16>, vector<64x256xbf16>, vector<16x256xf32> -> vector<16x256xf32>
    %c0_72 = arith.constant 0 : index
    %c0_73 = arith.constant 0 : index
    %199 = vector.load %arg16[%c0_72, %c0_73] : memref<2x256xf32, #tpu.memory_space<vmem>>, vector<1x256xf32>
    %200 = vector.shape_cast %199 : vector<1x256xf32> to vector<256xf32>
    %201 = vector.shape_cast %200 : vector<256xf32> to vector<1x256xf32>
    %202 = vector.broadcast %201 : vector<1x256xf32> to vector<16x256xf32>
    %203 = arith.addf %198, %202 : vector<16x256xf32>
    %cst_74 = arith.constant 0.000000e+00 : f32
    %204 = vector.broadcast %cst_74 : f32 to vector<16x256xf32>
    %205 = arith.maximumf %203, %204 : vector<16x256xf32>
    %206 = arith.truncf %205 : vector<16x256xf32> to vector<16x256xbf16>
    %c0_75 = arith.constant 0 : index
    %c0_76 = arith.constant 0 : index
    %c0_77 = arith.constant 0 : index
    %207 = vector.load %arg17[%c0_75, %c0_76, %c0_77] : memref<2x256x64xbf16, #tpu.memory_space<vmem>>, vector<1x256x64xbf16>
    %208 = vector.shape_cast %207 : vector<1x256x64xbf16> to vector<256x64xbf16>
    %cst_78 = arith.constant dense<0.000000e+00> : vector<16x64xf32>
    %209 = tpu.matmul %206, %208, %cst_78 {dimension_numbers = #tpu.dot_dimension_numbers<[1], [0], [0], [1], [0, 0, 1, 1], [], []>} : vector<16x256xbf16>, vector<256x64xbf16>, vector<16x64xf32> -> vector<16x64xf32>
    %c0_79 = arith.constant 0 : index
    %c0_80 = arith.constant 0 : index
    %210 = vector.load %arg18[%c0_79, %c0_80] : memref<2x64xf32, #tpu.memory_space<vmem>>, vector<1x64xf32>
    %211 = vector.shape_cast %210 : vector<1x64xf32> to vector<64xf32>
    %212 = vector.shape_cast %211 : vector<64xf32> to vector<1x64xf32>
    %213 = vector.broadcast %212 : vector<1x64xf32> to vector<16x64xf32>
    %214 = arith.addf %209, %213 : vector<16x64xf32>
    %215 = arith.addf %194, %214 : vector<16x64xf32>
    %c0_81 = arith.constant 0 : index
    %c0_82 = arith.constant 0 : index
    %216 = vector.load %arg13[%c0_81, %c0_82] : memref<2x64xf32, #tpu.memory_space<vmem>>, vector<1x64xf32>
    %217 = vector.shape_cast %216 : vector<1x64xf32> to vector<64xf32>
    %c0_83 = arith.constant 0 : index
    %c0_84 = arith.constant 0 : index
    %218 = vector.load %arg14[%c0_83, %c0_84] : memref<2x64xf32, #tpu.memory_space<vmem>>, vector<1x64xf32>
    %219 = vector.shape_cast %218 : vector<1x64xf32> to vector<64xf32>
    %cst_85 = arith.constant dense<0.000000e+00> : vector<16xf32>
    %220 = vector.multi_reduction <add>, %215, %cst_85 [1] : vector<16x64xf32> to vector<16xf32>
    %221 = vector.shape_cast %220 : vector<16xf32> to vector<16x1xf32>
    %cst_86 = arith.constant 6.400000e+01 : f32
    %222 = vector.broadcast %cst_86 : f32 to vector<16x1xf32>
    %223 = arith.divf %221, %222 : vector<16x1xf32>
    %224 = vector.broadcast %223 : vector<16x1xf32> to vector<16x64xf32>
    %225 = arith.subf %215, %224 : vector<16x64xf32>
    %226 = arith.mulf %225, %225 : vector<16x64xf32>
    %cst_87 = arith.constant dense<0.000000e+00> : vector<16xf32>
    %227 = vector.multi_reduction <add>, %226, %cst_87 [1] : vector<16x64xf32> to vector<16xf32>
    %228 = vector.shape_cast %227 : vector<16xf32> to vector<16x1xf32>
    %cst_88 = arith.constant 6.400000e+01 : f32
    %229 = vector.broadcast %cst_88 : f32 to vector<16x1xf32>
    %230 = arith.divf %228, %229 : vector<16x1xf32>
    %231 = vector.broadcast %223 : vector<16x1xf32> to vector<16x64xf32>
    %232 = arith.subf %215, %231 : vector<16x64xf32>
    %cst_89 = arith.constant 9.99999974E-6 : f32
    %233 = vector.broadcast %cst_89 : f32 to vector<16x1xf32>
    %234 = arith.addf %230, %233 : vector<16x1xf32>
    %235 = math.rsqrt %234 : vector<16x1xf32>
    %236 = vector.broadcast %235 : vector<16x1xf32> to vector<16x64xf32>
    %237 = arith.mulf %232, %236 : vector<16x64xf32>
    %238 = vector.shape_cast %217 : vector<64xf32> to vector<1x64xf32>
    %239 = vector.broadcast %238 : vector<1x64xf32> to vector<16x64xf32>
    %240 = arith.mulf %237, %239 : vector<16x64xf32>
    %241 = vector.shape_cast %219 : vector<64xf32> to vector<1x64xf32>
    %242 = vector.broadcast %241 : vector<1x64xf32> to vector<16x64xf32>
    %243 = arith.addf %240, %242 : vector<16x64xf32>
    %244 = arith.truncf %243 : vector<16x64xf32> to vector<16x64xbf16>
    %c1_90 = arith.constant 1 : index
    %c0_91 = arith.constant 0 : index
    %c0_92 = arith.constant 0 : index
    %245 = vector.load %arg4[%c1_90, %c0_91, %c0_92] : memref<2x64x192xbf16, #tpu.memory_space<vmem>>, vector<1x64x192xbf16>
    %246 = vector.shape_cast %245 : vector<1x64x192xbf16> to vector<64x192xbf16>
    %cst_93 = arith.constant dense<0.000000e+00> : vector<16x192xf32>
    %247 = tpu.matmul %244, %246, %cst_93 {dimension_numbers = #tpu.dot_dimension_numbers<[1], [0], [0], [1], [0, 0, 1, 1], [], []>} : vector<16x64xbf16>, vector<64x192xbf16>, vector<16x192xf32> -> vector<16x192xf32>
    %c1_94 = arith.constant 1 : index
    %c0_95 = arith.constant 0 : index
    %248 = vector.load %arg5[%c1_94, %c0_95] : memref<2x192xf32, #tpu.memory_space<vmem>>, vector<1x192xf32>
    %249 = vector.shape_cast %248 : vector<1x192xf32> to vector<192xf32>
    %250 = vector.shape_cast %249 : vector<192xf32> to vector<1x192xf32>
    %251 = vector.broadcast %250 : vector<1x192xf32> to vector<16x192xf32>
    %252 = arith.addf %247, %251 : vector<16x192xf32>
    %253 = vector.shape_cast %252 : vector<16x192xf32> to vector<1x16x192xf32>
    %254 = vector.extract_strided_slice %253 {offsets = [0, 0, 0], sizes = [1, 16, 16], strides = [1, 1, 1]} : vector<1x16x192xf32> to vector<1x16x16xf32>
    %255 = arith.truncf %254 : vector<1x16x16xf32> to vector<1x16x16xbf16>
    %256 = vector.extract_strided_slice %253 {offsets = [0, 0, 64], sizes = [1, 16, 16], strides = [1, 1, 1]} : vector<1x16x192xf32> to vector<1x16x16xf32>
    %257 = arith.truncf %256 : vector<1x16x16xf32> to vector<1x16x16xbf16>
    %258 = vector.extract_strided_slice %253 {offsets = [0, 0, 128], sizes = [1, 16, 16], strides = [1, 1, 1]} : vector<1x16x192xf32> to vector<1x16x16xf32>
    %259 = arith.truncf %258 : vector<1x16x16xf32> to vector<1x16x16xbf16>
    "tpu.trace_start"() <{level = 10 : i32, message = "bqd,bkd->bqk"}> : () -> ()
    %cst_96 = arith.constant dense<0.000000e+00> : vector<1x16x16xf32>
    %260 = tpu.matmul %255, %257, %cst_96 {dimension_numbers = #tpu.dot_dimension_numbers<[2], [2], [1], [1], [0, 0, 0, 1, 1, 1], [0], [0]>} : vector<1x16x16xbf16>, vector<1x16x16xbf16>, vector<1x16x16xf32> -> vector<1x16x16xf32>
    "tpu.trace_stop"() : () -> ()
    %261 = vector.shape_cast %5 : vector<16x16xf32> to vector<1x16x16xf32>
    %262 = arith.addf %260, %261 : vector<1x16x16xf32>
    %cst_97 = arith.constant dense<0xFF800000> : vector<1x16xf32>
    %263 = vector.multi_reduction <maximumf>, %262, %cst_97 [2] : vector<1x16x16xf32> to vector<1x16xf32>
    %264 = vector.shape_cast %263 : vector<1x16xf32> to vector<1x16x1xf32>
    %265 = vector.broadcast %264 : vector<1x16x1xf32> to vector<1x16x16xf32>
    %266 = arith.subf %262, %265 : vector<1x16x16xf32>
    %267 = math.exp %266 : vector<1x16x16xf32>
    %cst_98 = arith.constant dense<0.000000e+00> : vector<1x16xf32>
    %268 = vector.multi_reduction <add>, %267, %cst_98 [2] : vector<1x16x16xf32> to vector<1x16xf32>
    %269 = vector.shape_cast %268 : vector<1x16xf32> to vector<1x16x1xf32>
    %270 = tpu.reciprocal %269 {approx = true} : vector<1x16x1xf32> -> vector<1x16x1xf32>
    %271 = vector.broadcast %270 : vector<1x16x1xf32> to vector<1x16x16xf32>
    %272 = arith.mulf %267, %271 : vector<1x16x16xf32>
    %273 = arith.truncf %272 : vector<1x16x16xf32> to vector<1x16x16xbf16>
    "tpu.trace_start"() <{level = 10 : i32, message = "bqk,bkd->bqd"}> : () -> ()
    %cst_99 = arith.constant dense<0.000000e+00> : vector<1x16x16xf32>
    %274 = tpu.matmul %273, %259, %cst_99 {dimension_numbers = #tpu.dot_dimension_numbers<[2], [1], [1], [2], [0, 0, 0, 1, 1, 2], [0], [0]>} : vector<1x16x16xbf16>, vector<1x16x16xbf16>, vector<1x16x16xf32> -> vector<1x16x16xf32>
    "tpu.trace_stop"() : () -> ()
    %275 = arith.truncf %274 : vector<1x16x16xf32> to vector<1x16x16xbf16>
    %c1_100 = arith.constant 1 : index
    %c0_101 = arith.constant 0 : index
    %c0_102 = arith.constant 0 : index
    %c0_103 = arith.constant 0 : index
    %276 = vector.load %arg6[%c1_100, %c0_101, %c0_102, %c0_103] : memref<2x4x16x64xbf16, #tpu.memory_space<vmem>>, vector<1x1x16x64xbf16>
    %277 = vector.shape_cast %276 : vector<1x1x16x64xbf16> to vector<16x64xbf16>
    "tpu.trace_start"() <{level = 10 : i32, message = "bqd,do->bqo"}> : () -> ()
    %cst_104 = arith.constant dense<0.000000e+00> : vector<1x16x64xf32>
    %278 = tpu.matmul %275, %277, %cst_104 {dimension_numbers = #tpu.dot_dimension_numbers<[2], [0], [0, 1], [1], [0, 0, 0, 1, 1, 1], [], []>} : vector<1x16x16xbf16>, vector<16x64xbf16>, vector<1x16x64xf32> -> vector<1x16x64xf32>
    "tpu.trace_stop"() : () -> ()
    %279 = vector.extract_strided_slice %253 {offsets = [0, 0, 16], sizes = [1, 16, 16], strides = [1, 1, 1]} : vector<1x16x192xf32> to vector<1x16x16xf32>
    %280 = arith.truncf %279 : vector<1x16x16xf32> to vector<1x16x16xbf16>
    %281 = vector.extract_strided_slice %253 {offsets = [0, 0, 80], sizes = [1, 16, 16], strides = [1, 1, 1]} : vector<1x16x192xf32> to vector<1x16x16xf32>
    %282 = arith.truncf %281 : vector<1x16x16xf32> to vector<1x16x16xbf16>
    %283 = vector.extract_strided_slice %253 {offsets = [0, 0, 144], sizes = [1, 16, 16], strides = [1, 1, 1]} : vector<1x16x192xf32> to vector<1x16x16xf32>
    %284 = arith.truncf %283 : vector<1x16x16xf32> to vector<1x16x16xbf16>
    "tpu.trace_start"() <{level = 10 : i32, message = "bqd,bkd->bqk"}> : () -> ()
    %cst_105 = arith.constant dense<0.000000e+00> : vector<1x16x16xf32>
    %285 = tpu.matmul %280, %282, %cst_105 {dimension_numbers = #tpu.dot_dimension_numbers<[2], [2], [1], [1], [0, 0, 0, 1, 1, 1], [0], [0]>} : vector<1x16x16xbf16>, vector<1x16x16xbf16>, vector<1x16x16xf32> -> vector<1x16x16xf32>
    "tpu.trace_stop"() : () -> ()
    %286 = vector.shape_cast %5 : vector<16x16xf32> to vector<1x16x16xf32>
    %287 = arith.addf %285, %286 : vector<1x16x16xf32>
    %cst_106 = arith.constant dense<0xFF800000> : vector<1x16xf32>
    %288 = vector.multi_reduction <maximumf>, %287, %cst_106 [2] : vector<1x16x16xf32> to vector<1x16xf32>
    %289 = vector.shape_cast %288 : vector<1x16xf32> to vector<1x16x1xf32>
    %290 = vector.broadcast %289 : vector<1x16x1xf32> to vector<1x16x16xf32>
    %291 = arith.subf %287, %290 : vector<1x16x16xf32>
    %292 = math.exp %291 : vector<1x16x16xf32>
    %cst_107 = arith.constant dense<0.000000e+00> : vector<1x16xf32>
    %293 = vector.multi_reduction <add>, %292, %cst_107 [2] : vector<1x16x16xf32> to vector<1x16xf32>
    %294 = vector.shape_cast %293 : vector<1x16xf32> to vector<1x16x1xf32>
    %295 = tpu.reciprocal %294 {approx = true} : vector<1x16x1xf32> -> vector<1x16x1xf32>
    %296 = vector.broadcast %295 : vector<1x16x1xf32> to vector<1x16x16xf32>
    %297 = arith.mulf %292, %296 : vector<1x16x16xf32>
    %298 = arith.truncf %297 : vector<1x16x16xf32> to vector<1x16x16xbf16>
    "tpu.trace_start"() <{level = 10 : i32, message = "bqk,bkd->bqd"}> : () -> ()
    %cst_108 = arith.constant dense<0.000000e+00> : vector<1x16x16xf32>
    %299 = tpu.matmul %298, %284, %cst_108 {dimension_numbers = #tpu.dot_dimension_numbers<[2], [1], [1], [2], [0, 0, 0, 1, 1, 2], [0], [0]>} : vector<1x16x16xbf16>, vector<1x16x16xbf16>, vector<1x16x16xf32> -> vector<1x16x16xf32>
    "tpu.trace_stop"() : () -> ()
    %300 = arith.truncf %299 : vector<1x16x16xf32> to vector<1x16x16xbf16>
    %c1_109 = arith.constant 1 : index
    %c1_110 = arith.constant 1 : index
    %c0_111 = arith.constant 0 : index
    %c0_112 = arith.constant 0 : index
    %301 = vector.load %arg6[%c1_109, %c1_110, %c0_111, %c0_112] : memref<2x4x16x64xbf16, #tpu.memory_space<vmem>>, vector<1x1x16x64xbf16>
    %302 = vector.shape_cast %301 : vector<1x1x16x64xbf16> to vector<16x64xbf16>
    "tpu.trace_start"() <{level = 10 : i32, message = "bqd,do->bqo"}> : () -> ()
    %cst_113 = arith.constant dense<0.000000e+00> : vector<1x16x64xf32>
    %303 = tpu.matmul %300, %302, %cst_113 {dimension_numbers = #tpu.dot_dimension_numbers<[2], [0], [0, 1], [1], [0, 0, 0, 1, 1, 1], [], []>} : vector<1x16x16xbf16>, vector<16x64xbf16>, vector<1x16x64xf32> -> vector<1x16x64xf32>
    "tpu.trace_stop"() : () -> ()
    %304 = arith.addf %278, %303 : vector<1x16x64xf32>
    %305 = vector.extract_strided_slice %253 {offsets = [0, 0, 32], sizes = [1, 16, 16], strides = [1, 1, 1]} : vector<1x16x192xf32> to vector<1x16x16xf32>
    %306 = arith.truncf %305 : vector<1x16x16xf32> to vector<1x16x16xbf16>
    %307 = vector.extract_strided_slice %253 {offsets = [0, 0, 96], sizes = [1, 16, 16], strides = [1, 1, 1]} : vector<1x16x192xf32> to vector<1x16x16xf32>
    %308 = arith.truncf %307 : vector<1x16x16xf32> to vector<1x16x16xbf16>
    %309 = vector.extract_strided_slice %253 {offsets = [0, 0, 160], sizes = [1, 16, 16], strides = [1, 1, 1]} : vector<1x16x192xf32> to vector<1x16x16xf32>
    %310 = arith.truncf %309 : vector<1x16x16xf32> to vector<1x16x16xbf16>
    "tpu.trace_start"() <{level = 10 : i32, message = "bqd,bkd->bqk"}> : () -> ()
    %cst_114 = arith.constant dense<0.000000e+00> : vector<1x16x16xf32>
    %311 = tpu.matmul %306, %308, %cst_114 {dimension_numbers = #tpu.dot_dimension_numbers<[2], [2], [1], [1], [0, 0, 0, 1, 1, 1], [0], [0]>} : vector<1x16x16xbf16>, vector<1x16x16xbf16>, vector<1x16x16xf32> -> vector<1x16x16xf32>
    "tpu.trace_stop"() : () -> ()
    %312 = vector.shape_cast %5 : vector<16x16xf32> to vector<1x16x16xf32>
    %313 = arith.addf %311, %312 : vector<1x16x16xf32>
    %cst_115 = arith.constant dense<0xFF800000> : vector<1x16xf32>
    %314 = vector.multi_reduction <maximumf>, %313, %cst_115 [2] : vector<1x16x16xf32> to vector<1x16xf32>
    %315 = vector.shape_cast %314 : vector<1x16xf32> to vector<1x16x1xf32>
    %316 = vector.broadcast %315 : vector<1x16x1xf32> to vector<1x16x16xf32>
    %317 = arith.subf %313, %316 : vector<1x16x16xf32>
    %318 = math.exp %317 : vector<1x16x16xf32>
    %cst_116 = arith.constant dense<0.000000e+00> : vector<1x16xf32>
    %319 = vector.multi_reduction <add>, %318, %cst_116 [2] : vector<1x16x16xf32> to vector<1x16xf32>
    %320 = vector.shape_cast %319 : vector<1x16xf32> to vector<1x16x1xf32>
    %321 = tpu.reciprocal %320 {approx = true} : vector<1x16x1xf32> -> vector<1x16x1xf32>
    %322 = vector.broadcast %321 : vector<1x16x1xf32> to vector<1x16x16xf32>
    %323 = arith.mulf %318, %322 : vector<1x16x16xf32>
    %324 = arith.truncf %323 : vector<1x16x16xf32> to vector<1x16x16xbf16>
    "tpu.trace_start"() <{level = 10 : i32, message = "bqk,bkd->bqd"}> : () -> ()
    %cst_117 = arith.constant dense<0.000000e+00> : vector<1x16x16xf32>
    %325 = tpu.matmul %324, %310, %cst_117 {dimension_numbers = #tpu.dot_dimension_numbers<[2], [1], [1], [2], [0, 0, 0, 1, 1, 2], [0], [0]>} : vector<1x16x16xbf16>, vector<1x16x16xbf16>, vector<1x16x16xf32> -> vector<1x16x16xf32>
    "tpu.trace_stop"() : () -> ()
    %326 = arith.truncf %325 : vector<1x16x16xf32> to vector<1x16x16xbf16>
    %c1_118 = arith.constant 1 : index
    %c2_119 = arith.constant 2 : index
    %c0_120 = arith.constant 0 : index
    %c0_121 = arith.constant 0 : index
    %327 = vector.load %arg6[%c1_118, %c2_119, %c0_120, %c0_121] : memref<2x4x16x64xbf16, #tpu.memory_space<vmem>>, vector<1x1x16x64xbf16>
    %328 = vector.shape_cast %327 : vector<1x1x16x64xbf16> to vector<16x64xbf16>
    "tpu.trace_start"() <{level = 10 : i32, message = "bqd,do->bqo"}> : () -> ()
    %cst_122 = arith.constant dense<0.000000e+00> : vector<1x16x64xf32>
    %329 = tpu.matmul %326, %328, %cst_122 {dimension_numbers = #tpu.dot_dimension_numbers<[2], [0], [0, 1], [1], [0, 0, 0, 1, 1, 1], [], []>} : vector<1x16x16xbf16>, vector<16x64xbf16>, vector<1x16x64xf32> -> vector<1x16x64xf32>
    "tpu.trace_stop"() : () -> ()
    %330 = arith.addf %304, %329 : vector<1x16x64xf32>
    %331 = vector.extract_strided_slice %253 {offsets = [0, 0, 48], sizes = [1, 16, 16], strides = [1, 1, 1]} : vector<1x16x192xf32> to vector<1x16x16xf32>
    %332 = arith.truncf %331 : vector<1x16x16xf32> to vector<1x16x16xbf16>
    %333 = vector.extract_strided_slice %253 {offsets = [0, 0, 112], sizes = [1, 16, 16], strides = [1, 1, 1]} : vector<1x16x192xf32> to vector<1x16x16xf32>
    %334 = arith.truncf %333 : vector<1x16x16xf32> to vector<1x16x16xbf16>
    %335 = vector.extract_strided_slice %253 {offsets = [0, 0, 176], sizes = [1, 16, 16], strides = [1, 1, 1]} : vector<1x16x192xf32> to vector<1x16x16xf32>
    %336 = arith.truncf %335 : vector<1x16x16xf32> to vector<1x16x16xbf16>
    "tpu.trace_start"() <{level = 10 : i32, message = "bqd,bkd->bqk"}> : () -> ()
    %cst_123 = arith.constant dense<0.000000e+00> : vector<1x16x16xf32>
    %337 = tpu.matmul %332, %334, %cst_123 {dimension_numbers = #tpu.dot_dimension_numbers<[2], [2], [1], [1], [0, 0, 0, 1, 1, 1], [0], [0]>} : vector<1x16x16xbf16>, vector<1x16x16xbf16>, vector<1x16x16xf32> -> vector<1x16x16xf32>
    "tpu.trace_stop"() : () -> ()
    %338 = vector.shape_cast %5 : vector<16x16xf32> to vector<1x16x16xf32>
    %339 = arith.addf %337, %338 : vector<1x16x16xf32>
    %cst_124 = arith.constant dense<0xFF800000> : vector<1x16xf32>
    %340 = vector.multi_reduction <maximumf>, %339, %cst_124 [2] : vector<1x16x16xf32> to vector<1x16xf32>
    %341 = vector.shape_cast %340 : vector<1x16xf32> to vector<1x16x1xf32>
    %342 = vector.broadcast %341 : vector<1x16x1xf32> to vector<1x16x16xf32>
    %343 = arith.subf %339, %342 : vector<1x16x16xf32>
    %344 = math.exp %343 : vector<1x16x16xf32>
    %cst_125 = arith.constant dense<0.000000e+00> : vector<1x16xf32>
    %345 = vector.multi_reduction <add>, %344, %cst_125 [2] : vector<1x16x16xf32> to vector<1x16xf32>
    %346 = vector.shape_cast %345 : vector<1x16xf32> to vector<1x16x1xf32>
    %347 = tpu.reciprocal %346 {approx = true} : vector<1x16x1xf32> -> vector<1x16x1xf32>
    %348 = vector.broadcast %347 : vector<1x16x1xf32> to vector<1x16x16xf32>
    %349 = arith.mulf %344, %348 : vector<1x16x16xf32>
    %350 = arith.truncf %349 : vector<1x16x16xf32> to vector<1x16x16xbf16>
    "tpu.trace_start"() <{level = 10 : i32, message = "bqk,bkd->bqd"}> : () -> ()
    %cst_126 = arith.constant dense<0.000000e+00> : vector<1x16x16xf32>
    %351 = tpu.matmul %350, %336, %cst_126 {dimension_numbers = #tpu.dot_dimension_numbers<[2], [1], [1], [2], [0, 0, 0, 1, 1, 2], [0], [0]>} : vector<1x16x16xbf16>, vector<1x16x16xbf16>, vector<1x16x16xf32> -> vector<1x16x16xf32>
    "tpu.trace_stop"() : () -> ()
    %352 = arith.truncf %351 : vector<1x16x16xf32> to vector<1x16x16xbf16>
    %c1_127 = arith.constant 1 : index
    %c3_128 = arith.constant 3 : index
    %c0_129 = arith.constant 0 : index
    %c0_130 = arith.constant 0 : index
    %353 = vector.load %arg6[%c1_127, %c3_128, %c0_129, %c0_130] : memref<2x4x16x64xbf16, #tpu.memory_space<vmem>>, vector<1x1x16x64xbf16>
    %354 = vector.shape_cast %353 : vector<1x1x16x64xbf16> to vector<16x64xbf16>
    "tpu.trace_start"() <{level = 10 : i32, message = "bqd,do->bqo"}> : () -> ()
    %cst_131 = arith.constant dense<0.000000e+00> : vector<1x16x64xf32>
    %355 = tpu.matmul %352, %354, %cst_131 {dimension_numbers = #tpu.dot_dimension_numbers<[2], [0], [0, 1], [1], [0, 0, 0, 1, 1, 1], [], []>} : vector<1x16x16xbf16>, vector<16x64xbf16>, vector<1x16x64xf32> -> vector<1x16x64xf32>
    "tpu.trace_stop"() : () -> ()
    %356 = arith.addf %330, %355 : vector<1x16x64xf32>
    %357 = vector.shape_cast %356 : vector<1x16x64xf32> to vector<16x64xf32>
    %c1_132 = arith.constant 1 : index
    %c0_133 = arith.constant 0 : index
    %358 = vector.load %arg7[%c1_132, %c0_133] : memref<2x64xf32, #tpu.memory_space<vmem>>, vector<1x64xf32>
    %359 = vector.shape_cast %358 : vector<1x64xf32> to vector<64xf32>
    %360 = vector.shape_cast %359 : vector<64xf32> to vector<1x64xf32>
    %361 = vector.broadcast %360 : vector<1x64xf32> to vector<16x64xf32>
    %362 = arith.addf %357, %361 : vector<16x64xf32>
    %363 = arith.addf %243, %362 : vector<16x64xf32>
    %c1_134 = arith.constant 1 : index
    %c0_135 = arith.constant 0 : index
    %364 = vector.load %arg9[%c1_134, %c0_135] : memref<2x64xf32, #tpu.memory_space<vmem>>, vector<1x64xf32>
    %365 = vector.shape_cast %364 : vector<1x64xf32> to vector<64xf32>
    %c1_136 = arith.constant 1 : index
    %c0_137 = arith.constant 0 : index
    %366 = vector.load %arg10[%c1_136, %c0_137] : memref<2x64xf32, #tpu.memory_space<vmem>>, vector<1x64xf32>
    %367 = vector.shape_cast %366 : vector<1x64xf32> to vector<64xf32>
    %cst_138 = arith.constant dense<0.000000e+00> : vector<16xf32>
    %368 = vector.multi_reduction <add>, %363, %cst_138 [1] : vector<16x64xf32> to vector<16xf32>
    %369 = vector.shape_cast %368 : vector<16xf32> to vector<16x1xf32>
    %cst_139 = arith.constant 6.400000e+01 : f32
    %370 = vector.broadcast %cst_139 : f32 to vector<16x1xf32>
    %371 = arith.divf %369, %370 : vector<16x1xf32>
    %372 = vector.broadcast %371 : vector<16x1xf32> to vector<16x64xf32>
    %373 = arith.subf %363, %372 : vector<16x64xf32>
    %374 = arith.mulf %373, %373 : vector<16x64xf32>
    %cst_140 = arith.constant dense<0.000000e+00> : vector<16xf32>
    %375 = vector.multi_reduction <add>, %374, %cst_140 [1] : vector<16x64xf32> to vector<16xf32>
    %376 = vector.shape_cast %375 : vector<16xf32> to vector<16x1xf32>
    %cst_141 = arith.constant 6.400000e+01 : f32
    %377 = vector.broadcast %cst_141 : f32 to vector<16x1xf32>
    %378 = arith.divf %376, %377 : vector<16x1xf32>
    %379 = vector.broadcast %371 : vector<16x1xf32> to vector<16x64xf32>
    %380 = arith.subf %363, %379 : vector<16x64xf32>
    %cst_142 = arith.constant 9.99999974E-6 : f32
    %381 = vector.broadcast %cst_142 : f32 to vector<16x1xf32>
    %382 = arith.addf %378, %381 : vector<16x1xf32>
    %383 = math.rsqrt %382 : vector<16x1xf32>
    %384 = vector.broadcast %383 : vector<16x1xf32> to vector<16x64xf32>
    %385 = arith.mulf %380, %384 : vector<16x64xf32>
    %386 = vector.shape_cast %365 : vector<64xf32> to vector<1x64xf32>
    %387 = vector.broadcast %386 : vector<1x64xf32> to vector<16x64xf32>
    %388 = arith.mulf %385, %387 : vector<16x64xf32>
    %389 = vector.shape_cast %367 : vector<64xf32> to vector<1x64xf32>
    %390 = vector.broadcast %389 : vector<1x64xf32> to vector<16x64xf32>
    %391 = arith.addf %388, %390 : vector<16x64xf32>
    %c1_143 = arith.constant 1 : index
    %c0_144 = arith.constant 0 : index
    %392 = vector.load %arg8[%c1_143, %c0_144] : memref<2x64xf32, #tpu.memory_space<vmem>>, vector<1x64xf32>
    %393 = vector.shape_cast %392 : vector<1x64xf32> to vector<64xf32>
    %394 = vector.shape_cast %393 : vector<64xf32> to vector<1x64xf32>
    %395 = vector.broadcast %394 : vector<1x64xf32> to vector<16x64xf32>
    %396 = arith.addf %391, %395 : vector<16x64xf32>
    %c1_145 = arith.constant 1 : index
    %c0_146 = arith.constant 0 : index
    %397 = vector.load %arg11[%c1_145, %c0_146] : memref<2x64xf32, #tpu.memory_space<vmem>>, vector<1x64xf32>
    %398 = vector.shape_cast %397 : vector<1x64xf32> to vector<64xf32>
    %c1_147 = arith.constant 1 : index
    %c0_148 = arith.constant 0 : index
    %399 = vector.load %arg12[%c1_147, %c0_148] : memref<2x64xf32, #tpu.memory_space<vmem>>, vector<1x64xf32>
    %400 = vector.shape_cast %399 : vector<1x64xf32> to vector<64xf32>
    %cst_149 = arith.constant dense<0.000000e+00> : vector<16xf32>
    %401 = vector.multi_reduction <add>, %396, %cst_149 [1] : vector<16x64xf32> to vector<16xf32>
    %402 = vector.shape_cast %401 : vector<16xf32> to vector<16x1xf32>
    %cst_150 = arith.constant 6.400000e+01 : f32
    %403 = vector.broadcast %cst_150 : f32 to vector<16x1xf32>
    %404 = arith.divf %402, %403 : vector<16x1xf32>
    %405 = vector.broadcast %404 : vector<16x1xf32> to vector<16x64xf32>
    %406 = arith.subf %396, %405 : vector<16x64xf32>
    %407 = arith.mulf %406, %406 : vector<16x64xf32>
    %cst_151 = arith.constant dense<0.000000e+00> : vector<16xf32>
    %408 = vector.multi_reduction <add>, %407, %cst_151 [1] : vector<16x64xf32> to vector<16xf32>
    %409 = vector.shape_cast %408 : vector<16xf32> to vector<16x1xf32>
    %cst_152 = arith.constant 6.400000e+01 : f32
    %410 = vector.broadcast %cst_152 : f32 to vector<16x1xf32>
    %411 = arith.divf %409, %410 : vector<16x1xf32>
    %412 = vector.broadcast %404 : vector<16x1xf32> to vector<16x64xf32>
    %413 = arith.subf %396, %412 : vector<16x64xf32>
    %cst_153 = arith.constant 9.99999974E-6 : f32
    %414 = vector.broadcast %cst_153 : f32 to vector<16x1xf32>
    %415 = arith.addf %411, %414 : vector<16x1xf32>
    %416 = math.rsqrt %415 : vector<16x1xf32>
    %417 = vector.broadcast %416 : vector<16x1xf32> to vector<16x64xf32>
    %418 = arith.mulf %413, %417 : vector<16x64xf32>
    %419 = vector.shape_cast %398 : vector<64xf32> to vector<1x64xf32>
    %420 = vector.broadcast %419 : vector<1x64xf32> to vector<16x64xf32>
    %421 = arith.mulf %418, %420 : vector<16x64xf32>
    %422 = vector.shape_cast %400 : vector<64xf32> to vector<1x64xf32>
    %423 = vector.broadcast %422 : vector<1x64xf32> to vector<16x64xf32>
    %424 = arith.addf %421, %423 : vector<16x64xf32>
    %425 = arith.truncf %424 : vector<16x64xf32> to vector<16x64xbf16>
    %c1_154 = arith.constant 1 : index
    %c0_155 = arith.constant 0 : index
    %c0_156 = arith.constant 0 : index
    %426 = vector.load %arg15[%c1_154, %c0_155, %c0_156] : memref<2x64x256xbf16, #tpu.memory_space<vmem>>, vector<1x64x256xbf16>
    %427 = vector.shape_cast %426 : vector<1x64x256xbf16> to vector<64x256xbf16>
    %cst_157 = arith.constant dense<0.000000e+00> : vector<16x256xf32>
    %428 = tpu.matmul %425, %427, %cst_157 {dimension_numbers = #tpu.dot_dimension_numbers<[1], [0], [0], [1], [0, 0, 1, 1], [], []>} : vector<16x64xbf16>, vector<64x256xbf16>, vector<16x256xf32> -> vector<16x256xf32>
    %c1_158 = arith.constant 1 : index
    %c0_159 = arith.constant 0 : index
    %429 = vector.load %arg16[%c1_158, %c0_159] : memref<2x256xf32, #tpu.memory_space<vmem>>, vector<1x256xf32>
    %430 = vector.shape_cast %429 : vector<1x256xf32> to vector<256xf32>
    %431 = vector.shape_cast %430 : vector<256xf32> to vector<1x256xf32>
    %432 = vector.broadcast %431 : vector<1x256xf32> to vector<16x256xf32>
    %433 = arith.addf %428, %432 : vector<16x256xf32>
    %cst_160 = arith.constant 0.000000e+00 : f32
    %434 = vector.broadcast %cst_160 : f32 to vector<16x256xf32>
    %435 = arith.maximumf %433, %434 : vector<16x256xf32>
    %436 = arith.truncf %435 : vector<16x256xf32> to vector<16x256xbf16>
    %c1_161 = arith.constant 1 : index
    %c0_162 = arith.constant 0 : index
    %c0_163 = arith.constant 0 : index
    %437 = vector.load %arg17[%c1_161, %c0_162, %c0_163] : memref<2x256x64xbf16, #tpu.memory_space<vmem>>, vector<1x256x64xbf16>
    %438 = vector.shape_cast %437 : vector<1x256x64xbf16> to vector<256x64xbf16>
    %cst_164 = arith.constant dense<0.000000e+00> : vector<16x64xf32>
    %439 = tpu.matmul %436, %438, %cst_164 {dimension_numbers = #tpu.dot_dimension_numbers<[1], [0], [0], [1], [0, 0, 1, 1], [], []>} : vector<16x256xbf16>, vector<256x64xbf16>, vector<16x64xf32> -> vector<16x64xf32>
    %c1_165 = arith.constant 1 : index
    %c0_166 = arith.constant 0 : index
    %440 = vector.load %arg18[%c1_165, %c0_166] : memref<2x64xf32, #tpu.memory_space<vmem>>, vector<1x64xf32>
    %441 = vector.shape_cast %440 : vector<1x64xf32> to vector<64xf32>
    %442 = vector.shape_cast %441 : vector<64xf32> to vector<1x64xf32>
    %443 = vector.broadcast %442 : vector<1x64xf32> to vector<16x64xf32>
    %444 = arith.addf %439, %443 : vector<16x64xf32>
    %445 = arith.addf %424, %444 : vector<16x64xf32>
    %c1_167 = arith.constant 1 : index
    %c0_168 = arith.constant 0 : index
    %446 = vector.load %arg13[%c1_167, %c0_168] : memref<2x64xf32, #tpu.memory_space<vmem>>, vector<1x64xf32>
    %447 = vector.shape_cast %446 : vector<1x64xf32> to vector<64xf32>
    %c1_169 = arith.constant 1 : index
    %c0_170 = arith.constant 0 : index
    %448 = vector.load %arg14[%c1_169, %c0_170] : memref<2x64xf32, #tpu.memory_space<vmem>>, vector<1x64xf32>
    %449 = vector.shape_cast %448 : vector<1x64xf32> to vector<64xf32>
    %cst_171 = arith.constant dense<0.000000e+00> : vector<16xf32>
    %450 = vector.multi_reduction <add>, %445, %cst_171 [1] : vector<16x64xf32> to vector<16xf32>
    %451 = vector.shape_cast %450 : vector<16xf32> to vector<16x1xf32>
    %cst_172 = arith.constant 6.400000e+01 : f32
    %452 = vector.broadcast %cst_172 : f32 to vector<16x1xf32>
    %453 = arith.divf %451, %452 : vector<16x1xf32>
    %454 = vector.broadcast %453 : vector<16x1xf32> to vector<16x64xf32>
    %455 = arith.subf %445, %454 : vector<16x64xf32>
    %456 = arith.mulf %455, %455 : vector<16x64xf32>
    %cst_173 = arith.constant dense<0.000000e+00> : vector<16xf32>
    %457 = vector.multi_reduction <add>, %456, %cst_173 [1] : vector<16x64xf32> to vector<16xf32>
    %458 = vector.shape_cast %457 : vector<16xf32> to vector<16x1xf32>
    %cst_174 = arith.constant 6.400000e+01 : f32
    %459 = vector.broadcast %cst_174 : f32 to vector<16x1xf32>
    %460 = arith.divf %458, %459 : vector<16x1xf32>
    %461 = vector.broadcast %453 : vector<16x1xf32> to vector<16x64xf32>
    %462 = arith.subf %445, %461 : vector<16x64xf32>
    %cst_175 = arith.constant 9.99999974E-6 : f32
    %463 = vector.broadcast %cst_175 : f32 to vector<16x1xf32>
    %464 = arith.addf %460, %463 : vector<16x1xf32>
    %465 = math.rsqrt %464 : vector<16x1xf32>
    %466 = vector.broadcast %465 : vector<16x1xf32> to vector<16x64xf32>
    %467 = arith.mulf %462, %466 : vector<16x64xf32>
    %468 = vector.shape_cast %447 : vector<64xf32> to vector<1x64xf32>
    %469 = vector.broadcast %468 : vector<1x64xf32> to vector<16x64xf32>
    %470 = arith.mulf %467, %469 : vector<16x64xf32>
    %471 = vector.shape_cast %449 : vector<64xf32> to vector<1x64xf32>
    %472 = vector.broadcast %471 : vector<1x64xf32> to vector<16x64xf32>
    %473 = arith.addf %470, %472 : vector<16x64xf32>
    %474 = arith.truncf %473 : vector<16x64xf32> to vector<16x64xbf16>
    %c0_176 = arith.constant 0 : index
    %c0_177 = arith.constant 0 : index
    %475 = vector.load %arg19[%c0_176, %c0_177] : memref<64x128xbf16, #tpu.memory_space<vmem>>, vector<64x128xbf16>
    %cst_178 = arith.constant dense<0.000000e+00> : vector<16x128xf32>
    %476 = tpu.matmul %474, %475, %cst_178 {dimension_numbers = #tpu.dot_dimension_numbers<[1], [0], [0], [1], [0, 0, 1, 1], [], []>} : vector<16x64xbf16>, vector<64x128xbf16>, vector<16x128xf32> -> vector<16x128xf32>
    %c0_179 = arith.constant 0 : index
    %c0_180 = arith.constant 0 : index
    %477 = vector.load %arg20[%c0_179, %c0_180] : memref<1x128xf32, #tpu.memory_space<vmem>>, vector<1x128xf32>
    %478 = vector.broadcast %477 : vector<1x128xf32> to vector<16x128xf32>
    %479 = arith.addf %476, %478 : vector<16x128xf32>
    %480 = arith.negf %479 : vector<16x128xf32>
    %481 = math.exp %480 : vector<16x128xf32>
    %cst_181 = arith.constant 1.000000e+00 : f32
    %482 = vector.broadcast %cst_181 : f32 to vector<16x128xf32>
    %483 = arith.addf %482, %481 : vector<16x128xf32>
    %484 = arith.divf %482, %483 : vector<16x128xf32>
    %c0_182 = arith.constant 0 : index
    %c0_183 = arith.constant 0 : index
    %485 = vector.load %arg21[%c0_182, %c0_183] : memref<16x128xf32, #tpu.memory_space<vmem>>, vector<16x128xf32>
    tpu.vector_store %arg21[%c0_182, %c0_183], %484 {strides = array<i32>} : memref<16x128xf32, #tpu.memory_space<vmem>>, vector<16x128xf32>,
    return
  }
  func.func @transform_0(%arg0: i32) -> (i32, i32) {
    %c0_i32 = arith.constant 0 : i32
    %c0_i32_0 = arith.constant 0 : i32
    return %arg0, %c0_i32 : i32, i32
  }
  func.func @transform_1(%arg0: i32) -> (i32, i32) {
    %c0_i32 = arith.constant 0 : i32
    %c0_i32_0 = arith.constant 0 : i32
    %c0_i32_1 = arith.constant 0 : i32
    return %c0_i32, %c0_i32_0 : i32, i32
  }
  func.func @transform_2(%arg0: i32) -> (i32, i32) {
    %c0_i32 = arith.constant 0 : i32
    %c0_i32_0 = arith.constant 0 : i32
    %c0_i32_1 = arith.constant 0 : i32
    return %c0_i32, %c0_i32_0 : i32, i32
  }
  func.func @transform_3(%arg0: i32) -> (i32, i32, i32) {
    %c0_i32 = arith.constant 0 : i32
    %c0_i32_0 = arith.constant 0 : i32
    %c0_i32_1 = arith.constant 0 : i32
    %c0_i32_2 = arith.constant 0 : i32
    return %c0_i32, %c0_i32_0, %c0_i32_1 : i32, i32, i32
  }
  func.func @transform_4(%arg0: i32) -> (i32, i32) {
    %c0_i32 = arith.constant 0 : i32
    %c0_i32_0 = arith.constant 0 : i32
    %c0_i32_1 = arith.constant 0 : i32
    return %c0_i32, %c0_i32_0 : i32, i32
  }
  func.func @transform_5(%arg0: i32) -> (i32, i32, i32, i32) {
    %c0_i32 = arith.constant 0 : i32
    %c0_i32_0 = arith.constant 0 : i32
    %c0_i32_1 = arith.constant 0 : i32
    %c0_i32_2 = arith.constant 0 : i32
    %c0_i32_3 = arith.constant 0 : i32
    return %c0_i32, %c0_i32_0, %c0_i32_1, %c0_i32_2 : i32, i32, i32, i32
  }
  func.func @transform_6(%arg0: i32) -> (i32, i32) {
    %c0_i32 = arith.constant 0 : i32
    %c0_i32_0 = arith.constant 0 : i32
    %c0_i32_1 = arith.constant 0 : i32
    return %c0_i32, %c0_i32_0 : i32, i32
  }
  func.func @transform_7(%arg0: i32) -> (i32, i32) {
    %c0_i32 = arith.constant 0 : i32
    %c0_i32_0 = arith.constant 0 : i32
    %c0_i32_1 = arith.constant 0 : i32
    return %c0_i32, %c0_i32_0 : i32, i32
  }
  func.func @transform_8(%arg0: i32) -> (i32, i32) {
    %c0_i32 = arith.constant 0 : i32
    %c0_i32_0 = arith.constant 0 : i32
    %c0_i32_1 = arith.constant 0 : i32
    return %c0_i32, %c0_i32_0 : i32, i32
  }
  func.func @transform_9(%arg0: i32) -> (i32, i32) {
    %c0_i32 = arith.constant 0 : i32
    %c0_i32_0 = arith.constant 0 : i32
    %c0_i32_1 = arith.constant 0 : i32
    return %c0_i32, %c0_i32_0 : i32, i32
  }
  func.func @transform_10(%arg0: i32) -> (i32, i32) {
    %c0_i32 = arith.constant 0 : i32
    %c0_i32_0 = arith.constant 0 : i32
    %c0_i32_1 = arith.constant 0 : i32
    return %c0_i32, %c0_i32_0 : i32, i32
  }
  func.func @transform_11(%arg0: i32) -> (i32, i32) {
    %c0_i32 = arith.constant 0 : i32
    %c0_i32_0 = arith.constant 0 : i32
    %c0_i32_1 = arith.constant 0 : i32
    return %c0_i32, %c0_i32_0 : i32, i32
  }
  func.func @transform_12(%arg0: i32) -> (i32, i32) {
    %c0_i32 = arith.constant 0 : i32
    %c0_i32_0 = arith.constant 0 : i32
    %c0_i32_1 = arith.constant 0 : i32
    return %c0_i32, %c0_i32_0 : i32, i32
  }
  func.func @transform_13(%arg0: i32) -> (i32, i32) {
    %c0_i32 = arith.constant 0 : i32
    %c0_i32_0 = arith.constant 0 : i32
    %c0_i32_1 = arith.constant 0 : i32
    return %c0_i32, %c0_i32_0 : i32, i32
  }
  func.func @transform_14(%arg0: i32) -> (i32, i32, i32) {
    %c0_i32 = arith.constant 0 : i32
    %c0_i32_0 = arith.constant 0 : i32
    %c0_i32_1 = arith.constant 0 : i32
    %c0_i32_2 = arith.constant 0 : i32
    return %c0_i32, %c0_i32_0, %c0_i32_1 : i32, i32, i32
  }
  func.func @transform_15(%arg0: i32) -> (i32, i32) {
    %c0_i32 = arith.constant 0 : i32
    %c0_i32_0 = arith.constant 0 : i32
    %c0_i32_1 = arith.constant 0 : i32
    return %c0_i32, %c0_i32_0 : i32, i32
  }
  func.func @transform_16(%arg0: i32) -> (i32, i32, i32) {
    %c0_i32 = arith.constant 0 : i32
    %c0_i32_0 = arith.constant 0 : i32
    %c0_i32_1 = arith.constant 0 : i32
    %c0_i32_2 = arith.constant 0 : i32
    return %c0_i32, %c0_i32_0, %c0_i32_1 : i32, i32, i32
  }
  func.func @transform_17(%arg0: i32) -> (i32, i32) {
    %c0_i32 = arith.constant 0 : i32
    %c0_i32_0 = arith.constant 0 : i32
    %c0_i32_1 = arith.constant 0 : i32
    return %c0_i32, %c0_i32_0 : i32, i32
  }
  func.func @transform_18(%arg0: i32) -> (i32, i32) {
    %c0_i32 = arith.constant 0 : i32
    %c0_i32_0 = arith.constant 0 : i32
    %c0_i32_1 = arith.constant 0 : i32
    return %c0_i32, %c0_i32_0 : i32, i32
  }
  func.func @transform_19(%arg0: i32) -> (i32, i32) {
    %c0_i32 = arith.constant 0 : i32
    %c0_i32_0 = arith.constant 0 : i32
    %c0_i32_1 = arith.constant 0 : i32
    return %c0_i32, %c0_i32_0 : i32, i32
  }
  func.func @transform_20(%arg0: i32) -> (i32, i32) {
    %c0_i32 = arith.constant 0 : i32
    %c0_i32_0 = arith.constant 0 : i32
    return %arg0, %c0_i32 : i32, i32
  }
}

module attributes {stable_mosaic.version = 11 : i64} {
  func.func @kernel(%arg0: i32, %arg1: memref<16x32xbf16, #tpu.memory_space<vmem>>, %arg2: memref<16x64xf32, #tpu.memory_space<vmem>>, %arg3: memref<32x64xbf16, #tpu.memory_space<vmem>>, %arg4: memref<2x64x192xbf16, #tpu.memory_space<vmem>>, %arg5: memref<2x192xf32, #tpu.memory_space<vmem>>, %arg6: memref<2x4x16x64xbf16, #tpu.memory_space<vmem>>, %arg7: memref<2x64xf32, #tpu.memory_space<vmem>>, %arg8: memref<2x64xf32, #tpu.memory_space<vmem>>, %arg9: memref<2x64xf32, #tpu.memory_space<vmem>>, %arg10: memref<2x64xf32, #tpu.memory_space<vmem>>, %arg11: memref<2x64xf32, #tpu.memory_space<vmem>>, %arg12: memref<2x64xf32, #tpu.memory_space<vmem>>, %arg13: memref<2x64xf32, #tpu.memory_space<vmem>>, %arg14: memref<2x64xf32, #tpu.memory_space<vmem>>, %arg15: memref<2x64x256xbf16, #tpu.memory_space<vmem>>, %arg16: memref<2x256xf32, #tpu.memory_space<vmem>>, %arg17: memref<2x256x64xbf16, #tpu.memory_space<vmem>>, %arg18: memref<2x64xf32, #tpu.memory_space<vmem>>, %arg19: memref<64x128xbf16, #tpu.memory_space<vmem>>, %arg20: memref<1x128xf32, #tpu.memory_space<vmem>>, %arg21: memref<16x128xf32, #tpu.memory_space<vmem>>) attributes {dimension_semantics = [#tpu.dimension_semantics<parallel>], iteration_bounds = array<i64: 2>, scalar_prefetch = 0 : i64, scratch_operands = 0 : i64, tpu.core_type = #tpu.core_type<tc>, window_params = [{transform_indices = @transform_0, window_bounds = array<i64: 16, 32>}, {pipeline_mode = #tpu.pipeline_mode<synchronous>, transform_indices = @transform_1, window_bounds = array<i64: 16, 64>}, {pipeline_mode = #tpu.pipeline_mode<synchronous>, transform_indices = @transform_2, window_bounds = array<i64: 32, 64>}, {pipeline_mode = #tpu.pipeline_mode<synchronous>, transform_indices = @transform_3, window_bounds = array<i64: 2, 64, 192>}, {pipeline_mode = #tpu.pipeline_mode<synchronous>, transform_indices = @transform_4, window_bounds = array<i64: 2, 192>}, {pipeline_mode = #tpu.pipeline_mode<synchronous>, transform_indices = @transform_5, window_bounds = array<i64: 2, 4, 16, 64>}, {pipeline_mode = #tpu.pipeline_mode<synchronous>, transform_indices = @transform_6, window_bounds = array<i64: 2, 64>}, {pipeline_mode = #tpu.pipeline_mode<synchronous>, transform_indices = @transform_7, window_bounds = array<i64: 2, 64>}, {pipeline_mode = #tpu.pipeline_mode<synchronous>, transform_indices = @transform_8, window_bounds = array<i64: 2, 64>}, {pipeline_mode = #tpu.pipeline_mode<synchronous>, transform_indices = @transform_9, window_bounds = array<i64: 2, 64>}, {pipeline_mode = #tpu.pipeline_mode<synchronous>, transform_indices = @transform_10, window_bounds = array<i64: 2, 64>}, {pipeline_mode = #tpu.pipeline_mode<synchronous>, transform_indices = @transform_11, window_bounds = array<i64: 2, 64>}, {pipeline_mode = #tpu.pipeline_mode<synchronous>, transform_indices = @transform_12, window_bounds = array<i64: 2, 64>}, {pipeline_mode = #tpu.pipeline_mode<synchronous>, transform_indices = @transform_13, window_bounds = array<i64: 2, 64>}, {pipeline_mode = #tpu.pipeline_mode<synchronous>, transform_indices = @transform_14, window_bounds = array<i64: 2, 64, 256>}, {pipeline_mode = #tpu.pipeline_mode<synchronous>, transform_indices = @transform_15, window_bounds = array<i64: 2, 256>}, {pipeline_mode = #tpu.pipeline_mode<synchronous>, transform_indices = @transform_16, window_bounds = array<i64: 2, 256, 64>}, {pipeline_mode = #tpu.pipeline_mode<synchronous>, transform_indices = @transform_17, window_bounds = array<i64: 2, 64>}, {pipeline_mode = #tpu.pipeline_mode<synchronous>, transform_indices = @transform_18, window_bounds = array<i64: 64, 128>}, {pipeline_mode = #tpu.pipeline_mode<synchronous>, transform_indices = @transform_19, window_bounds = array<i64: 1, 128>}, {transform_indices = @transform_20, window_bounds = array<i64: 16, 128>}]} {
    %0 = tpu.iota {dimensions = array<i32: 0>} : vector<16x16xi32>
    %1 = tpu.iota {dimensions = array<i32: 1>} : vector<16x16xi32>
    %2 = arith.cmpi sle, %1, %0 : vector<16x16xi32>
    %cst = arith.constant 0.000000e+00 : f32
    %cst_0 = arith.constant -1.000000e+30 : f32
    %3 = vector.broadcast %cst : f32 to vector<16x16xf32>
    %4 = vector.broadcast %cst_0 : f32 to vector<16x16xf32>
    %5 = arith.select %2, %3, %4 : vector<16x16xi1>, vector<16x16xf32>
    %c0 = arith.constant 0 : index
    %c0_1 = arith.constant 0 : index
    %6 = vector.load %arg1[%c0, %c0_1] : memref<16x32xbf16, #tpu.memory_space<vmem>>, vector<16x32xbf16>
    %c0_2 = arith.constant 0 : index
    %c0_3 = arith.constant 0 : index
    %7 = vector.load %arg3[%c0_2, %c0_3] : memref<32x64xbf16, #tpu.memory_space<vmem>>, vector<32x64xbf16>
    %cst_4 = arith.constant dense<0.000000e+00> : vector<16x64xf32>
    %8 = tpu.matmul %6, %7, %cst_4 {dimension_numbers = #tpu.dot_dimension_numbers<[1], [0], [0], [1], [0, 0, 1, 1], [], []>} : vector<16x32xbf16>, vector<32x64xbf16>, vector<16x64xf32> -> vector<16x64xf32>
    %9 = vector.shape_cast %8 : vector<16x64xf32> to vector<1x16x64xf32>
    %c0_5 = arith.constant 0 : index
    %c0_6 = arith.constant 0 : index
    %10 = vector.load %arg2[%c0_5, %c0_6] : memref<16x64xf32, #tpu.memory_space<vmem>>, vector<16x64xf32>
    %11 = vector.shape_cast %10 : vector<16x64xf32> to vector<1x16x64xf32>
    %12 = arith.addf %9, %11 : vector<1x16x64xf32>
    %13 = vector.shape_cast %12 : vector<1x16x64xf32> to vector<16x64xf32>
    %14 = arith.truncf %13 : vector<16x64xf32> to vector<16x64xbf16>
    %c0_7 = arith.constant 0 : index
    %c0_8 = arith.constant 0 : index
    %c0_9 = arith.constant 0 : index
    %15 = vector.load %arg4[%c0_7, %c0_8, %c0_9] : memref<2x64x192xbf16, #tpu.memory_space<vmem>>, vector<1x64x192xbf16>
    %16 = vector.shape_cast %15 : vector<1x64x192xbf16> to vector<64x192xbf16>
    %cst_10 = arith.constant dense<0.000000e+00> : vector<16x192xf32>
    %17 = tpu.matmul %14, %16, %cst_10 {dimension_numbers = #tpu.dot_dimension_numbers<[1], [0], [0], [1], [0, 0, 1, 1], [], []>} : vector<16x64xbf16>, vector<64x192xbf16>, vector<16x192xf32> -> vector<16x192xf32>
    %c0_11 = arith.constant 0 : index
    %c0_12 = arith.constant 0 : index
    %18 = vector.load %arg5[%c0_11, %c0_12] : memref<2x192xf32, #tpu.memory_space<vmem>>, vector<1x192xf32>
    %19 = vector.shape_cast %18 : vector<1x192xf32> to vector<192xf32>
    %20 = vector.shape_cast %19 : vector<192xf32> to vector<1x192xf32>
    %21 = vector.broadcast %20 : vector<1x192xf32> to vector<16x192xf32>
    %22 = arith.addf %17, %21 : vector<16x192xf32>
    %23 = vector.shape_cast %22 : vector<16x192xf32> to vector<1x16x192xf32>
    %24 = vector.extract_strided_slice %23 {offsets = [0, 0, 0], sizes = [1, 16, 16], strides = [1, 1, 1]} : vector<1x16x192xf32> to vector<1x16x16xf32>
    %25 = arith.truncf %24 : vector<1x16x16xf32> to vector<1x16x16xbf16>
    %26 = vector.extract_strided_slice %23 {offsets = [0, 0, 64], sizes = [1, 16, 16], strides = [1, 1, 1]} : vector<1x16x192xf32> to vector<1x16x16xf32>
    %27 = arith.truncf %26 : vector<1x16x16xf32> to vector<1x16x16xbf16>
    %28 = vector.extract_strided_slice %23 {offsets = [0, 0, 128], sizes = [1, 16, 16], strides = [1, 1, 1]} : vector<1x16x192xf32> to vector<1x16x16xf32>
    %29 = arith.truncf %28 : vector<1x16x16xf32> to vector<1x16x16xbf16>
    "tpu.trace_start"() <{level = 10 : i32, message = "bqd,bkd->bqk"}> : () -> ()
    %cst_13 = arith.constant dense<0.000000e+00> : vector<1x16x16xf32>
    %30 = tpu.matmul %25, %27, %cst_13 {dimension_numbers = #tpu.dot_dimension_numbers<[2], [2], [1], [1], [0, 0, 0, 1, 1, 1], [0], [0]>} : vector<1x16x16xbf16>, vector<1x16x16xbf16>, vector<1x16x16xf32> -> vector<1x16x16xf32>
    "tpu.trace_stop"() : () -> ()
    %31 = vector.shape_cast %5 : vector<16x16xf32> to vector<1x16x16xf32>
    %32 = arith.addf %30, %31 : vector<1x16x16xf32>
    %cst_14 = arith.constant dense<0xFF800000> : vector<1x16xf32>
    %33 = vector.multi_reduction <maximumf>, %32, %cst_14 [2] : vector<1x16x16xf32> to vector<1x16xf32>
    %34 = vector.shape_cast %33 : vector<1x16xf32> to vector<1x16x1xf32>
    %35 = vector.broadcast %34 : vector<1x16x1xf32> to vector<1x16x16xf32>
    %36 = arith.subf %32, %35 : vector<1x16x16xf32>
    %37 = math.exp %36 : vector<1x16x16xf32>
    %cst_15 = arith.constant dense<0.000000e+00> : vector<1x16xf32>
    %38 = vector.multi_reduction <add>, %37, %cst_15 [2] : vector<1x16x16xf32> to vector<1x16xf32>
    %39 = vector.shape_cast %38 : vector<1x16xf32> to vector<1x16x1xf32>
    %40 = tpu.reciprocal %39 {approx = true} : vector<1x16x1xf32> -> vector<1x16x1xf32>
    %41 = vector.broadcast %40 : vector<1x16x1xf32> to vector<1x16x16xf32>
    %42 = arith.mulf %37, %41 : vector<1x16x16xf32>
    %43 = arith.truncf %42 : vector<1x16x16xf32> to vector<1x16x16xbf16>
    "tpu.trace_start"() <{level = 10 : i32, message = "bqk,bkd->bqd"}> : () -> ()
    %cst_16 = arith.constant dense<0.000000e+00> : vector<1x16x16xf32>
    %44 = tpu.matmul %43, %29, %cst_16 {dimension_numbers = #tpu.dot_dimension_numbers<[2], [1], [1], [2], [0, 0, 0, 1, 1, 2], [0], [0]>} : vector<1x16x16xbf16>, vector<1x16x16xbf16>, vector<1x16x16xf32> -> vector<1x16x16xf32>
    "tpu.trace_stop"() : () -> ()
    %45 = arith.truncf %44 : vector<1x16x16xf32> to vector<1x16x16xbf16>
    %c0_17 = arith.constant 0 : index
    %c0_18 = arith.constant 0 : index
    %c0_19 = arith.constant 0 : index
    %c0_20 = arith.constant 0 : index
    %46 = vector.load %arg6[%c0_17, %c0_18, %c0_19, %c0_20] : memref<2x4x16x64xbf16, #tpu.memory_space<vmem>>, vector<1x1x16x64xbf16>
    %47 = vector.shape_cast %46 : vector<1x1x16x64xbf16> to vector<16x64xbf16>
    "tpu.trace_start"() <{level = 10 : i32, message = "bqd,do->bqo"}> : () -> ()
    %cst_21 = arith.constant dense<0.000000e+00> : vector<1x16x64xf32>
    %48 = tpu.matmul %45, %47, %cst_21 {dimension_numbers = #tpu.dot_dimension_numbers<[2], [0], [0, 1], [1], [0, 0, 0, 1, 1, 1], [], []>} : vector<1x16x16xbf16>, vector<16x64xbf16>, vector<1x16x64xf32> -> vector<1x16x64xf32>
    "tpu.trace_stop"() : () -> ()
    %49 = vector.extract_strided_slice %23 {offsets = [0, 0, 16], sizes = [1, 16, 16], strides = [1, 1, 1]} : vector<1x16x192xf32> to vector<1x16x16xf32>
    %50 = arith.truncf %49 : vector<1x16x16xf32> to vector<1x16x16xbf16>
    %51 = vector.extract_strided_slice %23 {offsets = [0, 0, 80], sizes = [1, 16, 16], strides = [1, 1, 1]} : vector<1x16x192xf32> to vector<1x16x16xf32>
    %52 = arith.truncf %51 : vector<1x16x16xf32> to vector<1x16x16xbf16>
    %53 = vector.extract_strided_slice %23 {offsets = [0, 0, 144], sizes = [1, 16, 16], strides = [1, 1, 1]} : vector<1x16x192xf32> to vector<1x16x16xf32>
    %54 = arith.truncf %53 : vector<1x16x16xf32> to vector<1x16x16xbf16>
    "tpu.trace_start"() <{level = 10 : i32, message = "bqd,bkd->bqk"}> : () -> ()
    %cst_22 = arith.constant dense<0.000000e+00> : vector<1x16x16xf32>
    %55 = tpu.matmul %50, %52, %cst_22 {dimension_numbers = #tpu.dot_dimension_numbers<[2], [2], [1], [1], [0, 0, 0, 1, 1, 1], [0], [0]>} : vector<1x16x16xbf16>, vector<1x16x16xbf16>, vector<1x16x16xf32> -> vector<1x16x16xf32>
    "tpu.trace_stop"() : () -> ()
    %56 = vector.shape_cast %5 : vector<16x16xf32> to vector<1x16x16xf32>
    %57 = arith.addf %55, %56 : vector<1x16x16xf32>
    %cst_23 = arith.constant dense<0xFF800000> : vector<1x16xf32>
    %58 = vector.multi_reduction <maximumf>, %57, %cst_23 [2] : vector<1x16x16xf32> to vector<1x16xf32>
    %59 = vector.shape_cast %58 : vector<1x16xf32> to vector<1x16x1xf32>
    %60 = vector.broadcast %59 : vector<1x16x1xf32> to vector<1x16x16xf32>
    %61 = arith.subf %57, %60 : vector<1x16x16xf32>
    %62 = math.exp %61 : vector<1x16x16xf32>
    %cst_24 = arith.constant dense<0.000000e+00> : vector<1x16xf32>
    %63 = vector.multi_reduction <add>, %62, %cst_24 [2] : vector<1x16x16xf32> to vector<1x16xf32>
    %64 = vector.shape_cast %63 : vector<1x16xf32> to vector<1x16x1xf32>
    %65 = tpu.reciprocal %64 {approx = true} : vector<1x16x1xf32> -> vector<1x16x1xf32>
    %66 = vector.broadcast %65 : vector<1x16x1xf32> to vector<1x16x16xf32>
    %67 = arith.mulf %62, %66 : vector<1x16x16xf32>
    %68 = arith.truncf %67 : vector<1x16x16xf32> to vector<1x16x16xbf16>
    "tpu.trace_start"() <{level = 10 : i32, message = "bqk,bkd->bqd"}> : () -> ()
    %cst_25 = arith.constant dense<0.000000e+00> : vector<1x16x16xf32>
    %69 = tpu.matmul %68, %54, %cst_25 {dimension_numbers = #tpu.dot_dimension_numbers<[2], [1], [1], [2], [0, 0, 0, 1, 1, 2], [0], [0]>} : vector<1x16x16xbf16>, vector<1x16x16xbf16>, vector<1x16x16xf32> -> vector<1x16x16xf32>
    "tpu.trace_stop"() : () -> ()
    %70 = arith.truncf %69 : vector<1x16x16xf32> to vector<1x16x16xbf16>
    %c0_26 = arith.constant 0 : index
    %c1 = arith.constant 1 : index
    %c0_27 = arith.constant 0 : index
    %c0_28 = arith.constant 0 : index
    %71 = vector.load %arg6[%c0_26, %c1, %c0_27, %c0_28] : memref<2x4x16x64xbf16, #tpu.memory_space<vmem>>, vector<1x1x16x64xbf16>
    %72 = vector.shape_cast %71 : vector<1x1x16x64xbf16> to vector<16x64xbf16>
    "tpu.trace_start"() <{level = 10 : i32, message = "bqd,do->bqo"}> : () -> ()
    %cst_29 = arith.constant dense<0.000000e+00> : vector<1x16x64xf32>
    %73 = tpu.matmul %70, %72, %cst_29 {dimension_numbers = #tpu.dot_dimension_numbers<[2], [0], [0, 1], [1], [0, 0, 0, 1, 1, 1], [], []>} : vector<1x16x16xbf16>, vector<16x64xbf16>, vector<1x16x64xf32> -> vector<1x16x64xf32>
    "tpu.trace_stop"() : () -> ()
    %74 = arith.addf %48, %73 : vector<1x16x64xf32>
    %75 = vector.extract_strided_slice %23 {offsets = [0, 0, 32], sizes = [1, 16, 16], strides = [1, 1, 1]} : vector<1x16x192xf32> to vector<1x16x16xf32>
    %76 = arith.truncf %75 : vector<1x16x16xf32> to vector<1x16x16xbf16>
    %77 = vector.extract_strided_slice %23 {offsets = [0, 0, 96], sizes = [1, 16, 16], strides = [1, 1, 1]} : vector<1x16x192xf32> to vector<1x16x16xf32>
    %78 = arith.truncf %77 : vector<1x16x16xf32> to vector<1x16x16xbf16>
    %79 = vector.extract_strided_slice %23 {offsets = [0, 0, 160], sizes = [1, 16, 16], strides = [1, 1, 1]} : vector<1x16x192xf32> to vector<1x16x16xf32>
    %80 = arith.truncf %79 : vector<1x16x16xf32> to vector<1x16x16xbf16>
    "tpu.trace_start"() <{level = 10 : i32, message = "bqd,bkd->bqk"}> : () -> ()
    %cst_30 = arith.constant dense<0.000000e+00> : vector<1x16x16xf32>
    %81 = tpu.matmul %76, %78, %cst_30 {dimension_numbers = #tpu.dot_dimension_numbers<[2], [2], [1], [1], [0, 0, 0, 1, 1, 1], [0], [0]>} : vector<1x16x16xbf16>, vector<1x16x16xbf16>, vector<1x16x16xf32> -> vector<1x16x16xf32>
    "tpu.trace_stop"() : () -> ()
    %82 = vector.shape_cast %5 : vector<16x16xf32> to vector<1x16x16xf32>
    %83 = arith.addf %81, %82 : vector<1x16x16xf32>
    %cst_31 = arith.constant dense<0xFF800000> : vector<1x16xf32>
    %84 = vector.multi_reduction <maximumf>, %83, %cst_31 [2] : vector<1x16x16xf32> to vector<1x16xf32>
    %85 = vector.shape_cast %84 : vector<1x16xf32> to vector<1x16x1xf32>
    %86 = vector.broadcast %85 : vector<1x16x1xf32> to vector<1x16x16xf32>
    %87 = arith.subf %83, %86 : vector<1x16x16xf32>
    %88 = math.exp %87 : vector<1x16x16xf32>
    %cst_32 = arith.constant dense<0.000000e+00> : vector<1x16xf32>
    %89 = vector.multi_reduction <add>, %88, %cst_32 [2] : vector<1x16x16xf32> to vector<1x16xf32>
    %90 = vector.shape_cast %89 : vector<1x16xf32> to vector<1x16x1xf32>
    %91 = tpu.reciprocal %90 {approx = true} : vector<1x16x1xf32> -> vector<1x16x1xf32>
    %92 = vector.broadcast %91 : vector<1x16x1xf32> to vector<1x16x16xf32>
    %93 = arith.mulf %88, %92 : vector<1x16x16xf32>
    %94 = arith.truncf %93 : vector<1x16x16xf32> to vector<1x16x16xbf16>
    "tpu.trace_start"() <{level = 10 : i32, message = "bqk,bkd->bqd"}> : () -> ()
    %cst_33 = arith.constant dense<0.000000e+00> : vector<1x16x16xf32>
    %95 = tpu.matmul %94, %80, %cst_33 {dimension_numbers = #tpu.dot_dimension_numbers<[2], [1], [1], [2], [0, 0, 0, 1, 1, 2], [0], [0]>} : vector<1x16x16xbf16>, vector<1x16x16xbf16>, vector<1x16x16xf32> -> vector<1x16x16xf32>
    "tpu.trace_stop"() : () -> ()
    %96 = arith.truncf %95 : vector<1x16x16xf32> to vector<1x16x16xbf16>
    %c0_34 = arith.constant 0 : index
    %c2 = arith.constant 2 : index
    %c0_35 = arith.constant 0 : index
    %c0_36 = arith.constant 0 : index
    %97 = vector.load %arg6[%c0_34, %c2, %c0_35, %c0_36] : memref<2x4x16x64xbf16, #tpu.memory_space<vmem>>, vector<1x1x16x64xbf16>
    %98 = vector.shape_cast %97 : vector<1x1x16x64xbf16> to vector<16x64xbf16>
    "tpu.trace_start"() <{level = 10 : i32, message = "bqd,do->bqo"}> : () -> ()
    %cst_37 = arith.constant dense<0.000000e+00> : vector<1x16x64xf32>
    %99 = tpu.matmul %96, %98, %cst_37 {dimension_numbers = #tpu.dot_dimension_numbers<[2], [0], [0, 1], [1], [0, 0, 0, 1, 1, 1], [], []>} : vector<1x16x16xbf16>, vector<16x64xbf16>, vector<1x16x64xf32> -> vector<1x16x64xf32>
    "tpu.trace_stop"() : () -> ()
    %100 = arith.addf %74, %99 : vector<1x16x64xf32>
    %101 = vector.extract_strided_slice %23 {offsets = [0, 0, 48], sizes = [1, 16, 16], strides = [1, 1, 1]} : vector<1x16x192xf32> to vector<1x16x16xf32>
    %102 = arith.truncf %101 : vector<1x16x16xf32> to vector<1x16x16xbf16>
    %103 = vector.extract_strided_slice %23 {offsets = [0, 0, 112], sizes = [1, 16, 16], strides = [1, 1, 1]} : vector<1x16x192xf32> to vector<1x16x16xf32>
    %104 = arith.truncf %103 : vector<1x16x16xf32> to vector<1x16x16xbf16>
    %105 = vector.extract_strided_slice %23 {offsets = [0, 0, 176], sizes = [1, 16, 16], strides = [1, 1, 1]} : vector<1x16x192xf32> to vector<1x16x16xf32>
    %106 = arith.truncf %105 : vector<1x16x16xf32> to vector<1x16x16xbf16>
    "tpu.trace_start"() <{level = 10 : i32, message = "bqd,bkd->bqk"}> : () -> ()
    %cst_38 = arith.constant dense<0.000000e+00> : vector<1x16x16xf32>
    %107 = tpu.matmul %102, %104, %cst_38 {dimension_numbers = #tpu.dot_dimension_numbers<[2], [2], [1], [1], [0, 0, 0, 1, 1, 1], [0], [0]>} : vector<1x16x16xbf16>, vector<1x16x16xbf16>, vector<1x16x16xf32> -> vector<1x16x16xf32>
    "tpu.trace_stop"() : () -> ()
    %108 = vector.shape_cast %5 : vector<16x16xf32> to vector<1x16x16xf32>
    %109 = arith.addf %107, %108 : vector<1x16x16xf32>
    %cst_39 = arith.constant dense<0xFF800000> : vector<1x16xf32>
    %110 = vector.multi_reduction <maximumf>, %109, %cst_39 [2] : vector<1x16x16xf32> to vector<1x16xf32>
    %111 = vector.shape_cast %110 : vector<1x16xf32> to vector<1x16x1xf32>
    %112 = vector.broadcast %111 : vector<1x16x1xf32> to vector<1x16x16xf32>
    %113 = arith.subf %109, %112 : vector<1x16x16xf32>
    %114 = math.exp %113 : vector<1x16x16xf32>
    %cst_40 = arith.constant dense<0.000000e+00> : vector<1x16xf32>
    %115 = vector.multi_reduction <add>, %114, %cst_40 [2] : vector<1x16x16xf32> to vector<1x16xf32>
    %116 = vector.shape_cast %115 : vector<1x16xf32> to vector<1x16x1xf32>
    %117 = tpu.reciprocal %116 {approx = true} : vector<1x16x1xf32> -> vector<1x16x1xf32>
    %118 = vector.broadcast %117 : vector<1x16x1xf32> to vector<1x16x16xf32>
    %119 = arith.mulf %114, %118 : vector<1x16x16xf32>
    %120 = arith.truncf %119 : vector<1x16x16xf32> to vector<1x16x16xbf16>
    "tpu.trace_start"() <{level = 10 : i32, message = "bqk,bkd->bqd"}> : () -> ()
    %cst_41 = arith.constant dense<0.000000e+00> : vector<1x16x16xf32>
    %121 = tpu.matmul %120, %106, %cst_41 {dimension_numbers = #tpu.dot_dimension_numbers<[2], [1], [1], [2], [0, 0, 0, 1, 1, 2], [0], [0]>} : vector<1x16x16xbf16>, vector<1x16x16xbf16>, vector<1x16x16xf32> -> vector<1x16x16xf32>
    "tpu.trace_stop"() : () -> ()
    %122 = arith.truncf %121 : vector<1x16x16xf32> to vector<1x16x16xbf16>
    %c0_42 = arith.constant 0 : index
    %c3 = arith.constant 3 : index
    %c0_43 = arith.constant 0 : index
    %c0_44 = arith.constant 0 : index
    %123 = vector.load %arg6[%c0_42, %c3, %c0_43, %c0_44] : memref<2x4x16x64xbf16, #tpu.memory_space<vmem>>, vector<1x1x16x64xbf16>
    %124 = vector.shape_cast %123 : vector<1x1x16x64xbf16> to vector<16x64xbf16>
    "tpu.trace_start"() <{level = 10 : i32, message = "bqd,do->bqo"}> : () -> ()
    %cst_45 = arith.constant dense<0.000000e+00> : vector<1x16x64xf32>
    %125 = tpu.matmul %122, %124, %cst_45 {dimension_numbers = #tpu.dot_dimension_numbers<[2], [0], [0, 1], [1], [0, 0, 0, 1, 1, 1], [], []>} : vector<1x16x16xbf16>, vector<16x64xbf16>, vector<1x16x64xf32> -> vector<1x16x64xf32>
    "tpu.trace_stop"() : () -> ()
    %126 = arith.addf %100, %125 : vector<1x16x64xf32>
    %127 = vector.shape_cast %126 : vector<1x16x64xf32> to vector<16x64xf32>
    %c0_46 = arith.constant 0 : index
    %c0_47 = arith.constant 0 : index
    %128 = vector.load %arg7[%c0_46, %c0_47] : memref<2x64xf32, #tpu.memory_space<vmem>>, vector<1x64xf32>
    %129 = vector.shape_cast %128 : vector<1x64xf32> to vector<64xf32>
    %130 = vector.shape_cast %129 : vector<64xf32> to vector<1x64xf32>
    %131 = vector.broadcast %130 : vector<1x64xf32> to vector<16x64xf32>
    %132 = arith.addf %127, %131 : vector<16x64xf32>
    %133 = arith.addf %13, %132 : vector<16x64xf32>
    %c0_48 = arith.constant 0 : index
    %c0_49 = arith.constant 0 : index
    %134 = vector.load %arg9[%c0_48, %c0_49] : memref<2x64xf32, #tpu.memory_space<vmem>>, vector<1x64xf32>
    %135 = vector.shape_cast %134 : vector<1x64xf32> to vector<64xf32>
    %c0_50 = arith.constant 0 : index
    %c0_51 = arith.constant 0 : index
    %136 = vector.load %arg10[%c0_50, %c0_51] : memref<2x64xf32, #tpu.memory_space<vmem>>, vector<1x64xf32>
    %137 = vector.shape_cast %136 : vector<1x64xf32> to vector<64xf32>
    %cst_52 = arith.constant dense<0.000000e+00> : vector<16xf32>
    %138 = vector.multi_reduction <add>, %133, %cst_52 [1] : vector<16x64xf32> to vector<16xf32>
    %139 = vector.shape_cast %138 : vector<16xf32> to vector<16x1xf32>
    %cst_53 = arith.constant 6.400000e+01 : f32
    %140 = vector.broadcast %cst_53 : f32 to vector<16x1xf32>
    %141 = arith.divf %139, %140 : vector<16x1xf32>
    %142 = vector.broadcast %141 : vector<16x1xf32> to vector<16x64xf32>
    %143 = arith.subf %133, %142 : vector<16x64xf32>
    %144 = arith.mulf %143, %143 : vector<16x64xf32>
    %cst_54 = arith.constant dense<0.000000e+00> : vector<16xf32>
    %145 = vector.multi_reduction <add>, %144, %cst_54 [1] : vector<16x64xf32> to vector<16xf32>
    %146 = vector.shape_cast %145 : vector<16xf32> to vector<16x1xf32>
    %cst_55 = arith.constant 6.400000e+01 : f32
    %147 = vector.broadcast %cst_55 : f32 to vector<16x1xf32>
    %148 = arith.divf %146, %147 : vector<16x1xf32>
    %149 = vector.broadcast %141 : vector<16x1xf32> to vector<16x64xf32>
    %150 = arith.subf %133, %149 : vector<16x64xf32>
    %cst_56 = arith.constant 9.99999974E-6 : f32
    %151 = vector.broadcast %cst_56 : f32 to vector<16x1xf32>
    %152 = arith.addf %148, %151 : vector<16x1xf32>
    %153 = math.rsqrt %152 : vector<16x1xf32>
    %154 = vector.broadcast %153 : vector<16x1xf32> to vector<16x64xf32>
    %155 = arith.mulf %150, %154 : vector<16x64xf32>
    %156 = vector.shape_cast %135 : vector<64xf32> to vector<1x64xf32>
    %157 = vector.broadcast %156 : vector<1x64xf32> to vector<16x64xf32>
    %158 = arith.mulf %155, %157 : vector<16x64xf32>
    %159 = vector.shape_cast %137 : vector<64xf32> to vector<1x64xf32>
    %160 = vector.broadcast %159 : vector<1x64xf32> to vector<16x64xf32>
    %161 = arith.addf %158, %160 : vector<16x64xf32>
    %c0_57 = arith.constant 0 : index
    %c0_58 = arith.constant 0 : index
    %162 = vector.load %arg8[%c0_57, %c0_58] : memref<2x64xf32, #tpu.memory_space<vmem>>, vector<1x64xf32>
    %163 = vector.shape_cast %162 : vector<1x64xf32> to vector<64xf32>
    %164 = vector.shape_cast %163 : vector<64xf32> to vector<1x64xf32>
    %165 = vector.broadcast %164 : vector<1x64xf32> to vector<16x64xf32>
    %166 = arith.addf %161, %165 : vector<16x64xf32>
    %c0_59 = arith.constant 0 : index
    %c0_60 = arith.constant 0 : index
    %167 = vector.load %arg11[%c0_59, %c0_60] : memref<2x64xf32, #tpu.memory_space<vmem>>, vector<1x64xf32>
    %168 = vector.shape_cast %167 : vector<1x64xf32> to vector<64xf32>
    %c0_61 = arith.constant 0 : index
    %c0_62 = arith.constant 0 : index
    %169 = vector.load %arg12[%c0_61, %c0_62] : memref<2x64xf32, #tpu.memory_space<vmem>>, vector<1x64xf32>
    %170 = vector.shape_cast %169 : vector<1x64xf32> to vector<64xf32>
    %cst_63 = arith.constant dense<0.000000e+00> : vector<16xf32>
    %171 = vector.multi_reduction <add>, %166, %cst_63 [1] : vector<16x64xf32> to vector<16xf32>
    %172 = vector.shape_cast %171 : vector<16xf32> to vector<16x1xf32>
    %cst_64 = arith.constant 6.400000e+01 : f32
    %173 = vector.broadcast %cst_64 : f32 to vector<16x1xf32>
    %174 = arith.divf %172, %173 : vector<16x1xf32>
    %175 = vector.broadcast %174 : vector<16x1xf32> to vector<16x64xf32>
    %176 = arith.subf %166, %175 : vector<16x64xf32>
    %177 = arith.mulf %176, %176 : vector<16x64xf32>
    %cst_65 = arith.constant dense<0.000000e+00> : vector<16xf32>
    %178 = vector.multi_reduction <add>, %177, %cst_65 [1] : vector<16x64xf32> to vector<16xf32>
    %179 = vector.shape_cast %178 : vector<16xf32> to vector<16x1xf32>
    %cst_66 = arith.constant 6.400000e+01 : f32
    %180 = vector.broadcast %cst_66 : f32 to vector<16x1xf32>
    %181 = arith.divf %179, %180 : vector<16x1xf32>
    %182 = vector.broadcast %174 : vector<16x1xf32> to vector<16x64xf32>
    %183 = arith.subf %166, %182 : vector<16x64xf32>
    %cst_67 = arith.constant 9.99999974E-6 : f32
    %184 = vector.broadcast %cst_67 : f32 to vector<16x1xf32>
    %185 = arith.addf %181, %184 : vector<16x1xf32>
    %186 = math.rsqrt %185 : vector<16x1xf32>
    %187 = vector.broadcast %186 : vector<16x1xf32> to vector<16x64xf32>
    %188 = arith.mulf %183, %187 : vector<16x64xf32>
    %189 = vector.shape_cast %168 : vector<64xf32> to vector<1x64xf32>
    %190 = vector.broadcast %189 : vector<1x64xf32> to vector<16x64xf32>
    %191 = arith.mulf %188, %190 : vector<16x64xf32>
    %192 = vector.shape_cast %170 : vector<64xf32> to vector<1x64xf32>
    %193 = vector.broadcast %192 : vector<1x64xf32> to vector<16x64xf32>
    %194 = arith.addf %191, %193 : vector<16x64xf32>
    %195 = arith.truncf %194 : vector<16x64xf32> to vector<16x64xbf16>
    %c0_68 = arith.constant 0 : index
    %c0_69 = arith.constant 0 : index
    %c0_70 = arith.constant 0 : index
    %196 = vector.load %arg15[%c0_68, %c0_69, %c0_70] : memref<2x64x256xbf16, #tpu.memory_space<vmem>>, vector<1x64x256xbf16>
    %197 = vector.shape_cast %196 : vector<1x64x256xbf16> to vector<64x256xbf16>
    %cst_71 = arith.constant dense<0.000000e+00> : vector<16x256xf32>
    %198 = tpu.matmul %195, %197, %cst_71 {dimension_numbers = #tpu.dot_dimension_numbers<[1], [0], [0], [1], [0, 0, 1, 1], [], []>} : vector<16x64xbf16>, vector<64x256xbf16>, vector<16x256xf32> -> vector<16x256xf32>
    %c0_72 = arith.constant 0 : index
    %c0_73 = arith.constant 0 : index
    %199 = vector.load %arg16[%c0_72, %c0_73] : memref<2x256xf32, #tpu.memory_space<vmem>>, vector<1x256xf32>
    %200 = vector.shape_cast %199 : vector<1x256xf32> to vector<256xf32>
    %201 = vector.shape_cast %200 : vector<256xf32> to vector<1x256xf32>
    %202 = vector.broadcast %201 : vector<1x256xf32> to vector<16x256xf32>
    %203 = arith.addf %198, %202 : vector<16x256xf32>
    %cst_74 = arith.constant 0.000000e+00 : f32
    %204 = vector.broadcast %cst_74 : f32 to vector<16x256xf32>
    %205 = arith.maximumf %203, %204 : vector<16x256xf32>
    %206 = arith.truncf %205 : vector<16x256xf32> to vector<16x256xbf16>
    %c0_75 = arith.constant 0 : index
    %c0_76 = arith.constant 0 : index
    %c0_77 = arith.constant 0 : index
    %207 = vector.load %arg17[%c0_75, %c0_76, %c0_77] : memref<2x256x64xbf16, #tpu.memory_space<vmem>>, vector<1x256x64xbf16>
    %208 = vector.shape_cast %207 : vector<1x256x64xbf16> to vector<256x64xbf16>
    %cst_78 = arith.constant dense<0.000000e+00> : vector<16x64xf32>
    %209 = tpu.matmul %206, %208, %cst_78 {dimension_numbers = #tpu.dot_dimension_numbers<[1], [0], [0], [1], [0, 0, 1, 1], [], []>} : vector<16x256xbf16>, vector<256x64xbf16>, vector<16x64xf32> -> vector<16x64xf32>
    %c0_79 = arith.constant 0 : index
    %c0_80 = arith.constant 0 : index
    %210 = vector.load %arg18[%c0_79, %c0_80] : memref<2x64xf32, #tpu.memory_space<vmem>>, vector<1x64xf32>
    %211 = vector.shape_cast %210 : vector<1x64xf32> to vector<64xf32>
    %212 = vector.shape_cast %211 : vector<64xf32> to vector<1x64xf32>
    %213 = vector.broadcast %212 : vector<1x64xf32> to vector<16x64xf32>
    %214 = arith.addf %209, %213 : vector<16x64xf32>
    %215 = arith.addf %194, %214 : vector<16x64xf32>
    %c0_81 = arith.constant 0 : index
    %c0_82 = arith.constant 0 : index
    %216 = vector.load %arg13[%c0_81, %c0_82] : memref<2x64xf32, #tpu.memory_space<vmem>>, vector<1x64xf32>
    %217 = vector.shape_cast %216 : vector<1x64xf32> to vector<64xf32>
    %c0_83 = arith.constant 0 : index
    %c0_84 = arith.constant 0 : index
    %218 = vector.load %arg14[%c0_83, %c0_84] : memref<2x64xf32, #tpu.memory_space<vmem>>, vector<1x64xf32>
    %219 = vector.shape_cast %218 : vector<1x64xf32> to vector<64xf32>
    %cst_85 = arith.constant dense<0.000000e+00> : vector<16xf32>
    %220 = vector.multi_reduction <add>, %215, %cst_85 [1] : vector<16x64xf32> to vector<16xf32>
    %221 = vector.shape_cast %220 : vector<16xf32> to vector<16x1xf32>
    %cst_86 = arith.constant 6.400000e+01 : f32
    %222 = vector.broadcast %cst_86 : f32 to vector<16x1xf32>
    %223 = arith.divf %221, %222 : vector<16x1xf32>
    %224 = vector.broadcast %223 : vector<16x1xf32> to vector<16x64xf32>
    %225 = arith.subf %215, %224 : vector<16x64xf32>
    %226 = arith.mulf %225, %225 : vector<16x64xf32>
    %cst_87 = arith.constant dense<0.000000e+00> : vector<16xf32>
    %227 = vector.multi_reduction <add>, %226, %cst_87 [1] : vector<16x64xf32> to vector<16xf32>
    %228 = vector.shape_cast %227 : vector<16xf32> to vector<16x1xf32>
    %cst_88 = arith.constant 6.400000e+01 : f32
    %229 = vector.broadcast %cst_88 : f32 to vector<16x1xf32>
    %230 = arith.divf %228, %229 : vector<16x1xf32>
    %231 = vector.broadcast %223 : vector<16x1xf32> to vector<16x64xf32>
    %232 = arith.subf %215, %231 : vector<16x64xf32>
    %cst_89 = arith.constant 9.99999974E-6 : f32
    %233 = vector.broadcast %cst_89 : f32 to vector<16x1xf32>
    %234 = arith.addf %230, %233 : vector<16x1xf32>
    %235 = math.rsqrt %234 : vector<16x1xf32>
    %236 = vector.broadcast %235 : vector<16x1xf32> to vector<16x64xf32>
    %237 = arith.mulf %232, %236 : vector<16x64xf32>
    %238 = vector.shape_cast %217 : vector<64xf32> to vector<1x64xf32>
    %239 = vector.broadcast %238 : vector<1x64xf32> to vector<16x64xf32>
    %240 = arith.mulf %237, %239 : vector<16x64xf32>
    %241 = vector.shape_cast %219 : vector<64xf32> to vector<1x64xf32>
    %242 = vector.broadcast %241 : vector<1x64xf32> to vector<16x64xf32>
    %243 = arith.addf %240, %242 : vector<16x64xf32>
    %244 = arith.truncf %243 : vector<16x64xf32> to vector<16x64xbf16>
    %c1_90 = arith.constant 1 : index
    %c0_91 = arith.constant 0 : index
    %c0_92 = arith.constant 0 : index
    %245 = vector.load %arg4[%c1_90, %c0_91, %c0_92] : memref<2x64x192xbf16, #tpu.memory_space<vmem>>, vector<1x64x192xbf16>
    %246 = vector.shape_cast %245 : vector<1x64x192xbf16> to vector<64x192xbf16>
    %cst_93 = arith.constant dense<0.000000e+00> : vector<16x192xf32>
    %247 = tpu.matmul %244, %246, %cst_93 {dimension_numbers = #tpu.dot_dimension_numbers<[1], [0], [0], [1], [0, 0, 1, 1], [], []>} : vector<16x64xbf16>, vector<64x192xbf16>, vector<16x192xf32> -> vector<16x192xf32>
    %c1_94 = arith.constant 1 : index
    %c0_95 = arith.constant 0 : index
    %248 = vector.load %arg5[%c1_94, %c0_95] : memref<2x192xf32, #tpu.memory_space<vmem>>, vector<1x192xf32>
    %249 = vector.shape_cast %248 : vector<1x192xf32> to vector<192xf32>
    %250 = vector.shape_cast %249 : vector<192xf32> to vector<1x192xf32>
    %251 = vector.broadcast %250 : vector<1x192xf32> to vector<16x192xf32>
    %252 = arith.addf %247, %251 : vector<16x192xf32>
    %253 = vector.shape_cast %252 : vector<16x192xf32> to vector<1x16x192xf32>
    %254 = vector.extract_strided_slice %253 {offsets = [0, 0, 0], sizes = [1, 16, 16], strides = [1, 1, 1]} : vector<1x16x192xf32> to vector<1x16x16xf32>
    %255 = arith.truncf %254 : vector<1x16x16xf32> to vector<1x16x16xbf16>
    %256 = vector.extract_strided_slice %253 {offsets = [0, 0, 64], sizes = [1, 16, 16], strides = [1, 1, 1]} : vector<1x16x192xf32> to vector<1x16x16xf32>
    %257 = arith.truncf %256 : vector<1x16x16xf32> to vector<1x16x16xbf16>
    %258 = vector.extract_strided_slice %253 {offsets = [0, 0, 128], sizes = [1, 16, 16], strides = [1, 1, 1]} : vector<1x16x192xf32> to vector<1x16x16xf32>
    %259 = arith.truncf %258 : vector<1x16x16xf32> to vector<1x16x16xbf16>
    "tpu.trace_start"() <{level = 10 : i32, message = "bqd,bkd->bqk"}> : () -> ()
    %cst_96 = arith.constant dense<0.000000e+00> : vector<1x16x16xf32>
    %260 = tpu.matmul %255, %257, %cst_96 {dimension_numbers = #tpu.dot_dimension_numbers<[2], [2], [1], [1], [0, 0, 0, 1, 1, 1], [0], [0]>} : vector<1x16x16xbf16>, vector<1x16x16xbf16>, vector<1x16x16xf32> -> vector<1x16x16xf32>
    "tpu.trace_stop"() : () -> ()
    %261 = vector.shape_cast %5 : vector<16x16xf32> to vector<1x16x16xf32>
    %262 = arith.addf %260, %261 : vector<1x16x16xf32>
    %cst_97 = arith.constant dense<0xFF800000> : vector<1x16xf32>
    %263 = vector.multi_reduction <maximumf>, %262, %cst_97 [2] : vector<1x16x16xf32> to vector<1x16xf32>
    %264 = vector.shape_cast %263 : vector<1x16xf32> to vector<1x16x1xf32>
    %265 = vector.broadcast %264 : vector<1x16x1xf32> to vector<1x16x16xf32>
    %266 = arith.subf %262, %265 : vector<1x16x16xf32>
    %267 = math.exp %266 : vector<1x16x16xf32>
    %cst_98 = arith.constant dense<0.000000e+00> : vector<1x16xf32>
    %268 = vector.multi_reduction <add>, %267, %cst_98 [2] : vector<1x16x16xf32> to vector<1x16xf32>
    %269 = vector.shape_cast %268 : vector<1x16xf32> to vector<1x16x1xf32>
    %270 = tpu.reciprocal %269 {approx = true} : vector<1x16x1xf32> -> vector<1x16x1xf32>
    %271 = vector.broadcast %270 : vector<1x16x1xf32> to vector<1x16x16xf32>
    %272 = arith.mulf %267, %271 : vector<1x16x16xf32>
    %273 = arith.truncf %272 : vector<1x16x16xf32> to vector<1x16x16xbf16>
    "tpu.trace_start"() <{level = 10 : i32, message = "bqk,bkd->bqd"}> : () -> ()
    %cst_99 = arith.constant dense<0.000000e+00> : vector<1x16x16xf32>
    %274 = tpu.matmul %273, %259, %cst_99 {dimension_numbers = #tpu.dot_dimension_numbers<[2], [1], [1], [2], [0, 0, 0, 1, 1, 2], [0], [0]>} : vector<1x16x16xbf16>, vector<1x16x16xbf16>, vector<1x16x16xf32> -> vector<1x16x16xf32>
    "tpu.trace_stop"() : () -> ()
    %275 = arith.truncf %274 : vector<1x16x16xf32> to vector<1x16x16xbf16>
    %c1_100 = arith.constant 1 : index
    %c0_101 = arith.constant 0 : index
    %c0_102 = arith.constant 0 : index
    %c0_103 = arith.constant 0 : index
    %276 = vector.load %arg6[%c1_100, %c0_101, %c0_102, %c0_103] : memref<2x4x16x64xbf16, #tpu.memory_space<vmem>>, vector<1x1x16x64xbf16>
    %277 = vector.shape_cast %276 : vector<1x1x16x64xbf16> to vector<16x64xbf16>
    "tpu.trace_start"() <{level = 10 : i32, message = "bqd,do->bqo"}> : () -> ()
    %cst_104 = arith.constant dense<0.000000e+00> : vector<1x16x64xf32>
    %278 = tpu.matmul %275, %277, %cst_104 {dimension_numbers = #tpu.dot_dimension_numbers<[2], [0], [0, 1], [1], [0, 0, 0, 1, 1, 1], [], []>} : vector<1x16x16xbf16>, vector<16x64xbf16>, vector<1x16x64xf32> -> vector<1x16x64xf32>
    "tpu.trace_stop"() : () -> ()
    %279 = vector.extract_strided_slice %253 {offsets = [0, 0, 16], sizes = [1, 16, 16], strides = [1, 1, 1]} : vector<1x16x192xf32> to vector<1x16x16xf32>
    %280 = arith.truncf %279 : vector<1x16x16xf32> to vector<1x16x16xbf16>
    %281 = vector.extract_strided_slice %253 {offsets = [0, 0, 80], sizes = [1, 16, 16], strides = [1, 1, 1]} : vector<1x16x192xf32> to vector<1x16x16xf32>
    %282 = arith.truncf %281 : vector<1x16x16xf32> to vector<1x16x16xbf16>
    %283 = vector.extract_strided_slice %253 {offsets = [0, 0, 144], sizes = [1, 16, 16], strides = [1, 1, 1]} : vector<1x16x192xf32> to vector<1x16x16xf32>
    %284 = arith.truncf %283 : vector<1x16x16xf32> to vector<1x16x16xbf16>
    "tpu.trace_start"() <{level = 10 : i32, message = "bqd,bkd->bqk"}> : () -> ()
    %cst_105 = arith.constant dense<0.000000e+00> : vector<1x16x16xf32>
    %285 = tpu.matmul %280, %282, %cst_105 {dimension_numbers = #tpu.dot_dimension_numbers<[2], [2], [1], [1], [0, 0, 0, 1, 1, 1], [0], [0]>} : vector<1x16x16xbf16>, vector<1x16x16xbf16>, vector<1x16x16xf32> -> vector<1x16x16xf32>
    "tpu.trace_stop"() : () -> ()
    %286 = vector.shape_cast %5 : vector<16x16xf32> to vector<1x16x16xf32>
    %287 = arith.addf %285, %286 : vector<1x16x16xf32>
    %cst_106 = arith.constant dense<0xFF800000> : vector<1x16xf32>
    %288 = vector.multi_reduction <maximumf>, %287, %cst_106 [2] : vector<1x16x16xf32> to vector<1x16xf32>
    %289 = vector.shape_cast %288 : vector<1x16xf32> to vector<1x16x1xf32>
    %290 = vector.broadcast %289 : vector<1x16x1xf32> to vector<1x16x16xf32>
    %291 = arith.subf %287, %290 : vector<1x16x16xf32>
    %292 = math.exp %291 : vector<1x16x16xf32>
    %cst_107 = arith.constant dense<0.000000e+00> : vector<1x16xf32>
    %293 = vector.multi_reduction <add>, %292, %cst_107 [2] : vector<1x16x16xf32> to vector<1x16xf32>
    %294 = vector.shape_cast %293 : vector<1x16xf32> to vector<1x16x1xf32>
    %295 = tpu.reciprocal %294 {approx = true} : vector<1x16x1xf32> -> vector<1x16x1xf32>
    %296 = vector.broadcast %295 : vector<1x16x1xf32> to vector<1x16x16xf32>
    %297 = arith.mulf %292, %296 : vector<1x16x16xf32>
    %298 = arith.truncf %297 : vector<1x16x16xf32> to vector<1x16x16xbf16>
    "tpu.trace_start"() <{level = 10 : i32, message = "bqk,bkd->bqd"}> : () -> ()
    %cst_108 = arith.constant dense<0.000000e+00> : vector<1x16x16xf32>
    %299 = tpu.matmul %298, %284, %cst_108 {dimension_numbers = #tpu.dot_dimension_numbers<[2], [1], [1], [2], [0, 0, 0, 1, 1, 2], [0], [0]>} : vector<1x16x16xbf16>, vector<1x16x16xbf16>, vector<1x16x16xf32> -> vector<1x16x16xf32>
    "tpu.trace_stop"() : () -> ()
    %300 = arith.truncf %299 : vector<1x16x16xf32> to vector<1x16x16xbf16>
    %c1_109 = arith.constant 1 : index
    %c1_110 = arith.constant 1 : index
    %c0_111 = arith.constant 0 : index
    %c0_112 = arith.constant 0 : index
    %301 = vector.load %arg6[%c1_109, %c1_110, %c0_111, %c0_112] : memref<2x4x16x64xbf16, #tpu.memory_space<vmem>>, vector<1x1x16x64xbf16>
    %302 = vector.shape_cast %301 : vector<1x1x16x64xbf16> to vector<16x64xbf16>
    "tpu.trace_start"() <{level = 10 : i32, message = "bqd,do->bqo"}> : () -> ()
    %cst_113 = arith.constant dense<0.000000e+00> : vector<1x16x64xf32>
    %303 = tpu.matmul %300, %302, %cst_113 {dimension_numbers = #tpu.dot_dimension_numbers<[2], [0], [0, 1], [1], [0, 0, 0, 1, 1, 1], [], []>} : vector<1x16x16xbf16>, vector<16x64xbf16>, vector<1x16x64xf32> -> vector<1x16x64xf32>
    "tpu.trace_stop"() : () -> ()
    %304 = arith.addf %278, %303 : vector<1x16x64xf32>
    %305 = vector.extract_strided_slice %253 {offsets = [0, 0, 32], sizes = [1, 16, 16], strides = [1, 1, 1]} : vector<1x16x192xf32> to vector<1x16x16xf32>
    %306 = arith.truncf %305 : vector<1x16x16xf32> to vector<1x16x16xbf16>
    %307 = vector.extract_strided_slice %253 {offsets = [0, 0, 96], sizes = [1, 16, 16], strides = [1, 1, 1]} : vector<1x16x192xf32> to vector<1x16x16xf32>
    %308 = arith.truncf %307 : vector<1x16x16xf32> to vector<1x16x16xbf16>
    %309 = vector.extract_strided_slice %253 {offsets = [0, 0, 160], sizes = [1, 16, 16], strides = [1, 1, 1]} : vector<1x16x192xf32> to vector<1x16x16xf32>
    %310 = arith.truncf %309 : vector<1x16x16xf32> to vector<1x16x16xbf16>
    "tpu.trace_start"() <{level = 10 : i32, message = "bqd,bkd->bqk"}> : () -> ()
    %cst_114 = arith.constant dense<0.000000e+00> : vector<1x16x16xf32>
    %311 = tpu.matmul %306, %308, %cst_114 {dimension_numbers = #tpu.dot_dimension_numbers<[2], [2], [1], [1], [0, 0, 0, 1, 1, 1], [0], [0]>} : vector<1x16x16xbf16>, vector<1x16x16xbf16>, vector<1x16x16xf32> -> vector<1x16x16xf32>
    "tpu.trace_stop"() : () -> ()
    %312 = vector.shape_cast %5 : vector<16x16xf32> to vector<1x16x16xf32>
    %313 = arith.addf %311, %312 : vector<1x16x16xf32>
    %cst_115 = arith.constant dense<0xFF800000> : vector<1x16xf32>
    %314 = vector.multi_reduction <maximumf>, %313, %cst_115 [2] : vector<1x16x16xf32> to vector<1x16xf32>
    %315 = vector.shape_cast %314 : vector<1x16xf32> to vector<1x16x1xf32>
    %316 = vector.broadcast %315 : vector<1x16x1xf32> to vector<1x16x16xf32>
    %317 = arith.subf %313, %316 : vector<1x16x16xf32>
    %318 = math.exp %317 : vector<1x16x16xf32>
    %cst_116 = arith.constant dense<0.000000e+00> : vector<1x16xf32>
    %319 = vector.multi_reduction <add>, %318, %cst_116 [2] : vector<1x16x16xf32> to vector<1x16xf32>
    %320 = vector.shape_cast %319 : vector<1x16xf32> to vector<1x16x1xf32>
    %321 = tpu.reciprocal %320 {approx = true} : vector<1x16x1xf32> -> vector<1x16x1xf32>
    %322 = vector.broadcast %321 : vector<1x16x1xf32> to vector<1x16x16xf32>
    %323 = arith.mulf %318, %322 : vector<1x16x16xf32>
    %324 = arith.truncf %323 : vector<1x16x16xf32> to vector<1x16x16xbf16>
    "tpu.trace_start"() <{level = 10 : i32, message = "bqk,bkd->bqd"}> : () -> ()
    %cst_117 = arith.constant dense<0.000000e+00> : vector<1x16x16xf32>
    %325 = tpu.matmul %324, %310, %cst_117 {dimension_numbers = #tpu.dot_dimension_numbers<[2], [1], [1], [2], [0, 0, 0, 1, 1, 2], [0], [0]>} : vector<1x16x16xbf16>, vector<1x16x16xbf16>, vector<1x16x16xf32> -> vector<1x16x16xf32>
    "tpu.trace_stop"() : () -> ()
    %326 = arith.truncf %325 : vector<1x16x16xf32> to vector<1x16x16xbf16>
    %c1_118 = arith.constant 1 : index
    %c2_119 = arith.constant 2 : index
    %c0_120 = arith.constant 0 : index
    %c0_121 = arith.constant 0 : index
    %327 = vector.load %arg6[%c1_118, %c2_119, %c0_120, %c0_121] : memref<2x4x16x64xbf16, #tpu.memory_space<vmem>>, vector<1x1x16x64xbf16>
    %328 = vector.shape_cast %327 : vector<1x1x16x64xbf16> to vector<16x64xbf16>
    "tpu.trace_start"() <{level = 10 : i32, message = "bqd,do->bqo"}> : () -> ()
    %cst_122 = arith.constant dense<0.000000e+00> : vector<1x16x64xf32>
    %329 = tpu.matmul %326, %328, %cst_122 {dimension_numbers = #tpu.dot_dimension_numbers<[2], [0], [0, 1], [1], [0, 0, 0, 1, 1, 1], [], []>} : vector<1x16x16xbf16>, vector<16x64xbf16>, vector<1x16x64xf32> -> vector<1x16x64xf32>
    "tpu.trace_stop"() : () -> ()
    %330 = arith.addf %304, %329 : vector<1x16x64xf32>
    %331 = vector.extract_strided_slice %253 {offsets = [0, 0, 48], sizes = [1, 16, 16], strides = [1, 1, 1]} : vector<1x16x192xf32> to vector<1x16x16xf32>
    %332 = arith.truncf %331 : vector<1x16x16xf32> to vector<1x16x16xbf16>
    %333 = vector.extract_strided_slice %253 {offsets = [0, 0, 112], sizes = [1, 16, 16], strides = [1, 1, 1]} : vector<1x16x192xf32> to vector<1x16x16xf32>
    %334 = arith.truncf %333 : vector<1x16x16xf32> to vector<1x16x16xbf16>
    %335 = vector.extract_strided_slice %253 {offsets = [0, 0, 176], sizes = [1, 16, 16], strides = [1, 1, 1]} : vector<1x16x192xf32> to vector<1x16x16xf32>
    %336 = arith.truncf %335 : vector<1x16x16xf32> to vector<1x16x16xbf16>
    "tpu.trace_start"() <{level = 10 : i32, message = "bqd,bkd->bqk"}> : () -> ()
    %cst_123 = arith.constant dense<0.000000e+00> : vector<1x16x16xf32>
    %337 = tpu.matmul %332, %334, %cst_123 {dimension_numbers = #tpu.dot_dimension_numbers<[2], [2], [1], [1], [0, 0, 0, 1, 1, 1], [0], [0]>} : vector<1x16x16xbf16>, vector<1x16x16xbf16>, vector<1x16x16xf32> -> vector<1x16x16xf32>
    "tpu.trace_stop"() : () -> ()
    %338 = vector.shape_cast %5 : vector<16x16xf32> to vector<1x16x16xf32>
    %339 = arith.addf %337, %338 : vector<1x16x16xf32>
    %cst_124 = arith.constant dense<0xFF800000> : vector<1x16xf32>
    %340 = vector.multi_reduction <maximumf>, %339, %cst_124 [2] : vector<1x16x16xf32> to vector<1x16xf32>
    %341 = vector.shape_cast %340 : vector<1x16xf32> to vector<1x16x1xf32>
    %342 = vector.broadcast %341 : vector<1x16x1xf32> to vector<1x16x16xf32>
    %343 = arith.subf %339, %342 : vector<1x16x16xf32>
    %344 = math.exp %343 : vector<1x16x16xf32>
    %cst_125 = arith.constant dense<0.000000e+00> : vector<1x16xf32>
    %345 = vector.multi_reduction <add>, %344, %cst_125 [2] : vector<1x16x16xf32> to vector<1x16xf32>
    %346 = vector.shape_cast %345 : vector<1x16xf32> to vector<1x16x1xf32>
    %347 = tpu.reciprocal %346 {approx = true} : vector<1x16x1xf32> -> vector<1x16x1xf32>
    %348 = vector.broadcast %347 : vector<1x16x1xf32> to vector<1x16x16xf32>
    %349 = arith.mulf %344, %348 : vector<1x16x16xf32>
    %350 = arith.truncf %349 : vector<1x16x16xf32> to vector<1x16x16xbf16>
    "tpu.trace_start"() <{level = 10 : i32, message = "bqk,bkd->bqd"}> : () -> ()
    %cst_126 = arith.constant dense<0.000000e+00> : vector<1x16x16xf32>
    %351 = tpu.matmul %350, %336, %cst_126 {dimension_numbers = #tpu.dot_dimension_numbers<[2], [1], [1], [2], [0, 0, 0, 1, 1, 2], [0], [0]>} : vector<1x16x16xbf16>, vector<1x16x16xbf16>, vector<1x16x16xf32> -> vector<1x16x16xf32>
    "tpu.trace_stop"() : () -> ()
    %352 = arith.truncf %351 : vector<1x16x16xf32> to vector<1x16x16xbf16>
    %c1_127 = arith.constant 1 : index
    %c3_128 = arith.constant 3 : index
    %c0_129 = arith.constant 0 : index
    %c0_130 = arith.constant 0 : index
    %353 = vector.load %arg6[%c1_127, %c3_128, %c0_129, %c0_130] : memref<2x4x16x64xbf16, #tpu.memory_space<vmem>>, vector<1x1x16x64xbf16>
    %354 = vector.shape_cast %353 : vector<1x1x16x64xbf16> to vector<16x64xbf16>
    "tpu.trace_start"() <{level = 10 : i32, message = "bqd,do->bqo"}> : () -> ()
    %cst_131 = arith.constant dense<0.000000e+00> : vector<1x16x64xf32>
    %355 = tpu.matmul %352, %354, %cst_131 {dimension_numbers = #tpu.dot_dimension_numbers<[2], [0], [0, 1], [1], [0, 0, 0, 1, 1, 1], [], []>} : vector<1x16x16xbf16>, vector<16x64xbf16>, vector<1x16x64xf32> -> vector<1x16x64xf32>
    "tpu.trace_stop"() : () -> ()
    %356 = arith.addf %330, %355 : vector<1x16x64xf32>
    %357 = vector.shape_cast %356 : vector<1x16x64xf32> to vector<16x64xf32>
    %c1_132 = arith.constant 1 : index
    %c0_133 = arith.constant 0 : index
    %358 = vector.load %arg7[%c1_132, %c0_133] : memref<2x64xf32, #tpu.memory_space<vmem>>, vector<1x64xf32>
    %359 = vector.shape_cast %358 : vector<1x64xf32> to vector<64xf32>
    %360 = vector.shape_cast %359 : vector<64xf32> to vector<1x64xf32>
    %361 = vector.broadcast %360 : vector<1x64xf32> to vector<16x64xf32>
    %362 = arith.addf %357, %361 : vector<16x64xf32>
    %363 = arith.addf %243, %362 : vector<16x64xf32>
    %c1_134 = arith.constant 1 : index
    %c0_135 = arith.constant 0 : index
    %364 = vector.load %arg9[%c1_134, %c0_135] : memref<2x64xf32, #tpu.memory_space<vmem>>, vector<1x64xf32>
    %365 = vector.shape_cast %364 : vector<1x64xf32> to vector<64xf32>
    %c1_136 = arith.constant 1 : index
    %c0_137 = arith.constant 0 : index
    %366 = vector.load %arg10[%c1_136, %c0_137] : memref<2x64xf32, #tpu.memory_space<vmem>>, vector<1x64xf32>
    %367 = vector.shape_cast %366 : vector<1x64xf32> to vector<64xf32>
    %cst_138 = arith.constant dense<0.000000e+00> : vector<16xf32>
    %368 = vector.multi_reduction <add>, %363, %cst_138 [1] : vector<16x64xf32> to vector<16xf32>
    %369 = vector.shape_cast %368 : vector<16xf32> to vector<16x1xf32>
    %cst_139 = arith.constant 6.400000e+01 : f32
    %370 = vector.broadcast %cst_139 : f32 to vector<16x1xf32>
    %371 = arith.divf %369, %370 : vector<16x1xf32>
    %372 = vector.broadcast %371 : vector<16x1xf32> to vector<16x64xf32>
    %373 = arith.subf %363, %372 : vector<16x64xf32>
    %374 = arith.mulf %373, %373 : vector<16x64xf32>
    %cst_140 = arith.constant dense<0.000000e+00> : vector<16xf32>
    %375 = vector.multi_reduction <add>, %374, %cst_140 [1] : vector<16x64xf32> to vector<16xf32>
    %376 = vector.shape_cast %375 : vector<16xf32> to vector<16x1xf32>
    %cst_141 = arith.constant 6.400000e+01 : f32
    %377 = vector.broadcast %cst_141 : f32 to vector<16x1xf32>
    %378 = arith.divf %376, %377 : vector<16x1xf32>
    %379 = vector.broadcast %371 : vector<16x1xf32> to vector<16x64xf32>
    %380 = arith.subf %363, %379 : vector<16x64xf32>
    %cst_142 = arith.constant 9.99999974E-6 : f32
    %381 = vector.broadcast %cst_142 : f32 to vector<16x1xf32>
    %382 = arith.addf %378, %381 : vector<16x1xf32>
    %383 = math.rsqrt %382 : vector<16x1xf32>
    %384 = vector.broadcast %383 : vector<16x1xf32> to vector<16x64xf32>
    %385 = arith.mulf %380, %384 : vector<16x64xf32>
    %386 = vector.shape_cast %365 : vector<64xf32> to vector<1x64xf32>
    %387 = vector.broadcast %386 : vector<1x64xf32> to vector<16x64xf32>
    %388 = arith.mulf %385, %387 : vector<16x64xf32>
    %389 = vector.shape_cast %367 : vector<64xf32> to vector<1x64xf32>
    %390 = vector.broadcast %389 : vector<1x64xf32> to vector<16x64xf32>
    %391 = arith.addf %388, %390 : vector<16x64xf32>
    %c1_143 = arith.constant 1 : index
    %c0_144 = arith.constant 0 : index
    %392 = vector.load %arg8[%c1_143, %c0_144] : memref<2x64xf32, #tpu.memory_space<vmem>>, vector<1x64xf32>
    %393 = vector.shape_cast %392 : vector<1x64xf32> to vector<64xf32>
    %394 = vector.shape_cast %393 : vector<64xf32> to vector<1x64xf32>
    %395 = vector.broadcast %394 : vector<1x64xf32> to vector<16x64xf32>
    %396 = arith.addf %391, %395 : vector<16x64xf32>
    %c1_145 = arith.constant 1 : index
    %c0_146 = arith.constant 0 : index
    %397 = vector.load %arg11[%c1_145, %c0_146] : memref<2x64xf32, #tpu.memory_space<vmem>>, vector<1x64xf32>
    %398 = vector.shape_cast %397 : vector<1x64xf32> to vector<64xf32>
    %c1_147 = arith.constant 1 : index
    %c0_148 = arith.constant 0 : index
    %399 = vector.load %arg12[%c1_147, %c0_148] : memref<2x64xf32, #tpu.memory_space<vmem>>, vector<1x64xf32>
    %400 = vector.shape_cast %399 : vector<1x64xf32> to vector<64xf32>
    %cst_149 = arith.constant dense<0.000000e+00> : vector<16xf32>
    %401 = vector.multi_reduction <add>, %396, %cst_149 [1] : vector<16x64xf32> to vector<16xf32>
    %402 = vector.shape_cast %401 : vector<16xf32> to vector<16x1xf32>
    %cst_150 = arith.constant 6.400000e+01 : f32
    %403 = vector.broadcast %cst_150 : f32 to vector<16x1xf32>
    %404 = arith.divf %402, %403 : vector<16x1xf32>
    %405 = vector.broadcast %404 : vector<16x1xf32> to vector<16x64xf32>
    %406 = arith.subf %396, %405 : vector<16x64xf32>
    %407 = arith.mulf %406, %406 : vector<16x64xf32>
    %cst_151 = arith.constant dense<0.000000e+00> : vector<16xf32>
    %408 = vector.multi_reduction <add>, %407, %cst_151 [1] : vector<16x64xf32> to vector<16xf32>
    %409 = vector.shape_cast %408 : vector<16xf32> to vector<16x1xf32>
    %cst_152 = arith.constant 6.400000e+01 : f32
    %410 = vector.broadcast %cst_152 : f32 to vector<16x1xf32>
    %411 = arith.divf %409, %410 : vector<16x1xf32>
    %412 = vector.broadcast %404 : vector<16x1xf32> to vector<16x64xf32>
    %413 = arith.subf %396, %412 : vector<16x64xf32>
    %cst_153 = arith.constant 9.99999974E-6 : f32
    %414 = vector.broadcast %cst_153 : f32 to vector<16x1xf32>
    %415 = arith.addf %411, %414 : vector<16x1xf32>
    %416 = math.rsqrt %415 : vector<16x1xf32>
    %417 = vector.broadcast %416 : vector<16x1xf32> to vector<16x64xf32>
    %418 = arith.mulf %413, %417 : vector<16x64xf32>
    %419 = vector.shape_cast %398 : vector<64xf32> to vector<1x64xf32>
    %420 = vector.broadcast %419 : vector<1x64xf32> to vector<16x64xf32>
    %421 = arith.mulf %418, %420 : vector<16x64xf32>
    %422 = vector.shape_cast %400 : vector<64xf32> to vector<1x64xf32>
    %423 = vector.broadcast %422 : vector<1x64xf32> to vector<16x64xf32>
    %424 = arith.addf %421, %423 : vector<16x64xf32>
    %425 = arith.truncf %424 : vector<16x64xf32> to vector<16x64xbf16>
    %c1_154 = arith.constant 1 : index
    %c0_155 = arith.constant 0 : index
    %c0_156 = arith.constant 0 : index
    %426 = vector.load %arg15[%c1_154, %c0_155, %c0_156] : memref<2x64x256xbf16, #tpu.memory_space<vmem>>, vector<1x64x256xbf16>
    %427 = vector.shape_cast %426 : vector<1x64x256xbf16> to vector<64x256xbf16>
    %cst_157 = arith.constant dense<0.000000e+00> : vector<16x256xf32>
    %428 = tpu.matmul %425, %427, %cst_157 {dimension_numbers = #tpu.dot_dimension_numbers<[1], [0], [0], [1], [0, 0, 1, 1], [], []>} : vector<16x64xbf16>, vector<64x256xbf16>, vector<16x256xf32> -> vector<16x256xf32>
    %c1_158 = arith.constant 1 : index
    %c0_159 = arith.constant 0 : index
    %429 = vector.load %arg16[%c1_158, %c0_159] : memref<2x256xf32, #tpu.memory_space<vmem>>, vector<1x256xf32>
    %430 = vector.shape_cast %429 : vector<1x256xf32> to vector<256xf32>
    %431 = vector.shape_cast %430 : vector<256xf32> to vector<1x256xf32>
    %432 = vector.broadcast %431 : vector<1x256xf32> to vector<16x256xf32>
    %433 = arith.addf %428, %432 : vector<16x256xf32>
    %cst_160 = arith.constant 0.000000e+00 : f32
    %434 = vector.broadcast %cst_160 : f32 to vector<16x256xf32>
    %435 = arith.maximumf %433, %434 : vector<16x256xf32>
    %436 = arith.truncf %435 : vector<16x256xf32> to vector<16x256xbf16>
    %c1_161 = arith.constant 1 : index
    %c0_162 = arith.constant 0 : index
    %c0_163 = arith.constant 0 : index
    %437 = vector.load %arg17[%c1_161, %c0_162, %c0_163] : memref<2x256x64xbf16, #tpu.memory_space<vmem>>, vector<1x256x64xbf16>
    %438 = vector.shape_cast %437 : vector<1x256x64xbf16> to vector<256x64xbf16>
    %cst_164 = arith.constant dense<0.000000e+00> : vector<16x64xf32>
    %439 = tpu.matmul %436, %438, %cst_164 {dimension_numbers = #tpu.dot_dimension_numbers<[1], [0], [0], [1], [0, 0, 1, 1], [], []>} : vector<16x256xbf16>, vector<256x64xbf16>, vector<16x64xf32> -> vector<16x64xf32>
    %c1_165 = arith.constant 1 : index
    %c0_166 = arith.constant 0 : index
    %440 = vector.load %arg18[%c1_165, %c0_166] : memref<2x64xf32, #tpu.memory_space<vmem>>, vector<1x64xf32>
    %441 = vector.shape_cast %440 : vector<1x64xf32> to vector<64xf32>
    %442 = vector.shape_cast %441 : vector<64xf32> to vector<1x64xf32>
    %443 = vector.broadcast %442 : vector<1x64xf32> to vector<16x64xf32>
    %444 = arith.addf %439, %443 : vector<16x64xf32>
    %445 = arith.addf %424, %444 : vector<16x64xf32>
    %c1_167 = arith.constant 1 : index
    %c0_168 = arith.constant 0 : index
    %446 = vector.load %arg13[%c1_167, %c0_168] : memref<2x64xf32, #tpu.memory_space<vmem>>, vector<1x64xf32>
    %447 = vector.shape_cast %446 : vector<1x64xf32> to vector<64xf32>
    %c1_169 = arith.constant 1 : index
    %c0_170 = arith.constant 0 : index
    %448 = vector.load %arg14[%c1_169, %c0_170] : memref<2x64xf32, #tpu.memory_space<vmem>>, vector<1x64xf32>
    %449 = vector.shape_cast %448 : vector<1x64xf32> to vector<64xf32>
    %cst_171 = arith.constant dense<0.000000e+00> : vector<16xf32>
    %450 = vector.multi_reduction <add>, %445, %cst_171 [1] : vector<16x64xf32> to vector<16xf32>
    %451 = vector.shape_cast %450 : vector<16xf32> to vector<16x1xf32>
    %cst_172 = arith.constant 6.400000e+01 : f32
    %452 = vector.broadcast %cst_172 : f32 to vector<16x1xf32>
    %453 = arith.divf %451, %452 : vector<16x1xf32>
    %454 = vector.broadcast %453 : vector<16x1xf32> to vector<16x64xf32>
    %455 = arith.subf %445, %454 : vector<16x64xf32>
    %456 = arith.mulf %455, %455 : vector<16x64xf32>
    %cst_173 = arith.constant dense<0.000000e+00> : vector<16xf32>
    %457 = vector.multi_reduction <add>, %456, %cst_173 [1] : vector<16x64xf32> to vector<16xf32>
    %458 = vector.shape_cast %457 : vector<16xf32> to vector<16x1xf32>
    %cst_174 = arith.constant 6.400000e+01 : f32
    %459 = vector.broadcast %cst_174 : f32 to vector<16x1xf32>
    %460 = arith.divf %458, %459 : vector<16x1xf32>
    %461 = vector.broadcast %453 : vector<16x1xf32> to vector<16x64xf32>
    %462 = arith.subf %445, %461 : vector<16x64xf32>
    %cst_175 = arith.constant 9.99999974E-6 : f32
    %463 = vector.broadcast %cst_175 : f32 to vector<16x1xf32>
    %464 = arith.addf %460, %463 : vector<16x1xf32>
    %465 = math.rsqrt %464 : vector<16x1xf32>
    %466 = vector.broadcast %465 : vector<16x1xf32> to vector<16x64xf32>
    %467 = arith.mulf %462, %466 : vector<16x64xf32>
    %468 = vector.shape_cast %447 : vector<64xf32> to vector<1x64xf32>
    %469 = vector.broadcast %468 : vector<1x64xf32> to vector<16x64xf32>
    %470 = arith.mulf %467, %469 : vector<16x64xf32>
    %471 = vector.shape_cast %449 : vector<64xf32> to vector<1x64xf32>
    %472 = vector.broadcast %471 : vector<1x64xf32> to vector<16x64xf32>
    %473 = arith.addf %470, %472 : vector<16x64xf32>
    %474 = arith.truncf %473 : vector<16x64xf32> to vector<16x64xbf16>
    %c0_176 = arith.constant 0 : index
    %c0_177 = arith.constant 0 : index
    %475 = vector.load %arg19[%c0_176, %c0_177] : memref<64x128xbf16, #tpu.memory_space<vmem>>, vector<64x128xbf16>
    %cst_178 = arith.constant dense<0.000000e+00> : vector<16x128xf32>
    %476 = tpu.matmul %474, %475, %cst_178 {dimension_numbers = #tpu.dot_dimension_numbers<[1], [0], [0], [1], [0, 0, 1, 1], [], []>} : vector<16x64xbf16>, vector<64x128xbf16>, vector<16x128xf32> -> vector<16x128xf32>
    %c0_179 = arith.constant 0 : index
    %c0_180 = arith.constant 0 : index
    %477 = vector.load %arg20[%c0_179, %c0_180] : memref<1x128xf32, #tpu.memory_space<vmem>>, vector<1x128xf32>
    %478 = vector.broadcast %477 : vector<1x128xf32> to vector<16x128xf32>
    %479 = arith.addf %476, %478 : vector<16x128xf32>
    %480 = arith.negf %479 : vector<16x128xf32>
    %481 = math.exp %480 : vector<16x128xf32>
    %cst_181 = arith.constant 1.000000e+00 : f32
    %482 = vector.broadcast %cst_181 : f32 to vector<16x128xf32>
    %483 = arith.addf %482, %481 : vector<16x128xf32>
    %484 = arith.divf %482, %483 : vector<16x128xf32>
    %c0_182 = arith.constant 0 : index
    %c0_183 = arith.constant 0 : index
    %485 = vector.load %arg21[%c0_182, %c0_183] : memref<16x128xf32, #tpu.memory_space<vmem>>, vector<16x128xf32>
    tpu.vector_store %arg21[%c0_182, %c0_183], %484 {strides = array<i32>} : memref<16x128xf32, #tpu.memory_space<vmem>>, vector<16x128xf32>,
    return
  }
  func.func @transform_0(%arg0: i32) -> (i32, i32) {
    %c0_i32 = arith.constant 0 : i32
    %c0_i32_0 = arith.constant 0 : i32
    return %arg0, %c0_i32 : i32, i32
  }
  func.func @transform_1(%arg0: i32) -> (i32, i32) {
    %c0_i32 = arith.constant 0 : i32
    %c0_i32_0 = arith.constant 0 : i32
    %c0_i32_1 = arith.constant 0 : i32
    return %c0_i32, %c0_i32_0 : i32, i32
  }
  func.func @transform_2(%arg0: i32) -> (i32, i32) {
    %c0_i32 = arith.constant 0 : i32
    %c0_i32_0 = arith.constant 0 : i32
    %c0_i32_1 = arith.constant 0 : i32
    return %c0_i32, %c0_i32_0 : i32, i32
  }
  func.func @transform_3(%arg0: i32) -> (i32, i32, i32) {
    %c0_i32 = arith.constant 0 : i32
    %c0_i32_0 = arith.constant 0 : i32
    %c0_i32_1 = arith.constant 0 : i32
    %c0_i32_2 = arith.constant 0 : i32
    return %c0_i32, %c0_i32_0, %c0_i32_1 : i32, i32, i32
  }
  func.func @transform_4(%arg0: i32) -> (i32, i32) {
    %c0_i32 = arith.constant 0 : i32
    %c0_i32_0 = arith.constant 0 : i32
    %c0_i32_1 = arith.constant 0 : i32
    return %c0_i32, %c0_i32_0 : i32, i32
  }
  func.func @transform_5(%arg0: i32) -> (i32, i32, i32, i32) {
    %c0_i32 = arith.constant 0 : i32
    %c0_i32_0 = arith.constant 0 : i32
    %c0_i32_1 = arith.constant 0 : i32
    %c0_i32_2 = arith.constant 0 : i32
    %c0_i32_3 = arith.constant 0 : i32
    return %c0_i32, %c0_i32_0, %c0_i32_1, %c0_i32_2 : i32, i32, i32, i32
  }
  func.func @transform_6(%arg0: i32) -> (i32, i32) {
    %c0_i32 = arith.constant 0 : i32
    %c0_i32_0 = arith.constant 0 : i32
    %c0_i32_1 = arith.constant 0 : i32
    return %c0_i32, %c0_i32_0 : i32, i32
  }
  func.func @transform_7(%arg0: i32) -> (i32, i32) {
    %c0_i32 = arith.constant 0 : i32
    %c0_i32_0 = arith.constant 0 : i32
    %c0_i32_1 = arith.constant 0 : i32
    return %c0_i32, %c0_i32_0 : i32, i32
  }
  func.func @transform_8(%arg0: i32) -> (i32, i32) {
    %c0_i32 = arith.constant 0 : i32
    %c0_i32_0 = arith.constant 0 : i32
    %c0_i32_1 = arith.constant 0 : i32
    return %c0_i32, %c0_i32_0 : i32, i32
  }
  func.func @transform_9(%arg0: i32) -> (i32, i32) {
    %c0_i32 = arith.constant 0 : i32
    %c0_i32_0 = arith.constant 0 : i32
    %c0_i32_1 = arith.constant 0 : i32
    return %c0_i32, %c0_i32_0 : i32, i32
  }
  func.func @transform_10(%arg0: i32) -> (i32, i32) {
    %c0_i32 = arith.constant 0 : i32
    %c0_i32_0 = arith.constant 0 : i32
    %c0_i32_1 = arith.constant 0 : i32
    return %c0_i32, %c0_i32_0 : i32, i32
  }
  func.func @transform_11(%arg0: i32) -> (i32, i32) {
    %c0_i32 = arith.constant 0 : i32
    %c0_i32_0 = arith.constant 0 : i32
    %c0_i32_1 = arith.constant 0 : i32
    return %c0_i32, %c0_i32_0 : i32, i32
  }
  func.func @transform_12(%arg0: i32) -> (i32, i32) {
    %c0_i32 = arith.constant 0 : i32
    %c0_i32_0 = arith.constant 0 : i32
    %c0_i32_1 = arith.constant 0 : i32
    return %c0_i32, %c0_i32_0 : i32, i32
  }
  func.func @transform_13(%arg0: i32) -> (i32, i32) {
    %c0_i32 = arith.constant 0 : i32
    %c0_i32_0 = arith.constant 0 : i32
    %c0_i32_1 = arith.constant 0 : i32
    return %c0_i32, %c0_i32_0 : i32, i32
  }
  func.func @transform_14(%arg0: i32) -> (i32, i32, i32) {
    %c0_i32 = arith.constant 0 : i32
    %c0_i32_0 = arith.constant 0 : i32
    %c0_i32_1 = arith.constant 0 : i32
    %c0_i32_2 = arith.constant 0 : i32
    return %c0_i32, %c0_i32_0, %c0_i32_1 : i32, i32, i32
  }
  func.func @transform_15(%arg0: i32) -> (i32, i32) {
    %c0_i32 = arith.constant 0 : i32
    %c0_i32_0 = arith.constant 0 : i32
    %c0_i32_1 = arith.constant 0 : i32
    return %c0_i32, %c0_i32_0 : i32, i32
  }
  func.func @transform_16(%arg0: i32) -> (i32, i32, i32) {
    %c0_i32 = arith.constant 0 : i32
    %c0_i32_0 = arith.constant 0 : i32
    %c0_i32_1 = arith.constant 0 : i32
    %c0_i32_2 = arith.constant 0 : i32
    return %c0_i32, %c0_i32_0, %c0_i32_1 : i32, i32, i32
  }
  func.func @transform_17(%arg0: i32) -> (i32, i32) {
    %c0_i32 = arith.constant 0 : i32
    %c0_i32_0 = arith.constant 0 : i32
    %c0_i32_1 = arith.constant 0 : i32
    return %c0_i32, %c0_i32_0 : i32, i32
  }
  func.func @transform_18(%arg0: i32) -> (i32, i32) {
    %c0_i32 = arith.constant 0 : i32
    %c0_i32_0 = arith.constant 0 : i32
    %c0_i32_1 = arith.constant 0 : i32
    return %c0_i32, %c0_i32_0 : i32, i32
  }
  func.func @transform_19(%arg0: i32) -> (i32, i32) {
    %c0_i32 = arith.constant 0 : i32
    %c0_i32_0 = arith.constant 0 : i32
    %c0_i32_1 = arith.constant 0 : i32
    return %c0_i32, %c0_i32_0 : i32, i32
  }
  func.func @transform_20(%arg0: i32) -> (i32, i32) {
    %c0_i32 = arith.constant 0 : i32
    %c0_i32_0 = arith.constant 0 : i32
    return %arg0, %c0_i32 : i32, i32
  }
}

</mosaic_0001>

<bundles_post_ra>
// kernel: tpu_custom_call.1
= control target key start
LH: loop header
LB: loop body
LE: loop exit
PB: predicated region body
PF: predicated region fallthrough
CT: control target
= control target key end

     0   :  { %s5069_s0 = inlined_call_operand.vmem [shape: bf16[32,32], index: 0, kind: input, shape index: {}]   ;;  %s5070_s1 = inlined_call_operand.vmem [shape: f32[16,64], index: 1, kind: input, shape index: {}]   ;;  %s5071_s2 = inlined_call_operand.hbm [shape: bf16[32,64], index: 2, kind: input, shape index: {}]   ;;  %s5072_s3 = inlined_call_operand.vmem [shape: bf16[2,64,192], index: 3, kind: input, shape index: {}]   ;;  %s5073_s4 = inlined_call_operand.vmem [shape: f32[2,192], index: 4, kind: input, shape index: {}]   ;;  %s5074_s5 = inlined_call_operand.vmem [shape: bf16[2,4,16,64], index: 5, kind: input, shape index: {}]   ;;  %s5075_s6 = inlined_call_operand.vmem [shape: f32[2,64], index: 6, kind: input, shape index: {}]   ;;  %s5076_s7 = inlined_call_operand.vmem [shape: f32[2,64], index: 7, kind: input, shape index: {}]   ;;  %s5077_s8 = inlined_call_operand.vmem [shape: f32[2,64], index: 8, kind: input, shape index: {}]   ;;  %s5078_s9 = inlined_call_operand.vmem [shape: f32[2,64], index: 9, kind: input, shape index: {}]   ;;  %s5079_s10 = inlined_call_operand.vmem [shape: f32[2,64], index: 10, kind: input, shape index: {}]   ;;  %s5080_s11 = inlined_call_operand.vmem [shape: f32[2,64], index: 11, kind: input, shape index: {}]   ;;  %s5081_s12 = inlined_call_operand.vmem [shape: f32[2,64], index: 12, kind: input, shape index: {}]   ;;  %s5082_s13 = inlined_call_operand.vmem [shape: f32[2,64], index: 13, kind: input, shape index: {}]   ;;  %s5083_s14 = inlined_call_operand.vmem [shape: bf16[2,64,256], index: 14, kind: input, shape index: {}]   ;;  %s5084_s15 = inlined_call_operand.vmem [shape: f32[2,256], index: 15, kind: input, shape index: {}]   ;;  %s5085_s16 = inlined_call_operand.vmem [shape: bf16[2,256,64], index: 16, kind: input, shape index: {}]   ;;  %s5086_s17 = inlined_call_operand.vmem [shape: f32[2,64], index: 17, kind: input, shape index: {}]   ;;  %s5087_s18 = inlined_call_operand.vmem [shape: bf16[64,128], index: 18, kind: input, shape index: {}]   ;;  %s5088_s19 = inlined_call_operand.vmem [shape: f32[1,128], index: 19, kind: input, shape index: {}]   ;;  %s5089_s20 = inlined_call_operand.hbm [shape: f32[32,128], index: 20, kind: output, shape index: {}]  }
   0x1   :  { %5116 = sst [smem:[#allocation14_spill]] %s5069_s0 }
   0x2   :  { %5117 = sst [smem:[#allocation15_spill]] %s5070_s1 }
   0x3   :  { %5118 = sst [smem:[#allocation16_spill]] %s5071_s2 }
   0x4   :  { %5119 = sst [smem:[#allocation17_spill]] %s5072_s3 }
   0x5   :  { %5120 = sst [smem:[#allocation18_spill]] %s5073_s4 }
   0x6   :  { %25 = vsyncpa [#allocation3], 0 }
   0x7   :  { %26 = vsyncpa [#allocation4], 0 }
   0x8   :  { %28 = vsyncpa [#allocation4 + $0x1], 0  ;;  %s4338_s1 = smov 0   ;;  %s4340_s22 = smov 0  }
   0x9   :  { %s4342_s23 = smov 0   ;;  %s4344_s24 = smov 0  }
   0xa LB: > { %5121 = sst [smem:[#allocation8_spill]] %s4202_s1  ;;  %s4359_s2 = sadd.s32 4294967295, %s4214_s24   ;;  %s4214_s24 = sphi %s4344_s24, %s5152_s24   ;;  %s4210_s23 = sphi %s4342_s23, %s5154_s23   ;;  %s4206_s22 = sphi %s4340_s22, %s5156_s22   ;;  %s4202_s1 = sphi %s4338_s1, %s5155_s1  }
   0xb   : > { %5122 = sst [smem:[#allocation9_spill]] %s4210_s23  ;;  %s3391_s25 = sadd.s32 4294967294, %s4214_s24  }
   0xc   : > { %5123 = sst [smem:[#allocation10_spill]] %s4214_s24  ;;  %s4363_s3 = sadd.s32 1, %s4214_s24  }
   0xd   : > { %5124 = sst [smem:[#allocation11_spill]] %s4363_s3  ;;  %s466_s26 = sadd.s32 1, %s4210_s23 }
   0xe   : > { %s463_s27 = ssub.s32 %s4214_s24, %s4363_s3  ;;  %p476_p0 = scmp.ne.s32.totalorder %s4210_s23, %s4206_s22 }
   0xf   : > { %p464_p1 = scmp.eq.s32.totalorder %s463_s27, 0  ;;  %p477_p2 = scmp.eq.s32.totalorder %s4359_s2, 1 }
  0x10   : > { %p482_p3 = scmp.ne.s32.totalorder %s4206_s22, %s4202_s1  ;;  %p483_p4 = scmp.eq.s32.totalorder %s3391_s25, 1 }
  0x11   : > { %s4374_s28 = scalar_select %p464_p1, %s4210_s23, %s466_s26  }
  0x12   : > { %p4376_p5 = por %p477_p2, %p476_p0  ;;  %p4380_p6 = por %p483_p4, %p482_p3 }
  0x13   : > { %5125 = sst [smem:[#allocation12_spill]] %s4374_s28  ;;  %p3392_p7 = scmp.ge.s32.totalorder %s4214_s24, 1 }
  0x14   : > { %s5126_s4 = scalar_select %p4376_p5, 1, 0 }
  0x15   : > { %s5127_s29 = scalar_select %p4380_p6, 1, 0 }
  0x16   : > { %p490_p8 = scmp.lt.s32.totalorder %s4214_s24, 3  ;;  %p5100_p9 = scmp.eq.s32.totalorder %s4359_s2, 0 }
  0x17   : > { %5128 = sst [smem:[#allocation13_spill]] %s5127_s29  ;;  %s4216_s0 = smov [#allocation2]  }
  0x18   : > { %p4387_p10 = pnand %p3392_p7, %p490_p8  ;;  %s505_s21 = sshll.u32 %s4216_s0, 4  ;;  %s506_s21 = int_to_ptr.vmem [resolvable:$true] %s505_s21 }
  0x19   : > { %s5131_s28 = sld [smem:[#allocation16_spill]] }
  0x1a   : > { %s5129_s30 = scalar_select %p4387_p10, 1, 0 }
  0x1b   : > { %p3870_p11 = pneg %p4387_p10 }
  0x1d   : > { %p4395_p12 = pnand %p5100_p9, %p3870_p11 }
  0x1f   : > { %s4120_s23 = scalar_lea.hbm %s5131_s28, 256  ;;  %p4122_p0 = pneg %p4395_p12 }
  0x20   : > { %p4121_p13 = scmp.ne.s32.totalorder %s5131_s28, %s4120_s23  ;;  %p4127_p3 = scmp.lt.u32.totalorder %s4120_s23, %s5131_s28 }
  0x22   : > { %p4123_p1 = pnand %p4122_p0, %p4121_p13 }
  0x24   : > { %p4124_p2 = pneg %p4123_p1 }
  0x26   : > { %p4129_p4 = pnand %p4127_p3, %p4124_p2 }
  0x28   : > { %4132 = shalt.err (!%p4129_p4)
}
  0x29   : > { %s4133_s24 = scalar_lea.vmem %s506_s21, 256  ;;  %p4141_p9 = scmp.lt.s32.totalorder %s506_s21, %s506_s21 }
  0x2a   : > { %p4134_p7 = scmp.ne.s32.totalorder %s506_s21, %s4133_s24  ;;  %p4142_p6 = scmp.lt.s32.totalorder %s4133_s24, %s4133_s24 }
  0x2c   : > { %p4136_p8 = pnand %p4134_p7, %p4122_p0  ;;  %p4143_p5 = por %p4142_p6, %p4141_p9 }
  0x2e   : > { %p4137_p11 = pneg %p4136_p8 }
  0x30   : > { %p4144_p10 = pnand %p4143_p5, %p4137_p11 }
  0x32   : > { %4147 = shalt.err (!%p4144_p10)
}
  0x33   : > { %s4217_s3 = smov 64   ;;  %s4218_s29 = smov 4  }
  0x34   : > { %3873 = dma.hbm_to_vmem [thread:$0]  (!%p4395_p12), %s5131_s28, 256, %s506_s21, [#allocation3], %s4217_s3, %s4217_s3, %s4218_s29  }
  0x35   : > { %p5132_p13 = scmp.ne.s32.totalorder %s5129_s30, 0 }
  0x36   : > { %p5133_p1 = scmp.eq.s32.totalorder (!%p5132_p13), %s4359_s2, 0 }
  0x37   : > { %581 = sbr.rel (%p5132_p13) target bundleno = 8561 (0x2171), region = 100 }
  0x3e   : > { %4193 = dma.done.wait (%p5133_p1), [#allocation3], 256   ;;  %p5134_p0 = pmov %p5133_p1 }
  0x3f   : > { %s3398_s1 = sshll.u32 %s4359_s2, 1  ;;  %v4219_v0 = vmov 0.0   ;;  %vm4220_vm0 = vmmov 0   ;;  %v3929_v1 = vld [vmem:[#allocation2] sm:$0xff]   ;;  %s5135_s21 = sld [smem:[#allocation14_spill]]  ;;  %v3930_v2 = vld [vmem:[#allocation2 + $0x8] sm:$0xff]   ;;  %v647_v22 = vlaneseq }
  0x40   : > { %4195 = vsyncadd (%p5134_p0), [#allocation3], 4294967040  ;;  %3700 = vmatprep.subr.bf16.mxu0 %v4219_v0  ;;  %3704 = vmatprep.mubr.msk.bf16.mxu0 %vm4220_vm0, %v4219_v0  ;;  %p640_p5 = scmp.lt.s32.totalorder %s3398_s1, 3  ;;  %s5136_s29 = sld [smem:[#allocation17_spill]]  ;;  %vm679_vm1 = vcmask 261120   ;;  %v4221_v12 = vmov 0  }
  0x41   : > { %3701 = vmatpush3.bf16.msra.mxu0 %v3929_v1  ;;  %825 = vmatprep.mubr.bf16.mxu1 %v4221_v12  ;;  %vm789_vm2 = vcmask 523264   ;;  %v648_v23 = vshrl.u32 %v647_v22, 7  ;;  %s5139_s3 = sld [smem:[#allocation18_spill]]  ;;  %s5110_s26 = smov 112   ;;  %vm841_vm3 = vcmask 130048   ;;  %v651_v44 = vand.u32 127, %v647_v22 }
  0x42   : > { %s5158_s1 = smov (!%p640_p5, %s3398_s1), 3  ;;  %3702 = vmatprep.subr.bf16.mxu0 %v4219_v0  ;;  %s5112_s27 = smov 64   ;;  %v4225_v46 = vmov -1e+30  }
  0x43   : > { %s3399_s23 = sshll.u32 %s5158_s1, 2  ;;  %v4473_v24 = vsub.s32 0, %v648_v23  ;;  %v4478_v26 = vsub.s32 1, %v648_v23  ;;  %s5113_s1 = smov 48   ;;  %v649_v45 = vadd.s32 8, %v648_v23  ;;  %vm652_vm4 = vcmp.le.s32.totalorder %v651_v44, %v648_v23 }
  0x44   : > { %v4505_v47 = vsel %vm652_vm4, 0.0, %v4225_v46  ;;  %s5107_s24 = smov 32   ;;  %s5106_s28 = smov 16  }
  0x45   : > { %s643_s25 = scalar_lea.vmem %s5135_s21, %s3399_s23  ;;  %3703 = vmatpush3.bf16.msra.mxu0 %v3930_v2  ;;  %s5137_s23 = sld [smem:[#allocation15_spill]]  ;;  %vm653_vm5 = vcmp.le.s32.totalorder %v651_v44, %v649_v45  ;;  %v3944_v44 = vld [vmem:[%s5074_s5] sm:$0xff]   ;;  %v3945_v45 = vld [vmem:[%s5074_s5 + $0x8] sm:$0xff]  }
  0x46   : > { %v3931_v3 = vld [vmem:[%s643_s25] sm:$0xff]   ;;  %v3935_v6 = vld [vmem:[%s5136_s29 + $0x14] ss:$8 sps:$4 sm:$0xff]   ;;  %v3937_v7 = vld [vmem:[%s5136_s29 + $0x10] ss:$8 sps:$4 sm:$0xff]   ;;  %3708 = vmatprep.subr.bf16.mxu0 %v4219_v0  ;;  %v4507_v49 = vsel %vm653_vm5, 0.0, %v4225_v46 }
  0x47   : > { %v3932_v4 = vld [vmem:[%s5136_s29 + $0x4] ss:$8 sps:$4 sm:$0xff]   ;;  %v3934_v5 = vld [vmem:[%s5136_s29] ss:$8 sps:$4 sm:$0xff]   ;;  %v3941_v10 = vld [vmem:[%s5136_s29 + $0x34] ss:$8 sps:$4 sm:$0xff]  }
  0x48   : > { %793 = vmatprep.subr.bf16.mxu1 %v3932_v4  ;;  %v3938_v8 = vld [vmem:[%s5136_s29 + $0x24] ss:$8 sps:$4 sm:$0xff]   ;;  %3705 = vmatmul.mubr.msk.bf16.vlgmr.msra.gmra.mrb[0].mxu0 %vm679_vm1, %v3931_v3  ;;  %v3940_v9 = vld [vmem:[%s5136_s29 + $0x20] ss:$8 sps:$4 sm:$0xff]   ;;  %v3943_v11 = vld [vmem:[%s5136_s29 + $0x30] ss:$8 sps:$4 sm:$0xff]  }
  0x49   : > { %794 = vmatpush1.bf16.msra.mxu1 %v3934_v5  ;;  %3710 = vmatprep.mubr.msk.bf16.mxu0 %vm4220_vm0, %v4219_v0  ;;  %v737_v25 = vld [vmem:[%s5139_s3] ss:$2 sm:$0x3]  ;;  %s5104_s21 = smov 80   ;;  %p5147_p9 = scmp.ne.s32.totalorder %s5126_s4, 0 }
  0x4a   : > { %795 = vmatprep.subr.bf16.mxu1 %v3935_v6  ;;  %v742_v27 = vrot.slane %v737_v25, %v4473_v24  ;;  %v746_v29 = vrot.slane %v737_v25, %v4478_v26 }
  0x4b   : > { %s5138_s30 = smov %s5137_s23  ;;  %v724_v14 = vld [vmem:[%s5137_s23] sm:$0xff]  ;;  %s5108_s23 = smov 96  }
  0x4c   : > { %v725_v15 = vld [vmem:[%s5138_s30 + $0x8] sm:$0xff]  ;;  %s5140_s30 = smov 48  }
  0x4d   : > { %796 = vmatpush1.bf16.msra.mxu1 %v3937_v7 }
  0x4e   : > { %797 = vmatprep.subr.bf16.mxu1 %v3938_v8 }
  0x51   : > { %798 = vmatpush1.bf16.msra.mxu1 %v3940_v9 }
  0x52   : > { %799 = vmatprep.subr.bf16.mxu1 %v3941_v10 }
  0x55   : > { %800 = vmatpush1.bf16.msra.mxu1 %v3943_v11 }
  0x56   : > { %3720 = vmatprep.subr.bf16.mxu1 %v4219_v0 }
 0x11b   : > { %v717_v13 = vpop.f32.mrb[0].mxu0 }
 0x11c   : > { %v3706_v16 = vpop.f32.mrb[1].mxu0  ;;  %v4464_v18 = vadd.f32 %v724_v14, %v717_v13 }
 0x11d   : > { %v720_v17 = vpop.f32.mrb[2].mxu0 }
 0x11e   : > { %v4466_v19 = vadd.f32 %v725_v15, %v720_v17  ;;  %v3707_v20 = vpop.f32.mrb[3].mxu0 }
 0x120   : > { %v728_v21 = vpack.c.bf16 %v4466_v19, %v4464_v18 }
 0x122   : > { %3412 = vmatmul.mubr.msk.bf16.vlgmr.msra.gmra.mrb[0].mxu1 %vm789_vm2, %v728_v21 }
 0x123   : > { %3722 = vmatprep.mubr.msk.bf16.mxu1 %vm4220_vm0, %v4219_v0 }
 0x1f5   : > { %v827_v28 = vpop.f32.mrb[0].mxu1 }
 0x1f6   : > { %v829_v30 = vpop.f32.mrb[1].mxu1  ;;  %v828_v32 = vadd.f32 %v827_v28, %v742_v27 }
 0x1f7   : > { %v831_v31 = vpop.f32.mrb[2].mxu1  ;;  %v830_v35 = vadd.f32 %v829_v30, %v746_v29 }
 0x1f8   : > { %v832_v33 = vadd.f32 %v831_v31, %v742_v27  ;;  %v833_v34 = vpop.f32.mrb[3].mxu1 }
 0x1f9   : > { %v834_v36 = vadd.f32 %v833_v34, %v746_v29 }
 0x1fa   : > { %v4482_v37 = vpack.c.bf16 %v832_v33, %v828_v32 }
 0x1fb   : > { %v4484_v38 = vpack.c.bf16 %v834_v36, %v830_v35 }
 0x1fc   : > { %959 = vrot.lane.b32.xlu1 %v4482_v37, %s5110_s26  ;;  %839 = vrot.lane.b32.xlu0 %v4482_v37, %s5112_s27  ;;  %s5145_s27 = smov 16  }
 0x200   : > { %961 = vrot.lane.b32.xlu0 %v4482_v37, %s5113_s1  ;;  %s5141_s1 = smov 64  }
 0x26e   : > { %v840_v39 = vpop.permute.xlu0 %839  ;;  %v960_v43 = vpop.permute.xlu1 %959 }
 0x26f   : > { %v846_v40 = vsel %vm841_vm3, %v840_v39, 0 }
 0x270   : > { %3709 = vmatpush3.bf16.xpose.msra.mxu0 %v846_v40 }
 0x271   : > { %3714 = vmatprep.subr.bf16.mxu0 %v4219_v0 }
 0x272   : > { %v962_v41 = vpop.permute.xlu0 %961 }
 0x273   : > { %v967_v42 = vsel %vm841_vm3, %v962_v41, 0 }
 0x274   : > { %3721 = vmatpush3.bf16.xpose.msra.mxu1 %v967_v42 }
 0x275   : > { %3732 = vmatprep.subr.bf16.mxu1 %v4219_v0 }
 0x277   : > { %3711 = vmatmul.mubr.msk.bf16.vlgmr.msra.gmra.mrb[4].mxu0 %vm841_vm3, %v4482_v37 }
 0x278   : > { %3715 = vmatpush3.bf16.msra.mxu0 %v4484_v38  ;;  %3716 = vmatprep.mubr.msk.bf16.mxu0 %vm4220_vm0, %v4219_v0 }
 0x279   : > { %3726 = vmatprep.subr.bf16.mxu0 %v4219_v0 }
 0x27b   : > { %3723 = vmatmul.mubr.msk.bf16.vlgmr.msra.gmra.mrb[4].mxu1 %vm841_vm3, %v960_v43 }
 0x27c   : > { %3734 = vmatprep.mubr.msk.bf16.mxu1 %vm4220_vm0, %v4219_v0  ;;  %3733 = vmatpush3.bf16.msra.mxu1 %v3945_v45 }
 0x27d   : > { %3744 = vmatprep.subr.bf16.mxu1 %v4219_v0 }
 0x34a   : > { %v882_v48 = vpop.f32.mrb[4].mxu0 }
 0x34b   : > { %v883_v50 = vadd.f32 %v882_v48, %v4505_v47  ;;  %v3712_v51 = vpop.f32.mrb[5].mxu0 }
 0x34c   : > { %v885_v52 = vpop.f32.mrb[6].mxu0 }
 0x34d   : > { %v886_v53 = vadd.f32 %v885_v52, %v4507_v49  ;;  %v3713_v54 = vpop.f32.mrb[7].mxu0  ;;  %v889_v55 = vsel %vm841_vm3, %v883_v50, -inf }
 0x34e   : > { %v1003_v56 = vpop.f32.mrb[4].mxu1  ;;  %890 = vmax.xlane.f32.xlu1 %v889_v55 }
 0x34f   : > { %v1004_v57 = vadd.f32 %v1003_v56, %v4505_v47  ;;  %v3724_v58 = vpop.f32.mrb[5].mxu1  ;;  %v892_v59 = vsel %vm841_vm3, %v886_v53, -inf }
 0x350   : > { %v1006_v60 = vpop.f32.mrb[6].mxu1  ;;  %893 = vmax.xlane.f32.xlu0 %v892_v59 }
 0x351   : > { %v1007_v61 = vadd.f32 %v1006_v60, %v4507_v49  ;;  %v3725_v62 = vpop.f32.mrb[7].mxu1  ;;  %v1010_v1 = vsel %vm841_vm3, %v1004_v57, -inf }
 0x353   : > { %v1013_v63 = vsel %vm841_vm3, %v1007_v61, -inf }
 0x354   : > { %1014 = vmax.xlane.f32.xlu1 %v1013_v63  ;;  %1011 = vmax.xlane.f32.xlu0 %v1010_v1 }
 0x3db   : > { %v891_v2 = vpop.xlane.xlu1 %890 }
 0x3dc   : > { %v895_v3 = vsub.f32 %v883_v50, %v891_v2 }
 0x3dd   : > { %v894_v4 = vpop.xlane.xlu0 %893 }
 0x3de   : > { %v897_v5 = vmul.f32 1.442695, %v895_v3  ;;  %v896_v6 = vsub.f32 %v886_v53, %v894_v4 }
 0x3e0   : > { %4024 = vpow2.f32 %v897_v5  ;;  %v899_v7 = vmul.f32 1.442695, %v896_v6 }
 0x3e1   : > { %v1015_v8 = vpop.xlane.xlu1 %1014  ;;  %v1012_v9 = vpop.xlane.xlu0 %1011 }
 0x3e2   : > { %4026 = vpow2.f32 %v899_v7  ;;  %v1017_v10 = vsub.f32 %v1007_v61, %v1015_v8  ;;  %v1016_v11 = vsub.f32 %v1004_v57, %v1012_v9 }
 0x3e4   : > { %v1020_v13 = vmul.f32 1.442695, %v1017_v10  ;;  %v1018_v14 = vmul.f32 1.442695, %v1016_v11 }
 0x3e6   : > { %4028 = vpow2.f32 %v1020_v13 }
 0x3e7   : > { %4030 = vpow2.f32 %v1018_v14 }
 0x3ea   : > { %v4025_v15 = vpop.eup %4024 }
 0x3eb   : > { %v901_v16 = vsel %vm841_vm3, %v4025_v15, 0.0 }
 0x3ec   : > { %v4027_v17 = vpop.eup %4026  ;;  %902 = vadd.xlane.f32.xlu0 %v901_v16 }
 0x3ed   : > { %v904_v20 = vsel %vm841_vm3, %v4027_v17, 0.0 }
 0x3ee   : > { %905 = vadd.xlane.f32.xlu1 %v904_v20 }
 0x3f0   : > { %v4029_v21 = vpop.eup %4028 }
 0x3f1   : > { %v4031_v22 = vpop.eup %4030  ;;  %v1025_v23 = vsel %vm841_vm3, %v4029_v21, 0.0 }
 0x3f2   : > { %1026 = vadd.xlane.f32.xlu1 %v1025_v23  ;;  %v1022_v25 = vsel %vm841_vm3, %v4031_v22, 0.0 }
 0x3f3   : > { %1023 = vadd.xlane.f32.xlu0 %v1022_v25 }
 0x403   : > { %1187 = vrot.lane.b32.xlu1 %v4482_v37, %s5107_s24  ;;  %s5142_s24 = smov 112  }
 0x407   : > { %1185 = vrot.lane.b32.xlu1 %v4482_v37, %s5108_s23 }
 0x409   : > { %1034 = vrot.lane.b32.xlu0 %v4484_v38, %s5110_s26 }
 0x479   : > { %v903_v27 = vpop.xlane.xlu0 %902 }
 0x47a   : > { %4032 = vrcp.f32 %v903_v27 }
 0x47b   : > { %v906_v28 = vpop.xlane.xlu1 %905 }
 0x47c   : > { %4034 = vrcp.f32 %v906_v28 }
 0x47f   : > { %v1027_v29 = vpop.xlane.xlu1 %1026 }
 0x480   : > { %4036 = vrcp.f32 %v1027_v29  ;;  %v1024_v30 = vpop.xlane.xlu0 %1023 }
 0x481   : > { %4038 = vrcp.f32 %v1024_v30 }
 0x483   : > { %v1188_v55 = vpop.permute.xlu1 %1187 }
 0x484   : > { %v4033_v31 = vpop.eup %4032  ;;  %v1035_v40 = vpop.permute.xlu0 %1034  ;;  %v1193_v59 = vsel %vm841_vm3, %v1188_v55, 0 }
 0x485   : > { %v909_v33 = vmul.f32 %v4033_v31, %v4025_v15 }
 0x486   : > { %v4035_v32 = vpop.eup %4034 }
 0x487   : > { %v910_v34 = vmul.f32 %v4035_v32, %v4027_v17  ;;  %v1186_v60 = vpop.permute.xlu1 %1185 }
 0x489   : > { %v911_v35 = vpack.c.bf16 %v910_v34, %v909_v33 }
 0x48a   : > { %v4037_v36 = vpop.eup %4036 }
 0x48b   : > { %v4039_v39 = vpop.eup %4038  ;;  %3717 = vmatmul.mubr.msk.bf16.vlgmr.msra.gmra.mrb[8].mxu0 %vm841_vm3, %v911_v35  ;;  %v1031_v41 = vmul.f32 %v4037_v36, %v4029_v21 }
 0x48c   : > { %3727 = vmatpush3.bf16.msra.mxu0 %v1035_v40  ;;  %3728 = vmatprep.mubr.msk.bf16.mxu0 %vm4220_vm0, %v4219_v0  ;;  %v1030_v42 = vmul.f32 %v4039_v39, %v4031_v22 }
 0x48d   : > { %3738 = vmatprep.subr.bf16.mxu0 %v4219_v0 }
 0x48e   : > { %v1032_v43 = vpack.c.bf16 %v1031_v41, %v1030_v42 }
 0x493   : > { %3729 = vmatmul.mubr.msk.bf16.vlgmr.msra.gmra.mrb[12].mxu0 %vm841_vm3, %v1032_v43  ;;  %v3946_v43 = vld [vmem:[%s5074_s5 + $0x10] sm:$0xff]  }
 0x494   : > { %3740 = vmatprep.mubr.msk.bf16.mxu0 %vm4220_vm0, %v4219_v0  ;;  %3739 = vmatpush3.bf16.msra.mxu0 %v3944_v44 }
 0x495   : > { %3750 = vmatprep.subr.bf16.mxu0 %v4219_v0 }
 0x55e   : > { %v949_v46 = vpop.f32.mrb[8].mxu0 }
 0x55f   : > { %v3718_v48 = vpop.f32.mrb[9].mxu0 }
 0x560   : > { %v952_v50 = vpop.f32.mrb[10].mxu0 }
 0x561   : > { %v956_v51 = vpack.c.bf16 %v952_v50, %v949_v46  ;;  %v3719_v52 = vpop.f32.mrb[11].mxu0 }
 0x563   : > { %3741 = vmatmul.mubr.msk.bf16.vlgmr.msra.gmra.mrb[16].mxu0 %vm841_vm3, %v956_v51 }
 0x564   : > { %3752 = vmatprep.mubr.msk.bf16.mxu0 %vm4220_vm0, %v4219_v0 }
 0x566   : > { %v1074_v53 = vpop.f32.mrb[12].mxu0 }
 0x567   : > { %v3730_v54 = vpop.f32.mrb[13].mxu0 }
 0x568   : > { %v1077_v56 = vpop.f32.mrb[14].mxu0 }
 0x569   : > { %v1081_v57 = vpack.c.bf16 %v1077_v56, %v1074_v53  ;;  %v3731_v58 = vpop.f32.mrb[15].mxu0 }
 0x56b   : > { %3735 = vmatmul.mubr.msk.bf16.vlgmr.msra.gmra.mrb[8].mxu1 %vm841_vm3, %v1081_v57 }
 0x56c   : > { %3745 = vmatpush3.bf16.xpose.msra.mxu1 %v1193_v59  ;;  %3746 = vmatprep.mubr.msk.bf16.mxu1 %vm4220_vm0, %v4219_v0 }
 0x56d   : > { %3756 = vmatprep.subr.bf16.mxu1 %v4219_v0 }
 0x573   : > { %3747 = vmatmul.mubr.msk.bf16.vlgmr.msra.gmra.mrb[12].mxu1 %vm841_vm3, %v1186_v60 }
 0x574   : > { %3758 = vmatprep.mubr.msk.bf16.mxu1 %vm4220_vm0, %v4219_v0  ;;  %3757 = vmatpush3.bf16.msra.mxu1 %v3946_v43 }
 0x575   : > { %3768 = vmatprep.subr.bf16.mxu1 %v4219_v0 }
 0x636   : > { %v1178_v61 = vpop.f32.mrb[16].mxu0 }
 0x637   : > { %v3742_v62 = vpop.f32.mrb[17].mxu0 }
 0x638   : > { %v1181_v63 = vpop.f32.mrb[18].mxu0 }
 0x639   : > { %v3743_v1 = vpop.f32.mrb[19].mxu0 }
 0x63e   : > { %v1128_v2 = vpop.f32.mrb[8].mxu1 }
 0x63f   : > { %v4553_v3 = vadd.f32 %v1178_v61, %v1128_v2  ;;  %v3736_v4 = vpop.f32.mrb[9].mxu1 }
 0x640   : > { %v1131_v5 = vpop.f32.mrb[10].mxu1 }
 0x641   : > { %v4555_v6 = vadd.f32 %v1181_v63, %v1131_v5  ;;  %v3737_v7 = vpop.f32.mrb[11].mxu1 }
 0x646   : > { %v1229_v8 = vpop.f32.mrb[12].mxu1 }
 0x647   : > { %v1230_v9 = vadd.f32 %v1229_v8, %v4505_v47  ;;  %v3748_v10 = vpop.f32.mrb[13].mxu1  ;;  %v3947_v8 = vld [vmem:[%s5074_s5 + $0x18] sm:$0xff]  }
 0x648   : > { %v1232_v11 = vpop.f32.mrb[14].mxu1 }
 0x649   : > { %v1233_v13 = vadd.f32 %v1232_v11, %v4507_v49  ;;  %v3749_v14 = vpop.f32.mrb[15].mxu1  ;;  %v1236_v15 = vsel %vm841_vm3, %v1230_v9, -inf }
 0x64a   : > { %1237 = vmax.xlane.f32.xlu0 %v1236_v15 }
 0x64b   : > { %v1239_v16 = vsel %vm841_vm3, %v1233_v13, -inf }
 0x64c   : > { %1240 = vmax.xlane.f32.xlu1 %v1239_v16 }
 0x65d   : > { %1259 = vrot.lane.b32.xlu1 %v4484_v38, %s5108_s23  ;;  %s5143_s23 = smov 96  }
 0x661   : > { %1362 = vrot.lane.b32.xlu1 %v4482_v37, %s5104_s21 }
 0x6d7   : > { %v1238_v17 = vpop.xlane.xlu0 %1237 }
 0x6d8   : > { %v1242_v20 = vsub.f32 %v1230_v9, %v1238_v17 }
 0x6d9   : > { %v1241_v21 = vpop.xlane.xlu1 %1240 }
 0x6da   : > { %v1244_v22 = vmul.f32 1.442695, %v1242_v20  ;;  %v1243_v23 = vsub.f32 %v1233_v13, %v1241_v21 }
 0x6dc   : > { %4040 = vpow2.f32 %v1244_v22  ;;  %v1246_v25 = vmul.f32 1.442695, %v1243_v23 }
 0x6dd   : > { %v1260_v27 = vpop.permute.xlu1 %1259 }
 0x6de   : > { %4042 = vpow2.f32 %v1246_v25  ;;  %3751 = vmatpush3.bf16.msra.mxu0 %v1260_v27 }
 0x6df   : > { %3762 = vmatprep.subr.bf16.mxu0 %v4219_v0 }
 0x6e6   : > { %v4041_v28 = vpop.eup %4040 }
 0x6e7   : > { %v1248_v29 = vsel %vm841_vm3, %v4041_v28, 0.0 }
 0x6e8   : > { %v4043_v30 = vpop.eup %4042  ;;  %1249 = vadd.xlane.f32.xlu0 %v1248_v29 }
 0x6e9   : > { %v1251_v31 = vsel %vm841_vm3, %v4043_v30, 0.0 }
 0x6ec   : > { %1252 = vadd.xlane.f32.xlu0 %v1251_v31  ;;  %v3435_v31 = vld [vmem:[%s5075_s6] ss:$0 sm:$0xff] }
 0x702   : > { %1364 = vrot.lane.b32.xlu0 %v4482_v37, %s5106_s28  ;;  %v1363_v37 = vpop.permute.xlu1 %1362  ;;  %s3599_s28 = sshll.u32 %s4359_s2, 8  ;;  %s4230_s2 = smov [#allocation5]  }
 0x775   : > { %v1250_v32 = vpop.xlane.xlu0 %1249 }
 0x776   : > { %4044 = vrcp.f32 %v1250_v32 }
 0x779   : > { %v1253_v33 = vpop.xlane.xlu0 %1252 }
 0x77a   : > { %4046 = vrcp.f32 %v1253_v33 }
 0x77d   : > { %v1365_v40 = vpop.permute.xlu0 %1364 }
 0x77e   : > { %v1370_v42 = vsel %vm841_vm3, %v1365_v40, 0 }
 0x780   : > { %v4045_v34 = vpop.eup %4044 }
 0x781   : > { %v1256_v36 = vmul.f32 %v4045_v34, %v4041_v28 }
 0x784   : > { %v4047_v35 = vpop.eup %4046 }
 0x785   : > { %v1257_v39 = vmul.f32 %v4047_v35, %v4043_v30 }
 0x787   : > { %v1258_v41 = vpack.c.bf16 %v1257_v39, %v1256_v36 }
 0x789   : > { %3753 = vmatmul.mubr.msk.bf16.vlgmr.msra.gmra.mrb[20].mxu0 %vm841_vm3, %v1258_v41 }
 0x78a   : > { %3763 = vmatpush3.bf16.xpose.msra.mxu0 %v1370_v42  ;;  %3764 = vmatprep.mubr.msk.bf16.mxu0 %vm4220_vm0, %v4219_v0 }
 0x78b   : > { %3774 = vmatprep.subr.bf16.mxu0 %v4219_v0 }
 0x791   : > { %3765 = vmatmul.mubr.msk.bf16.vlgmr.msra.gmra.mrb[24].mxu0 %vm841_vm3, %v1363_v37 }
 0x792   : > { %3776 = vmatprep.mubr.msk.bf16.mxu0 %vm4220_vm0, %v4219_v0  ;;  %3775 = vmatpush3.bf16.msra.mxu0 %v3947_v8 }
 0x85c   : > { %v1299_v44 = vpop.f32.mrb[20].mxu0 }
 0x85d   : > { %v3754_v45 = vpop.f32.mrb[21].mxu0 }
 0x85e   : > { %v1302_v46 = vpop.f32.mrb[22].mxu0 }
 0x85f   : > { %v1306_v48 = vpack.c.bf16 %v1302_v46, %v1299_v44  ;;  %v3755_v50 = vpop.f32.mrb[23].mxu0 }
 0x861   : > { %3759 = vmatmul.mubr.msk.bf16.vlgmr.msra.gmra.mrb[16].mxu1 %vm841_vm3, %v1306_v48 }
 0x862   : > { %3770 = vmatprep.mubr.msk.bf16.mxu1 %vm4220_vm0, %v4219_v0 }
 0x864   : > { %v1406_v51 = vpop.f32.mrb[24].mxu0 }
 0x865   : > { %v1407_v52 = vadd.f32 %v1406_v51, %v4505_v47  ;;  %v3766_v53 = vpop.f32.mrb[25].mxu0 }
 0x866   : > { %v1409_v54 = vpop.f32.mrb[26].mxu0 }
 0x867   : > { %v1410_v55 = vadd.f32 %v1409_v54, %v4507_v49  ;;  %v3767_v56 = vpop.f32.mrb[27].mxu0  ;;  %v1413_v57 = vsel %vm841_vm3, %v1407_v52, -inf }
 0x868   : > { %1414 = vmax.xlane.f32.xlu1 %v1413_v57 }
 0x869   : > { %v1416_v58 = vsel %vm841_vm3, %v1410_v55, -inf }
 0x86a   : > { %1417 = vmax.xlane.f32.xlu0 %v1416_v58 }
 0x8f5   : > { %v1415_v59 = vpop.xlane.xlu1 %1414 }
 0x8f6   : > { %v1419_v60 = vsub.f32 %v1407_v52, %v1415_v59 }
 0x8f7   : > { %v1418_v61 = vpop.xlane.xlu0 %1417 }
 0x8f8   : > { %v1421_v62 = vmul.f32 1.442695, %v1419_v60  ;;  %v1420_v63 = vsub.f32 %v1410_v55, %v1418_v61  ;;  %v3436_v61 = vld [vmem:[%s5077_s8] ss:$0 sm:$0xff] }
 0x8fa   : > { %4048 = vpow2.f32 %v1421_v62  ;;  %v1423_v1 = vmul.f32 1.442695, %v1420_v63  ;;  %v3437_v63 = vld [vmem:[%s5078_s9] ss:$0 sm:$0xff] }
 0x8fc   : > { %4050 = vpow2.f32 %v1423_v1 }
 0x904   : > { %v4049_v2 = vpop.eup %4048 }
 0x905   : > { %v1425_v4 = vsel %vm841_vm3, %v4049_v2, 0.0 }
 0x906   : > { %v4051_v5 = vpop.eup %4050  ;;  %1426 = vadd.xlane.f32.xlu0 %v1425_v4  ;;  %v3438_v4 = vld [vmem:[%s5076_s7] ss:$0 sm:$0xff] }
 0x907   : > { %v1428_v7 = vsel %vm841_vm3, %v4051_v5, 0.0 }
 0x908   : > { %1429 = vadd.xlane.f32.xlu1 %v1428_v7 }
 0x91c   : > { %1436 = vrot.lane.b32.xlu0 %v4484_v38, %s5104_s21  ;;  %s5144_s21 = smov 32  }
 0x934   : > { %v1353_v9 = vpop.f32.mrb[16].mxu1 }
 0x935   : > { %v1360_v10 = vadd.f32 %v1353_v9, %v4553_v3  ;;  %v3760_v11 = vpop.f32.mrb[17].mxu1 }
 0x936   : > { %v1356_v13 = vpop.f32.mrb[18].mxu1 }
 0x937   : > { %v1361_v14 = vadd.f32 %v1356_v13, %v4555_v6  ;;  %v3761_v15 = vpop.f32.mrb[19].mxu1 }
 0x993   : > { %v1427_v16 = vpop.xlane.xlu0 %1426 }
 0x994   : > { %4052 = vrcp.f32 %v1427_v16 }
 0x995   : > { %v1430_v17 = vpop.xlane.xlu1 %1429 }
 0x996   : > { %4054 = vrcp.f32 %v1430_v17 }
 0x997   : > { %v1437_v20 = vpop.permute.xlu0 %1436 }
 0x998   : > { %3769 = vmatpush3.bf16.msra.mxu1 %v1437_v20 }
 0x99e   : > { %v4053_v38 = vpop.eup %4052 }
 0x99f   : > { %v1433_v22 = vmul.f32 %v4053_v38, %v4049_v2 }
 0x9a0   : > { %v4055_v21 = vpop.eup %4054 }
 0x9a1   : > { %v1434_v23 = vmul.f32 %v4055_v21, %v4051_v5 }
 0x9a3   : > { %v1435_v25 = vpack.c.bf16 %v1434_v23, %v1433_v22 }
 0x9a5   : > { %3771 = vmatmul.mubr.msk.bf16.vlgmr.msra.gmra.mrb[20].mxu1 %vm841_vm3, %v1435_v25 }
 0x9a6   : > { %1732 = vmatprep.mubr.bf16.mxu1 %v4221_v12 }
 0xa78   : > { %v1476_v3 = vpop.f32.mrb[20].mxu1 }
 0xa79   : > { %v3772_v27 = vpop.f32.mrb[21].mxu1 }
 0xa7a   : > { %v1479_v28 = vpop.f32.mrb[22].mxu1  ;;  %v3950_v27 = vld [vmem:[%s5083_s14 + $0x4] ss:$8 sps:$4 sm:$0xff]  }
 0xa7b   : > { %v1483_v6 = vpack.c.bf16 %v1479_v28, %v1476_v3  ;;  %v3773_v29 = vpop.f32.mrb[23].mxu1  ;;  %v3948_v28 = vld [vmem:[%s5083_s14] ss:$8 sps:$4 sm:$0xff]   ;;  %1700 = vmatprep.subr.bf16.mxu1 %v3950_v27 }
 0xa7c   : > { %1701 = vmatpush1.bf16.msra.mxu1 %v3948_v28  ;;  %v3951_v29 = vld [vmem:[%s5083_s14 + $0x10] ss:$8 sps:$4 sm:$0xff]   ;;  %v3450_v28 = vld [vmem:[%s5086_s17] ss:$0 sm:$0xff] }
 0xa7d   : > { %3777 = vmatmul.mubr.msk.bf16.vlgmr.msra.gmra.mrb[28].mxu0 %vm841_vm3, %v1483_v6  ;;  %v3953_v6 = vld [vmem:[%s5083_s14 + $0x14] ss:$8 sps:$4 sm:$0xff]  }
 0xa7e   : > { %1702 = vmatprep.subr.bf16.mxu1 %v3953_v6 }
 0xa80   : > { %1703 = vmatpush1.bf16.msra.mxu1 %v3951_v29 }
 0xb50   : > { %v1530_v30 = vpop.f32.mrb[28].mxu0 }
 0xb51   : > { %v1537_v32 = vadd.f32 %v1530_v30, %v1360_v10  ;;  %v3778_v33 = vpop.f32.mrb[29].mxu0  ;;  %v3956_v30 = vld [vmem:[%s5083_s14 + $0x24] ss:$8 sps:$4 sm:$0xff]  }
 0xb52   : > { %v1533_v34 = vpop.f32.mrb[30].mxu0  ;;  %1704 = vmatprep.subr.bf16.mxu1 %v3956_v30  ;;  %v3959_v33 = vld [vmem:[%s5083_s14 + $0x34] ss:$8 sps:$4 sm:$0xff]  }
 0xb53   : > { %v1544_v35 = vadd.f32 %v3435_v31, %v1537_v32  ;;  %v1538_v36 = vadd.f32 %v1533_v34, %v1361_v14  ;;  %v3779_v39 = vpop.f32.mrb[31].mxu0  ;;  %v3957_v32 = vld [vmem:[%s5083_s14 + $0x30] ss:$8 sps:$4 sm:$0xff]   ;;  %v3960_v34 = vld [vmem:[%s5085_s16 + $0x40] sm:$0xff]  }
 0xb54   : > { %3627 = vmatprep.subr.bf16.mxu0 %v3960_v34  ;;  %v3963_v39 = vld [vmem:[%s5085_s16 + $0x8] sm:$0xff]  }
 0xb55   : > { %v1545_v40 = vadd.f32 %v3435_v31, %v1538_v36  ;;  %v1546_v41 = vadd.f32 %v1544_v35, %v4464_v18  ;;  %v3954_v31 = vld [vmem:[%s5083_s14 + $0x20] ss:$8 sps:$4 sm:$0xff]  }
 0xb56   : > { %1705 = vmatpush1.bf16.msra.mxu1 %v3954_v31  ;;  %v3961_v35 = vld [vmem:[%s5085_s16] sm:$0xff]   ;;  %v3962_v36 = vld [vmem:[%s5085_s16 + $0x48] sm:$0xff]  }
 0xb57   : > { %v1550_v42 = vsel %vm789_vm2, %v1546_v41, 0.0  ;;  %v1547_v37 = vadd.f32 %v1545_v40, %v4466_v19  ;;  %1706 = vmatprep.subr.bf16.mxu1 %v3959_v33  ;;  %3628 = vmatpush3.bf16.msra.mxu0 %v3961_v35  ;;  %v3964_v40 = vld [vmem:[%s5085_s16 + $0x50] sm:$0xff]  }
 0xb58   : > { %1551 = vadd.xlane.f32.xlu1 %v1550_v42  ;;  %3629 = vmatprep.subr.bf16.mxu0 %v3962_v36  ;;  %v3966_v42 = vld [vmem:[%s5085_s16 + $0x58] sm:$0xff]  }
 0xb59   : > { %v1553_v43 = vsel %vm789_vm2, %v1547_v37, 0.0 }
 0xb5a   : > { %1707 = vmatpush1.bf16.msra.mxu1 %v3957_v32 }
 0xb5b   : > { %3630 = vmatpush3.bf16.msra.mxu0 %v3963_v39 }
 0xb5c   : > { %1554 = vadd.xlane.f32.xlu1 %v1553_v43  ;;  %3631 = vmatprep.subr.bf16.mxu0 %v3964_v40  ;;  %v3968_v43 = vld [vmem:[%s5085_s16 + $0x60] sm:$0xff]  }
 0xbe5   : > { %v1552_v44 = vpop.xlane.xlu1 %1551 }
 0xbe6   : > { %v1557_v45 = vmul.f32 0.015625, %v1552_v44  ;;  %v3969_v44 = vld [vmem:[%s5085_s16 + $0x20] sm:$0xff]  }
 0xbe8   : > { %v1559_v46 = vsub.f32 %v1546_v41, %v1557_v45  ;;  %v3965_v41 = vld [vmem:[%s5085_s16 + $0x10] sm:$0xff]   ;;  %v3970_v45 = vld [vmem:[%s5085_s16 + $0x68] sm:$0xff]  }
 0xbe9   : > { %v1555_v48 = vpop.xlane.xlu1 %1554  ;;  %3632 = vmatpush3.bf16.msra.mxu0 %v3965_v41 }
 0xbea   : > { %v1558_v50 = vmul.f32 0.015625, %v1555_v48  ;;  %v1561_v51 = vmul.f32 %v1559_v46, %v1559_v46  ;;  %3633 = vmatprep.subr.bf16.mxu0 %v3966_v42 }
 0xbec   : > { %v1560_v52 = vsub.f32 %v1547_v37, %v1558_v50  ;;  %v1563_v53 = vsel %vm789_vm2, %v1561_v51, 0.0  ;;  %v3967_v37 = vld [vmem:[%s5085_s16 + $0x18] sm:$0xff]  }
 0xbed   : > { %1564 = vadd.xlane.f32.xlu1 %v1563_v53  ;;  %3634 = vmatpush3.bf16.msra.mxu0 %v3967_v37 }
 0xbee   : > { %v1562_v54 = vmul.f32 %v1560_v52, %v1560_v52  ;;  %3635 = vmatprep.subr.bf16.mxu0 %v3968_v43 }
 0xbf0   : > { %v1566_v18 = vsel %vm789_vm2, %v1562_v54, 0.0 }
 0xbf1   : > { %1567 = vadd.xlane.f32.xlu1 %v1566_v18  ;;  %3636 = vmatpush3.bf16.msra.mxu0 %v3969_v44 }
 0xbf2   : > { %3637 = vmatprep.subr.bf16.mxu0 %v3970_v45 }
 0xc7a   : > { %v1565_v55 = vpop.xlane.xlu1 %1564 }
 0xc7b   : > { %v1569_v19 = vmul.f32 0.015625, %v1565_v55  ;;  %v3439_v55 = vld [vmem:[%s5079_s10] ss:$0 sm:$0xff] }
 0xc7d   : > { %v1571_v56 = vadd.f32 1e-05, %v1569_v19 }
 0xc7e   : > { %v1568_v57 = vpop.xlane.xlu1 %1567 }
 0xc7f   : > { %4056 = vrsqrt.f32 %v1571_v56  ;;  %v1570_v58 = vmul.f32 0.015625, %v1568_v57 }
 0xc81   : > { %v1572_v59 = vadd.f32 1e-05, %v1570_v58  ;;  %v3440_v58 = vld [vmem:[%s5080_s11] ss:$0 sm:$0xff] }
 0xc83   : > { %4058 = vrsqrt.f32 %v1572_v59 }
 0xc89   : > { %v4057_v60 = vpop.eup %4056 }
 0xc8a   : > { %v1575_v62 = vmul.f32 %v4057_v60, %v1559_v46 }
 0xc8c   : > { %v1581_v1 = vmul.f32 %v3436_v61, %v1575_v62 }
 0xc8d   : > { %v4059_v2 = vpop.eup %4058 }
 0xc8e   : > { %v1587_v5 = vadd.f32 %v3437_v63, %v1581_v1  ;;  %v1576_v7 = vmul.f32 %v4059_v2, %v1560_v52  ;;  %v3972_v1 = vld [vmem:[%s5085_s16 + $0x70] sm:$0xff]  }
 0xc8f   : > { %v3973_v2 = vld [vmem:[%s5085_s16 + $0x30] sm:$0xff]  }
 0xc90   : > { %v1594_v8 = vadd.f32 %v3438_v4, %v1587_v5  ;;  %v1582_v9 = vmul.f32 %v3436_v61, %v1576_v7  ;;  %v3975_v5 = vld [vmem:[%s5085_s16 + $0x38] sm:$0xff]   ;;  %v1645_v7 = vld [vmem:[%s5084_s15] ss:$2 sm:$0x3] }
 0xc92   : > { %v1598_v10 = vsel %vm789_vm2, %v1594_v8, 0.0  ;;  %v1588_v11 = vadd.f32 %v3437_v63, %v1582_v9  ;;  %v3971_v63 = vld [vmem:[%s5085_s16 + $0x28] sm:$0xff]   ;;  %v1654_v9 = vrot.slane %v1645_v7, %v4478_v26 }
 0xc93   : > { %1599 = vadd.xlane.f32.xlu1 %v1598_v10  ;;  %3638 = vmatpush3.bf16.msra.mxu0 %v3971_v63 }
 0xc94   : > { %v1595_v13 = vadd.f32 %v3438_v4, %v1588_v11  ;;  %3639 = vmatprep.subr.bf16.mxu0 %v3972_v1  ;;  %v3974_v4 = vld [vmem:[%s5085_s16 + $0x78] sm:$0xff]  }
 0xc96   : > { %v1601_v14 = vsel %vm789_vm2, %v1595_v13, 0.0 }
 0xc97   : > { %1602 = vadd.xlane.f32.xlu1 %v1601_v14  ;;  %3640 = vmatpush3.bf16.msra.mxu0 %v3973_v2 }
 0xc98   : > { %3641 = vmatprep.subr.bf16.mxu0 %v3974_v4  ;;  %v3467_v4 = vld [vmem:[%s5081_s12] ss:$0 sm:$0xff] }
 0xc9b   : > { %3642 = vmatpush3.bf16.msra.mxu0 %v3975_v5 }
 0xc9c   : > { %3786 = vmatprep.subr.bf16.mxu0 %v4219_v0 }
 0xd20   : > { %v1600_v15 = vpop.xlane.xlu1 %1599 }
 0xd21   : > { %v1604_v16 = vmul.f32 0.015625, %v1600_v15 }
 0xd23   : > { %v1606_v17 = vsub.f32 %v1594_v8, %v1604_v16  ;;  %v1650_v8 = vrot.slane %v1645_v7, %v4473_v24 }
 0xd24   : > { %v1603_v20 = vpop.xlane.xlu1 %1602 }
 0xd25   : > { %v1605_v38 = vmul.f32 0.015625, %v1603_v20  ;;  %v1608_v21 = vmul.f32 %v1606_v17, %v1606_v17 }
 0xd27   : > { %v1607_v22 = vsub.f32 %v1595_v13, %v1605_v38  ;;  %v1610_v23 = vsel %vm789_vm2, %v1608_v21, 0.0 }
 0xd28   : > { %1611 = vadd.xlane.f32.xlu0 %v1610_v23 }
 0xd29   : > { %v1609_v25 = vmul.f32 %v1607_v22, %v1607_v22 }
 0xd2b   : > { %v1613_v3 = vsel %vm789_vm2, %v1609_v25, 0.0 }
 0xd2c   : > { %1614 = vadd.xlane.f32.xlu1 %v1613_v3 }
 0xdb5   : > { %v1612_v46 = vpop.xlane.xlu0 %1611 }
 0xdb6   : > { %v1616_v48 = vmul.f32 0.015625, %v1612_v46 }
 0xdb8   : > { %v1618_v50 = vadd.f32 1e-05, %v1616_v48 }
 0xdb9   : > { %v1615_v51 = vpop.xlane.xlu1 %1614 }
 0xdba   : > { %4060 = vrsqrt.f32 %v1618_v50  ;;  %v1617_v52 = vmul.f32 0.015625, %v1615_v51 }
 0xdbc   : > { %v1619_v53 = vadd.f32 1e-05, %v1617_v52  ;;  %v3978_v52 = vld [vmem:[%s5136_s29 + $0x44] ss:$8 sps:$4 sm:$0xff]  }
 0xdbd   : > { %2031 = vmatprep.subr.bf16.mxu1 %v3978_v52 }
 0xdbe   : > { %4062 = vrsqrt.f32 %v1619_v53  ;;  %v3976_v53 = vld [vmem:[%s5136_s29 + $0x40] ss:$8 sps:$4 sm:$0xff]  }
 0xdc4   : > { %v4061_v54 = vpop.eup %4060 }
 0xdc5   : > { %v1622_v18 = vmul.f32 %v4061_v54, %v1606_v17  ;;  %v3981_v54 = vld [vmem:[%s5136_s29 + $0x54] ss:$8 sps:$4 sm:$0xff]  }
 0xdc7   : > { %v1628_v56 = vmul.f32 %v3439_v55, %v1622_v18  ;;  %v3979_v18 = vld [vmem:[%s5136_s29 + $0x50] ss:$8 sps:$4 sm:$0xff]  }
 0xdc8   : > { %v4063_v19 = vpop.eup %4062 }
 0xdc9   : > { %v1623_v57 = vmul.f32 %v4063_v19, %v1607_v22  ;;  %v1634_v60 = vadd.f32 %v3440_v58, %v1628_v56  ;;  %v3982_v19 = vld [vmem:[%s5136_s29 + $0x60] ss:$8 sps:$4 sm:$0xff]   ;;  %v3985_v56 = vld [vmem:[%s5136_s29 + $0x70] ss:$8 sps:$4 sm:$0xff]  }
 0xdcb   : > { %v1629_v59 = vmul.f32 %v3439_v55, %v1623_v57  ;;  %v3984_v55 = vld [vmem:[%s5136_s29 + $0x64] ss:$8 sps:$4 sm:$0xff]   ;;  %v3987_v57 = vld [vmem:[%s5136_s29 + $0x74] ss:$8 sps:$4 sm:$0xff]  }
 0xdcd   : > { %v1635_v61 = vadd.f32 %v3440_v58, %v1629_v59 }
 0xdcf   : > { %v1636_v62 = vpack.c.bf16 %v1635_v61, %v1634_v60 }
 0xdd1   : > { %3449 = vmatmul.mubr.msk.bf16.vlgmr.msra.gmra.mrb[24].mxu1 %vm789_vm2, %v1636_v62 }
 0xdd2   : > { %2063 = vmatprep.mubr.bf16.mxu1 %v4221_v12  ;;  %2032 = vmatpush1.bf16.msra.mxu1 %v3976_v53 }
 0xdd3   : > { %2033 = vmatprep.subr.bf16.mxu1 %v3981_v54 }
 0xdd6   : > { %2034 = vmatpush1.bf16.msra.mxu1 %v3979_v18 }
 0xdd7   : > { %2035 = vmatprep.subr.bf16.mxu1 %v3984_v55 }
 0xdda   : > { %2036 = vmatpush1.bf16.msra.mxu1 %v3982_v19 }
 0xddb   : > { %2037 = vmatprep.subr.bf16.mxu1 %v3987_v57 }
 0xdde   : > { %2038 = vmatpush1.bf16.msra.mxu1 %v3985_v56 }
 0xddf   : > { %3780 = vmatprep.subr.bf16.mxu1 %v4219_v0 }
 0xea4   : > { %v1734_v10 = vpop.f32.mrb[24].mxu1 }
 0xea5   : > { %v1735_v11 = vadd.f32 %v1734_v10, %v1650_v8  ;;  %v1736_v13 = vpop.f32.mrb[25].mxu1 }
 0xea6   : > { %v1737_v14 = vadd.f32 %v1736_v13, %v1654_v9  ;;  %v1738_v15 = vpop.f32.mrb[26].mxu1 }
 0xea7   : > { %v1739_v16 = vadd.f32 %v1738_v15, %v1650_v8  ;;  %v1740_v17 = vpop.f32.mrb[27].mxu1  ;;  %v1743_v38 = vmax.f32 %v1735_v11, 0.0  ;;  %v3477_v15 = vld [vmem:[%s5139_s3 + $0x1] ss:$2 sm:$0x3] }
 0xea8   : > { %v1741_v20 = vadd.f32 %v1740_v17, %v1654_v9  ;;  %v1744_v22 = vmax.f32 %v1737_v14, 0.0  ;;  %v3468_v9 = vld [vmem:[%s5082_s13] ss:$0 sm:$0xff] }
 0xea9   : > { %v1745_v21 = vmax.f32 %v1739_v16, 0.0  ;;  %v1981_v16 = vrot.slane %v3477_v15, %v4473_v24 }
 0xeaa   : > { %v1746_v23 = vmax.f32 %v1741_v20, 0.0  ;;  %v1985_v20 = vrot.slane %v3477_v15, %v4478_v26 }
 0xeab   : > { %v1747_v25 = vpack.c.bf16 %v1745_v21, %v1743_v38 }
 0xeac   : > { %v1748_v3 = vpack.c.bf16 %v1746_v23, %v1744_v22 }
 0xeae   : > { %1914 = vmatprep.mubr.bf16.mxu0 %v1748_v3 }
 0xeaf   : > { %1915 = vmatmul.mubr.bf16.vlgmr.msra.gmra.mrb[32].mxu0 %v1747_v25 }
 0xeb0   : > { %3788 = vmatprep.mubr.msk.bf16.mxu0 %vm4220_vm0, %v4219_v0 }
 0xf82   : > { %v3643_v27 = vpop.f32.mrb[32].mxu0 }
 0xf83   : > { %v3644_v6 = vpop.f32.mrb[33].mxu0 }
 0xf84   : > { %v3645_v29 = vadd.f32 %v3644_v6, %v3643_v27  ;;  %v3646_v30 = vpop.f32.mrb[34].mxu0 }
 0xf85   : > { %v3647_v31 = vpop.f32.mrb[35].mxu0 }
 0xf86   : > { %v1917_v32 = vadd.f32 %v3645_v29, %v3450_v28  ;;  %v3648_v33 = vadd.f32 %v3647_v31, %v3646_v30 }
 0xf88   : > { %v1920_v34 = vadd.f32 %v3648_v33, %v3450_v28  ;;  %v1923_v35 = vadd.f32 %v1917_v32, %v1634_v60 }
 0xf8a   : > { %v1927_v36 = vsel %vm789_vm2, %v1923_v35, 0.0  ;;  %v1924_v39 = vadd.f32 %v1920_v34, %v1635_v61 }
 0xf8b   : > { %1928 = vadd.xlane.f32.xlu1 %v1927_v36 }
 0xf8c   : > { %v1930_v40 = vsel %vm789_vm2, %v1924_v39, 0.0 }
 0xf8f   : > { %1931 = vadd.xlane.f32.xlu1 %v1930_v40 }
0x1018   : > { %v1929_v41 = vpop.xlane.xlu1 %1928 }
0x1019   : > { %v1933_v42 = vmul.f32 0.015625, %v1929_v41 }
0x101b   : > { %v1935_v37 = vsub.f32 %v1923_v35, %v1933_v42 }
0x101c   : > { %v1932_v43 = vpop.xlane.xlu1 %1931 }
0x101d   : > { %v1934_v44 = vmul.f32 0.015625, %v1932_v43  ;;  %v1937_v45 = vmul.f32 %v1935_v37, %v1935_v37 }
0x101f   : > { %v1936_v46 = vsub.f32 %v1924_v39, %v1934_v44  ;;  %v1939_v48 = vsel %vm789_vm2, %v1937_v45, 0.0 }
0x1020   : > { %1940 = vadd.xlane.f32.xlu1 %v1939_v48 }
0x1021   : > { %v1938_v50 = vmul.f32 %v1936_v46, %v1936_v46 }
0x1023   : > { %v1942_v51 = vsel %vm789_vm2, %v1938_v50, 0.0 }
0x1024   : > { %1943 = vadd.xlane.f32.xlu1 %v1942_v51 }
0x10ad   : > { %v1941_v58 = vpop.xlane.xlu1 %1940 }
0x10ae   : > { %v1945_v59 = vmul.f32 0.015625, %v1941_v58 }
0x10b0   : > { %v1947_v60 = vadd.f32 1e-05, %v1945_v59 }
0x10b1   : > { %v1944_v61 = vpop.xlane.xlu1 %1943 }
0x10b2   : > { %4064 = vrsqrt.f32 %v1947_v60  ;;  %v1946_v62 = vmul.f32 0.015625, %v1944_v61 }
0x10b4   : > { %v1948_v63 = vadd.f32 1e-05, %v1946_v62 }
0x10b6   : > { %4066 = vrsqrt.f32 %v1948_v63 }
0x10bc   : > { %v4065_v1 = vpop.eup %4064 }
0x10bd   : > { %v1951_v2 = vmul.f32 %v4065_v1, %v1935_v37 }
0x10bf   : > { %v1957_v7 = vmul.f32 %v3467_v4, %v1951_v2 }
0x10c0   : > { %v4067_v5 = vpop.eup %4066 }
0x10c1   : > { %v1952_v8 = vmul.f32 %v4067_v5, %v1936_v46  ;;  %v4749_v11 = vadd.f32 %v3468_v9, %v1957_v7 }
0x10c3   : > { %v1958_v10 = vmul.f32 %v3467_v4, %v1952_v8 }
0x10c5   : > { %v4751_v13 = vadd.f32 %v3468_v9, %v1958_v10 }
0x10c7   : > { %v1965_v14 = vpack.c.bf16 %v4751_v13, %v4749_v11 }
0x10c9   : > { %3486 = vmatmul.mubr.msk.bf16.vlgmr.msra.gmra.mrb[28].mxu1 %vm789_vm2, %v1965_v14 }
0x10ca   : > { %3782 = vmatprep.mubr.msk.bf16.mxu1 %vm4220_vm0, %v4219_v0 }
0x119c   : > { %v2065_v17 = vpop.f32.mrb[28].mxu1 }
0x119d   : > { %v2067_v38 = vpop.f32.mrb[29].mxu1  ;;  %v2066_v22 = vadd.f32 %v2065_v17, %v1981_v16 }
0x119e   : > { %v2069_v21 = vpop.f32.mrb[30].mxu1  ;;  %v2068_v3 = vadd.f32 %v2067_v38, %v1985_v20 }
0x119f   : > { %v2070_v23 = vadd.f32 %v2069_v21, %v1981_v16  ;;  %v2071_v25 = vpop.f32.mrb[31].mxu1 }
0x11a0   : > { %v2072_v27 = vadd.f32 %v2071_v25, %v1985_v20 }
0x11a1   : > { %v4763_v28 = vpack.c.bf16 %v2070_v23, %v2066_v22 }
0x11a2   : > { %v4765_v6 = vpack.c.bf16 %v2072_v27, %v2068_v3 }
0x11a3   : > { %2199 = vrot.lane.b32.xlu0 %v4763_v28, %s5140_s30  ;;  %2077 = vrot.lane.b32.xlu1 %v4763_v28, %s5141_s1  ;;  %s5146_s30 = smov 80  }
0x11a4   : > { %3787 = vmatpush3.bf16.msra.mxu0 %v4765_v6 }
0x11a5   : > { %3798 = vmatprep.subr.bf16.mxu0 %v4219_v0 }
0x11a7   : > { %2197 = vrot.lane.b32.xlu1 %v4763_v28, %s5142_s24 }
0x1215   : > { %v2078_v29 = vpop.permute.xlu1 %2077  ;;  %v2200_v31 = vpop.permute.xlu0 %2199 }
0x1216   : > { %v2083_v30 = vsel %vm841_vm3, %v2078_v29, 0  ;;  %v2205_v32 = vsel %vm841_vm3, %v2200_v31, 0  ;;  %v3988_v31 = vld [vmem:[%s5074_s5 + $0x20] sm:$0xff]  }
0x1217   : > { %3781 = vmatpush3.bf16.xpose.msra.mxu1 %v2083_v30 }
0x1218   : > { %3792 = vmatprep.subr.bf16.mxu1 %v4219_v0 }
0x1219   : > { %v2198_v33 = vpop.permute.xlu1 %2197 }
0x121e   : > { %3783 = vmatmul.mubr.msk.bf16.vlgmr.msra.gmra.mrb[32].mxu1 %vm841_vm3, %v4763_v28 }
0x121f   : > { %3793 = vmatpush3.bf16.xpose.msra.mxu1 %v2205_v32  ;;  %3794 = vmatprep.mubr.msk.bf16.mxu1 %vm4220_vm0, %v4219_v0  ;;  %v3989_v32 = vld [vmem:[%s5074_s5 + $0x28] sm:$0xff]  }
0x1220   : > { %3804 = vmatprep.subr.bf16.mxu1 %v4219_v0 }
0x1226   : > { %3795 = vmatmul.mubr.msk.bf16.vlgmr.msra.gmra.mrb[36].mxu1 %vm841_vm3, %v2198_v33 }
0x1227   : > { %3806 = vmatprep.mubr.msk.bf16.mxu1 %vm4220_vm0, %v4219_v0  ;;  %3805 = vmatpush3.bf16.msra.mxu1 %v3989_v32 }
0x1228   : > { %3816 = vmatprep.subr.bf16.mxu1 %v4219_v0 }
0x12f1   : > { %v2119_v34 = vpop.f32.mrb[32].mxu1 }
0x12f2   : > { %v2120_v35 = vadd.f32 %v2119_v34, %v4505_v47  ;;  %v3784_v36 = vpop.f32.mrb[33].mxu1 }
0x12f3   : > { %v2122_v39 = vpop.f32.mrb[34].mxu1 }
0x12f4   : > { %v2123_v40 = vadd.f32 %v2122_v39, %v4507_v49  ;;  %v3785_v41 = vpop.f32.mrb[35].mxu1  ;;  %v2126_v42 = vsel %vm841_vm3, %v2120_v35, -inf }
0x12f5   : > { %2127 = vmax.xlane.f32.xlu1 %v2126_v42 }
0x12f6   : > { %v2129_v37 = vsel %vm841_vm3, %v2123_v40, -inf }
0x12f7   : > { %2130 = vmax.xlane.f32.xlu0 %v2129_v37 }
0x12f9   : > { %v2241_v43 = vpop.f32.mrb[36].mxu1 }
0x12fa   : > { %v2242_v44 = vadd.f32 %v2241_v43, %v4505_v47  ;;  %v3796_v45 = vpop.f32.mrb[37].mxu1 }
0x12fb   : > { %v2244_v46 = vpop.f32.mrb[38].mxu1 }
0x12fc   : > { %v2245_v48 = vadd.f32 %v2244_v46, %v4507_v49  ;;  %v3797_v50 = vpop.f32.mrb[39].mxu1  ;;  %v2248_v51 = vsel %vm841_vm3, %v2242_v44, -inf }
0x12fd   : > { %2249 = vmax.xlane.f32.xlu1 %v2248_v51 }
0x12fe   : > { %v2251_v52 = vsel %vm841_vm3, %v2245_v48, -inf }
0x12ff   : > { %2252 = vmax.xlane.f32.xlu0 %v2251_v52 }
0x1382   : > { %v2128_v53 = vpop.xlane.xlu1 %2127 }
0x1383   : > { %v2132_v54 = vsub.f32 %v2120_v35, %v2128_v53 }
0x1384   : > { %v2131_v18 = vpop.xlane.xlu0 %2130 }
0x1385   : > { %v2134_v55 = vmul.f32 1.442695, %v2132_v54  ;;  %v2133_v19 = vsub.f32 %v2123_v40, %v2131_v18 }
0x1387   : > { %4068 = vpow2.f32 %v2134_v55  ;;  %v2136_v56 = vmul.f32 1.442695, %v2133_v19 }
0x1389   : > { %4070 = vpow2.f32 %v2136_v56 }
0x138a   : > { %v2250_v57 = vpop.xlane.xlu1 %2249 }
0x138b   : > { %v2254_v58 = vsub.f32 %v2242_v44, %v2250_v57 }
0x138c   : > { %v2253_v59 = vpop.xlane.xlu0 %2252 }
0x138d   : > { %v2256_v60 = vmul.f32 1.442695, %v2254_v58  ;;  %v2255_v61 = vsub.f32 %v2245_v48, %v2253_v59 }
0x138f   : > { %4072 = vpow2.f32 %v2256_v60  ;;  %v2258_v62 = vmul.f32 1.442695, %v2255_v61 }
0x1391   : > { %v4069_v63 = vpop.eup %4068  ;;  %4074 = vpow2.f32 %v2258_v62 }
0x1392   : > { %v2138_v1 = vsel %vm841_vm3, %v4069_v63, 0.0 }
0x1393   : > { %v4071_v2 = vpop.eup %4070  ;;  %2139 = vadd.xlane.f32.xlu1 %v2138_v1 }
0x1394   : > { %v2141_v4 = vsel %vm841_vm3, %v4071_v2, 0.0 }
0x1395   : > { %2142 = vadd.xlane.f32.xlu0 %v2141_v4 }
0x1399   : > { %v4073_v5 = vpop.eup %4072 }
0x139a   : > { %v2260_v7 = vsel %vm841_vm3, %v4073_v5, 0.0 }
0x139b   : > { %v4075_v8 = vpop.eup %4074  ;;  %2261 = vadd.xlane.f32.xlu1 %v2260_v7 }
0x139c   : > { %v2263_v9 = vsel %vm841_vm3, %v4075_v8, 0.0 }
0x139d   : > { %2264 = vadd.xlane.f32.xlu0 %v2263_v9 }
0x13ac   : > { %2272 = vrot.lane.b32.xlu1 %v4765_v6, %s5142_s24 }
0x13b0   : > { %2423 = vrot.lane.b32.xlu1 %v4763_v28, %s5143_s23 }
0x13b3   : > { %2425 = vrot.lane.b32.xlu0 %v4763_v28, %s5144_s21 }
0x1420   : > { %v2140_v10 = vpop.xlane.xlu1 %2139 }
0x1421   : > { %4076 = vrcp.f32 %v2140_v10 }
0x1422   : > { %v2143_v14 = vpop.xlane.xlu0 %2142 }
0x1423   : > { %4078 = vrcp.f32 %v2143_v14 }
0x1428   : > { %v2262_v15 = vpop.xlane.xlu1 %2261 }
0x1429   : > { %4080 = vrcp.f32 %v2262_v15 }
0x142a   : > { %v2265_v16 = vpop.xlane.xlu0 %2264 }
0x142b   : > { %v4077_v17 = vpop.eup %4076  ;;  %4082 = vrcp.f32 %v2265_v16 }
0x142c   : > { %v2146_v38 = vmul.f32 %v4077_v17, %v4069_v63  ;;  %v2273_v23 = vpop.permute.xlu1 %2272 }
0x142d   : > { %v4079_v20 = vpop.eup %4078 }
0x142e   : > { %v2147_v21 = vmul.f32 %v4079_v20, %v4071_v2  ;;  %v2426_v42 = vpop.permute.xlu0 %2425 }
0x142f   : > { %v2431_v45 = vsel %vm841_vm3, %v2426_v42, 0 }
0x1430   : > { %v2148_v22 = vpack.c.bf16 %v2147_v21, %v2146_v38  ;;  %v2424_v46 = vpop.permute.xlu1 %2423 }
0x1432   : > { %3789 = vmatmul.mubr.msk.bf16.vlgmr.msra.gmra.mrb[36].mxu0 %vm841_vm3, %v2148_v22 }
0x1433   : > { %v4081_v25 = vpop.eup %4080  ;;  %3799 = vmatpush3.bf16.msra.mxu0 %v2273_v23  ;;  %3800 = vmatprep.mubr.msk.bf16.mxu0 %vm4220_vm0, %v4219_v0 }
0x1434   : > { %3810 = vmatprep.subr.bf16.mxu0 %v4219_v0  ;;  %v2268_v27 = vmul.f32 %v4081_v25, %v4073_v5 }
0x1435   : > { %v4083_v3 = vpop.eup %4082 }
0x1436   : > { %v2269_v29 = vmul.f32 %v4083_v3, %v4075_v8 }
0x1438   : > { %v2270_v30 = vpack.c.bf16 %v2269_v29, %v2268_v27 }
0x143a   : > { %3801 = vmatmul.mubr.msk.bf16.vlgmr.msra.gmra.mrb[40].mxu0 %vm841_vm3, %v2270_v30  ;;  %v3990_v30 = vld [vmem:[%s5074_s5 + $0x30] sm:$0xff]  }
0x143b   : > { %3812 = vmatprep.mubr.msk.bf16.mxu0 %vm4220_vm0, %v4219_v0  ;;  %3811 = vmatpush3.bf16.msra.mxu0 %v3988_v31 }
0x143c   : > { %3822 = vmatprep.subr.bf16.mxu0 %v4219_v0 }
0x1505   : > { %v2186_v33 = vpop.f32.mrb[36].mxu0 }
0x1506   : > { %v3790_v34 = vpop.f32.mrb[37].mxu0 }
0x1507   : > { %v2189_v35 = vpop.f32.mrb[38].mxu0 }
0x1508   : > { %v2193_v36 = vpack.c.bf16 %v2189_v35, %v2186_v33  ;;  %v3791_v39 = vpop.f32.mrb[39].mxu0 }
0x150a   : > { %3813 = vmatmul.mubr.msk.bf16.vlgmr.msra.gmra.mrb[44].mxu0 %vm841_vm3, %v2193_v36 }
0x150b   : > { %3824 = vmatprep.mubr.msk.bf16.mxu0 %vm4220_vm0, %v4219_v0 }
0x150d   : > { %v2312_v40 = vpop.f32.mrb[40].mxu0 }
0x150e   : > { %v3802_v41 = vpop.f32.mrb[41].mxu0 }
0x150f   : > { %v2315_v37 = vpop.f32.mrb[42].mxu0 }
0x1510   : > { %v2319_v43 = vpack.c.bf16 %v2315_v37, %v2312_v40  ;;  %v3803_v44 = vpop.f32.mrb[43].mxu0 }
0x1512   : > { %3807 = vmatmul.mubr.msk.bf16.vlgmr.msra.gmra.mrb[40].mxu1 %vm841_vm3, %v2319_v43 }
0x1513   : > { %3817 = vmatpush3.bf16.xpose.msra.mxu1 %v2431_v45  ;;  %3818 = vmatprep.mubr.msk.bf16.mxu1 %vm4220_vm0, %v4219_v0 }
0x1514   : > { %3828 = vmatprep.subr.bf16.mxu1 %v4219_v0 }
0x151a   : > { %3819 = vmatmul.mubr.msk.bf16.vlgmr.msra.gmra.mrb[44].mxu1 %vm841_vm3, %v2424_v46 }
0x151b   : > { %3830 = vmatprep.mubr.msk.bf16.mxu1 %vm4220_vm0, %v4219_v0  ;;  %3829 = vmatpush3.bf16.msra.mxu1 %v3990_v30 }
0x151c   : > { %3840 = vmatprep.subr.bf16.mxu1 %v4219_v0 }
0x15dd   : > { %v2416_v48 = vpop.f32.mrb[44].mxu0 }
0x15de   : > { %v3814_v50 = vpop.f32.mrb[45].mxu0 }
0x15df   : > { %v2419_v51 = vpop.f32.mrb[46].mxu0 }
0x15e0   : > { %v3815_v52 = vpop.f32.mrb[47].mxu0 }
0x15e5   : > { %v2366_v53 = vpop.f32.mrb[40].mxu1 }
0x15e6   : > { %v4830_v54 = vadd.f32 %v2416_v48, %v2366_v53  ;;  %v3808_v18 = vpop.f32.mrb[41].mxu1 }
0x15e7   : > { %v2369_v55 = vpop.f32.mrb[42].mxu1 }
0x15e8   : > { %v4832_v19 = vadd.f32 %v2419_v51, %v2369_v55  ;;  %v3809_v56 = vpop.f32.mrb[43].mxu1 }
0x15ed   : > { %v2467_v57 = vpop.f32.mrb[44].mxu1 }
0x15ee   : > { %v2468_v58 = vadd.f32 %v2467_v57, %v4505_v47  ;;  %v3820_v59 = vpop.f32.mrb[45].mxu1 }
0x15ef   : > { %v2470_v60 = vpop.f32.mrb[46].mxu1 }
0x15f0   : > { %v2471_v61 = vadd.f32 %v2470_v60, %v4507_v49  ;;  %v3821_v62 = vpop.f32.mrb[47].mxu1  ;;  %v2474_v63 = vsel %vm841_vm3, %v2468_v58, -inf }
0x15f1   : > { %2475 = vmax.xlane.f32.xlu1 %v2474_v63 }
0x15f2   : > { %v2477_v1 = vsel %vm841_vm3, %v2471_v61, -inf }
0x15f3   : > { %2478 = vmax.xlane.f32.xlu0 %v2477_v1 }
0x167e   : > { %v2476_v2 = vpop.xlane.xlu1 %2475 }
0x167f   : > { %v2480_v4 = vsub.f32 %v2468_v58, %v2476_v2 }
0x1680   : > { %v2479_v5 = vpop.xlane.xlu0 %2478 }
0x1681   : > { %v2482_v7 = vmul.f32 1.442695, %v2480_v4  ;;  %v2481_v8 = vsub.f32 %v2471_v61, %v2479_v5 }
0x1683   : > { %4084 = vpow2.f32 %v2482_v7  ;;  %v2484_v9 = vmul.f32 1.442695, %v2481_v8 }
0x1685   : > { %4086 = vpow2.f32 %v2484_v9 }
0x168d   : > { %v4085_v10 = vpop.eup %4084 }
0x168e   : > { %v2486_v14 = vsel %vm841_vm3, %v4085_v10, 0.0 }
0x168f   : > { %v4087_v15 = vpop.eup %4086  ;;  %2487 = vadd.xlane.f32.xlu0 %v2486_v14 }
0x1690   : > { %v2489_v16 = vsel %vm841_vm3, %v4087_v15, 0.0 }
0x1691   : > { %2490 = vadd.xlane.f32.xlu1 %v2489_v16 }
0x16a2   : > { %2602 = vrot.lane.b32.xlu1 %v4763_v28, %s5145_s27 }
0x16a5   : > { %2497 = vrot.lane.b32.xlu0 %v4765_v6, %s5143_s23  ;;  %s636_s23 = sand.u32 1, %s4206_s22  }
0x16a6   : > { %2600 = vrot.lane.b32.xlu1 %v4763_v28, %s5146_s30  ;;  %s3397_s21 = sshll.u32 %s636_s23, 4  ;;  %s5028_s1 = scalar_lea.sflag [#allocation4], %s636_s23 }
0x16a7   : > { %s638_s25 = scalar_lea.vmem [#allocation5], %s3397_s21  ;;  %s4152_s21 = sshll.u32 %s4230_s2, 4  ;;  %s4153_s21 = int_to_ptr.vmem [resolvable:$false] %s4152_s21 }
0x16a8   : > { %s3317_s0 = sshll.u32 %s638_s25, 4  ;;  %s5026_s0 = int_to_ptr.vmem [resolvable:$true] %s3317_s0 }
0x16a9   : > { %s4148_s24 = scalar_lea.vmem %s5026_s0, 256  ;;  %p4155_p2 = scmp.lt.s32.totalorder %s5026_s0, %s4153_s21 }
0x16aa   : > { %p4149_p6 = scmp.ne.s32.totalorder %s5026_s0, %s4148_s24 }
0x16ac   : > { %p4150_p10 = pnand %p4149_p6, %p5147_p9 }
0x16ae   : > { %p4151_p12 = pneg %p4150_p10 }
0x171c   : > { %v2488_v17 = vpop.xlane.xlu0 %2487 }
0x171d   : > { %4088 = vrcp.f32 %v2488_v17 }
0x171e   : > { %v2491_v20 = vpop.xlane.xlu1 %2490 }
0x171f   : > { %4090 = vrcp.f32 %v2491_v20 }
0x1720   : > { %v2498_v38 = vpop.permute.xlu0 %2497 }
0x1721   : > { %3823 = vmatpush3.bf16.msra.mxu0 %v2498_v38 }
0x1722   : > { %3834 = vmatprep.subr.bf16.mxu0 %v4219_v0  ;;  %v2603_v3 = vpop.permute.xlu1 %2602 }
0x1723   : > { %v2608_v29 = vsel %vm841_vm3, %v2603_v3, 0 }
0x1726   : > { %v2601_v28 = vpop.permute.xlu1 %2600 }
0x1727   : > { %v4089_v21 = vpop.eup %4088 }
0x1728   : > { %v2494_v23 = vmul.f32 %v4089_v21, %v4085_v10 }
0x1729   : > { %v4091_v22 = vpop.eup %4090 }
0x172a   : > { %v2495_v25 = vmul.f32 %v4091_v22, %v4087_v15  ;;  %v3511_v15 = vld [vmem:[%s5075_s6 + $0x1] ss:$0 sm:$0xff] }
0x172c   : > { %v2496_v27 = vpack.c.bf16 %v2495_v25, %v2494_v23 }
0x172e   : > { %3825 = vmatmul.mubr.msk.bf16.vlgmr.msra.gmra.mrb[48].mxu0 %vm841_vm3, %v2496_v27 }
0x172f   : > { %3835 = vmatpush3.bf16.xpose.msra.mxu0 %v2608_v29  ;;  %3836 = vmatprep.mubr.msk.bf16.mxu0 %vm4220_vm0, %v4219_v0 }
0x1730   : > { %3846 = vmatprep.subr.bf16.mxu0 %v4219_v0 }
0x1736   : > { %3837 = vmatmul.mubr.msk.bf16.vlgmr.msra.gmra.mrb[52].mxu0 %vm841_vm3, %v2601_v28 }
0x1737   : > { %3848 = vmatprep.mubr.msk.bf16.mxu0 %vm4220_vm0, %v4219_v0 }
0x1801   : > { %v2537_v31 = vpop.f32.mrb[48].mxu0 }
0x1802   : > { %v3826_v32 = vpop.f32.mrb[49].mxu0 }
0x1803   : > { %v2540_v33 = vpop.f32.mrb[50].mxu0 }
0x1804   : > { %v2544_v34 = vpack.c.bf16 %v2540_v33, %v2537_v31  ;;  %v3827_v35 = vpop.f32.mrb[51].mxu0 }
0x1806   : > { %3831 = vmatmul.mubr.msk.bf16.vlgmr.msra.gmra.mrb[48].mxu1 %vm841_vm3, %v2544_v34 }
0x1807   : > { %3842 = vmatprep.mubr.msk.bf16.mxu1 %vm4220_vm0, %v4219_v0 }
0x1809   : > { %v2644_v36 = vpop.f32.mrb[52].mxu0 }
0x180a   : > { %v2645_v39 = vadd.f32 %v2644_v36, %v4505_v47  ;;  %v3838_v40 = vpop.f32.mrb[53].mxu0 }
0x180b   : > { %v2647_v41 = vpop.f32.mrb[54].mxu0 }
0x180c   : > { %v2648_v42 = vadd.f32 %v2647_v41, %v4507_v49  ;;  %v3839_v37 = vpop.f32.mrb[55].mxu0  ;;  %v2651_v43 = vsel %vm841_vm3, %v2645_v39, -inf }
0x180d   : > { %2652 = vmax.xlane.f32.xlu1 %v2651_v43 }
0x180e   : > { %v2654_v44 = vsel %vm841_vm3, %v2648_v42, -inf }
0x180f   : > { %2655 = vmax.xlane.f32.xlu0 %v2654_v44  ;;  %v3512_v44 = vld [vmem:[%s5077_s8 + $0x1] ss:$0 sm:$0xff] }
0x181e   : > { %2674 = vrot.lane.b32.xlu1 %v4765_v6, %s5146_s30  ;;  %v3991_v6 = vld [vmem:[%s5074_s5 + $0x38] sm:$0xff]   ;;  %s5024_s30 = scalar_lea.hbm %s5089_s20, %s3599_s28  ;;  %s4154_s28 = scalar_lea.vmem %s4153_s21, 512 }
0x181f   : > { %3847 = vmatpush3.bf16.msra.mxu0 %v3991_v6  ;;  %p4156_p3 = scmp.lt.s32.totalorder %s4154_s28, %s4148_s24 }
0x1821   : > { %p4157_p4 = por %p4156_p3, %p4155_p2 }
0x1823   : > { %p4158_p7 = pnand %p4157_p4, %p4151_p12 }
0x189a   : > { %v2653_v45 = vpop.xlane.xlu1 %2652 }
0x189b   : > { %v2657_v46 = vsub.f32 %v2645_v39, %v2653_v45 }
0x189c   : > { %v2656_v48 = vpop.xlane.xlu0 %2655 }
0x189d   : > { %v2659_v50 = vmul.f32 1.442695, %v2657_v46  ;;  %v2658_v51 = vsub.f32 %v2648_v42, %v2656_v48  ;;  %v3513_v46 = vld [vmem:[%s5078_s9 + $0x1] ss:$0 sm:$0xff] }
0x189e   : > { %v2675_v47 = vpop.permute.xlu1 %2674 }
0x189f   : > { %4092 = vpow2.f32 %v2659_v50  ;;  %v2661_v52 = vmul.f32 1.442695, %v2658_v51  ;;  %3841 = vmatpush3.bf16.msra.mxu1 %v2675_v47  ;;  %v3514_v51 = vld [vmem:[%s5076_s7 + $0x1] ss:$0 sm:$0xff] }
0x18a1   : > { %4094 = vpow2.f32 %v2661_v52 }
0x18a9   : > { %v4093_v49 = vpop.eup %4092 }
0x18aa   : > { %v2663_v53 = vsel %vm841_vm3, %v4093_v49, 0.0 }
0x18ab   : > { %v4095_v18 = vpop.eup %4094  ;;  %2664 = vadd.xlane.f32.xlu0 %v2663_v53 }
0x18ac   : > { %v2666_v55 = vsel %vm841_vm3, %v4095_v18, 0.0 }
0x18af   : > { %2667 = vadd.xlane.f32.xlu0 %v2666_v55 }
0x18d9   : > { %v2591_v56 = vpop.f32.mrb[48].mxu1 }
0x18da   : > { %v2598_v57 = vadd.f32 %v2591_v56, %v4830_v54  ;;  %v3832_v58 = vpop.f32.mrb[49].mxu1 }
0x18db   : > { %v2594_v59 = vpop.f32.mrb[50].mxu1 }
0x18dc   : > { %v2599_v60 = vadd.f32 %v2594_v59, %v4832_v19  ;;  %v3833_v61 = vpop.f32.mrb[51].mxu1 }
0x1938   : > { %v2665_v62 = vpop.xlane.xlu0 %2664 }
0x1939   : > { %4096 = vrcp.f32 %v2665_v62 }
0x193c   : > { %v2668_v63 = vpop.xlane.xlu0 %2667 }
0x193d   : > { %4098 = vrcp.f32 %v2668_v63 }
0x1943   : > { %v4097_v1 = vpop.eup %4096 }
0x1944   : > { %v2671_v4 = vmul.f32 %v4097_v1, %v4093_v49 }
0x1947   : > { %v4099_v2 = vpop.eup %4098 }
0x1948   : > { %v2672_v5 = vmul.f32 %v4099_v2, %v4095_v18 }
0x194a   : > { %v2673_v7 = vpack.c.bf16 %v2672_v5, %v2671_v4  ;;  %v3994_v5 = vld [vmem:[%s5083_s14 + $0x44] ss:$8 sps:$4 sm:$0xff]  }
0x194b   : > { %2939 = vmatprep.subr.bf16.mxu1 %v3994_v5 }
0x194c   : > { %3843 = vmatmul.mubr.msk.bf16.vlgmr.msra.gmra.mrb[52].mxu1 %vm841_vm3, %v2673_v7  ;;  %v3992_v7 = vld [vmem:[%s5083_s14 + $0x40] ss:$8 sps:$4 sm:$0xff]  }
0x194d   : > { %2971 = vmatprep.mubr.bf16.mxu1 %v4221_v12  ;;  %2940 = vmatpush1.bf16.msra.mxu1 %v3992_v7 }
0x1a1f   : > { %v2714_v8 = vpop.f32.mrb[52].mxu1 }
0x1a20   : > { %v3844_v54 = vpop.f32.mrb[53].mxu1 }
0x1a21   : > { %v2717_v9 = vpop.f32.mrb[54].mxu1  ;;  %v3995_v54 = vld [vmem:[%s5083_s14 + $0x50] ss:$8 sps:$4 sm:$0xff]  }
0x1a22   : > { %v2721_v10 = vpack.c.bf16 %v2717_v9, %v2714_v8  ;;  %v3845_v14 = vpop.f32.mrb[55].mxu1  ;;  %v3997_v8 = vld [vmem:[%s5083_s14 + $0x54] ss:$8 sps:$4 sm:$0xff]   ;;  %v4000_v9 = vld [vmem:[%s5083_s14 + $0x64] ss:$8 sps:$4 sm:$0xff]  }
0x1a23   : > { %2941 = vmatprep.subr.bf16.mxu1 %v3997_v8  ;;  %v4001_v14 = vld [vmem:[%s5083_s14 + $0x70] ss:$8 sps:$4 sm:$0xff]  }
0x1a24   : > { %3849 = vmatmul.mubr.msk.bf16.vlgmr.msra.gmra.mrb[56].mxu0 %vm841_vm3, %v2721_v10  ;;  %2942 = vmatpush1.bf16.msra.mxu1 %v3995_v54  ;;  %v3998_v10 = vld [vmem:[%s5083_s14 + $0x60] ss:$8 sps:$4 sm:$0xff]  }
0x1a25   : > { %2943 = vmatprep.subr.bf16.mxu1 %v4000_v9 }
0x1a28   : > { %2944 = vmatpush1.bf16.msra.mxu1 %v3998_v10 }
0x1af7   : > { %v2768_v19 = vpop.f32.mrb[56].mxu0 }
0x1af8   : > { %v2775_v16 = vadd.f32 %v2768_v19, %v2598_v57  ;;  %v3850_v17 = vpop.f32.mrb[57].mxu0  ;;  %v4003_v19 = vld [vmem:[%s5083_s14 + $0x74] ss:$8 sps:$4 sm:$0xff]  }
0x1af9   : > { %v2771_v20 = vpop.f32.mrb[58].mxu0  ;;  %2945 = vmatprep.subr.bf16.mxu1 %v4003_v19  ;;  %v4006_v17 = vld [vmem:[%s5085_s16 + $0xc8] sm:$0xff]  }
0x1afa   : > { %v2782_v38 = vadd.f32 %v3511_v15, %v2775_v16  ;;  %v2776_v21 = vadd.f32 %v2771_v20, %v2599_v60  ;;  %v3851_v22 = vpop.f32.mrb[59].mxu0  ;;  %2946 = vmatpush1.bf16.msra.mxu1 %v4001_v14  ;;  %v4005_v16 = vld [vmem:[%s5085_s16 + $0x80] sm:$0xff]   ;;  %v4007_v20 = vld [vmem:[%s5085_s16 + $0x88] sm:$0xff]  }
0x1afb   : > { %3852 = vmatprep.subr.bf16.mxu1 %v4219_v0  ;;  %v4010_v22 = vld [vmem:[%s5085_s16 + $0xd8] sm:$0xff]  }
0x1afc   : > { %v2783_v23 = vadd.f32 %v3511_v15, %v2776_v21  ;;  %v2784_v12 = vadd.f32 %v2782_v38, %v4749_v11  ;;  %v4004_v15 = vld [vmem:[%s5085_s16 + $0xc0] sm:$0xff]   ;;  %v4008_v38 = vld [vmem:[%s5085_s16 + $0xd0] sm:$0xff]  }
0x1afd   : > { %3673 = vmatprep.subr.bf16.mxu0 %v4004_v15  ;;  %v4009_v21 = vld [vmem:[%s5085_s16 + $0x90] sm:$0xff]  }
0x1afe   : > { %v2788_v25 = vsel %vm789_vm2, %v2784_v12, 0.0  ;;  %v2785_v3 = vadd.f32 %v2783_v23, %v4751_v13  ;;  %3674 = vmatpush3.bf16.msra.mxu0 %v4005_v16  ;;  %v4011_v23 = vld [vmem:[%s5085_s16 + $0x98] sm:$0xff]  }
0x1aff   : > { %2789 = vadd.xlane.f32.xlu0 %v2788_v25  ;;  %3675 = vmatprep.subr.bf16.mxu0 %v4006_v17  ;;  %v4013_v25 = vld [vmem:[%s5085_s16 + $0xa0] sm:$0xff]  }
0x1b00   : > { %v2791_v27 = vsel %vm789_vm2, %v2785_v3, 0.0 }
0x1b02   : > { %3676 = vmatpush3.bf16.msra.mxu0 %v4007_v20 }
0x1b03   : > { %2792 = vadd.xlane.f32.xlu0 %v2791_v27  ;;  %3677 = vmatprep.subr.bf16.mxu0 %v4008_v38 }
0x1b06   : > { %3678 = vmatpush3.bf16.msra.mxu0 %v4009_v21 }
0x1b07   : > { %3679 = vmatprep.subr.bf16.mxu0 %v4010_v22 }
0x1b0a   : > { %3680 = vmatpush3.bf16.msra.mxu0 %v4011_v23 }
0x1b8c   : > { %v2790_v29 = vpop.xlane.xlu0 %2789 }
0x1b8d   : > { %v2794_v28 = vmul.f32 0.015625, %v2790_v29 }
0x1b8f   : > { %v2796_v30 = vsub.f32 %v2784_v12, %v2794_v28  ;;  %v4012_v12 = vld [vmem:[%s5085_s16 + $0xe0] sm:$0xff]  }
0x1b90   : > { %v2793_v31 = vpop.xlane.xlu0 %2792  ;;  %3681 = vmatprep.subr.bf16.mxu0 %v4012_v12 }
0x1b91   : > { %v2795_v32 = vmul.f32 0.015625, %v2793_v31  ;;  %v2798_v33 = vmul.f32 %v2796_v30, %v2796_v30  ;;  %3682 = vmatpush3.bf16.msra.mxu0 %v4013_v25 }
0x1b93   : > { %v2797_v34 = vsub.f32 %v2785_v3, %v2795_v32  ;;  %v2800_v35 = vsel %vm789_vm2, %v2798_v33, 0.0  ;;  %v4014_v3 = vld [vmem:[%s5085_s16 + $0xe8] sm:$0xff]  }
0x1b94   : > { %2801 = vadd.xlane.f32.xlu0 %v2800_v35  ;;  %3683 = vmatprep.subr.bf16.mxu0 %v4014_v3  ;;  %v3515_v35 = vld [vmem:[%s5079_s10 + $0x1] ss:$0 sm:$0xff] }
0x1b95   : > { %v2799_v36 = vmul.f32 %v2797_v34, %v2797_v34  ;;  %v4020_v3 = vld [vmem:[%s5087_s18] sm:$0xff]  }
0x1b97   : > { %v2803_v11 = vsel %vm789_vm2, %v2799_v36, 0.0 }
0x1b98   : > { %2804 = vadd.xlane.f32.xlu0 %v2803_v11 }
0x1c21   : > { %v2802_v39 = vpop.xlane.xlu0 %2801 }
0x1c22   : > { %v2806_v13 = vmul.f32 0.015625, %v2802_v39 }
0x1c24   : > { %v2808_v40 = vadd.f32 1e-05, %v2806_v13  ;;  %v3516_v13 = vld [vmem:[%s5080_s11 + $0x1] ss:$0 sm:$0xff] }
0x1c25   : > { %v2805_v41 = vpop.xlane.xlu0 %2804 }
0x1c26   : > { %4100 = vrsqrt.f32 %v2808_v40  ;;  %v2807_v42 = vmul.f32 0.015625, %v2805_v41 }
0x1c28   : > { %v2809_v37 = vadd.f32 1e-05, %v2807_v42 }
0x1c2a   : > { %4102 = vrsqrt.f32 %v2809_v37 }
0x1c30   : > { %v4101_v43 = vpop.eup %4100 }
0x1c31   : > { %v2812_v45 = vmul.f32 %v4101_v43, %v2796_v30  ;;  %v4015_v43 = vld [vmem:[%s5085_s16 + $0xa8] sm:$0xff]  }
0x1c32   : > { %3684 = vmatpush3.bf16.msra.mxu0 %v4015_v43 }
0x1c33   : > { %v2818_v48 = vmul.f32 %v3512_v44, %v2812_v45  ;;  %v4017_v45 = vld [vmem:[%s5085_s16 + $0xb0] sm:$0xff]  }
0x1c34   : > { %v4103_v50 = vpop.eup %4102 }
0x1c35   : > { %v2824_v47 = vadd.f32 %v3513_v46, %v2818_v48  ;;  %v2813_v52 = vmul.f32 %v4103_v50, %v2797_v34  ;;  %v4019_v48 = vld [vmem:[%s5085_s16 + $0xb8] sm:$0xff]   ;;  %v3525_v50 = vld [vmem:[%s5084_s15 + $0x1] ss:$2 sm:$0x3] }
0x1c37   : > { %v2831_v49 = vadd.f32 %v3514_v51, %v2824_v47  ;;  %v2819_v53 = vmul.f32 %v3512_v44, %v2813_v52  ;;  %v4016_v44 = vld [vmem:[%s5085_s16 + $0xf0] sm:$0xff]   ;;  %v2893_v47 = vrot.slane %v3525_v50, %v4478_v26 }
0x1c38   : > { %3685 = vmatprep.subr.bf16.mxu0 %v4016_v44 }
0x1c39   : > { %v2835_v18 = vsel %vm789_vm2, %v2831_v49, 0.0  ;;  %v2825_v55 = vadd.f32 %v3513_v46, %v2819_v53  ;;  %3686 = vmatpush3.bf16.msra.mxu0 %v4017_v45  ;;  %v4018_v46 = vld [vmem:[%s5085_s16 + $0xf8] sm:$0xff]   ;;  %v3586_v45 = vld [vmem:[%s5088_s19] ss:$0 sm:$0xff] }
0x1c3a   : > { %2836 = vadd.xlane.f32.xlu1 %v2835_v18  ;;  %3687 = vmatprep.subr.bf16.mxu0 %v4018_v46 }
0x1c3b   : > { %v2832_v6 = vadd.f32 %v3514_v51, %v2825_v55  ;;  %v2889_v51 = vrot.slane %v3525_v50, %v4473_v24  ;;  %v3567_v24 = vld [vmem:[%s5086_s17 + $0x1] ss:$0 sm:$0xff] }
0x1c3d   : > { %v2838_v56 = vsel %vm789_vm2, %v2832_v6, 0.0  ;;  %3688 = vmatpush3.bf16.msra.mxu0 %v4019_v48 }
0x1c3e   : > { %2839 = vadd.xlane.f32.xlu0 %v2838_v56 }
0x1cc7   : > { %v2837_v57 = vpop.xlane.xlu1 %2836 }
0x1cc8   : > { %v2841_v58 = vmul.f32 0.015625, %v2837_v57 }
0x1cca   : > { %v2843_v59 = vsub.f32 %v2831_v49, %v2841_v58 }
0x1ccb   : > { %v2840_v60 = vpop.xlane.xlu0 %2839 }
0x1ccc   : > { %v2842_v61 = vmul.f32 0.015625, %v2840_v60  ;;  %v2845_v62 = vmul.f32 %v2843_v59, %v2843_v59 }
0x1cce   : > { %v2844_v63 = vsub.f32 %v2832_v6, %v2842_v61  ;;  %v2847_v1 = vsel %vm789_vm2, %v2845_v62, 0.0 }
0x1ccf   : > { %2848 = vadd.xlane.f32.xlu0 %v2847_v1 }
0x1cd0   : > { %v2846_v2 = vmul.f32 %v2844_v63, %v2844_v63 }
0x1cd2   : > { %v2850_v4 = vsel %vm789_vm2, %v2846_v2, 0.0 }
0x1cd3   : > { %2851 = vadd.xlane.f32.xlu0 %v2850_v4 }
0x1d5c   : > { %v2849_v27 = vpop.xlane.xlu0 %2848 }
0x1d5d   : > { %v2853_v29 = vmul.f32 0.015625, %v2849_v27  ;;  %v4021_v27 = vld [vmem:[%s5087_s18 + $0x8] sm:$0xff]  }
0x1d5f   : > { %v2855_v28 = vadd.f32 1e-05, %v2853_v29  ;;  %v4022_v29 = vld [vmem:[%s5087_s18 + $0x10] sm:$0xff]  }
0x1d60   : > { %v2852_v30 = vpop.xlane.xlu0 %2851 }
0x1d61   : > { %4104 = vrsqrt.f32 %v2855_v28  ;;  %v2854_v31 = vmul.f32 0.015625, %v2852_v30  ;;  %v4023_v28 = vld [vmem:[%s5087_s18 + $0x18] sm:$0xff]  }
0x1d63   : > { %v2856_v32 = vadd.f32 1e-05, %v2854_v31 }
0x1d65   : > { %4106 = vrsqrt.f32 %v2856_v32 }
0x1d6b   : > { %v4105_v33 = vpop.eup %4104 }
0x1d6c   : > { %v2859_v34 = vmul.f32 %v4105_v33, %v2843_v59 }
0x1d6e   : > { %v2865_v11 = vmul.f32 %v3515_v35, %v2859_v34 }
0x1d6f   : > { %v4107_v36 = vpop.eup %4106 }
0x1d70   : > { %v2860_v39 = vmul.f32 %v4107_v36, %v2844_v63  ;;  %v2871_v41 = vadd.f32 %v3516_v13, %v2865_v11 }
0x1d72   : > { %v2866_v40 = vmul.f32 %v3515_v35, %v2860_v39  ;;  %v3584_v39 = vld [vmem:[%s5081_s12 + $0x1] ss:$0 sm:$0xff] }
0x1d74   : > { %v2872_v42 = vadd.f32 %v3516_v13, %v2866_v40 }
0x1d76   : > { %v2873_v37 = vpack.c.bf16 %v2872_v42, %v2871_v41 }
0x1d78   : > { %3534 = vmatmul.mubr.msk.bf16.vlgmr.msra.gmra.mrb[56].mxu1 %vm789_vm2, %v2873_v37 }
0x1d79   : > { %3860 = vmatprep.mubr.msk.bf16.mxu1 %vm4220_vm0, %v4219_v0  ;;  %3853 = vmatpush3.bf16.msra.mxu1 %v4020_v3 }
0x1d7a   : > { %3854 = vmatprep.subr.bf16.mxu1 %v4219_v0 }
0x1d7d   : > { %3855 = vmatpush3.bf16.msra.mxu1 %v4021_v27 }
0x1d7e   : > { %3856 = vmatprep.subr.bf16.mxu1 %v4219_v0 }
0x1d81   : > { %3857 = vmatpush3.bf16.msra.mxu1 %v4022_v29 }
0x1d82   : > { %3858 = vmatprep.subr.bf16.mxu1 %v4219_v0  ;;  %v3585_v0 = vld [vmem:[%s5082_s13 + $0x1] ss:$0 sm:$0xff] }
0x1d85   : > { %3859 = vmatpush3.bf16.msra.mxu1 %v4023_v28 }
0x1e4b   : > { %v2973_v52 = vpop.f32.mrb[56].mxu1 }
0x1e4c   : > { %v2974_v49 = vadd.f32 %v2973_v52, %v2889_v51  ;;  %v2975_v53 = vpop.f32.mrb[57].mxu1 }
0x1e4d   : > { %v2976_v18 = vadd.f32 %v2975_v53, %v2893_v47  ;;  %v2977_v55 = vpop.f32.mrb[58].mxu1 }
0x1e4e   : > { %v2978_v6 = vadd.f32 %v2977_v55, %v2889_v51  ;;  %v2979_v56 = vpop.f32.mrb[59].mxu1  ;;  %v2982_v58 = vmax.f32 %v2974_v49, 0.0 }
0x1e4f   : > { %v2980_v57 = vadd.f32 %v2979_v56, %v2893_v47  ;;  %v2983_v60 = vmax.f32 %v2976_v18, 0.0 }
0x1e50   : > { %v2984_v59 = vmax.f32 %v2978_v6, 0.0 }
0x1e51   : > { %v2985_v61 = vmax.f32 %v2980_v57, 0.0 }
0x1e52   : > { %v2986_v62 = vpack.c.bf16 %v2984_v59, %v2982_v58 }
0x1e53   : > { %v2987_v63 = vpack.c.bf16 %v2985_v61, %v2983_v60 }
0x1e55   : > { %3154 = vmatprep.mubr.bf16.mxu0 %v2987_v63 }
0x1e56   : > { %3155 = vmatmul.mubr.bf16.vlgmr.msra.gmra.mrb[60].mxu0 %v2986_v62 }
0x1f29   : > { %v3689_v1 = vpop.f32.mrb[60].mxu0 }
0x1f2a   : > { %v3690_v26 = vpop.f32.mrb[61].mxu0 }
0x1f2b   : > { %v3691_v2 = vadd.f32 %v3690_v26, %v3689_v1  ;;  %v3692_v4 = vpop.f32.mrb[62].mxu0 }
0x1f2c   : > { %v3693_v5 = vpop.f32.mrb[63].mxu0 }
0x1f2d   : > { %v3157_v7 = vadd.f32 %v3691_v2, %v3567_v24  ;;  %v3694_v8 = vadd.f32 %v3693_v5, %v3692_v4 }
0x1f2f   : > { %v3160_v54 = vadd.f32 %v3694_v8, %v3567_v24  ;;  %v3163_v9 = vadd.f32 %v3157_v7, %v2871_v41 }
0x1f31   : > { %v3167_v10 = vsel %vm789_vm2, %v3163_v9, 0.0  ;;  %v3164_v14 = vadd.f32 %v3160_v54, %v2872_v42 }
0x1f32   : > { %3168 = vadd.xlane.f32.xlu0 %v3167_v10 }
0x1f33   : > { %v3170_v19 = vsel %vm789_vm2, %v3164_v14, 0.0 }
0x1f36   : > { %3171 = vadd.xlane.f32.xlu0 %v3170_v19 }
0x1fbf   : > { %v3169_v15 = vpop.xlane.xlu0 %3168 }
0x1fc0   : > { %v3173_v16 = vmul.f32 0.015625, %v3169_v15 }
0x1fc2   : > { %v3175_v17 = vsub.f32 %v3163_v9, %v3173_v16 }
0x1fc3   : > { %v3172_v20 = vpop.xlane.xlu0 %3171 }
0x1fc4   : > { %v3174_v38 = vmul.f32 0.015625, %v3172_v20  ;;  %v3177_v21 = vmul.f32 %v3175_v17, %v3175_v17 }
0x1fc6   : > { %v3176_v22 = vsub.f32 %v3164_v14, %v3174_v38  ;;  %v3179_v23 = vsel %vm789_vm2, %v3177_v21, 0.0 }
0x1fc7   : > { %3180 = vadd.xlane.f32.xlu0 %v3179_v23 }
0x1fc8   : > { %v3178_v12 = vmul.f32 %v3176_v22, %v3176_v22 }
0x1fca   : > { %v3182_v25 = vsel %vm789_vm2, %v3178_v12, 0.0 }
0x1fcb   : > { %3183 = vadd.xlane.f32.xlu0 %v3182_v25 }
0x2054   : > { %v3181_v30 = vpop.xlane.xlu0 %3180 }
0x2055   : > { %v3185_v31 = vmul.f32 0.015625, %v3181_v30 }
0x2057   : > { %v3187_v32 = vadd.f32 1e-05, %v3185_v31 }
0x2058   : > { %v3184_v33 = vpop.xlane.xlu0 %3183 }
0x2059   : > { %4108 = vrsqrt.f32 %v3187_v32  ;;  %v3186_v34 = vmul.f32 0.015625, %v3184_v33 }
0x205b   : > { %v3188_v35 = vadd.f32 1e-05, %v3186_v34 }
0x205d   : > { %4110 = vrsqrt.f32 %v3188_v35 }
0x2063   : > { %v4109_v36 = vpop.eup %4108 }
0x2064   : > { %v3191_v11 = vmul.f32 %v4109_v36, %v3175_v17 }
0x2066   : > { %v3197_v40 = vmul.f32 %v3584_v39, %v3191_v11 }
0x2067   : > { %v4111_v13 = vpop.eup %4110 }
0x2068   : > { %v3192_v41 = vmul.f32 %v4111_v13, %v3176_v22  ;;  %v3203_v37 = vadd.f32 %v3585_v0, %v3197_v40 }
0x206a   : > { %v3198_v42 = vmul.f32 %v3584_v39, %v3192_v41 }
0x206c   : > { %v3204_v43 = vadd.f32 %v3585_v0, %v3198_v42 }
0x206e   : > { %v3205_v44 = vpack.c.bf16 %v3204_v43, %v3203_v37 }
0x2070   : > { %3861 = vmatmul.mubr.msk.bf16.vlgmr.msra.gmra.mrb[60].mxu1 %vm789_vm2, %v3205_v44 }
0x2143   : > { %v3282_v46 = vpop.f32.mrb[60].mxu1 }
0x2144   : > { %v3283_v48 = vadd.f32 %v3586_v45, %v3282_v46  ;;  %v3862_v50 = vpop.f32.mrb[61].mxu1 }
0x2145   : > { %v3285_v51 = vpop.f32.mrb[62].mxu1 }
0x2146   : > { %v3592_v47 = vmul.f32 -1.442695, %v3283_v48  ;;  %v3286_v52 = vadd.f32 %v3586_v45, %v3285_v51  ;;  %v3863_v49 = vpop.f32.mrb[63].mxu1 }
0x2148   : > { %4112 = vpow2.f32 %v3592_v47  ;;  %v3593_v53 = vmul.f32 -1.442695, %v3286_v52 }
0x214a   : > { %4114 = vpow2.f32 %v3593_v53 }
0x2152   : > { %v4113_v18 = vpop.eup %4112 }
0x2153   : > { %v3295_v55 = vadd.f32 1.0, %v4113_v18 }
0x2154   : > { %v4115_v6 = vpop.eup %4114 }
0x2155   : > { %4116 = vrcp.f32 %v3295_v55  ;;  %v3296_v56 = vadd.f32 1.0, %v4115_v6 }
0x2157   : > { %4118 = vrcp.f32 %v3296_v56 }
0x215f   : > { %v4117_v57 = vpop.eup %4116 }
0x2160   : > { %3301 = vst [vmem:[%s638_s25] sm:$0xff] %v4117_v57 }
0x2161   : > { %v4119_v58 = vpop.eup %4118 }
0x2162   : > { %3302 = vst [vmem:[%s638_s25 + $0x8] sm:$0xff] %v4119_v58 }
0x2163   : > { %4161 = shalt.err (!%p4158_p7)
}
0x2164   : > { %s4162_s23 = scalar_lea.hbm %s5024_s30, 256  ;;  %s4166_s27 = scalar_lea.hbm %s5089_s20, 512 }
0x2165   : > { %p4163_p8 = scmp.ne.s32.totalorder %s5024_s30, %s4162_s23  ;;  %p4167_p1 = scmp.lt.u32.totalorder %s5024_s30, %s5089_s20 }
0x2166   : > { %p4168_p0 = scmp.lt.u32.totalorder %s4166_s27, %s4162_s23  ;;  %p4170_p6 = scmp.lt.u32.totalorder %s4162_s23, %s5024_s30 }
0x2167   : > { %p4164_p11 = pnand %p4163_p8, %p5147_p9 }
0x2168   : > { %p4169_p5 = por %p4168_p0, %p4167_p1 }
0x2169   : > { %p4165_p13 = pneg %p4164_p11 }
0x216a   : > { %p4171_p10 = por %p4170_p6, %p4169_p5 }
0x216c   : > { %p4172_p12 = pnand %p4171_p10, %p4165_p13 }
0x216e   : > { %4175 = shalt.err (!%p4172_p12)
}
0x216f   : > { %s4231_s24 = smov 128   ;;  %s4232_s28 = smov 8  }
0x2170   : > { %3868 = dma.vmem_to_hbm [thread:$0]  (%p5147_p9), %s5026_s0, 256, %s5024_s30, %s5028_s1, %s4231_s24, %s4231_s24, %s4232_s28  }
0x2171 PF: > { %s5148_s25 = sld [smem:[#allocation10_spill]]  ;;  %s5149_s26 = sld [smem:[#allocation8_spill]] }
0x2172   : > { %s5150_s3 = sld [smem:[#allocation13_spill]] }
0x2177   : > { %p3880_p2 = scmp.ge.s32.totalorder %s5148_s25, 2  ;;  %s3332_s2 = sand.u32 1, %s5149_s26  }
0x2178   : > { %p5151_p3 = scmp.ne.s32.totalorder %s5150_s3, 0  ;;  %s3333_s23 = scalar_lea.sflag [#allocation4], %s3332_s2 }
0x217a   : > { %p3875_p4 = pnand %p3880_p2, %p5151_p3 }
0x217c   : > { %4197 = dma.done.wait (!%p3875_p4), %s3333_s23, 256  }
0x217d   : > { %4199 = vsyncadd (!%p3875_p4), %s3333_s23, 4294967040  ;;  %s5152_s24 = sld [smem:[#allocation11_spill]]  ;;  %s5153_s27 = sld [smem:[#allocation9_spill]] }
0x217e   : > { %s5154_s23 = sld [smem:[#allocation12_spill]]  ;;  %s5155_s1 = smov %s4206_s22 }
0x2183   : > { %p31_p7 = scmp.ge.s32.totalorder %s5152_s24, 4   ;;  %s5156_s22 = smov %s5153_s27 }
0x2185   :  { %33 = sbr.rel (!%p31_p7) target bundleno = 10 (0xa), region = 152 }
0x218c   :  { %3338 = vsyncpa [#allocation3], 1 }
0x218d   :  { %3340 = vsyncpa [#allocation3 + $0x1], 1 }
0x218e   :  { %3341 = vsyncpa [#allocation4], 1 }
0x218f   :  { %3343 = vsyncpa [#allocation4 + $0x1], 1 }

// kernel: tpu_custom_call.1
= control target key start
LH: loop header
LB: loop body
LE: loop exit
PB: predicated region body
PF: predicated region fallthrough
CT: control target
= control target key end

     0   :  { %s5069_s0 = inlined_call_operand.vmem [shape: bf16[32,32], index: 0, kind: input, shape index: {}]   ;;  %s5070_s1 = inlined_call_operand.vmem [shape: f32[16,64], index: 1, kind: input, shape index: {}]   ;;  %s5071_s2 = inlined_call_operand.hbm [shape: bf16[32,64], index: 2, kind: input, shape index: {}]   ;;  %s5072_s3 = inlined_call_operand.vmem [shape: bf16[2,64,192], index: 3, kind: input, shape index: {}]   ;;  %s5073_s4 = inlined_call_operand.vmem [shape: f32[2,192], index: 4, kind: input, shape index: {}]   ;;  %s5074_s5 = inlined_call_operand.vmem [shape: bf16[2,4,16,64], index: 5, kind: input, shape index: {}]   ;;  %s5075_s6 = inlined_call_operand.vmem [shape: f32[2,64], index: 6, kind: input, shape index: {}]   ;;  %s5076_s7 = inlined_call_operand.vmem [shape: f32[2,64], index: 7, kind: input, shape index: {}]   ;;  %s5077_s8 = inlined_call_operand.vmem [shape: f32[2,64], index: 8, kind: input, shape index: {}]   ;;  %s5078_s9 = inlined_call_operand.vmem [shape: f32[2,64], index: 9, kind: input, shape index: {}]   ;;  %s5079_s10 = inlined_call_operand.vmem [shape: f32[2,64], index: 10, kind: input, shape index: {}]   ;;  %s5080_s11 = inlined_call_operand.vmem [shape: f32[2,64], index: 11, kind: input, shape index: {}]   ;;  %s5081_s12 = inlined_call_operand.vmem [shape: f32[2,64], index: 12, kind: input, shape index: {}]   ;;  %s5082_s13 = inlined_call_operand.vmem [shape: f32[2,64], index: 13, kind: input, shape index: {}]   ;;  %s5083_s14 = inlined_call_operand.vmem [shape: bf16[2,64,256], index: 14, kind: input, shape index: {}]   ;;  %s5084_s15 = inlined_call_operand.vmem [shape: f32[2,256], index: 15, kind: input, shape index: {}]   ;;  %s5085_s16 = inlined_call_operand.vmem [shape: bf16[2,256,64], index: 16, kind: input, shape index: {}]   ;;  %s5086_s17 = inlined_call_operand.vmem [shape: f32[2,64], index: 17, kind: input, shape index: {}]   ;;  %s5087_s18 = inlined_call_operand.vmem [shape: bf16[64,128], index: 18, kind: input, shape index: {}]   ;;  %s5088_s19 = inlined_call_operand.vmem [shape: f32[1,128], index: 19, kind: input, shape index: {}]   ;;  %s5089_s20 = inlined_call_operand.hbm [shape: f32[32,128], index: 20, kind: output, shape index: {}]  }
   0x1   :  { %5116 = sst [smem:[#allocation14_spill]] %s5069_s0 }
   0x2   :  { %5117 = sst [smem:[#allocation15_spill]] %s5070_s1 }
   0x3   :  { %5118 = sst [smem:[#allocation16_spill]] %s5071_s2 }
   0x4   :  { %5119 = sst [smem:[#allocation17_spill]] %s5072_s3 }
   0x5   :  { %5120 = sst [smem:[#allocation18_spill]] %s5073_s4 }
   0x6   :  { %25 = vsyncpa [#allocation3], 0 }
   0x7   :  { %26 = vsyncpa [#allocation4], 0 }
   0x8   :  { %28 = vsyncpa [#allocation4 + $0x1], 0  ;;  %s4338_s1 = smov 0   ;;  %s4340_s22 = smov 0  }
   0x9   :  { %s4342_s23 = smov 0   ;;  %s4344_s24 = smov 0  }
   0xa LB: > { %5121 = sst [smem:[#allocation8_spill]] %s4202_s1  ;;  %s4359_s2 = sadd.s32 4294967295, %s4214_s24   ;;  %s4214_s24 = sphi %s4344_s24, %s5152_s24   ;;  %s4210_s23 = sphi %s4342_s23, %s5154_s23   ;;  %s4206_s22 = sphi %s4340_s22, %s5156_s22   ;;  %s4202_s1 = sphi %s4338_s1, %s5155_s1  }
   0xb   : > { %5122 = sst [smem:[#allocation9_spill]] %s4210_s23  ;;  %s3391_s25 = sadd.s32 4294967294, %s4214_s24  }
   0xc   : > { %5123 = sst [smem:[#allocation10_spill]] %s4214_s24  ;;  %s4363_s3 = sadd.s32 1, %s4214_s24  }
   0xd   : > { %5124 = sst [smem:[#allocation11_spill]] %s4363_s3  ;;  %s466_s26 = sadd.s32 1, %s4210_s23 }
   0xe   : > { %s463_s27 = ssub.s32 %s4214_s24, %s4363_s3  ;;  %p476_p0 = scmp.ne.s32.totalorder %s4210_s23, %s4206_s22 }
   0xf   : > { %p464_p1 = scmp.eq.s32.totalorder %s463_s27, 0  ;;  %p477_p2 = scmp.eq.s32.totalorder %s4359_s2, 1 }
  0x10   : > { %p482_p3 = scmp.ne.s32.totalorder %s4206_s22, %s4202_s1  ;;  %p483_p4 = scmp.eq.s32.totalorder %s3391_s25, 1 }
  0x11   : > { %s4374_s28 = scalar_select %p464_p1, %s4210_s23, %s466_s26  }
  0x12   : > { %p4376_p5 = por %p477_p2, %p476_p0  ;;  %p4380_p6 = por %p483_p4, %p482_p3 }
  0x13   : > { %5125 = sst [smem:[#allocation12_spill]] %s4374_s28  ;;  %p3392_p7 = scmp.ge.s32.totalorder %s4214_s24, 1 }
  0x14   : > { %s5126_s4 = scalar_select %p4376_p5, 1, 0 }
  0x15   : > { %s5127_s29 = scalar_select %p4380_p6, 1, 0 }
  0x16   : > { %p490_p8 = scmp.lt.s32.totalorder %s4214_s24, 3  ;;  %p5100_p9 = scmp.eq.s32.totalorder %s4359_s2, 0 }
  0x17   : > { %5128 = sst [smem:[#allocation13_spill]] %s5127_s29  ;;  %s4216_s0 = smov [#allocation2]  }
  0x18   : > { %p4387_p10 = pnand %p3392_p7, %p490_p8  ;;  %s505_s21 = sshll.u32 %s4216_s0, 4  ;;  %s506_s21 = int_to_ptr.vmem [resolvable:$true] %s505_s21 }
  0x19   : > { %s5131_s28 = sld [smem:[#allocation16_spill]] }
  0x1a   : > { %s5129_s30 = scalar_select %p4387_p10, 1, 0 }
  0x1b   : > { %p3870_p11 = pneg %p4387_p10 }
  0x1d   : > { %p4395_p12 = pnand %p5100_p9, %p3870_p11 }
  0x1f   : > { %s4120_s23 = scalar_lea.hbm %s5131_s28, 256  ;;  %p4122_p0 = pneg %p4395_p12 }
  0x20   : > { %p4121_p13 = scmp.ne.s32.totalorder %s5131_s28, %s4120_s23  ;;  %p4127_p3 = scmp.lt.u32.totalorder %s4120_s23, %s5131_s28 }
  0x22   : > { %p4123_p1 = pnand %p4122_p0, %p4121_p13 }
  0x24   : > { %p4124_p2 = pneg %p4123_p1 }
  0x26   : > { %p4129_p4 = pnand %p4127_p3, %p4124_p2 }
  0x28   : > { %4132 = shalt.err (!%p4129_p4)
}
  0x29   : > { %s4133_s24 = scalar_lea.vmem %s506_s21, 256  ;;  %p4141_p9 = scmp.lt.s32.totalorder %s506_s21, %s506_s21 }
  0x2a   : > { %p4134_p7 = scmp.ne.s32.totalorder %s506_s21, %s4133_s24  ;;  %p4142_p6 = scmp.lt.s32.totalorder %s4133_s24, %s4133_s24 }
  0x2c   : > { %p4136_p8 = pnand %p4134_p7, %p4122_p0  ;;  %p4143_p5 = por %p4142_p6, %p4141_p9 }
  0x2e   : > { %p4137_p11 = pneg %p4136_p8 }
  0x30   : > { %p4144_p10 = pnand %p4143_p5, %p4137_p11 }
  0x32   : > { %4147 = shalt.err (!%p4144_p10)
}
  0x33   : > { %s4217_s3 = smov 64   ;;  %s4218_s29 = smov 4  }
  0x34   : > { %3873 = dma.hbm_to_vmem [thread:$0]  (!%p4395_p12), %s5131_s28, 256, %s506_s21, [#allocation3], %s4217_s3, %s4217_s3, %s4218_s29  }
  0x35   : > { %p5132_p13 = scmp.ne.s32.totalorder %s5129_s30, 0 }
  0x36   : > { %p5133_p1 = scmp.eq.s32.totalorder (!%p5132_p13), %s4359_s2, 0 }
  0x37   : > { %581 = sbr.rel (%p5132_p13) target bundleno = 8561 (0x2171), region = 100 }
  0x3e   : > { %4193 = dma.done.wait (%p5133_p1), [#allocation3], 256   ;;  %p5134_p0 = pmov %p5133_p1 }
  0x3f   : > { %s3398_s1 = sshll.u32 %s4359_s2, 1  ;;  %v4219_v0 = vmov 0.0   ;;  %vm4220_vm0 = vmmov 0   ;;  %v3929_v1 = vld [vmem:[#allocation2] sm:$0xff]   ;;  %s5135_s21 = sld [smem:[#allocation14_spill]]  ;;  %v3930_v2 = vld [vmem:[#allocation2 + $0x8] sm:$0xff]   ;;  %v647_v22 = vlaneseq }
  0x40   : > { %4195 = vsyncadd (%p5134_p0), [#allocation3], 4294967040  ;;  %3700 = vmatprep.subr.bf16.mxu0 %v4219_v0  ;;  %3704 = vmatprep.mubr.msk.bf16.mxu0 %vm4220_vm0, %v4219_v0  ;;  %p640_p5 = scmp.lt.s32.totalorder %s3398_s1, 3  ;;  %s5136_s29 = sld [smem:[#allocation17_spill]]  ;;  %vm679_vm1 = vcmask 261120   ;;  %v4221_v12 = vmov 0  }
  0x41   : > { %3701 = vmatpush3.bf16.msra.mxu0 %v3929_v1  ;;  %825 = vmatprep.mubr.bf16.mxu1 %v4221_v12  ;;  %vm789_vm2 = vcmask 523264   ;;  %v648_v23 = vshrl.u32 %v647_v22, 7  ;;  %s5139_s3 = sld [smem:[#allocation18_spill]]  ;;  %s5110_s26 = smov 112   ;;  %vm841_vm3 = vcmask 130048   ;;  %v651_v44 = vand.u32 127, %v647_v22 }
  0x42   : > { %s5158_s1 = smov (!%p640_p5, %s3398_s1), 3  ;;  %3702 = vmatprep.subr.bf16.mxu0 %v4219_v0  ;;  %s5112_s27 = smov 64   ;;  %v4225_v46 = vmov -1e+30  }
  0x43   : > { %s3399_s23 = sshll.u32 %s5158_s1, 2  ;;  %v4473_v24 = vsub.s32 0, %v648_v23  ;;  %v4478_v26 = vsub.s32 1, %v648_v23  ;;  %s5113_s1 = smov 48   ;;  %v649_v45 = vadd.s32 8, %v648_v23  ;;  %vm652_vm4 = vcmp.le.s32.totalorder %v651_v44, %v648_v23 }
  0x44   : > { %v4505_v47 = vsel %vm652_vm4, 0.0, %v4225_v46  ;;  %s5107_s24 = smov 32   ;;  %s5106_s28 = smov 16  }
  0x45   : > { %s643_s25 = scalar_lea.vmem %s5135_s21, %s3399_s23  ;;  %3703 = vmatpush3.bf16.msra.mxu0 %v3930_v2  ;;  %s5137_s23 = sld [smem:[#allocation15_spill]]  ;;  %vm653_vm5 = vcmp.le.s32.totalorder %v651_v44, %v649_v45  ;;  %v3944_v44 = vld [vmem:[%s5074_s5] sm:$0xff]   ;;  %v3945_v45 = vld [vmem:[%s5074_s5 + $0x8] sm:$0xff]  }
  0x46   : > { %v3931_v3 = vld [vmem:[%s643_s25] sm:$0xff]   ;;  %v3935_v6 = vld [vmem:[%s5136_s29 + $0x14] ss:$8 sps:$4 sm:$0xff]   ;;  %v3937_v7 = vld [vmem:[%s5136_s29 + $0x10] ss:$8 sps:$4 sm:$0xff]   ;;  %3708 = vmatprep.subr.bf16.mxu0 %v4219_v0  ;;  %v4507_v49 = vsel %vm653_vm5, 0.0, %v4225_v46 }
  0x47   : > { %v3932_v4 = vld [vmem:[%s5136_s29 + $0x4] ss:$8 sps:$4 sm:$0xff]   ;;  %v3934_v5 = vld [vmem:[%s5136_s29] ss:$8 sps:$4 sm:$0xff]   ;;  %v3941_v10 = vld [vmem:[%s5136_s29 + $0x34] ss:$8 sps:$4 sm:$0xff]  }
  0x48   : > { %793 = vmatprep.subr.bf16.mxu1 %v3932_v4  ;;  %v3938_v8 = vld [vmem:[%s5136_s29 + $0x24] ss:$8 sps:$4 sm:$0xff]   ;;  %3705 = vmatmul.mubr.msk.bf16.vlgmr.msra.gmra.mrb[0].mxu0 %vm679_vm1, %v3931_v3  ;;  %v3940_v9 = vld [vmem:[%s5136_s29 + $0x20] ss:$8 sps:$4 sm:$0xff]   ;;  %v3943_v11 = vld [vmem:[%s5136_s29 + $0x30] ss:$8 sps:$4 sm:$0xff]  }
  0x49   : > { %794 = vmatpush1.bf16.msra.mxu1 %v3934_v5  ;;  %3710 = vmatprep.mubr.msk.bf16.mxu0 %vm4220_vm0, %v4219_v0  ;;  %v737_v25 = vld [vmem:[%s5139_s3] ss:$2 sm:$0x3]  ;;  %s5104_s21 = smov 80   ;;  %p5147_p9 = scmp.ne.s32.totalorder %s5126_s4, 0 }
  0x4a   : > { %795 = vmatprep.subr.bf16.mxu1 %v3935_v6  ;;  %v742_v27 = vrot.slane %v737_v25, %v4473_v24  ;;  %v746_v29 = vrot.slane %v737_v25, %v4478_v26 }
  0x4b   : > { %s5138_s30 = smov %s5137_s23  ;;  %v724_v14 = vld [vmem:[%s5137_s23] sm:$0xff]  ;;  %s5108_s23 = smov 96  }
  0x4c   : > { %v725_v15 = vld [vmem:[%s5138_s30 + $0x8] sm:$0xff]  ;;  %s5140_s30 = smov 48  }
  0x4d   : > { %796 = vmatpush1.bf16.msra.mxu1 %v3937_v7 }
  0x4e   : > { %797 = vmatprep.subr.bf16.mxu1 %v3938_v8 }
  0x51   : > { %798 = vmatpush1.bf16.msra.mxu1 %v3940_v9 }
  0x52   : > { %799 = vmatprep.subr.bf16.mxu1 %v3941_v10 }
  0x55   : > { %800 = vmatpush1.bf16.msra.mxu1 %v3943_v11 }
  0x56   : > { %3720 = vmatprep.subr.bf16.mxu1 %v4219_v0 }
 0x11b   : > { %v717_v13 = vpop.f32.mrb[0].mxu0 }
 0x11c   : > { %v3706_v16 = vpop.f32.mrb[1].mxu0  ;;  %v4464_v18 = vadd.f32 %v724_v14, %v717_v13 }
 0x11d   : > { %v720_v17 = vpop.f32.mrb[2].mxu0 }
 0x11e   : > { %v4466_v19 = vadd.f32 %v725_v15, %v720_v17  ;;  %v3707_v20 = vpop.f32.mrb[3].mxu0 }
 0x120   : > { %v728_v21 = vpack.c.bf16 %v4466_v19, %v4464_v18 }
 0x122   : > { %3412 = vmatmul.mubr.msk.bf16.vlgmr.msra.gmra.mrb[0].mxu1 %vm789_vm2, %v728_v21 }
 0x123   : > { %3722 = vmatprep.mubr.msk.bf16.mxu1 %vm4220_vm0, %v4219_v0 }
 0x1f5   : > { %v827_v28 = vpop.f32.mrb[0].mxu1 }
 0x1f6   : > { %v829_v30 = vpop.f32.mrb[1].mxu1  ;;  %v828_v32 = vadd.f32 %v827_v28, %v742_v27 }
 0x1f7   : > { %v831_v31 = vpop.f32.mrb[2].mxu1  ;;  %v830_v35 = vadd.f32 %v829_v30, %v746_v29 }
 0x1f8   : > { %v832_v33 = vadd.f32 %v831_v31, %v742_v27  ;;  %v833_v34 = vpop.f32.mrb[3].mxu1 }
 0x1f9   : > { %v834_v36 = vadd.f32 %v833_v34, %v746_v29 }
 0x1fa   : > { %v4482_v37 = vpack.c.bf16 %v832_v33, %v828_v32 }
 0x1fb   : > { %v4484_v38 = vpack.c.bf16 %v834_v36, %v830_v35 }
 0x1fc   : > { %959 = vrot.lane.b32.xlu1 %v4482_v37, %s5110_s26  ;;  %839 = vrot.lane.b32.xlu0 %v4482_v37, %s5112_s27  ;;  %s5145_s27 = smov 16  }
 0x200   : > { %961 = vrot.lane.b32.xlu0 %v4482_v37, %s5113_s1  ;;  %s5141_s1 = smov 64  }
 0x26e   : > { %v840_v39 = vpop.permute.xlu0 %839  ;;  %v960_v43 = vpop.permute.xlu1 %959 }
 0x26f   : > { %v846_v40 = vsel %vm841_vm3, %v840_v39, 0 }
 0x270   : > { %3709 = vmatpush3.bf16.xpose.msra.mxu0 %v846_v40 }
 0x271   : > { %3714 = vmatprep.subr.bf16.mxu0 %v4219_v0 }
 0x272   : > { %v962_v41 = vpop.permute.xlu0 %961 }
 0x273   : > { %v967_v42 = vsel %vm841_vm3, %v962_v41, 0 }
 0x274   : > { %3721 = vmatpush3.bf16.xpose.msra.mxu1 %v967_v42 }
 0x275   : > { %3732 = vmatprep.subr.bf16.mxu1 %v4219_v0 }
 0x277   : > { %3711 = vmatmul.mubr.msk.bf16.vlgmr.msra.gmra.mrb[4].mxu0 %vm841_vm3, %v4482_v37 }
 0x278   : > { %3715 = vmatpush3.bf16.msra.mxu0 %v4484_v38  ;;  %3716 = vmatprep.mubr.msk.bf16.mxu0 %vm4220_vm0, %v4219_v0 }
 0x279   : > { %3726 = vmatprep.subr.bf16.mxu0 %v4219_v0 }
 0x27b   : > { %3723 = vmatmul.mubr.msk.bf16.vlgmr.msra.gmra.mrb[4].mxu1 %vm841_vm3, %v960_v43 }
 0x27c   : > { %3734 = vmatprep.mubr.msk.bf16.mxu1 %vm4220_vm0, %v4219_v0  ;;  %3733 = vmatpush3.bf16.msra.mxu1 %v3945_v45 }
 0x27d   : > { %3744 = vmatprep.subr.bf16.mxu1 %v4219_v0 }
 0x34a   : > { %v882_v48 = vpop.f32.mrb[4].mxu0 }
 0x34b   : > { %v883_v50 = vadd.f32 %v882_v48, %v4505_v47  ;;  %v3712_v51 = vpop.f32.mrb[5].mxu0 }
 0x34c   : > { %v885_v52 = vpop.f32.mrb[6].mxu0 }
 0x34d   : > { %v886_v53 = vadd.f32 %v885_v52, %v4507_v49  ;;  %v3713_v54 = vpop.f32.mrb[7].mxu0  ;;  %v889_v55 = vsel %vm841_vm3, %v883_v50, -inf }
 0x34e   : > { %v1003_v56 = vpop.f32.mrb[4].mxu1  ;;  %890 = vmax.xlane.f32.xlu1 %v889_v55 }
 0x34f   : > { %v1004_v57 = vadd.f32 %v1003_v56, %v4505_v47  ;;  %v3724_v58 = vpop.f32.mrb[5].mxu1  ;;  %v892_v59 = vsel %vm841_vm3, %v886_v53, -inf }
 0x350   : > { %v1006_v60 = vpop.f32.mrb[6].mxu1  ;;  %893 = vmax.xlane.f32.xlu0 %v892_v59 }
 0x351   : > { %v1007_v61 = vadd.f32 %v1006_v60, %v4507_v49  ;;  %v3725_v62 = vpop.f32.mrb[7].mxu1  ;;  %v1010_v1 = vsel %vm841_vm3, %v1004_v57, -inf }
 0x353   : > { %v1013_v63 = vsel %vm841_vm3, %v1007_v61, -inf }
 0x354   : > { %1014 = vmax.xlane.f32.xlu1 %v1013_v63  ;;  %1011 = vmax.xlane.f32.xlu0 %v1010_v1 }
 0x3db   : > { %v891_v2 = vpop.xlane.xlu1 %890 }
 0x3dc   : > { %v895_v3 = vsub.f32 %v883_v50, %v891_v2 }
 0x3dd   : > { %v894_v4 = vpop.xlane.xlu0 %893 }
 0x3de   : > { %v897_v5 = vmul.f32 1.442695, %v895_v3  ;;  %v896_v6 = vsub.f32 %v886_v53, %v894_v4 }
 0x3e0   : > { %4024 = vpow2.f32 %v897_v5  ;;  %v899_v7 = vmul.f32 1.442695, %v896_v6 }
 0x3e1   : > { %v1015_v8 = vpop.xlane.xlu1 %1014  ;;  %v1012_v9 = vpop.xlane.xlu0 %1011 }
 0x3e2   : > { %4026 = vpow2.f32 %v899_v7  ;;  %v1017_v10 = vsub.f32 %v1007_v61, %v1015_v8  ;;  %v1016_v11 = vsub.f32 %v1004_v57, %v1012_v9 }
 0x3e4   : > { %v1020_v13 = vmul.f32 1.442695, %v1017_v10  ;;  %v1018_v14 = vmul.f32 1.442695, %v1016_v11 }
 0x3e6   : > { %4028 = vpow2.f32 %v1020_v13 }
 0x3e7   : > { %4030 = vpow2.f32 %v1018_v14 }
 0x3ea   : > { %v4025_v15 = vpop.eup %4024 }
 0x3eb   : > { %v901_v16 = vsel %vm841_vm3, %v4025_v15, 0.0 }
 0x3ec   : > { %v4027_v17 = vpop.eup %4026  ;;  %902 = vadd.xlane.f32.xlu0 %v901_v16 }
 0x3ed   : > { %v904_v20 = vsel %vm841_vm3, %v4027_v17, 0.0 }
 0x3ee   : > { %905 = vadd.xlane.f32.xlu1 %v904_v20 }
 0x3f0   : > { %v4029_v21 = vpop.eup %4028 }
 0x3f1   : > { %v4031_v22 = vpop.eup %4030  ;;  %v1025_v23 = vsel %vm841_vm3, %v4029_v21, 0.0 }
 0x3f2   : > { %1026 = vadd.xlane.f32.xlu1 %v1025_v23  ;;  %v1022_v25 = vsel %vm841_vm3, %v4031_v22, 0.0 }
 0x3f3   : > { %1023 = vadd.xlane.f32.xlu0 %v1022_v25 }
 0x403   : > { %1187 = vrot.lane.b32.xlu1 %v4482_v37, %s5107_s24  ;;  %s5142_s24 = smov 112  }
 0x407   : > { %1185 = vrot.lane.b32.xlu1 %v4482_v37, %s5108_s23 }
 0x409   : > { %1034 = vrot.lane.b32.xlu0 %v4484_v38, %s5110_s26 }
 0x479   : > { %v903_v27 = vpop.xlane.xlu0 %902 }
 0x47a   : > { %4032 = vrcp.f32 %v903_v27 }
 0x47b   : > { %v906_v28 = vpop.xlane.xlu1 %905 }
 0x47c   : > { %4034 = vrcp.f32 %v906_v28 }
 0x47f   : > { %v1027_v29 = vpop.xlane.xlu1 %1026 }
 0x480   : > { %4036 = vrcp.f32 %v1027_v29  ;;  %v1024_v30 = vpop.xlane.xlu0 %1023 }
 0x481   : > { %4038 = vrcp.f32 %v1024_v30 }
 0x483   : > { %v1188_v55 = vpop.permute.xlu1 %1187 }
 0x484   : > { %v4033_v31 = vpop.eup %4032  ;;  %v1035_v40 = vpop.permute.xlu0 %1034  ;;  %v1193_v59 = vsel %vm841_vm3, %v1188_v55, 0 }
 0x485   : > { %v909_v33 = vmul.f32 %v4033_v31, %v4025_v15 }
 0x486   : > { %v4035_v32 = vpop.eup %4034 }
 0x487   : > { %v910_v34 = vmul.f32 %v4035_v32, %v4027_v17  ;;  %v1186_v60 = vpop.permute.xlu1 %1185 }
 0x489   : > { %v911_v35 = vpack.c.bf16 %v910_v34, %v909_v33 }
 0x48a   : > { %v4037_v36 = vpop.eup %4036 }
 0x48b   : > { %v4039_v39 = vpop.eup %4038  ;;  %3717 = vmatmul.mubr.msk.bf16.vlgmr.msra.gmra.mrb[8].mxu0 %vm841_vm3, %v911_v35  ;;  %v1031_v41 = vmul.f32 %v4037_v36, %v4029_v21 }
 0x48c   : > { %3727 = vmatpush3.bf16.msra.mxu0 %v1035_v40  ;;  %3728 = vmatprep.mubr.msk.bf16.mxu0 %vm4220_vm0, %v4219_v0  ;;  %v1030_v42 = vmul.f32 %v4039_v39, %v4031_v22 }
 0x48d   : > { %3738 = vmatprep.subr.bf16.mxu0 %v4219_v0 }
 0x48e   : > { %v1032_v43 = vpack.c.bf16 %v1031_v41, %v1030_v42 }
 0x493   : > { %3729 = vmatmul.mubr.msk.bf16.vlgmr.msra.gmra.mrb[12].mxu0 %vm841_vm3, %v1032_v43  ;;  %v3946_v43 = vld [vmem:[%s5074_s5 + $0x10] sm:$0xff]  }
 0x494   : > { %3740 = vmatprep.mubr.msk.bf16.mxu0 %vm4220_vm0, %v4219_v0  ;;  %3739 = vmatpush3.bf16.msra.mxu0 %v3944_v44 }
 0x495   : > { %3750 = vmatprep.subr.bf16.mxu0 %v4219_v0 }
 0x55e   : > { %v949_v46 = vpop.f32.mrb[8].mxu0 }
 0x55f   : > { %v3718_v48 = vpop.f32.mrb[9].mxu0 }
 0x560   : > { %v952_v50 = vpop.f32.mrb[10].mxu0 }
 0x561   : > { %v956_v51 = vpack.c.bf16 %v952_v50, %v949_v46  ;;  %v3719_v52 = vpop.f32.mrb[11].mxu0 }
 0x563   : > { %3741 = vmatmul.mubr.msk.bf16.vlgmr.msra.gmra.mrb[16].mxu0 %vm841_vm3, %v956_v51 }
 0x564   : > { %3752 = vmatprep.mubr.msk.bf16.mxu0 %vm4220_vm0, %v4219_v0 }
 0x566   : > { %v1074_v53 = vpop.f32.mrb[12].mxu0 }
 0x567   : > { %v3730_v54 = vpop.f32.mrb[13].mxu0 }
 0x568   : > { %v1077_v56 = vpop.f32.mrb[14].mxu0 }
 0x569   : > { %v1081_v57 = vpack.c.bf16 %v1077_v56, %v1074_v53  ;;  %v3731_v58 = vpop.f32.mrb[15].mxu0 }
 0x56b   : > { %3735 = vmatmul.mubr.msk.bf16.vlgmr.msra.gmra.mrb[8].mxu1 %vm841_vm3, %v1081_v57 }
 0x56c   : > { %3745 = vmatpush3.bf16.xpose.msra.mxu1 %v1193_v59  ;;  %3746 = vmatprep.mubr.msk.bf16.mxu1 %vm4220_vm0, %v4219_v0 }
 0x56d   : > { %3756 = vmatprep.subr.bf16.mxu1 %v4219_v0 }
 0x573   : > { %3747 = vmatmul.mubr.msk.bf16.vlgmr.msra.gmra.mrb[12].mxu1 %vm841_vm3, %v1186_v60 }
 0x574   : > { %3758 = vmatprep.mubr.msk.bf16.mxu1 %vm4220_vm0, %v4219_v0  ;;  %3757 = vmatpush3.bf16.msra.mxu1 %v3946_v43 }
 0x575   : > { %3768 = vmatprep.subr.bf16.mxu1 %v4219_v0 }
 0x636   : > { %v1178_v61 = vpop.f32.mrb[16].mxu0 }
 0x637   : > { %v3742_v62 = vpop.f32.mrb[17].mxu0 }
 0x638   : > { %v1181_v63 = vpop.f32.mrb[18].mxu0 }
 0x639   : > { %v3743_v1 = vpop.f32.mrb[19].mxu0 }
 0x63e   : > { %v1128_v2 = vpop.f32.mrb[8].mxu1 }
 0x63f   : > { %v4553_v3 = vadd.f32 %v1178_v61, %v1128_v2  ;;  %v3736_v4 = vpop.f32.mrb[9].mxu1 }
 0x640   : > { %v1131_v5 = vpop.f32.mrb[10].mxu1 }
 0x641   : > { %v4555_v6 = vadd.f32 %v1181_v63, %v1131_v5  ;;  %v3737_v7 = vpop.f32.mrb[11].mxu1 }
 0x646   : > { %v1229_v8 = vpop.f32.mrb[12].mxu1 }
 0x647   : > { %v1230_v9 = vadd.f32 %v1229_v8, %v4505_v47  ;;  %v3748_v10 = vpop.f32.mrb[13].mxu1  ;;  %v3947_v8 = vld [vmem:[%s5074_s5 + $0x18] sm:$0xff]  }
 0x648   : > { %v1232_v11 = vpop.f32.mrb[14].mxu1 }
 0x649   : > { %v1233_v13 = vadd.f32 %v1232_v11, %v4507_v49  ;;  %v3749_v14 = vpop.f32.mrb[15].mxu1  ;;  %v1236_v15 = vsel %vm841_vm3, %v1230_v9, -inf }
 0x64a   : > { %1237 = vmax.xlane.f32.xlu0 %v1236_v15 }
 0x64b   : > { %v1239_v16 = vsel %vm841_vm3, %v1233_v13, -inf }
 0x64c   : > { %1240 = vmax.xlane.f32.xlu1 %v1239_v16 }
 0x65d   : > { %1259 = vrot.lane.b32.xlu1 %v4484_v38, %s5108_s23  ;;  %s5143_s23 = smov 96  }
 0x661   : > { %1362 = vrot.lane.b32.xlu1 %v4482_v37, %s5104_s21 }
 0x6d7   : > { %v1238_v17 = vpop.xlane.xlu0 %1237 }
 0x6d8   : > { %v1242_v20 = vsub.f32 %v1230_v9, %v1238_v17 }
 0x6d9   : > { %v1241_v21 = vpop.xlane.xlu1 %1240 }
 0x6da   : > { %v1244_v22 = vmul.f32 1.442695, %v1242_v20  ;;  %v1243_v23 = vsub.f32 %v1233_v13, %v1241_v21 }
 0x6dc   : > { %4040 = vpow2.f32 %v1244_v22  ;;  %v1246_v25 = vmul.f32 1.442695, %v1243_v23 }
 0x6dd   : > { %v1260_v27 = vpop.permute.xlu1 %1259 }
 0x6de   : > { %4042 = vpow2.f32 %v1246_v25  ;;  %3751 = vmatpush3.bf16.msra.mxu0 %v1260_v27 }
 0x6df   : > { %3762 = vmatprep.subr.bf16.mxu0 %v4219_v0 }
 0x6e6   : > { %v4041_v28 = vpop.eup %4040 }
 0x6e7   : > { %v1248_v29 = vsel %vm841_vm3, %v4041_v28, 0.0 }
 0x6e8   : > { %v4043_v30 = vpop.eup %4042  ;;  %1249 = vadd.xlane.f32.xlu0 %v1248_v29 }
 0x6e9   : > { %v1251_v31 = vsel %vm841_vm3, %v4043_v30, 0.0 }
 0x6ec   : > { %1252 = vadd.xlane.f32.xlu0 %v1251_v31  ;;  %v3435_v31 = vld [vmem:[%s5075_s6] ss:$0 sm:$0xff] }
 0x702   : > { %1364 = vrot.lane.b32.xlu0 %v4482_v37, %s5106_s28  ;;  %v1363_v37 = vpop.permute.xlu1 %1362  ;;  %s3599_s28 = sshll.u32 %s4359_s2, 8  ;;  %s4230_s2 = smov [#allocation5]  }
 0x775   : > { %v1250_v32 = vpop.xlane.xlu0 %1249 }
 0x776   : > { %4044 = vrcp.f32 %v1250_v32 }
 0x779   : > { %v1253_v33 = vpop.xlane.xlu0 %1252 }
 0x77a   : > { %4046 = vrcp.f32 %v1253_v33 }
 0x77d   : > { %v1365_v40 = vpop.permute.xlu0 %1364 }
 0x77e   : > { %v1370_v42 = vsel %vm841_vm3, %v1365_v40, 0 }
 0x780   : > { %v4045_v34 = vpop.eup %4044 }
 0x781   : > { %v1256_v36 = vmul.f32 %v4045_v34, %v4041_v28 }
 0x784   : > { %v4047_v35 = vpop.eup %4046 }
 0x785   : > { %v1257_v39 = vmul.f32 %v4047_v35, %v4043_v30 }
 0x787   : > { %v1258_v41 = vpack.c.bf16 %v1257_v39, %v1256_v36 }
 0x789   : > { %3753 = vmatmul.mubr.msk.bf16.vlgmr.msra.gmra.mrb[20].mxu0 %vm841_vm3, %v1258_v41 }
 0x78a   : > { %3763 = vmatpush3.bf16.xpose.msra.mxu0 %v1370_v42  ;;  %3764 = vmatprep.mubr.msk.bf16.mxu0 %vm4220_vm0, %v4219_v0 }
 0x78b   : > { %3774 = vmatprep.subr.bf16.mxu0 %v4219_v0 }
 0x791   : > { %3765 = vmatmul.mubr.msk.bf16.vlgmr.msra.gmra.mrb[24].mxu0 %vm841_vm3, %v1363_v37 }
 0x792   : > { %3776 = vmatprep.mubr.msk.bf16.mxu0 %vm4220_vm0, %v4219_v0  ;;  %3775 = vmatpush3.bf16.msra.mxu0 %v3947_v8 }
 0x85c   : > { %v1299_v44 = vpop.f32.mrb[20].mxu0 }
 0x85d   : > { %v3754_v45 = vpop.f32.mrb[21].mxu0 }
 0x85e   : > { %v1302_v46 = vpop.f32.mrb[22].mxu0 }
 0x85f   : > { %v1306_v48 = vpack.c.bf16 %v1302_v46, %v1299_v44  ;;  %v3755_v50 = vpop.f32.mrb[23].mxu0 }
 0x861   : > { %3759 = vmatmul.mubr.msk.bf16.vlgmr.msra.gmra.mrb[16].mxu1 %vm841_vm3, %v1306_v48 }
 0x862   : > { %3770 = vmatprep.mubr.msk.bf16.mxu1 %vm4220_vm0, %v4219_v0 }
 0x864   : > { %v1406_v51 = vpop.f32.mrb[24].mxu0 }
 0x865   : > { %v1407_v52 = vadd.f32 %v1406_v51, %v4505_v47  ;;  %v3766_v53 = vpop.f32.mrb[25].mxu0 }
 0x866   : > { %v1409_v54 = vpop.f32.mrb[26].mxu0 }
 0x867   : > { %v1410_v55 = vadd.f32 %v1409_v54, %v4507_v49  ;;  %v3767_v56 = vpop.f32.mrb[27].mxu0  ;;  %v1413_v57 = vsel %vm841_vm3, %v1407_v52, -inf }
 0x868   : > { %1414 = vmax.xlane.f32.xlu1 %v1413_v57 }
 0x869   : > { %v1416_v58 = vsel %vm841_vm3, %v1410_v55, -inf }
 0x86a   : > { %1417 = vmax.xlane.f32.xlu0 %v1416_v58 }
 0x8f5   : > { %v1415_v59 = vpop.xlane.xlu1 %1414 }
 0x8f6   : > { %v1419_v60 = vsub.f32 %v1407_v52, %v1415_v59 }
 0x8f7   : > { %v1418_v61 = vpop.xlane.xlu0 %1417 }
 0x8f8   : > { %v1421_v62 = vmul.f32 1.442695, %v1419_v60  ;;  %v1420_v63 = vsub.f32 %v1410_v55, %v1418_v61  ;;  %v3436_v61 = vld [vmem:[%s5077_s8] ss:$0 sm:$0xff] }
 0x8fa   : > { %4048 = vpow2.f32 %v1421_v62  ;;  %v1423_v1 = vmul.f32 1.442695, %v1420_v63  ;;  %v3437_v63 = vld [vmem:[%s5078_s9] ss:$0 sm:$0xff] }
 0x8fc   : > { %4050 = vpow2.f32 %v1423_v1 }
 0x904   : > { %v4049_v2 = vpop.eup %4048 }
 0x905   : > { %v1425_v4 = vsel %vm841_vm3, %v4049_v2, 0.0 }
 0x906   : > { %v4051_v5 = vpop.eup %4050  ;;  %1426 = vadd.xlane.f32.xlu0 %v1425_v4  ;;  %v3438_v4 = vld [vmem:[%s5076_s7] ss:$0 sm:$0xff] }
 0x907   : > { %v1428_v7 = vsel %vm841_vm3, %v4051_v5, 0.0 }
 0x908   : > { %1429 = vadd.xlane.f32.xlu1 %v1428_v7 }
 0x91c   : > { %1436 = vrot.lane.b32.xlu0 %v4484_v38, %s5104_s21  ;;  %s5144_s21 = smov 32  }
 0x934   : > { %v1353_v9 = vpop.f32.mrb[16].mxu1 }
 0x935   : > { %v1360_v10 = vadd.f32 %v1353_v9, %v4553_v3  ;;  %v3760_v11 = vpop.f32.mrb[17].mxu1 }
 0x936   : > { %v1356_v13 = vpop.f32.mrb[18].mxu1 }
 0x937   : > { %v1361_v14 = vadd.f32 %v1356_v13, %v4555_v6  ;;  %v3761_v15 = vpop.f32.mrb[19].mxu1 }
 0x993   : > { %v1427_v16 = vpop.xlane.xlu0 %1426 }
 0x994   : > { %4052 = vrcp.f32 %v1427_v16 }
 0x995   : > { %v1430_v17 = vpop.xlane.xlu1 %1429 }
 0x996   : > { %4054 = vrcp.f32 %v1430_v17 }
 0x997   : > { %v1437_v20 = vpop.permute.xlu0 %1436 }
 0x998   : > { %3769 = vmatpush3.bf16.msra.mxu1 %v1437_v20 }
 0x99e   : > { %v4053_v38 = vpop.eup %4052 }
 0x99f   : > { %v1433_v22 = vmul.f32 %v4053_v38, %v4049_v2 }
 0x9a0   : > { %v4055_v21 = vpop.eup %4054 }
 0x9a1   : > { %v1434_v23 = vmul.f32 %v4055_v21, %v4051_v5 }
 0x9a3   : > { %v1435_v25 = vpack.c.bf16 %v1434_v23, %v1433_v22 }
 0x9a5   : > { %3771 = vmatmul.mubr.msk.bf16.vlgmr.msra.gmra.mrb[20].mxu1 %vm841_vm3, %v1435_v25 }
 0x9a6   : > { %1732 = vmatprep.mubr.bf16.mxu1 %v4221_v12 }
 0xa78   : > { %v1476_v3 = vpop.f32.mrb[20].mxu1 }
 0xa79   : > { %v3772_v27 = vpop.f32.mrb[21].mxu1 }
 0xa7a   : > { %v1479_v28 = vpop.f32.mrb[22].mxu1  ;;  %v3950_v27 = vld [vmem:[%s5083_s14 + $0x4] ss:$8 sps:$4 sm:$0xff]  }
 0xa7b   : > { %v1483_v6 = vpack.c.bf16 %v1479_v28, %v1476_v3  ;;  %v3773_v29 = vpop.f32.mrb[23].mxu1  ;;  %v3948_v28 = vld [vmem:[%s5083_s14] ss:$8 sps:$4 sm:$0xff]   ;;  %1700 = vmatprep.subr.bf16.mxu1 %v3950_v27 }
 0xa7c   : > { %1701 = vmatpush1.bf16.msra.mxu1 %v3948_v28  ;;  %v3951_v29 = vld [vmem:[%s5083_s14 + $0x10] ss:$8 sps:$4 sm:$0xff]   ;;  %v3450_v28 = vld [vmem:[%s5086_s17] ss:$0 sm:$0xff] }
 0xa7d   : > { %3777 = vmatmul.mubr.msk.bf16.vlgmr.msra.gmra.mrb[28].mxu0 %vm841_vm3, %v1483_v6  ;;  %v3953_v6 = vld [vmem:[%s5083_s14 + $0x14] ss:$8 sps:$4 sm:$0xff]  }
 0xa7e   : > { %1702 = vmatprep.subr.bf16.mxu1 %v3953_v6 }
 0xa80   : > { %1703 = vmatpush1.bf16.msra.mxu1 %v3951_v29 }
 0xb50   : > { %v1530_v30 = vpop.f32.mrb[28].mxu0 }
 0xb51   : > { %v1537_v32 = vadd.f32 %v1530_v30, %v1360_v10  ;;  %v3778_v33 = vpop.f32.mrb[29].mxu0  ;;  %v3956_v30 = vld [vmem:[%s5083_s14 + $0x24] ss:$8 sps:$4 sm:$0xff]  }
 0xb52   : > { %v1533_v34 = vpop.f32.mrb[30].mxu0  ;;  %1704 = vmatprep.subr.bf16.mxu1 %v3956_v30  ;;  %v3959_v33 = vld [vmem:[%s5083_s14 + $0x34] ss:$8 sps:$4 sm:$0xff]  }
 0xb53   : > { %v1544_v35 = vadd.f32 %v3435_v31, %v1537_v32  ;;  %v1538_v36 = vadd.f32 %v1533_v34, %v1361_v14  ;;  %v3779_v39 = vpop.f32.mrb[31].mxu0  ;;  %v3957_v32 = vld [vmem:[%s5083_s14 + $0x30] ss:$8 sps:$4 sm:$0xff]   ;;  %v3960_v34 = vld [vmem:[%s5085_s16 + $0x40] sm:$0xff]  }
 0xb54   : > { %3627 = vmatprep.subr.bf16.mxu0 %v3960_v34  ;;  %v3963_v39 = vld [vmem:[%s5085_s16 + $0x8] sm:$0xff]  }
 0xb55   : > { %v1545_v40 = vadd.f32 %v3435_v31, %v1538_v36  ;;  %v1546_v41 = vadd.f32 %v1544_v35, %v4464_v18  ;;  %v3954_v31 = vld [vmem:[%s5083_s14 + $0x20] ss:$8 sps:$4 sm:$0xff]  }
 0xb56   : > { %1705 = vmatpush1.bf16.msra.mxu1 %v3954_v31  ;;  %v3961_v35 = vld [vmem:[%s5085_s16] sm:$0xff]   ;;  %v3962_v36 = vld [vmem:[%s5085_s16 + $0x48] sm:$0xff]  }
 0xb57   : > { %v1550_v42 = vsel %vm789_vm2, %v1546_v41, 0.0  ;;  %v1547_v37 = vadd.f32 %v1545_v40, %v4466_v19  ;;  %1706 = vmatprep.subr.bf16.mxu1 %v3959_v33  ;;  %3628 = vmatpush3.bf16.msra.mxu0 %v3961_v35  ;;  %v3964_v40 = vld [vmem:[%s5085_s16 + $0x50] sm:$0xff]  }
 0xb58   : > { %1551 = vadd.xlane.f32.xlu1 %v1550_v42  ;;  %3629 = vmatprep.subr.bf16.mxu0 %v3962_v36  ;;  %v3966_v42 = vld [vmem:[%s5085_s16 + $0x58] sm:$0xff]  }
 0xb59   : > { %v1553_v43 = vsel %vm789_vm2, %v1547_v37, 0.0 }
 0xb5a   : > { %1707 = vmatpush1.bf16.msra.mxu1 %v3957_v32 }
 0xb5b   : > { %3630 = vmatpush3.bf16.msra.mxu0 %v3963_v39 }
 0xb5c   : > { %1554 = vadd.xlane.f32.xlu1 %v1553_v43  ;;  %3631 = vmatprep.subr.bf16.mxu0 %v3964_v40  ;;  %v3968_v43 = vld [vmem:[%s5085_s16 + $0x60] sm:$0xff]  }
 0xbe5   : > { %v1552_v44 = vpop.xlane.xlu1 %1551 }
 0xbe6   : > { %v1557_v45 = vmul.f32 0.015625, %v1552_v44  ;;  %v3969_v44 = vld [vmem:[%s5085_s16 + $0x20] sm:$0xff]  }
 0xbe8   : > { %v1559_v46 = vsub.f32 %v1546_v41, %v1557_v45  ;;  %v3965_v41 = vld [vmem:[%s5085_s16 + $0x10] sm:$0xff]   ;;  %v3970_v45 = vld [vmem:[%s5085_s16 + $0x68] sm:$0xff]  }
 0xbe9   : > { %v1555_v48 = vpop.xlane.xlu1 %1554  ;;  %3632 = vmatpush3.bf16.msra.mxu0 %v3965_v41 }
 0xbea   : > { %v1558_v50 = vmul.f32 0.015625, %v1555_v48  ;;  %v1561_v51 = vmul.f32 %v1559_v46, %v1559_v46  ;;  %3633 = vmatprep.subr.bf16.mxu0 %v3966_v42 }
 0xbec   : > { %v1560_v52 = vsub.f32 %v1547_v37, %v1558_v50  ;;  %v1563_v53 = vsel %vm789_vm2, %v1561_v51, 0.0  ;;  %v3967_v37 = vld [vmem:[%s5085_s16 + $0x18] sm:$0xff]  }
 0xbed   : > { %1564 = vadd.xlane.f32.xlu1 %v1563_v53  ;;  %3634 = vmatpush3.bf16.msra.mxu0 %v3967_v37 }
 0xbee   : > { %v1562_v54 = vmul.f32 %v1560_v52, %v1560_v52  ;;  %3635 = vmatprep.subr.bf16.mxu0 %v3968_v43 }
 0xbf0   : > { %v1566_v18 = vsel %vm789_vm2, %v1562_v54, 0.0 }
 0xbf1   : > { %1567 = vadd.xlane.f32.xlu1 %v1566_v18  ;;  %3636 = vmatpush3.bf16.msra.mxu0 %v3969_v44 }
 0xbf2   : > { %3637 = vmatprep.subr.bf16.mxu0 %v3970_v45 }
 0xc7a   : > { %v1565_v55 = vpop.xlane.xlu1 %1564 }
 0xc7b   : > { %v1569_v19 = vmul.f32 0.015625, %v1565_v55  ;;  %v3439_v55 = vld [vmem:[%s5079_s10] ss:$0 sm:$0xff] }
 0xc7d   : > { %v1571_v56 = vadd.f32 1e-05, %v1569_v19 }
 0xc7e   : > { %v1568_v57 = vpop.xlane.xlu1 %1567 }
 0xc7f   : > { %4056 = vrsqrt.f32 %v1571_v56  ;;  %v1570_v58 = vmul.f32 0.015625, %v1568_v57 }
 0xc81   : > { %v1572_v59 = vadd.f32 1e-05, %v1570_v58  ;;  %v3440_v58 = vld [vmem:[%s5080_s11] ss:$0 sm:$0xff] }
 0xc83   : > { %4058 = vrsqrt.f32 %v1572_v59 }
 0xc89   : > { %v4057_v60 = vpop.eup %4056 }
 0xc8a   : > { %v1575_v62 = vmul.f32 %v4057_v60, %v1559_v46 }
 0xc8c   : > { %v1581_v1 = vmul.f32 %v3436_v61, %v1575_v62 }
 0xc8d   : > { %v4059_v2 = vpop.eup %4058 }
 0xc8e   : > { %v1587_v5 = vadd.f32 %v3437_v63, %v1581_v1  ;;  %v1576_v7 = vmul.f32 %v4059_v2, %v1560_v52  ;;  %v3972_v1 = vld [vmem:[%s5085_s16 + $0x70] sm:$0xff]  }
 0xc8f   : > { %v3973_v2 = vld [vmem:[%s5085_s16 + $0x30] sm:$0xff]  }
 0xc90   : > { %v1594_v8 = vadd.f32 %v3438_v4, %v1587_v5  ;;  %v1582_v9 = vmul.f32 %v3436_v61, %v1576_v7  ;;  %v3975_v5 = vld [vmem:[%s5085_s16 + $0x38] sm:$0xff]   ;;  %v1645_v7 = vld [vmem:[%s5084_s15] ss:$2 sm:$0x3] }
 0xc92   : > { %v1598_v10 = vsel %vm789_vm2, %v1594_v8, 0.0  ;;  %v1588_v11 = vadd.f32 %v3437_v63, %v1582_v9  ;;  %v3971_v63 = vld [vmem:[%s5085_s16 + $0x28] sm:$0xff]   ;;  %v1654_v9 = vrot.slane %v1645_v7, %v4478_v26 }
 0xc93   : > { %1599 = vadd.xlane.f32.xlu1 %v1598_v10  ;;  %3638 = vmatpush3.bf16.msra.mxu0 %v3971_v63 }
 0xc94   : > { %v1595_v13 = vadd.f32 %v3438_v4, %v1588_v11  ;;  %3639 = vmatprep.subr.bf16.mxu0 %v3972_v1  ;;  %v3974_v4 = vld [vmem:[%s5085_s16 + $0x78] sm:$0xff]  }
 0xc96   : > { %v1601_v14 = vsel %vm789_vm2, %v1595_v13, 0.0 }
 0xc97   : > { %1602 = vadd.xlane.f32.xlu1 %v1601_v14  ;;  %3640 = vmatpush3.bf16.msra.mxu0 %v3973_v2 }
 0xc98   : > { %3641 = vmatprep.subr.bf16.mxu0 %v3974_v4  ;;  %v3467_v4 = vld [vmem:[%s5081_s12] ss:$0 sm:$0xff] }
 0xc9b   : > { %3642 = vmatpush3.bf16.msra.mxu0 %v3975_v5 }
 0xc9c   : > { %3786 = vmatprep.subr.bf16.mxu0 %v4219_v0 }
 0xd20   : > { %v1600_v15 = vpop.xlane.xlu1 %1599 }
 0xd21   : > { %v1604_v16 = vmul.f32 0.015625, %v1600_v15 }
 0xd23   : > { %v1606_v17 = vsub.f32 %v1594_v8, %v1604_v16  ;;  %v1650_v8 = vrot.slane %v1645_v7, %v4473_v24 }
 0xd24   : > { %v1603_v20 = vpop.xlane.xlu1 %1602 }
 0xd25   : > { %v1605_v38 = vmul.f32 0.015625, %v1603_v20  ;;  %v1608_v21 = vmul.f32 %v1606_v17, %v1606_v17 }
 0xd27   : > { %v1607_v22 = vsub.f32 %v1595_v13, %v1605_v38  ;;  %v1610_v23 = vsel %vm789_vm2, %v1608_v21, 0.0 }
 0xd28   : > { %1611 = vadd.xlane.f32.xlu0 %v1610_v23 }
 0xd29   : > { %v1609_v25 = vmul.f32 %v1607_v22, %v1607_v22 }
 0xd2b   : > { %v1613_v3 = vsel %vm789_vm2, %v1609_v25, 0.0 }
 0xd2c   : > { %1614 = vadd.xlane.f32.xlu1 %v1613_v3 }
 0xdb5   : > { %v1612_v46 = vpop.xlane.xlu0 %1611 }
 0xdb6   : > { %v1616_v48 = vmul.f32 0.015625, %v1612_v46 }
 0xdb8   : > { %v1618_v50 = vadd.f32 1e-05, %v1616_v48 }
 0xdb9   : > { %v1615_v51 = vpop.xlane.xlu1 %1614 }
 0xdba   : > { %4060 = vrsqrt.f32 %v1618_v50  ;;  %v1617_v52 = vmul.f32 0.015625, %v1615_v51 }
 0xdbc   : > { %v1619_v53 = vadd.f32 1e-05, %v1617_v52  ;;  %v3978_v52 = vld [vmem:[%s5136_s29 + $0x44] ss:$8 sps:$4 sm:$0xff]  }
 0xdbd   : > { %2031 = vmatprep.subr.bf16.mxu1 %v3978_v52 }
 0xdbe   : > { %4062 = vrsqrt.f32 %v1619_v53  ;;  %v3976_v53 = vld [vmem:[%s5136_s29 + $0x40] ss:$8 sps:$4 sm:$0xff]  }
 0xdc4   : > { %v4061_v54 = vpop.eup %4060 }
 0xdc5   : > { %v1622_v18 = vmul.f32 %v4061_v54, %v1606_v17  ;;  %v3981_v54 = vld [vmem:[%s5136_s29 + $0x54] ss:$8 sps:$4 sm:$0xff]  }
 0xdc7   : > { %v1628_v56 = vmul.f32 %v3439_v55, %v1622_v18  ;;  %v3979_v18 = vld [vmem:[%s5136_s29 + $0x50] ss:$8 sps:$4 sm:$0xff]  }
 0xdc8   : > { %v4063_v19 = vpop.eup %4062 }
 0xdc9   : > { %v1623_v57 = vmul.f32 %v4063_v19, %v1607_v22  ;;  %v1634_v60 = vadd.f32 %v3440_v58, %v1628_v56  ;;  %v3982_v19 = vld [vmem:[%s5136_s29 + $0x60] ss:$8 sps:$4 sm:$0xff]   ;;  %v3985_v56 = vld [vmem:[%s5136_s29 + $0x70] ss:$8 sps:$4 sm:$0xff]  }
 0xdcb   : > { %v1629_v59 = vmul.f32 %v3439_v55, %v1623_v57  ;;  %v3984_v55 = vld [vmem:[%s5136_s29 + $0x64] ss:$8 sps:$4 sm:$0xff]   ;;  %v3987_v57 = vld [vmem:[%s5136_s29 + $0x74] ss:$8 sps:$4 sm:$0xff]  }
 0xdcd   : > { %v1635_v61 = vadd.f32 %v3440_v58, %v1629_v59 }
 0xdcf   : > { %v1636_v62 = vpack.c.bf16 %v1635_v61, %v1634_v60 }
 0xdd1   : > { %3449 = vmatmul.mubr.msk.bf16.vlgmr.msra.gmra.mrb[24].mxu1 %vm789_vm2, %v1636_v62 }
 0xdd2   : > { %2063 = vmatprep.mubr.bf16.mxu1 %v4221_v12  ;;  %2032 = vmatpush1.bf16.msra.mxu1 %v3976_v53 }
 0xdd3   : > { %2033 = vmatprep.subr.bf16.mxu1 %v3981_v54 }
 0xdd6   : > { %2034 = vmatpush1.bf16.msra.mxu1 %v3979_v18 }
 0xdd7   : > { %2035 = vmatprep.subr.bf16.mxu1 %v3984_v55 }
 0xdda   : > { %2036 = vmatpush1.bf16.msra.mxu1 %v3982_v19 }
 0xddb   : > { %2037 = vmatprep.subr.bf16.mxu1 %v3987_v57 }
 0xdde   : > { %2038 = vmatpush1.bf16.msra.mxu1 %v3985_v56 }
 0xddf   : > { %3780 = vmatprep.subr.bf16.mxu1 %v4219_v0 }
 0xea4   : > { %v1734_v10 = vpop.f32.mrb[24].mxu1 }
 0xea5   : > { %v1735_v11 = vadd.f32 %v1734_v10, %v1650_v8  ;;  %v1736_v13 = vpop.f32.mrb[25].mxu1 }
 0xea6   : > { %v1737_v14 = vadd.f32 %v1736_v13, %v1654_v9  ;;  %v1738_v15 = vpop.f32.mrb[26].mxu1 }
 0xea7   : > { %v1739_v16 = vadd.f32 %v1738_v15, %v1650_v8  ;;  %v1740_v17 = vpop.f32.mrb[27].mxu1  ;;  %v1743_v38 = vmax.f32 %v1735_v11, 0.0  ;;  %v3477_v15 = vld [vmem:[%s5139_s3 + $0x1] ss:$2 sm:$0x3] }
 0xea8   : > { %v1741_v20 = vadd.f32 %v1740_v17, %v1654_v9  ;;  %v1744_v22 = vmax.f32 %v1737_v14, 0.0  ;;  %v3468_v9 = vld [vmem:[%s5082_s13] ss:$0 sm:$0xff] }
 0xea9   : > { %v1745_v21 = vmax.f32 %v1739_v16, 0.0  ;;  %v1981_v16 = vrot.slane %v3477_v15, %v4473_v24 }
 0xeaa   : > { %v1746_v23 = vmax.f32 %v1741_v20, 0.0  ;;  %v1985_v20 = vrot.slane %v3477_v15, %v4478_v26 }
 0xeab   : > { %v1747_v25 = vpack.c.bf16 %v1745_v21, %v1743_v38 }
 0xeac   : > { %v1748_v3 = vpack.c.bf16 %v1746_v23, %v1744_v22 }
 0xeae   : > { %1914 = vmatprep.mubr.bf16.mxu0 %v1748_v3 }
 0xeaf   : > { %1915 = vmatmul.mubr.bf16.vlgmr.msra.gmra.mrb[32].mxu0 %v1747_v25 }
 0xeb0   : > { %3788 = vmatprep.mubr.msk.bf16.mxu0 %vm4220_vm0, %v4219_v0 }
 0xf82   : > { %v3643_v27 = vpop.f32.mrb[32].mxu0 }
 0xf83   : > { %v3644_v6 = vpop.f32.mrb[33].mxu0 }
 0xf84   : > { %v3645_v29 = vadd.f32 %v3644_v6, %v3643_v27  ;;  %v3646_v30 = vpop.f32.mrb[34].mxu0 }
 0xf85   : > { %v3647_v31 = vpop.f32.mrb[35].mxu0 }
 0xf86   : > { %v1917_v32 = vadd.f32 %v3645_v29, %v3450_v28  ;;  %v3648_v33 = vadd.f32 %v3647_v31, %v3646_v30 }
 0xf88   : > { %v1920_v34 = vadd.f32 %v3648_v33, %v3450_v28  ;;  %v1923_v35 = vadd.f32 %v1917_v32, %v1634_v60 }
 0xf8a   : > { %v1927_v36 = vsel %vm789_vm2, %v1923_v35, 0.0  ;;  %v1924_v39 = vadd.f32 %v1920_v34, %v1635_v61 }
 0xf8b   : > { %1928 = vadd.xlane.f32.xlu1 %v1927_v36 }
 0xf8c   : > { %v1930_v40 = vsel %vm789_vm2, %v1924_v39, 0.0 }
 0xf8f   : > { %1931 = vadd.xlane.f32.xlu1 %v1930_v40 }
0x1018   : > { %v1929_v41 = vpop.xlane.xlu1 %1928 }
0x1019   : > { %v1933_v42 = vmul.f32 0.015625, %v1929_v41 }
0x101b   : > { %v1935_v37 = vsub.f32 %v1923_v35, %v1933_v42 }
0x101c   : > { %v1932_v43 = vpop.xlane.xlu1 %1931 }
0x101d   : > { %v1934_v44 = vmul.f32 0.015625, %v1932_v43  ;;  %v1937_v45 = vmul.f32 %v1935_v37, %v1935_v37 }
0x101f   : > { %v1936_v46 = vsub.f32 %v1924_v39, %v1934_v44  ;;  %v1939_v48 = vsel %vm789_vm2, %v1937_v45, 0.0 }
0x1020   : > { %1940 = vadd.xlane.f32.xlu1 %v1939_v48 }
0x1021   : > { %v1938_v50 = vmul.f32 %v1936_v46, %v1936_v46 }
0x1023   : > { %v1942_v51 = vsel %vm789_vm2, %v1938_v50, 0.0 }
0x1024   : > { %1943 = vadd.xlane.f32.xlu1 %v1942_v51 }
0x10ad   : > { %v1941_v58 = vpop.xlane.xlu1 %1940 }
0x10ae   : > { %v1945_v59 = vmul.f32 0.015625, %v1941_v58 }
0x10b0   : > { %v1947_v60 = vadd.f32 1e-05, %v1945_v59 }
0x10b1   : > { %v1944_v61 = vpop.xlane.xlu1 %1943 }
0x10b2   : > { %4064 = vrsqrt.f32 %v1947_v60  ;;  %v1946_v62 = vmul.f32 0.015625, %v1944_v61 }
0x10b4   : > { %v1948_v63 = vadd.f32 1e-05, %v1946_v62 }
0x10b6   : > { %4066 = vrsqrt.f32 %v1948_v63 }
0x10bc   : > { %v4065_v1 = vpop.eup %4064 }
0x10bd   : > { %v1951_v2 = vmul.f32 %v4065_v1, %v1935_v37 }
0x10bf   : > { %v1957_v7 = vmul.f32 %v3467_v4, %v1951_v2 }
0x10c0   : > { %v4067_v5 = vpop.eup %4066 }
0x10c1   : > { %v1952_v8 = vmul.f32 %v4067_v5, %v1936_v46  ;;  %v4749_v11 = vadd.f32 %v3468_v9, %v1957_v7 }
0x10c3   : > { %v1958_v10 = vmul.f32 %v3467_v4, %v1952_v8 }
0x10c5   : > { %v4751_v13 = vadd.f32 %v3468_v9, %v1958_v10 }
0x10c7   : > { %v1965_v14 = vpack.c.bf16 %v4751_v13, %v4749_v11 }
0x10c9   : > { %3486 = vmatmul.mubr.msk.bf16.vlgmr.msra.gmra.mrb[28].mxu1 %vm789_vm2, %v1965_v14 }
0x10ca   : > { %3782 = vmatprep.mubr.msk.bf16.mxu1 %vm4220_vm0, %v4219_v0 }
0x119c   : > { %v2065_v17 = vpop.f32.mrb[28].mxu1 }
0x119d   : > { %v2067_v38 = vpop.f32.mrb[29].mxu1  ;;  %v2066_v22 = vadd.f32 %v2065_v17, %v1981_v16 }
0x119e   : > { %v2069_v21 = vpop.f32.mrb[30].mxu1  ;;  %v2068_v3 = vadd.f32 %v2067_v38, %v1985_v20 }
0x119f   : > { %v2070_v23 = vadd.f32 %v2069_v21, %v1981_v16  ;;  %v2071_v25 = vpop.f32.mrb[31].mxu1 }
0x11a0   : > { %v2072_v27 = vadd.f32 %v2071_v25, %v1985_v20 }
0x11a1   : > { %v4763_v28 = vpack.c.bf16 %v2070_v23, %v2066_v22 }
0x11a2   : > { %v4765_v6 = vpack.c.bf16 %v2072_v27, %v2068_v3 }
0x11a3   : > { %2199 = vrot.lane.b32.xlu0 %v4763_v28, %s5140_s30  ;;  %2077 = vrot.lane.b32.xlu1 %v4763_v28, %s5141_s1  ;;  %s5146_s30 = smov 80  }
0x11a4   : > { %3787 = vmatpush3.bf16.msra.mxu0 %v4765_v6 }
0x11a5   : > { %3798 = vmatprep.subr.bf16.mxu0 %v4219_v0 }
0x11a7   : > { %2197 = vrot.lane.b32.xlu1 %v4763_v28, %s5142_s24 }
0x1215   : > { %v2078_v29 = vpop.permute.xlu1 %2077  ;;  %v2200_v31 = vpop.permute.xlu0 %2199 }
0x1216   : > { %v2083_v30 = vsel %vm841_vm3, %v2078_v29, 0  ;;  %v2205_v32 = vsel %vm841_vm3, %v2200_v31, 0  ;;  %v3988_v31 = vld [vmem:[%s5074_s5 + $0x20] sm:$0xff]  }
0x1217   : > { %3781 = vmatpush3.bf16.xpose.msra.mxu1 %v2083_v30 }
0x1218   : > { %3792 = vmatprep.subr.bf16.mxu1 %v4219_v0 }
0x1219   : > { %v2198_v33 = vpop.permute.xlu1 %2197 }
0x121e   : > { %3783 = vmatmul.mubr.msk.bf16.vlgmr.msra.gmra.mrb[32].mxu1 %vm841_vm3, %v4763_v28 }
0x121f   : > { %3793 = vmatpush3.bf16.xpose.msra.mxu1 %v2205_v32  ;;  %3794 = vmatprep.mubr.msk.bf16.mxu1 %vm4220_vm0, %v4219_v0  ;;  %v3989_v32 = vld [vmem:[%s5074_s5 + $0x28] sm:$0xff]  }
0x1220   : > { %3804 = vmatprep.subr.bf16.mxu1 %v4219_v0 }
0x1226   : > { %3795 = vmatmul.mubr.msk.bf16.vlgmr.msra.gmra.mrb[36].mxu1 %vm841_vm3, %v2198_v33 }
0x1227   : > { %3806 = vmatprep.mubr.msk.bf16.mxu1 %vm4220_vm0, %v4219_v0  ;;  %3805 = vmatpush3.bf16.msra.mxu1 %v3989_v32 }
0x1228   : > { %3816 = vmatprep.subr.bf16.mxu1 %v4219_v0 }
0x12f1   : > { %v2119_v34 = vpop.f32.mrb[32].mxu1 }
0x12f2   : > { %v2120_v35 = vadd.f32 %v2119_v34, %v4505_v47  ;;  %v3784_v36 = vpop.f32.mrb[33].mxu1 }
0x12f3   : > { %v2122_v39 = vpop.f32.mrb[34].mxu1 }
0x12f4   : > { %v2123_v40 = vadd.f32 %v2122_v39, %v4507_v49  ;;  %v3785_v41 = vpop.f32.mrb[35].mxu1  ;;  %v2126_v42 = vsel %vm841_vm3, %v2120_v35, -inf }
0x12f5   : > { %2127 = vmax.xlane.f32.xlu1 %v2126_v42 }
0x12f6   : > { %v2129_v37 = vsel %vm841_vm3, %v2123_v40, -inf }
0x12f7   : > { %2130 = vmax.xlane.f32.xlu0 %v2129_v37 }
0x12f9   : > { %v2241_v43 = vpop.f32.mrb[36].mxu1 }
0x12fa   : > { %v2242_v44 = vadd.f32 %v2241_v43, %v4505_v47  ;;  %v3796_v45 = vpop.f32.mrb[37].mxu1 }
0x12fb   : > { %v2244_v46 = vpop.f32.mrb[38].mxu1 }
0x12fc   : > { %v2245_v48 = vadd.f32 %v2244_v46, %v4507_v49  ;;  %v3797_v50 = vpop.f32.mrb[39].mxu1  ;;  %v2248_v51 = vsel %vm841_vm3, %v2242_v44, -inf }
0x12fd   : > { %2249 = vmax.xlane.f32.xlu1 %v2248_v51 }
0x12fe   : > { %v2251_v52 = vsel %vm841_vm3, %v2245_v48, -inf }
0x12ff   : > { %2252 = vmax.xlane.f32.xlu0 %v2251_v52 }
0x1382   : > { %v2128_v53 = vpop.xlane.xlu1 %2127 }
0x1383   : > { %v2132_v54 = vsub.f32 %v2120_v35, %v2128_v53 }
0x1384   : > { %v2131_v18 = vpop.xlane.xlu0 %2130 }
0x1385   : > { %v2134_v55 = vmul.f32 1.442695, %v2132_v54  ;;  %v2133_v19 = vsub.f32 %v2123_v40, %v2131_v18 }
0x1387   : > { %4068 = vpow2.f32 %v2134_v55  ;;  %v2136_v56 = vmul.f32 1.442695, %v2133_v19 }
0x1389   : > { %4070 = vpow2.f32 %v2136_v56 }
0x138a   : > { %v2250_v57 = vpop.xlane.xlu1 %2249 }
0x138b   : > { %v2254_v58 = vsub.f32 %v2242_v44, %v2250_v57 }
0x138c   : > { %v2253_v59 = vpop.xlane.xlu0 %2252 }
0x138d   : > { %v2256_v60 = vmul.f32 1.442695, %v2254_v58  ;;  %v2255_v61 = vsub.f32 %v2245_v48, %v2253_v59 }
0x138f   : > { %4072 = vpow2.f32 %v2256_v60  ;;  %v2258_v62 = vmul.f32 1.442695, %v2255_v61 }
0x1391   : > { %v4069_v63 = vpop.eup %4068  ;;  %4074 = vpow2.f32 %v2258_v62 }
0x1392   : > { %v2138_v1 = vsel %vm841_vm3, %v4069_v63, 0.0 }
0x1393   : > { %v4071_v2 = vpop.eup %4070  ;;  %2139 = vadd.xlane.f32.xlu1 %v2138_v1 }
0x1394   : > { %v2141_v4 = vsel %vm841_vm3, %v4071_v2, 0.0 }
0x1395   : > { %2142 = vadd.xlane.f32.xlu0 %v2141_v4 }
0x1399   : > { %v4073_v5 = vpop.eup %4072 }
0x139a   : > { %v2260_v7 = vsel %vm841_vm3, %v4073_v5, 0.0 }
0x139b   : > { %v4075_v8 = vpop.eup %4074  ;;  %2261 = vadd.xlane.f32.xlu1 %v2260_v7 }
0x139c   : > { %v2263_v9 = vsel %vm841_vm3, %v4075_v8, 0.0 }
0x139d   : > { %2264 = vadd.xlane.f32.xlu0 %v2263_v9 }
0x13ac   : > { %2272 = vrot.lane.b32.xlu1 %v4765_v6, %s5142_s24 }
0x13b0   : > { %2423 = vrot.lane.b32.xlu1 %v4763_v28, %s5143_s23 }
0x13b3   : > { %2425 = vrot.lane.b32.xlu0 %v4763_v28, %s5144_s21 }
0x1420   : > { %v2140_v10 = vpop.xlane.xlu1 %2139 }
0x1421   : > { %4076 = vrcp.f32 %v2140_v10 }
0x1422   : > { %v2143_v14 = vpop.xlane.xlu0 %2142 }
0x1423   : > { %4078 = vrcp.f32 %v2143_v14 }
0x1428   : > { %v2262_v15 = vpop.xlane.xlu1 %2261 }
0x1429   : > { %4080 = vrcp.f32 %v2262_v15 }
0x142a   : > { %v2265_v16 = vpop.xlane.xlu0 %2264 }
0x142b   : > { %v4077_v17 = vpop.eup %4076  ;;  %4082 = vrcp.f32 %v2265_v16 }
0x142c   : > { %v2146_v38 = vmul.f32 %v4077_v17, %v4069_v63  ;;  %v2273_v23 = vpop.permute.xlu1 %2272 }
0x142d   : > { %v4079_v20 = vpop.eup %4078 }
0x142e   : > { %v2147_v21 = vmul.f32 %v4079_v20, %v4071_v2  ;;  %v2426_v42 = vpop.permute.xlu0 %2425 }
0x142f   : > { %v2431_v45 = vsel %vm841_vm3, %v2426_v42, 0 }
0x1430   : > { %v2148_v22 = vpack.c.bf16 %v2147_v21, %v2146_v38  ;;  %v2424_v46 = vpop.permute.xlu1 %2423 }
0x1432   : > { %3789 = vmatmul.mubr.msk.bf16.vlgmr.msra.gmra.mrb[36].mxu0 %vm841_vm3, %v2148_v22 }
0x1433   : > { %v4081_v25 = vpop.eup %4080  ;;  %3799 = vmatpush3.bf16.msra.mxu0 %v2273_v23  ;;  %3800 = vmatprep.mubr.msk.bf16.mxu0 %vm4220_vm0, %v4219_v0 }
0x1434   : > { %3810 = vmatprep.subr.bf16.mxu0 %v4219_v0  ;;  %v2268_v27 = vmul.f32 %v4081_v25, %v4073_v5 }
0x1435   : > { %v4083_v3 = vpop.eup %4082 }
0x1436   : > { %v2269_v29 = vmul.f32 %v4083_v3, %v4075_v8 }
0x1438   : > { %v2270_v30 = vpack.c.bf16 %v2269_v29, %v2268_v27 }
0x143a   : > { %3801 = vmatmul.mubr.msk.bf16.vlgmr.msra.gmra.mrb[40].mxu0 %vm841_vm3, %v2270_v30  ;;  %v3990_v30 = vld [vmem:[%s5074_s5 + $0x30] sm:$0xff]  }
0x143b   : > { %3812 = vmatprep.mubr.msk.bf16.mxu0 %vm4220_vm0, %v4219_v0  ;;  %3811 = vmatpush3.bf16.msra.mxu0 %v3988_v31 }
0x143c   : > { %3822 = vmatprep.subr.bf16.mxu0 %v4219_v0 }
0x1505   : > { %v2186_v33 = vpop.f32.mrb[36].mxu0 }
0x1506   : > { %v3790_v34 = vpop.f32.mrb[37].mxu0 }
0x1507   : > { %v2189_v35 = vpop.f32.mrb[38].mxu0 }
0x1508   : > { %v2193_v36 = vpack.c.bf16 %v2189_v35, %v2186_v33  ;;  %v3791_v39 = vpop.f32.mrb[39].mxu0 }
0x150a   : > { %3813 = vmatmul.mubr.msk.bf16.vlgmr.msra.gmra.mrb[44].mxu0 %vm841_vm3, %v2193_v36 }
0x150b   : > { %3824 = vmatprep.mubr.msk.bf16.mxu0 %vm4220_vm0, %v4219_v0 }
0x150d   : > { %v2312_v40 = vpop.f32.mrb[40].mxu0 }
0x150e   : > { %v3802_v41 = vpop.f32.mrb[41].mxu0 }
0x150f   : > { %v2315_v37 = vpop.f32.mrb[42].mxu0 }
0x1510   : > { %v2319_v43 = vpack.c.bf16 %v2315_v37, %v2312_v40  ;;  %v3803_v44 = vpop.f32.mrb[43].mxu0 }
0x1512   : > { %3807 = vmatmul.mubr.msk.bf16.vlgmr.msra.gmra.mrb[40].mxu1 %vm841_vm3, %v2319_v43 }
0x1513   : > { %3817 = vmatpush3.bf16.xpose.msra.mxu1 %v2431_v45  ;;  %3818 = vmatprep.mubr.msk.bf16.mxu1 %vm4220_vm0, %v4219_v0 }
0x1514   : > { %3828 = vmatprep.subr.bf16.mxu1 %v4219_v0 }
0x151a   : > { %3819 = vmatmul.mubr.msk.bf16.vlgmr.msra.gmra.mrb[44].mxu1 %vm841_vm3, %v2424_v46 }
0x151b   : > { %3830 = vmatprep.mubr.msk.bf16.mxu1 %vm4220_vm0, %v4219_v0  ;;  %3829 = vmatpush3.bf16.msra.mxu1 %v3990_v30 }
0x151c   : > { %3840 = vmatprep.subr.bf16.mxu1 %v4219_v0 }
0x15dd   : > { %v2416_v48 = vpop.f32.mrb[44].mxu0 }
0x15de   : > { %v3814_v50 = vpop.f32.mrb[45].mxu0 }
0x15df   : > { %v2419_v51 = vpop.f32.mrb[46].mxu0 }
0x15e0   : > { %v3815_v52 = vpop.f32.mrb[47].mxu0 }
0x15e5   : > { %v2366_v53 = vpop.f32.mrb[40].mxu1 }
0x15e6   : > { %v4830_v54 = vadd.f32 %v2416_v48, %v2366_v53  ;;  %v3808_v18 = vpop.f32.mrb[41].mxu1 }
0x15e7   : > { %v2369_v55 = vpop.f32.mrb[42].mxu1 }
0x15e8   : > { %v4832_v19 = vadd.f32 %v2419_v51, %v2369_v55  ;;  %v3809_v56 = vpop.f32.mrb[43].mxu1 }
0x15ed   : > { %v2467_v57 = vpop.f32.mrb[44].mxu1 }
0x15ee   : > { %v2468_v58 = vadd.f32 %v2467_v57, %v4505_v47  ;;  %v3820_v59 = vpop.f32.mrb[45].mxu1 }
0x15ef   : > { %v2470_v60 = vpop.f32.mrb[46].mxu1 }
0x15f0   : > { %v2471_v61 = vadd.f32 %v2470_v60, %v4507_v49  ;;  %v3821_v62 = vpop.f32.mrb[47].mxu1  ;;  %v2474_v63 = vsel %vm841_vm3, %v2468_v58, -inf }
0x15f1   : > { %2475 = vmax.xlane.f32.xlu1 %v2474_v63 }
0x15f2   : > { %v2477_v1 = vsel %vm841_vm3, %v2471_v61, -inf }
0x15f3   : > { %2478 = vmax.xlane.f32.xlu0 %v2477_v1 }
0x167e   : > { %v2476_v2 = vpop.xlane.xlu1 %2475 }
0x167f   : > { %v2480_v4 = vsub.f32 %v2468_v58, %v2476_v2 }
0x1680   : > { %v2479_v5 = vpop.xlane.xlu0 %2478 }
0x1681   : > { %v2482_v7 = vmul.f32 1.442695, %v2480_v4  ;;  %v2481_v8 = vsub.f32 %v2471_v61, %v2479_v5 }
0x1683   : > { %4084 = vpow2.f32 %v2482_v7  ;;  %v2484_v9 = vmul.f32 1.442695, %v2481_v8 }
0x1685   : > { %4086 = vpow2.f32 %v2484_v9 }
0x168d   : > { %v4085_v10 = vpop.eup %4084 }
0x168e   : > { %v2486_v14 = vsel %vm841_vm3, %v4085_v10, 0.0 }
0x168f   : > { %v4087_v15 = vpop.eup %4086  ;;  %2487 = vadd.xlane.f32.xlu0 %v2486_v14 }
0x1690   : > { %v2489_v16 = vsel %vm841_vm3, %v4087_v15, 0.0 }
0x1691   : > { %2490 = vadd.xlane.f32.xlu1 %v2489_v16 }
0x16a2   : > { %2602 = vrot.lane.b32.xlu1 %v4763_v28, %s5145_s27 }
0x16a5   : > { %2497 = vrot.lane.b32.xlu0 %v4765_v6, %s5143_s23  ;;  %s636_s23 = sand.u32 1, %s4206_s22  }
0x16a6   : > { %2600 = vrot.lane.b32.xlu1 %v4763_v28, %s5146_s30  ;;  %s3397_s21 = sshll.u32 %s636_s23, 4  ;;  %s5028_s1 = scalar_lea.sflag [#allocation4], %s636_s23 }
0x16a7   : > { %s638_s25 = scalar_lea.vmem [#allocation5], %s3397_s21  ;;  %s4152_s21 = sshll.u32 %s4230_s2, 4  ;;  %s4153_s21 = int_to_ptr.vmem [resolvable:$false] %s4152_s21 }
0x16a8   : > { %s3317_s0 = sshll.u32 %s638_s25, 4  ;;  %s5026_s0 = int_to_ptr.vmem [resolvable:$true] %s3317_s0 }
0x16a9   : > { %s4148_s24 = scalar_lea.vmem %s5026_s0, 256  ;;  %p4155_p2 = scmp.lt.s32.totalorder %s5026_s0, %s4153_s21 }
0x16aa   : > { %p4149_p6 = scmp.ne.s32.totalorder %s5026_s0, %s4148_s24 }
0x16ac   : > { %p4150_p10 = pnand %p4149_p6, %p5147_p9 }
0x16ae   : > { %p4151_p12 = pneg %p4150_p10 }
0x171c   : > { %v2488_v17 = vpop.xlane.xlu0 %2487 }
0x171d   : > { %4088 = vrcp.f32 %v2488_v17 }
0x171e   : > { %v2491_v20 = vpop.xlane.xlu1 %2490 }
0x171f   : > { %4090 = vrcp.f32 %v2491_v20 }
0x1720   : > { %v2498_v38 = vpop.permute.xlu0 %2497 }
0x1721   : > { %3823 = vmatpush3.bf16.msra.mxu0 %v2498_v38 }
0x1722   : > { %3834 = vmatprep.subr.bf16.mxu0 %v4219_v0  ;;  %v2603_v3 = vpop.permute.xlu1 %2602 }
0x1723   : > { %v2608_v29 = vsel %vm841_vm3, %v2603_v3, 0 }
0x1726   : > { %v2601_v28 = vpop.permute.xlu1 %2600 }
0x1727   : > { %v4089_v21 = vpop.eup %4088 }
0x1728   : > { %v2494_v23 = vmul.f32 %v4089_v21, %v4085_v10 }
0x1729   : > { %v4091_v22 = vpop.eup %4090 }
0x172a   : > { %v2495_v25 = vmul.f32 %v4091_v22, %v4087_v15  ;;  %v3511_v15 = vld [vmem:[%s5075_s6 + $0x1] ss:$0 sm:$0xff] }
0x172c   : > { %v2496_v27 = vpack.c.bf16 %v2495_v25, %v2494_v23 }
0x172e   : > { %3825 = vmatmul.mubr.msk.bf16.vlgmr.msra.gmra.mrb[48].mxu0 %vm841_vm3, %v2496_v27 }
0x172f   : > { %3835 = vmatpush3.bf16.xpose.msra.mxu0 %v2608_v29  ;;  %3836 = vmatprep.mubr.msk.bf16.mxu0 %vm4220_vm0, %v4219_v0 }
0x1730   : > { %3846 = vmatprep.subr.bf16.mxu0 %v4219_v0 }
0x1736   : > { %3837 = vmatmul.mubr.msk.bf16.vlgmr.msra.gmra.mrb[52].mxu0 %vm841_vm3, %v2601_v28 }
0x1737   : > { %3848 = vmatprep.mubr.msk.bf16.mxu0 %vm4220_vm0, %v4219_v0 }
0x1801   : > { %v2537_v31 = vpop.f32.mrb[48].mxu0 }
0x1802   : > { %v3826_v32 = vpop.f32.mrb[49].mxu0 }
0x1803   : > { %v2540_v33 = vpop.f32.mrb[50].mxu0 }
0x1804   : > { %v2544_v34 = vpack.c.bf16 %v2540_v33, %v2537_v31  ;;  %v3827_v35 = vpop.f32.mrb[51].mxu0 }
0x1806   : > { %3831 = vmatmul.mubr.msk.bf16.vlgmr.msra.gmra.mrb[48].mxu1 %vm841_vm3, %v2544_v34 }
0x1807   : > { %3842 = vmatprep.mubr.msk.bf16.mxu1 %vm4220_vm0, %v4219_v0 }
0x1809   : > { %v2644_v36 = vpop.f32.mrb[52].mxu0 }
0x180a   : > { %v2645_v39 = vadd.f32 %v2644_v36, %v4505_v47  ;;  %v3838_v40 = vpop.f32.mrb[53].mxu0 }
0x180b   : > { %v2647_v41 = vpop.f32.mrb[54].mxu0 }
0x180c   : > { %v2648_v42 = vadd.f32 %v2647_v41, %v4507_v49  ;;  %v3839_v37 = vpop.f32.mrb[55].mxu0  ;;  %v2651_v43 = vsel %vm841_vm3, %v2645_v39, -inf }
0x180d   : > { %2652 = vmax.xlane.f32.xlu1 %v2651_v43 }
0x180e   : > { %v2654_v44 = vsel %vm841_vm3, %v2648_v42, -inf }
0x180f   : > { %2655 = vmax.xlane.f32.xlu0 %v2654_v44  ;;  %v3512_v44 = vld [vmem:[%s5077_s8 + $0x1] ss:$0 sm:$0xff] }
0x181e   : > { %2674 = vrot.lane.b32.xlu1 %v4765_v6, %s5146_s30  ;;  %v3991_v6 = vld [vmem:[%s5074_s5 + $0x38] sm:$0xff]   ;;  %s5024_s30 = scalar_lea.hbm %s5089_s20, %s3599_s28  ;;  %s4154_s28 = scalar_lea.vmem %s4153_s21, 512 }
0x181f   : > { %3847 = vmatpush3.bf16.msra.mxu0 %v3991_v6  ;;  %p4156_p3 = scmp.lt.s32.totalorder %s4154_s28, %s4148_s24 }
0x1821   : > { %p4157_p4 = por %p4156_p3, %p4155_p2 }
0x1823   : > { %p4158_p7 = pnand %p4157_p4, %p4151_p12 }
0x189a   : > { %v2653_v45 = vpop.xlane.xlu1 %2652 }
0x189b   : > { %v2657_v46 = vsub.f32 %v2645_v39, %v2653_v45 }
0x189c   : > { %v2656_v48 = vpop.xlane.xlu0 %2655 }
0x189d   : > { %v2659_v50 = vmul.f32 1.442695, %v2657_v46  ;;  %v2658_v51 = vsub.f32 %v2648_v42, %v2656_v48  ;;  %v3513_v46 = vld [vmem:[%s5078_s9 + $0x1] ss:$0 sm:$0xff] }
0x189e   : > { %v2675_v47 = vpop.permute.xlu1 %2674 }
0x189f   : > { %4092 = vpow2.f32 %v2659_v50  ;;  %v2661_v52 = vmul.f32 1.442695, %v2658_v51  ;;  %3841 = vmatpush3.bf16.msra.mxu1 %v2675_v47  ;;  %v3514_v51 = vld [vmem:[%s5076_s7 + $0x1] ss:$0 sm:$0xff] }
0x18a1   : > { %4094 = vpow2.f32 %v2661_v52 }
0x18a9   : > { %v4093_v49 = vpop.eup %4092 }
0x18aa   : > { %v2663_v53 = vsel %vm841_vm3, %v4093_v49, 0.0 }
0x18ab   : > { %v4095_v18 = vpop.eup %4094  ;;  %2664 = vadd.xlane.f32.xlu0 %v2663_v53 }
0x18ac   : > { %v2666_v55 = vsel %vm841_vm3, %v4095_v18, 0.0 }
0x18af   : > { %2667 = vadd.xlane.f32.xlu0 %v2666_v55 }
0x18d9   : > { %v2591_v56 = vpop.f32.mrb[48].mxu1 }
0x18da   : > { %v2598_v57 = vadd.f32 %v2591_v56, %v4830_v54  ;;  %v3832_v58 = vpop.f32.mrb[49].mxu1 }
0x18db   : > { %v2594_v59 = vpop.f32.mrb[50].mxu1 }
0x18dc   : > { %v2599_v60 = vadd.f32 %v2594_v59, %v4832_v19  ;;  %v3833_v61 = vpop.f32.mrb[51].mxu1 }
0x1938   : > { %v2665_v62 = vpop.xlane.xlu0 %2664 }
0x1939   : > { %4096 = vrcp.f32 %v2665_v62 }
0x193c   : > { %v2668_v63 = vpop.xlane.xlu0 %2667 }
0x193d   : > { %4098 = vrcp.f32 %v2668_v63 }
0x1943   : > { %v4097_v1 = vpop.eup %4096 }
0x1944   : > { %v2671_v4 = vmul.f32 %v4097_v1, %v4093_v49 }
0x1947   : > { %v4099_v2 = vpop.eup %4098 }
0x1948   : > { %v2672_v5 = vmul.f32 %v4099_v2, %v4095_v18 }
0x194a   : > { %v2673_v7 = vpack.c.bf16 %v2672_v5, %v2671_v4  ;;  %v3994_v5 = vld [vmem:[%s5083_s14 + $0x44] ss:$8 sps:$4 sm:$0xff]  }
0x194b   : > { %2939 = vmatprep.subr.bf16.mxu1 %v3994_v5 }
0x194c   : > { %3843 = vmatmul.mubr.msk.bf16.vlgmr.msra.gmra.mrb[52].mxu1 %vm841_vm3, %v2673_v7  ;;  %v3992_v7 = vld [vmem:[%s5083_s14 + $0x40] ss:$8 sps:$4 sm:$0xff]  }
0x194d   : > { %2971 = vmatprep.mubr.bf16.mxu1 %v4221_v12  ;;  %2940 = vmatpush1.bf16.msra.mxu1 %v3992_v7 }
0x1a1f   : > { %v2714_v8 = vpop.f32.mrb[52].mxu1 }
0x1a20   : > { %v3844_v54 = vpop.f32.mrb[53].mxu1 }
0x1a21   : > { %v2717_v9 = vpop.f32.mrb[54].mxu1  ;;  %v3995_v54 = vld [vmem:[%s5083_s14 + $0x50] ss:$8 sps:$4 sm:$0xff]  }
0x1a22   : > { %v2721_v10 = vpack.c.bf16 %v2717_v9, %v2714_v8  ;;  %v3845_v14 = vpop.f32.mrb[55].mxu1  ;;  %v3997_v8 = vld [vmem:[%s5083_s14 + $0x54] ss:$8 sps:$4 sm:$0xff]   ;;  %v4000_v9 = vld [vmem:[%s5083_s14 + $0x64] ss:$8 sps:$4 sm:$0xff]  }
0x1a23   : > { %2941 = vmatprep.subr.bf16.mxu1 %v3997_v8  ;;  %v4001_v14 = vld [vmem:[%s5083_s14 + $0x70] ss:$8 sps:$4 sm:$0xff]  }
0x1a24   : > { %3849 = vmatmul.mubr.msk.bf16.vlgmr.msra.gmra.mrb[56].mxu0 %vm841_vm3, %v2721_v10  ;;  %2942 = vmatpush1.bf16.msra.mxu1 %v3995_v54  ;;  %v3998_v10 = vld [vmem:[%s5083_s14 + $0x60] ss:$8 sps:$4 sm:$0xff]  }
0x1a25   : > { %2943 = vmatprep.subr.bf16.mxu1 %v4000_v9 }
0x1a28   : > { %2944 = vmatpush1.bf16.msra.mxu1 %v3998_v10 }
0x1af7   : > { %v2768_v19 = vpop.f32.mrb[56].mxu0 }
0x1af8   : > { %v2775_v16 = vadd.f32 %v2768_v19, %v2598_v57  ;;  %v3850_v17 = vpop.f32.mrb[57].mxu0  ;;  %v4003_v19 = vld [vmem:[%s5083_s14 + $0x74] ss:$8 sps:$4 sm:$0xff]  }
0x1af9   : > { %v2771_v20 = vpop.f32.mrb[58].mxu0  ;;  %2945 = vmatprep.subr.bf16.mxu1 %v4003_v19  ;;  %v4006_v17 = vld [vmem:[%s5085_s16 + $0xc8] sm:$0xff]  }
0x1afa   : > { %v2782_v38 = vadd.f32 %v3511_v15, %v2775_v16  ;;  %v2776_v21 = vadd.f32 %v2771_v20, %v2599_v60  ;;  %v3851_v22 = vpop.f32.mrb[59].mxu0  ;;  %2946 = vmatpush1.bf16.msra.mxu1 %v4001_v14  ;;  %v4005_v16 = vld [vmem:[%s5085_s16 + $0x80] sm:$0xff]   ;;  %v4007_v20 = vld [vmem:[%s5085_s16 + $0x88] sm:$0xff]  }
0x1afb   : > { %3852 = vmatprep.subr.bf16.mxu1 %v4219_v0  ;;  %v4010_v22 = vld [vmem:[%s5085_s16 + $0xd8] sm:$0xff]  }
0x1afc   : > { %v2783_v23 = vadd.f32 %v3511_v15, %v2776_v21  ;;  %v2784_v12 = vadd.f32 %v2782_v38, %v4749_v11  ;;  %v4004_v15 = vld [vmem:[%s5085_s16 + $0xc0] sm:$0xff]   ;;  %v4008_v38 = vld [vmem:[%s5085_s16 + $0xd0] sm:$0xff]  }
0x1afd   : > { %3673 = vmatprep.subr.bf16.mxu0 %v4004_v15  ;;  %v4009_v21 = vld [vmem:[%s5085_s16 + $0x90] sm:$0xff]  }
0x1afe   : > { %v2788_v25 = vsel %vm789_vm2, %v2784_v12, 0.0  ;;  %v2785_v3 = vadd.f32 %v2783_v23, %v4751_v13  ;;  %3674 = vmatpush3.bf16.msra.mxu0 %v4005_v16  ;;  %v4011_v23 = vld [vmem:[%s5085_s16 + $0x98] sm:$0xff]  }
0x1aff   : > { %2789 = vadd.xlane.f32.xlu0 %v2788_v25  ;;  %3675 = vmatprep.subr.bf16.mxu0 %v4006_v17  ;;  %v4013_v25 = vld [vmem:[%s5085_s16 + $0xa0] sm:$0xff]  }
0x1b00   : > { %v2791_v27 = vsel %vm789_vm2, %v2785_v3, 0.0 }
0x1b02   : > { %3676 = vmatpush3.bf16.msra.mxu0 %v4007_v20 }
0x1b03   : > { %2792 = vadd.xlane.f32.xlu0 %v2791_v27  ;;  %3677 = vmatprep.subr.bf16.mxu0 %v4008_v38 }
0x1b06   : > { %3678 = vmatpush3.bf16.msra.mxu0 %v4009_v21 }
0x1b07   : > { %3679 = vmatprep.subr.bf16.mxu0 %v4010_v22 }
0x1b0a   : > { %3680 = vmatpush3.bf16.msra.mxu0 %v4011_v23 }
0x1b8c   : > { %v2790_v29 = vpop.xlane.xlu0 %2789 }
0x1b8d   : > { %v2794_v28 = vmul.f32 0.015625, %v2790_v29 }
0x1b8f   : > { %v2796_v30 = vsub.f32 %v2784_v12, %v2794_v28  ;;  %v4012_v12 = vld [vmem:[%s5085_s16 + $0xe0] sm:$0xff]  }
0x1b90   : > { %v2793_v31 = vpop.xlane.xlu0 %2792  ;;  %3681 = vmatprep.subr.bf16.mxu0 %v4012_v12 }
0x1b91   : > { %v2795_v32 = vmul.f32 0.015625, %v2793_v31  ;;  %v2798_v33 = vmul.f32 %v2796_v30, %v2796_v30  ;;  %3682 = vmatpush3.bf16.msra.mxu0 %v4013_v25 }
0x1b93   : > { %v2797_v34 = vsub.f32 %v2785_v3, %v2795_v32  ;;  %v2800_v35 = vsel %vm789_vm2, %v2798_v33, 0.0  ;;  %v4014_v3 = vld [vmem:[%s5085_s16 + $0xe8] sm:$0xff]  }
0x1b94   : > { %2801 = vadd.xlane.f32.xlu0 %v2800_v35  ;;  %3683 = vmatprep.subr.bf16.mxu0 %v4014_v3  ;;  %v3515_v35 = vld [vmem:[%s5079_s10 + $0x1] ss:$0 sm:$0xff] }
0x1b95   : > { %v2799_v36 = vmul.f32 %v2797_v34, %v2797_v34  ;;  %v4020_v3 = vld [vmem:[%s5087_s18] sm:$0xff]  }
0x1b97   : > { %v2803_v11 = vsel %vm789_vm2, %v2799_v36, 0.0 }
0x1b98   : > { %2804 = vadd.xlane.f32.xlu0 %v2803_v11 }
0x1c21   : > { %v2802_v39 = vpop.xlane.xlu0 %2801 }
0x1c22   : > { %v2806_v13 = vmul.f32 0.015625, %v2802_v39 }
0x1c24   : > { %v2808_v40 = vadd.f32 1e-05, %v2806_v13  ;;  %v3516_v13 = vld [vmem:[%s5080_s11 + $0x1] ss:$0 sm:$0xff] }
0x1c25   : > { %v2805_v41 = vpop.xlane.xlu0 %2804 }
0x1c26   : > { %4100 = vrsqrt.f32 %v2808_v40  ;;  %v2807_v42 = vmul.f32 0.015625, %v2805_v41 }
0x1c28   : > { %v2809_v37 = vadd.f32 1e-05, %v2807_v42 }
0x1c2a   : > { %4102 = vrsqrt.f32 %v2809_v37 }
0x1c30   : > { %v4101_v43 = vpop.eup %4100 }
0x1c31   : > { %v2812_v45 = vmul.f32 %v4101_v43, %v2796_v30  ;;  %v4015_v43 = vld [vmem:[%s5085_s16 + $0xa8] sm:$0xff]  }
0x1c32   : > { %3684 = vmatpush3.bf16.msra.mxu0 %v4015_v43 }
0x1c33   : > { %v2818_v48 = vmul.f32 %v3512_v44, %v2812_v45  ;;  %v4017_v45 = vld [vmem:[%s5085_s16 + $0xb0] sm:$0xff]  }
0x1c34   : > { %v4103_v50 = vpop.eup %4102 }
0x1c35   : > { %v2824_v47 = vadd.f32 %v3513_v46, %v2818_v48  ;;  %v2813_v52 = vmul.f32 %v4103_v50, %v2797_v34  ;;  %v4019_v48 = vld [vmem:[%s5085_s16 + $0xb8] sm:$0xff]   ;;  %v3525_v50 = vld [vmem:[%s5084_s15 + $0x1] ss:$2 sm:$0x3] }
0x1c37   : > { %v2831_v49 = vadd.f32 %v3514_v51, %v2824_v47  ;;  %v2819_v53 = vmul.f32 %v3512_v44, %v2813_v52  ;;  %v4016_v44 = vld [vmem:[%s5085_s16 + $0xf0] sm:$0xff]   ;;  %v2893_v47 = vrot.slane %v3525_v50, %v4478_v26 }
0x1c38   : > { %3685 = vmatprep.subr.bf16.mxu0 %v4016_v44 }
0x1c39   : > { %v2835_v18 = vsel %vm789_vm2, %v2831_v49, 0.0  ;;  %v2825_v55 = vadd.f32 %v3513_v46, %v2819_v53  ;;  %3686 = vmatpush3.bf16.msra.mxu0 %v4017_v45  ;;  %v4018_v46 = vld [vmem:[%s5085_s16 + $0xf8] sm:$0xff]   ;;  %v3586_v45 = vld [vmem:[%s5088_s19] ss:$0 sm:$0xff] }
0x1c3a   : > { %2836 = vadd.xlane.f32.xlu1 %v2835_v18  ;;  %3687 = vmatprep.subr.bf16.mxu0 %v4018_v46 }
0x1c3b   : > { %v2832_v6 = vadd.f32 %v3514_v51, %v2825_v55  ;;  %v2889_v51 = vrot.slane %v3525_v50, %v4473_v24  ;;  %v3567_v24 = vld [vmem:[%s5086_s17 + $0x1] ss:$0 sm:$0xff] }
0x1c3d   : > { %v2838_v56 = vsel %vm789_vm2, %v2832_v6, 0.0  ;;  %3688 = vmatpush3.bf16.msra.mxu0 %v4019_v48 }
0x1c3e   : > { %2839 = vadd.xlane.f32.xlu0 %v2838_v56 }
0x1cc7   : > { %v2837_v57 = vpop.xlane.xlu1 %2836 }
0x1cc8   : > { %v2841_v58 = vmul.f32 0.015625, %v2837_v57 }
0x1cca   : > { %v2843_v59 = vsub.f32 %v2831_v49, %v2841_v58 }
0x1ccb   : > { %v2840_v60 = vpop.xlane.xlu0 %2839 }
0x1ccc   : > { %v2842_v61 = vmul.f32 0.015625, %v2840_v60  ;;  %v2845_v62 = vmul.f32 %v2843_v59, %v2843_v59 }
0x1cce   : > { %v2844_v63 = vsub.f32 %v2832_v6, %v2842_v61  ;;  %v2847_v1 = vsel %vm789_vm2, %v2845_v62, 0.0 }
0x1ccf   : > { %2848 = vadd.xlane.f32.xlu0 %v2847_v1 }
0x1cd0   : > { %v2846_v2 = vmul.f32 %v2844_v63, %v2844_v63 }
0x1cd2   : > { %v2850_v4 = vsel %vm789_vm2, %v2846_v2, 0.0 }
0x1cd3   : > { %2851 = vadd.xlane.f32.xlu0 %v2850_v4 }
0x1d5c   : > { %v2849_v27 = vpop.xlane.xlu0 %2848 }
0x1d5d   : > { %v2853_v29 = vmul.f32 0.015625, %v2849_v27  ;;  %v4021_v27 = vld [vmem:[%s5087_s18 + $0x8] sm:$0xff]  }
0x1d5f   : > { %v2855_v28 = vadd.f32 1e-05, %v2853_v29  ;;  %v4022_v29 = vld [vmem:[%s5087_s18 + $0x10] sm:$0xff]  }
0x1d60   : > { %v2852_v30 = vpop.xlane.xlu0 %2851 }
0x1d61   : > { %4104 = vrsqrt.f32 %v2855_v28  ;;  %v2854_v31 = vmul.f32 0.015625, %v2852_v30  ;;  %v4023_v28 = vld [vmem:[%s5087_s18 + $0x18] sm:$0xff]  }
0x1d63   : > { %v2856_v32 = vadd.f32 1e-05, %v2854_v31 }
0x1d65   : > { %4106 = vrsqrt.f32 %v2856_v32 }
0x1d6b   : > { %v4105_v33 = vpop.eup %4104 }
0x1d6c   : > { %v2859_v34 = vmul.f32 %v4105_v33, %v2843_v59 }
0x1d6e   : > { %v2865_v11 = vmul.f32 %v3515_v35, %v2859_v34 }
0x1d6f   : > { %v4107_v36 = vpop.eup %4106 }
0x1d70   : > { %v2860_v39 = vmul.f32 %v4107_v36, %v2844_v63  ;;  %v2871_v41 = vadd.f32 %v3516_v13, %v2865_v11 }
0x1d72   : > { %v2866_v40 = vmul.f32 %v3515_v35, %v2860_v39  ;;  %v3584_v39 = vld [vmem:[%s5081_s12 + $0x1] ss:$0 sm:$0xff] }
0x1d74   : > { %v2872_v42 = vadd.f32 %v3516_v13, %v2866_v40 }
0x1d76   : > { %v2873_v37 = vpack.c.bf16 %v2872_v42, %v2871_v41 }
0x1d78   : > { %3534 = vmatmul.mubr.msk.bf16.vlgmr.msra.gmra.mrb[56].mxu1 %vm789_vm2, %v2873_v37 }
0x1d79   : > { %3860 = vmatprep.mubr.msk.bf16.mxu1 %vm4220_vm0, %v4219_v0  ;;  %3853 = vmatpush3.bf16.msra.mxu1 %v4020_v3 }
0x1d7a   : > { %3854 = vmatprep.subr.bf16.mxu1 %v4219_v0 }
0x1d7d   : > { %3855 = vmatpush3.bf16.msra.mxu1 %v4021_v27 }
0x1d7e   : > { %3856 = vmatprep.subr.bf16.mxu1 %v4219_v0 }
0x1d81   : > { %3857 = vmatpush3.bf16.msra.mxu1 %v4022_v29 }
0x1d82   : > { %3858 = vmatprep.subr.bf16.mxu1 %v4219_v0  ;;  %v3585_v0 = vld [vmem:[%s5082_s13 + $0x1] ss:$0 sm:$0xff] }
0x1d85   : > { %3859 = vmatpush3.bf16.msra.mxu1 %v4023_v28 }
0x1e4b   : > { %v2973_v52 = vpop.f32.mrb[56].mxu1 }
0x1e4c   : > { %v2974_v49 = vadd.f32 %v2973_v52, %v2889_v51  ;;  %v2975_v53 = vpop.f32.mrb[57].mxu1 }
0x1e4d   : > { %v2976_v18 = vadd.f32 %v2975_v53, %v2893_v47  ;;  %v2977_v55 = vpop.f32.mrb[58].mxu1 }
0x1e4e   : > { %v2978_v6 = vadd.f32 %v2977_v55, %v2889_v51  ;;  %v2979_v56 = vpop.f32.mrb[59].mxu1  ;;  %v2982_v58 = vmax.f32 %v2974_v49, 0.0 }
0x1e4f   : > { %v2980_v57 = vadd.f32 %v2979_v56, %v2893_v47  ;;  %v2983_v60 = vmax.f32 %v2976_v18, 0.0 }
0x1e50   : > { %v2984_v59 = vmax.f32 %v2978_v6, 0.0 }
0x1e51   : > { %v2985_v61 = vmax.f32 %v2980_v57, 0.0 }
0x1e52   : > { %v2986_v62 = vpack.c.bf16 %v2984_v59, %v2982_v58 }
0x1e53   : > { %v2987_v63 = vpack.c.bf16 %v2985_v61, %v2983_v60 }
0x1e55   : > { %3154 = vmatprep.mubr.bf16.mxu0 %v2987_v63 }
0x1e56   : > { %3155 = vmatmul.mubr.bf16.vlgmr.msra.gmra.mrb[60].mxu0 %v2986_v62 }
0x1f29   : > { %v3689_v1 = vpop.f32.mrb[60].mxu0 }
0x1f2a   : > { %v3690_v26 = vpop.f32.mrb[61].mxu0 }
0x1f2b   : > { %v3691_v2 = vadd.f32 %v3690_v26, %v3689_v1  ;;  %v3692_v4 = vpop.f32.mrb[62].mxu0 }
0x1f2c   : > { %v3693_v5 = vpop.f32.mrb[63].mxu0 }
0x1f2d   : > { %v3157_v7 = vadd.f32 %v3691_v2, %v3567_v24  ;;  %v3694_v8 = vadd.f32 %v3693_v5, %v3692_v4 }
0x1f2f   : > { %v3160_v54 = vadd.f32 %v3694_v8, %v3567_v24  ;;  %v3163_v9 = vadd.f32 %v3157_v7, %v2871_v41 }
0x1f31   : > { %v3167_v10 = vsel %vm789_vm2, %v3163_v9, 0.0  ;;  %v3164_v14 = vadd.f32 %v3160_v54, %v2872_v42 }
0x1f32   : > { %3168 = vadd.xlane.f32.xlu0 %v3167_v10 }
0x1f33   : > { %v3170_v19 = vsel %vm789_vm2, %v3164_v14, 0.0 }
0x1f36   : > { %3171 = vadd.xlane.f32.xlu0 %v3170_v19 }
0x1fbf   : > { %v3169_v15 = vpop.xlane.xlu0 %3168 }
0x1fc0   : > { %v3173_v16 = vmul.f32 0.015625, %v3169_v15 }
0x1fc2   : > { %v3175_v17 = vsub.f32 %v3163_v9, %v3173_v16 }
0x1fc3   : > { %v3172_v20 = vpop.xlane.xlu0 %3171 }
0x1fc4   : > { %v3174_v38 = vmul.f32 0.015625, %v3172_v20  ;;  %v3177_v21 = vmul.f32 %v3175_v17, %v3175_v17 }
0x1fc6   : > { %v3176_v22 = vsub.f32 %v3164_v14, %v3174_v38  ;;  %v3179_v23 = vsel %vm789_vm2, %v3177_v21, 0.0 }
0x1fc7   : > { %3180 = vadd.xlane.f32.xlu0 %v3179_v23 }
0x1fc8   : > { %v3178_v12 = vmul.f32 %v3176_v22, %v3176_v22 }
0x1fca   : > { %v3182_v25 = vsel %vm789_vm2, %v3178_v12, 0.0 }
0x1fcb   : > { %3183 = vadd.xlane.f32.xlu0 %v3182_v25 }
0x2054   : > { %v3181_v30 = vpop.xlane.xlu0 %3180 }
0x2055   : > { %v3185_v31 = vmul.f32 0.015625, %v3181_v30 }
0x2057   : > { %v3187_v32 = vadd.f32 1e-05, %v3185_v31 }
0x2058   : > { %v3184_v33 = vpop.xlane.xlu0 %3183 }
0x2059   : > { %4108 = vrsqrt.f32 %v3187_v32  ;;  %v3186_v34 = vmul.f32 0.015625, %v3184_v33 }
0x205b   : > { %v3188_v35 = vadd.f32 1e-05, %v3186_v34 }
0x205d   : > { %4110 = vrsqrt.f32 %v3188_v35 }
0x2063   : > { %v4109_v36 = vpop.eup %4108 }
0x2064   : > { %v3191_v11 = vmul.f32 %v4109_v36, %v3175_v17 }
0x2066   : > { %v3197_v40 = vmul.f32 %v3584_v39, %v3191_v11 }
0x2067   : > { %v4111_v13 = vpop.eup %4110 }
0x2068   : > { %v3192_v41 = vmul.f32 %v4111_v13, %v3176_v22  ;;  %v3203_v37 = vadd.f32 %v3585_v0, %v3197_v40 }
0x206a   : > { %v3198_v42 = vmul.f32 %v3584_v39, %v3192_v41 }
0x206c   : > { %v3204_v43 = vadd.f32 %v3585_v0, %v3198_v42 }
0x206e   : > { %v3205_v44 = vpack.c.bf16 %v3204_v43, %v3203_v37 }
0x2070   : > { %3861 = vmatmul.mubr.msk.bf16.vlgmr.msra.gmra.mrb[60].mxu1 %vm789_vm2, %v3205_v44 }
0x2143   : > { %v3282_v46 = vpop.f32.mrb[60].mxu1 }
0x2144   : > { %v3283_v48 = vadd.f32 %v3586_v45, %v3282_v46  ;;  %v3862_v50 = vpop.f32.mrb[61].mxu1 }
0x2145   : > { %v3285_v51 = vpop.f32.mrb[62].mxu1 }
0x2146   : > { %v3592_v47 = vmul.f32 -1.442695, %v3283_v48  ;;  %v3286_v52 = vadd.f32 %v3586_v45, %v3285_v51  ;;  %v3863_v49 = vpop.f32.mrb[63].mxu1 }
0x2148   : > { %4112 = vpow2.f32 %v3592_v47  ;;  %v3593_v53 = vmul.f32 -1.442695, %v3286_v52 }
0x214a   : > { %4114 = vpow2.f32 %v3593_v53 }
0x2152   : > { %v4113_v18 = vpop.eup %4112 }
0x2153   : > { %v3295_v55 = vadd.f32 1.0, %v4113_v18 }
0x2154   : > { %v4115_v6 = vpop.eup %4114 }
0x2155   : > { %4116 = vrcp.f32 %v3295_v55  ;;  %v3296_v56 = vadd.f32 1.0, %v4115_v6 }
0x2157   : > { %4118 = vrcp.f32 %v3296_v56 }
0x215f   : > { %v4117_v57 = vpop.eup %4116 }
0x2160   : > { %3301 = vst [vmem:[%s638_s25] sm:$0xff] %v4117_v57 }
0x2161   : > { %v4119_v58 = vpop.eup %4118 }
0x2162   : > { %3302 = vst [vmem:[%s638_s25 + $0x8] sm:$0xff] %v4119_v58 }
0x2163   : > { %4161 = shalt.err (!%p4158_p7)
}
0x2164   : > { %s4162_s23 = scalar_lea.hbm %s5024_s30, 256  ;;  %s4166_s27 = scalar_lea.hbm %s5089_s20, 512 }
0x2165   : > { %p4163_p8 = scmp.ne.s32.totalorder %s5024_s30, %s4162_s23  ;;  %p4167_p1 = scmp.lt.u32.totalorder %s5024_s30, %s5089_s20 }
0x2166   : > { %p4168_p0 = scmp.lt.u32.totalorder %s4166_s27, %s4162_s23  ;;  %p4170_p6 = scmp.lt.u32.totalorder %s4162_s23, %s5024_s30 }
0x2167   : > { %p4164_p11 = pnand %p4163_p8, %p5147_p9 }
0x2168   : > { %p4169_p5 = por %p4168_p0, %p4167_p1 }
0x2169   : > { %p4165_p13 = pneg %p4164_p11 }
0x216a   : > { %p4171_p10 = por %p4170_p6, %p4169_p5 }
0x216c   : > { %p4172_p12 = pnand %p4171_p10, %p4165_p13 }
0x216e   : > { %4175 = shalt.err (!%p4172_p12)
}
0x216f   : > { %s4231_s24 = smov 128   ;;  %s4232_s28 = smov 8  }
0x2170   : > { %3868 = dma.vmem_to_hbm [thread:$0]  (%p5147_p9), %s5026_s0, 256, %s5024_s30, %s5028_s1, %s4231_s24, %s4231_s24, %s4232_s28  }
0x2171 PF: > { %s5148_s25 = sld [smem:[#allocation10_spill]]  ;;  %s5149_s26 = sld [smem:[#allocation8_spill]] }
0x2172   : > { %s5150_s3 = sld [smem:[#allocation13_spill]] }
0x2177   : > { %p3880_p2 = scmp.ge.s32.totalorder %s5148_s25, 2  ;;  %s3332_s2 = sand.u32 1, %s5149_s26  }
0x2178   : > { %p5151_p3 = scmp.ne.s32.totalorder %s5150_s3, 0  ;;  %s3333_s23 = scalar_lea.sflag [#allocation4], %s3332_s2 }
0x217a   : > { %p3875_p4 = pnand %p3880_p2, %p5151_p3 }
0x217c   : > { %4197 = dma.done.wait (!%p3875_p4), %s3333_s23, 256  }
0x217d   : > { %4199 = vsyncadd (!%p3875_p4), %s3333_s23, 4294967040  ;;  %s5152_s24 = sld [smem:[#allocation11_spill]]  ;;  %s5153_s27 = sld [smem:[#allocation9_spill]] }
0x217e   : > { %s5154_s23 = sld [smem:[#allocation12_spill]]  ;;  %s5155_s1 = smov %s4206_s22 }
0x2183   : > { %p31_p7 = scmp.ge.s32.totalorder %s5152_s24, 4   ;;  %s5156_s22 = smov %s5153_s27 }
0x2185   :  { %33 = sbr.rel (!%p31_p7) target bundleno = 10 (0xa), region = 152 }
0x218c   :  { %3338 = vsyncpa [#allocation3], 1 }
0x218d   :  { %3340 = vsyncpa [#allocation3 + $0x1], 1 }
0x218e   :  { %3341 = vsyncpa [#allocation4], 1 }
0x218f   :  { %3343 = vsyncpa [#allocation4 + $0x1], 1 }

</bundles_post_ra>
